<compile_context>
chip_gen: v7x
topology: tpu7x:2x2x1
jax: 0.10.0
libtpu: 0.0.40
codegen_flags: <defaults>
</compile_context>

<pallas_src>
import numpy as np
import jax
import jax.numpy as jnp
from jax import lax
from jax.experimental import pallas as pl
from jax.experimental.pallas import tpu as pltpu

# ---------------- configuration ----------------
C = 4            # inchannel
MK = 5           # mksize (MFRAT directional kernel size)
BK = 9           # bksize (mean-blur kernel size)
ANGLE0 = 45
NORM = True
DIRECTIONS = (180 // ANGLE0) * (2 if NORM else 1)   # = 8
D = DIRECTIONS
PM = MK // 2     # 2
PB = BK // 2     # 4
MID = False      # image_diff = blur(image) - image

B, H, W = 2, 16, 16
NP = B * C                  # 8 planes, all handled in one kernel invocation

# ---- lane-packed layout -----------------------------------------------------
# Each plane owns a 32-lane stripe.  Inside a stripe the blur-padded image
# (W + 2*PB = 24 cols) sits at stripe cols [LPAD, LPAD+24) = [2, 26); the extra
# LPAD = PM = 2 zero columns on the left double as the left zero-padding of the
# 5x5 directional conv, so every shifted window is a plain non-negative slice.
STRIDE = 32
LPAD = PM                   # 2
HPB = H + 2 * PB            # 24 padded rows
OUTW = NP * STRIDE          # 256-lane output slab (lane dense)
WMID = OUTW + 16            # 272: intermediate width, >= OUTW + MK - 1
PACKW = 384                 # packed input width, >= WMID + BK - 1, multiple of 128

assert LPAD + (W + 2 * PB) <= STRIDE
assert WMID >= OUTW + MK - 1
assert PACKW >= WMID + BK - 1 and PACKW % 128 == 0


def make_mfrat_bank(ksize: int, ndirs: int) -> np.ndarray:
    """Deterministic gaussian-weighted directional line filters (zero-mean)."""
    r = ksize // 2
    ys, xs = np.meshgrid(np.arange(-r, r + 1, dtype=np.float64),
                         np.arange(-r, r + 1, dtype=np.float64), indexing="ij")
    sigma = max(0.5 * r, 0.5)
    bank = np.zeros((ndirs, ksize, ksize), np.float64)
    for d in range(ndirs):
        theta = np.pi * d / ndirs
        dist = np.abs(xs * np.sin(theta) - ys * np.cos(theta))
        wgt = np.exp(-(dist ** 2) / (2.0 * sigma ** 2))
        wgt = wgt / wgt.sum()
        wgt = wgt - wgt.mean()        # zero-mean: responds to line structure
        bank[d] = wgt
    return bank.astype(np.float32)


# Fixed, non-learned bank; identical for every channel -> compile-time constants.
W_BANK = make_mfrat_bank(MK, D)       # (D, MK, MK)


def _make_symmetric_groups(bank: np.ndarray):
    """Group kernel taps into point-symmetric pairs sharing identical weights.

    For gaussian line filters w[d, u, v] == w[d, K-1-u, K-1-v]; the paired
    windows can be pre-summed so each direction needs one FMA per group
    (13 instead of 25 for a 5x5 kernel).  Verified numerically; falls back to
    singleton groups if the symmetry ever fails.
    """
    k = bank.shape[-1]
    groups = []
    seen = set()
    for u in range(k):
        for v in range(k):
            if (u, v) in seen:
                continue
            pu, pv = k - 1 - u, k - 1 - v
            if ((pu, pv) != (u, v) and (pu, pv) not in seen and
                    np.allclose(bank[:, u, v], bank[:, pu, pv],
                                rtol=1e-6, atol=1e-9)):
                wvec = 0.5 * (bank[:, u, v].astype(np.float64) +
                              bank[:, pu, pv].astype(np.float64))
                groups.append((((u, v), (pu, pv)), wvec))
                seen.add((u, v)); seen.add((pu, pv))
            else:
                groups.append((((u, v),), bank[:, u, v].astype(np.float64)))
                seen.add((u, v))
    return groups


GROUPS = _make_symmetric_groups(W_BANK)   # 13 groups for a symmetric 5x5 bank


def mfrat_kernel(img_ref, val_ref, arg_ref):
    # img_ref: (HPB, PACKW) packed, zero-padded planes (one 32-lane stripe each)
    # val_ref / arg_ref: (H, OUTW) lane-dense output slabs
    img = img_ref[...]                                   # (24, 384) f32

    # --- separable 9x9 mean blur (zero 'same' padding baked into the packing).
    #     Box sums via doubling tree: windows 2 -> 4 -> 8 -> 9 (4 adds per axis).
    s1 = img[:, 0:WMID + 7] + img[:, 1:WMID + 8]         # win 2
    s2 = s1[:, 0:WMID + 5] + s1[:, 2:WMID + 7]           # win 4
    s4 = s2[:, 0:WMID] + s2[:, 4:WMID + 4]               # win 8
    hsum = s4 + img[:, 8:WMID + 8]                       # win 9, (HPB, WMID)

    t1 = hsum[0:H + 7, :] + hsum[1:H + 8, :]             # win 2 (rows)
    t2 = t1[0:H + 5, :] + t1[2:H + 7, :]                 # win 4
    t4 = t2[0:H, :] + t2[4:H + 4, :]                     # win 8
    blur = (t4 + hsum[8:8 + H, :]) * (1.0 / (BK * BK))   # win 9, (H, WMID)

    center = img[PB:PB + H, PB:PB + WMID]                # (H, WMID) original image
    diff = (center - blur) if MID else (blur - center)   # MID=False -> blur - image

    # Zero all lanes outside each stripe's 16 true data columns so they act as
    # the zero padding of the 5x5 directional conv (no VMEM scratch needed).
    col = lax.broadcasted_iota(jnp.int32, (H, WMID), 1)
    scol = jnp.bitwise_and(col, STRIDE - 1)              # column within stripe
    keep = jnp.logical_and(scol >= LPAD, scol < LPAD + W)
    diffm = jnp.where(keep, diff, 0.0)

    # Row zero-padding for the 5x5 conv, kept in registers via a sublane concat.
    zrows = jnp.zeros((PM, WMID), jnp.float32)
    dpad = jnp.concatenate([zrows, diffm, zrows], axis=0)   # (H + 2*PM, WMID)

    # 5 column-shifted views shared by every row offset (5 lane shifts total,
    # the remaining 25 window slices are cheap sublane slices).
    cshift = [dpad[:, v:v + OUTW] for v in range(MK)]       # 5 x (H+2*PM, OUTW)

    # --- directional filter bank: point-symmetric taps pre-summed, then shared
    #     by all 8 directions; weights are compile-time float immediates ---
    resp = [None] * D
    for positions, wvec in GROUPS:
        u0, v0 = positions[0]
        shared = cshift[v0][u0:u0 + H, :]                # (H, OUTW)
        for (u, v) in positions[1:]:
            shared = shared + cshift[v][u:u + H, :]
        for d in range(D):
            w = float(wvec[d])
            if w == 0.0:
                continue
            term = w * shared
            resp[d] = term if resp[d] is None else resp[d] + term
    resp = [r if r is not None else jnp.zeros((H, OUTW), jnp.float32)
            for r in resp]

    # --- max / argmax over directions (first-max on ties, like jnp.argmax) ---
    best_val = resp[0]
    best_arg = jnp.zeros((H, OUTW), jnp.float32)
    for d in range(1, D):
        take = resp[d] > best_val
        best_arg = jnp.where(take, jnp.float32(d), best_arg)
        best_val = jnp.where(take, resp[d], best_val)

    val_ref[...] = best_val
    arg_ref[...] = best_arg * (1.0 / DIRECTIONS)


def _pack(image: jnp.ndarray) -> jnp.ndarray:
    """(B, C, H, W) -> (HPB, PACKW) lane-packed, zero-padded planes."""
    planes = image.reshape(NP, H, W)
    planes = jnp.pad(planes, ((0, 0), (PB, PB), (PB, PB)))            # (NP, 24, 24)
    planes = jnp.pad(planes, ((0, 0), (0, 0),
                              (LPAD, STRIDE - (W + 2 * PB) - LPAD)))  # (NP, 24, 32)
    packed = planes.transpose(1, 0, 2).reshape(HPB, NP * STRIDE)      # (24, 256)
    return jnp.pad(packed, ((0, 0), (0, PACKW - NP * STRIDE)))        # (24, 384)


def _unpack(slab: jnp.ndarray) -> jnp.ndarray:
    """(H, OUTW) lane-packed slab -> (B, C, H, W)."""
    out = slab.reshape(H, NP, STRIDE)[:, :, :W]                       # (H, NP, W)
    return out.transpose(1, 0, 2).reshape(B, C, H, W)


def mfrat_forward(image: jnp.ndarray) -> jnp.ndarray:
    """image: (B, C, H, W) f32 -> (B, 2C, H, W) f32 (value_max ++ arg_max/D)."""
    packed = _pack(image)
    # Single grid step (whole problem is ~100 KiB and latency-bound); one DMA in,
    # two lane-dense DMAs out.
    val, arg = pl.pallas_call(
        mfrat_kernel,
        grid=(1,),
        in_specs=[pl.BlockSpec((HPB, PACKW), lambda i: (0, 0))],
        out_specs=[pl.BlockSpec((H, OUTW), lambda i: (0, 0)),
                   pl.BlockSpec((H, OUTW), lambda i: (0, 0))],
        out_shape=[jax.ShapeDtypeStruct((H, OUTW), jnp.float32),
                   jax.ShapeDtypeStruct((H, OUTW), jnp.float32)],
        compiler_params=pltpu.CompilerParams(
            dimension_semantics=("arbitrary",)),
    )(packed)
    # use_arg=True: concat (value_max, arg_max / directions) along channel dim
    return jnp.concatenate([_unpack(val), _unpack(arg)], axis=1)


def mfrat_reference(image: jnp.ndarray, bank: jnp.ndarray) -> jnp.ndarray:
    """Plain-JAX reference mirroring the PyTorch forward."""
    blur_w = jnp.full((C, 1, BK, BK), 1.0 / (BK * BK), jnp.float32)
    blur = lax.conv_general_dilated(
        image, blur_w, (1, 1), [(PB, PB), (PB, PB)],
        dimension_numbers=("NCHW", "OIHW", "NCHW"), feature_group_count=C)
    diff = (image - blur) if MID else (blur - image)
    w = bank.reshape(C * D, 1, MK, MK)
    resp = lax.conv_general_dilated(
        diff, w, (1, 1), [(PM, PM), (PM, PM)],
        dimension_numbers=("NCHW", "OIHW", "NCHW"), feature_group_count=C)
    resp = resp.reshape(B, C, D, H, W)
    val = jnp.max(resp, axis=2)
    arg = jnp.argmax(resp, axis=2).astype(val.dtype) / DIRECTIONS
    return jnp.concatenate([val, arg], axis=1)


if __name__ == "__main__":
    key = jax.random.PRNGKey(0)
    image = jax.random.normal(key, (B, C, H, W), dtype=jnp.float32)

    out = jax.jit(mfrat_forward)(image)
    out = jax.block_until_ready(out)

    bank_c = jnp.asarray(np.broadcast_to(W_BANK, (C, D, MK, MK)).copy())
    ref = mfrat_reference(image, bank_c)

    assert out.shape == (B, 2 * C, H, W)
    val_ok = np.allclose(np.asarray(out[:, :C]), np.asarray(ref[:, :C]),
                         atol=1e-4, rtol=1e-4)
    arg_match = float(np.mean(np.asarray(out[:, C:]) == np.asarray(ref[:, C:])))
    assert val_ok, "value_max mismatch vs reference"
    assert arg_match > 0.99, f"arg_max mismatch fraction {1 - arg_match:.4f}"
    print("KERNEL_OK")
</pallas_src>

<mosaic_0001>
module attributes {stable_mosaic.version = 11 : i64} {
  func.func @mfrat_kernel(%arg0: i32, %arg1: memref<24x384xf32, #tpu.memory_space<vmem>>, %arg2: memref<16x256xf32, #tpu.memory_space<vmem>>, %arg3: memref<16x256xf32, #tpu.memory_space<vmem>>) attributes {dimension_semantics = [#tpu.dimension_semantics<arbitrary>], iteration_bounds = array<i64: 1>, scalar_prefetch = 0 : i64, scratch_operands = 0 : i64, tpu.core_type = #tpu.core_type<tc>, window_params = [{pipeline_mode = #tpu.pipeline_mode<synchronous>, transform_indices = @transform_0, window_bounds = array<i64: 24, 384>}, {pipeline_mode = #tpu.pipeline_mode<synchronous>, transform_indices = @transform_1, window_bounds = array<i64: 16, 256>}, {pipeline_mode = #tpu.pipeline_mode<synchronous>, transform_indices = @transform_2, window_bounds = array<i64: 16, 256>}]} {
    %c0 = arith.constant 0 : index
    %c0_0 = arith.constant 0 : index
    %0 = vector.load %arg1[%c0, %c0_0] : memref<24x384xf32, #tpu.memory_space<vmem>>, vector<24x384xf32>
    %1 = vector.extract_strided_slice %0 {offsets = [0, 0], sizes = [24, 279], strides = [1, 1]} : vector<24x384xf32> to vector<24x279xf32>
    %2 = vector.extract_strided_slice %0 {offsets = [0, 1], sizes = [24, 279], strides = [1, 1]} : vector<24x384xf32> to vector<24x279xf32>
    %3 = arith.addf %1, %2 : vector<24x279xf32>
    %4 = vector.extract_strided_slice %3 {offsets = [0, 0], sizes = [24, 277], strides = [1, 1]} : vector<24x279xf32> to vector<24x277xf32>
    %5 = vector.extract_strided_slice %3 {offsets = [0, 2], sizes = [24, 277], strides = [1, 1]} : vector<24x279xf32> to vector<24x277xf32>
    %6 = arith.addf %4, %5 : vector<24x277xf32>
    %7 = vector.extract_strided_slice %6 {offsets = [0, 0], sizes = [24, 272], strides = [1, 1]} : vector<24x277xf32> to vector<24x272xf32>
    %8 = vector.extract_strided_slice %6 {offsets = [0, 4], sizes = [24, 272], strides = [1, 1]} : vector<24x277xf32> to vector<24x272xf32>
    %9 = arith.addf %7, %8 : vector<24x272xf32>
    %10 = vector.extract_strided_slice %0 {offsets = [0, 8], sizes = [24, 272], strides = [1, 1]} : vector<24x384xf32> to vector<24x272xf32>
    %11 = arith.addf %9, %10 : vector<24x272xf32>
    %12 = vector.extract_strided_slice %11 {offsets = [0, 0], sizes = [23, 272], strides = [1, 1]} : vector<24x272xf32> to vector<23x272xf32>
    %13 = vector.extract_strided_slice %11 {offsets = [1, 0], sizes = [23, 272], strides = [1, 1]} : vector<24x272xf32> to vector<23x272xf32>
    %14 = arith.addf %12, %13 : vector<23x272xf32>
    %15 = vector.extract_strided_slice %14 {offsets = [0, 0], sizes = [21, 272], strides = [1, 1]} : vector<23x272xf32> to vector<21x272xf32>
    %16 = vector.extract_strided_slice %14 {offsets = [2, 0], sizes = [21, 272], strides = [1, 1]} : vector<23x272xf32> to vector<21x272xf32>
    %17 = arith.addf %15, %16 : vector<21x272xf32>
    %18 = vector.extract_strided_slice %17 {offsets = [0, 0], sizes = [16, 272], strides = [1, 1]} : vector<21x272xf32> to vector<16x272xf32>
    %19 = vector.extract_strided_slice %17 {offsets = [4, 0], sizes = [16, 272], strides = [1, 1]} : vector<21x272xf32> to vector<16x272xf32>
    %20 = arith.addf %18, %19 : vector<16x272xf32>
    %21 = vector.extract_strided_slice %11 {offsets = [8, 0], sizes = [16, 272], strides = [1, 1]} : vector<24x272xf32> to vector<16x272xf32>
    %22 = arith.addf %20, %21 : vector<16x272xf32>
    %cst = arith.constant 0.0123456791 : f32
    %23 = vector.broadcast %cst : f32 to vector<16x272xf32>
    %24 = arith.mulf %22, %23 : vector<16x272xf32>
    %25 = vector.extract_strided_slice %0 {offsets = [4, 4], sizes = [16, 272], strides = [1, 1]} : vector<24x384xf32> to vector<16x272xf32>
    %26 = arith.subf %24, %25 : vector<16x272xf32>
    %27 = tpu.iota {dimensions = array<i32: 1>} : vector<16x272xi32>
    %c31_i32 = arith.constant 31 : i32
    %28 = vector.broadcast %c31_i32 : i32 to vector<16x272xi32>
    %29 = arith.andi %27, %28 : vector<16x272xi32>
    %c2_i32 = arith.constant 2 : i32
    %30 = vector.broadcast %c2_i32 : i32 to vector<16x272xi32>
    %31 = arith.cmpi sge, %29, %30 : vector<16x272xi32>
    %c18_i32 = arith.constant 18 : i32
    %32 = vector.broadcast %c18_i32 : i32 to vector<16x272xi32>
    %33 = arith.cmpi slt, %29, %32 : vector<16x272xi32>
    %34 = arith.andi %31, %33 : vector<16x272xi1>
    %cst_1 = arith.constant 0.000000e+00 : f32
    %35 = vector.broadcast %cst_1 : f32 to vector<16x272xf32>
    %36 = arith.select %34, %26, %35 : vector<16x272xi1>, vector<16x272xf32>
    %cst_2 = arith.constant 0.000000e+00 : f32
    %37 = vector.broadcast %cst_2 : f32 to vector<2x272xf32>
    %38 = tpu.concatenate %37, %36, %37 in 0 : vector<2x272xf32>, vector<16x272xf32>, vector<2x272xf32> -> vector<20x272xf32>
    %39 = vector.extract_strided_slice %38 {offsets = [0, 0], sizes = [20, 256], strides = [1, 1]} : vector<20x272xf32> to vector<20x256xf32>
    %40 = vector.extract_strided_slice %38 {offsets = [0, 1], sizes = [20, 256], strides = [1, 1]} : vector<20x272xf32> to vector<20x256xf32>
    %41 = vector.extract_strided_slice %38 {offsets = [0, 2], sizes = [20, 256], strides = [1, 1]} : vector<20x272xf32> to vector<20x256xf32>
    %42 = vector.extract_strided_slice %38 {offsets = [0, 3], sizes = [20, 256], strides = [1, 1]} : vector<20x272xf32> to vector<20x256xf32>
    %43 = vector.extract_strided_slice %38 {offsets = [0, 4], sizes = [20, 256], strides = [1, 1]} : vector<20x272xf32> to vector<20x256xf32>
    %44 = vector.extract_strided_slice %39 {offsets = [0, 0], sizes = [16, 256], strides = [1, 1]} : vector<20x256xf32> to vector<16x256xf32>
    %45 = vector.extract_strided_slice %43 {offsets = [4, 0], sizes = [16, 256], strides = [1, 1]} : vector<20x256xf32> to vector<16x256xf32>
    %46 = arith.addf %44, %45 : vector<16x256xf32>
    %cst_3 = arith.constant -0.029102264 : f32
    %47 = vector.broadcast %cst_3 : f32 to vector<16x256xf32>
    %48 = arith.mulf %47, %46 : vector<16x256xf32>
    %cst_4 = arith.constant 0.00254986342 : f32
    %49 = vector.broadcast %cst_4 : f32 to vector<16x256xf32>
    %50 = arith.mulf %49, %46 : vector<16x256xf32>
    %cst_5 = arith.constant 0.0319636166 : f32
    %51 = vector.broadcast %cst_5 : f32 to vector<16x256xf32>
    %52 = arith.mulf %51, %46 : vector<16x256xf32>
    %cst_6 = arith.constant 0.00254986342 : f32
    %53 = vector.broadcast %cst_6 : f32 to vector<16x256xf32>
    %54 = arith.mulf %53, %46 : vector<16x256xf32>
    %cst_7 = arith.constant -0.029102264 : f32
    %55 = vector.broadcast %cst_7 : f32 to vector<16x256xf32>
    %56 = arith.mulf %55, %46 : vector<16x256xf32>
    %cst_8 = arith.constant -0.0374850594 : f32
    %57 = vector.broadcast %cst_8 : f32 to vector<16x256xf32>
    %58 = arith.mulf %57, %46 : vector<16x256xf32>
    %cst_9 = arith.constant -0.0386819392 : f32
    %59 = vector.broadcast %cst_9 : f32 to vector<16x256xf32>
    %60 = arith.mulf %59, %46 : vector<16x256xf32>
    %cst_10 = arith.constant -0.0374850594 : f32
    %61 = vector.broadcast %cst_10 : f32 to vector<16x256xf32>
    %62 = arith.mulf %61, %46 : vector<16x256xf32>
    %63 = vector.extract_strided_slice %40 {offsets = [0, 0], sizes = [16, 256], strides = [1, 1]} : vector<20x256xf32> to vector<16x256xf32>
    %64 = vector.extract_strided_slice %42 {offsets = [4, 0], sizes = [16, 256], strides = [1, 1]} : vector<20x256xf32> to vector<16x256xf32>
    %65 = arith.addf %63, %64 : vector<16x256xf32>
    %cst_11 = arith.constant -0.029102264 : f32
    %66 = vector.broadcast %cst_11 : f32 to vector<16x256xf32>
    %67 = arith.mulf %66, %65 : vector<16x256xf32>
    %68 = arith.addf %48, %67 : vector<16x256xf32>
    %cst_12 = arith.constant -0.013865931 : f32
    %69 = vector.broadcast %cst_12 : f32 to vector<16x256xf32>
    %70 = arith.mulf %69, %65 : vector<16x256xf32>
    %71 = arith.addf %50, %70 : vector<16x256xf32>
    %cst_13 = arith.constant 0.0160453208 : f32
    %72 = vector.broadcast %cst_13 : f32 to vector<16x256xf32>
    %73 = arith.mulf %72, %65 : vector<16x256xf32>
    %74 = arith.addf %52, %73 : vector<16x256xf32>
    %cst_14 = arith.constant 0.0354824327 : f32
    %75 = vector.broadcast %cst_14 : f32 to vector<16x256xf32>
    %76 = arith.mulf %75, %65 : vector<16x256xf32>
    %77 = arith.addf %54, %76 : vector<16x256xf32>
    %cst_15 = arith.constant 0.00884026847 : f32
    %78 = vector.broadcast %cst_15 : f32 to vector<16x256xf32>
    %79 = arith.mulf %78, %65 : vector<16x256xf32>
    %80 = arith.addf %56, %79 : vector<16x256xf32>
    %cst_16 = arith.constant -0.0216489583 : f32
    %81 = vector.broadcast %cst_16 : f32 to vector<16x256xf32>
    %82 = arith.mulf %81, %65 : vector<16x256xf32>
    %83 = arith.addf %58, %82 : vector<16x256xf32>
    %cst_17 = arith.constant -0.032415092 : f32
    %84 = vector.broadcast %cst_17 : f32 to vector<16x256xf32>
    %85 = arith.mulf %84, %65 : vector<16x256xf32>
    %86 = arith.addf %60, %85 : vector<16x256xf32>
    %cst_18 = arith.constant -0.0336463712 : f32
    %87 = vector.broadcast %cst_18 : f32 to vector<16x256xf32>
    %88 = arith.mulf %87, %65 : vector<16x256xf32>
    %89 = arith.addf %62, %88 : vector<16x256xf32>
    %90 = vector.extract_strided_slice %41 {offsets = [0, 0], sizes = [16, 256], strides = [1, 1]} : vector<20x256xf32> to vector<16x256xf32>
    %91 = vector.extract_strided_slice %41 {offsets = [4, 0], sizes = [16, 256], strides = [1, 1]} : vector<20x256xf32> to vector<16x256xf32>
    %92 = arith.addf %90, %91 : vector<16x256xf32>
    %cst_19 = arith.constant -0.029102264 : f32
    %93 = vector.broadcast %cst_19 : f32 to vector<16x256xf32>
    %94 = arith.mulf %93, %92 : vector<16x256xf32>
    %95 = arith.addf %68, %94 : vector<16x256xf32>
    %cst_20 = arith.constant -0.0261351578 : f32
    %96 = vector.broadcast %cst_20 : f32 to vector<16x256xf32>
    %97 = arith.mulf %96, %92 : vector<16x256xf32>
    %98 = arith.addf %71, %97 : vector<16x256xf32>
    %cst_21 = arith.constant -0.0135260653 : f32
    %99 = vector.broadcast %cst_21 : f32 to vector<16x256xf32>
    %100 = arith.mulf %99, %92 : vector<16x256xf32>
    %101 = arith.addf %74, %100 : vector<16x256xf32>
    %cst_22 = arith.constant 0.0170295686 : f32
    %102 = vector.broadcast %cst_22 : f32 to vector<16x256xf32>
    %103 = arith.mulf %102, %92 : vector<16x256xf32>
    %104 = arith.addf %77, %103 : vector<16x256xf32>
    %cst_23 = arith.constant 0.040523991 : f32
    %105 = vector.broadcast %cst_23 : f32 to vector<16x256xf32>
    %106 = arith.mulf %105, %92 : vector<16x256xf32>
    %107 = arith.addf %80, %106 : vector<16x256xf32>
    %cst_24 = arith.constant 0.0170295686 : f32
    %108 = vector.broadcast %cst_24 : f32 to vector<16x256xf32>
    %109 = arith.mulf %108, %92 : vector<16x256xf32>
    %110 = arith.addf %83, %109 : vector<16x256xf32>
    %cst_25 = arith.constant -0.0135260653 : f32
    %111 = vector.broadcast %cst_25 : f32 to vector<16x256xf32>
    %112 = arith.mulf %111, %92 : vector<16x256xf32>
    %113 = arith.addf %86, %112 : vector<16x256xf32>
    %cst_26 = arith.constant -0.0261351578 : f32
    %114 = vector.broadcast %cst_26 : f32 to vector<16x256xf32>
    %115 = arith.mulf %114, %92 : vector<16x256xf32>
    %116 = arith.addf %89, %115 : vector<16x256xf32>
    %117 = vector.extract_strided_slice %42 {offsets = [0, 0], sizes = [16, 256], strides = [1, 1]} : vector<20x256xf32> to vector<16x256xf32>
    %118 = vector.extract_strided_slice %40 {offsets = [4, 0], sizes = [16, 256], strides = [1, 1]} : vector<20x256xf32> to vector<16x256xf32>
    %119 = arith.addf %117, %118 : vector<16x256xf32>
    %cst_27 = arith.constant -0.029102264 : f32
    %120 = vector.broadcast %cst_27 : f32 to vector<16x256xf32>
    %121 = arith.mulf %120, %119 : vector<16x256xf32>
    %122 = arith.addf %95, %121 : vector<16x256xf32>
    %cst_28 = arith.constant -0.0336463712 : f32
    %123 = vector.broadcast %cst_28 : f32 to vector<16x256xf32>
    %124 = arith.mulf %123, %119 : vector<16x256xf32>
    %125 = arith.addf %98, %124 : vector<16x256xf32>
    %cst_29 = arith.constant -0.032415092 : f32
    %126 = vector.broadcast %cst_29 : f32 to vector<16x256xf32>
    %127 = arith.mulf %126, %119 : vector<16x256xf32>
    %128 = arith.addf %101, %127 : vector<16x256xf32>
    %cst_30 = arith.constant -0.0216489583 : f32
    %129 = vector.broadcast %cst_30 : f32 to vector<16x256xf32>
    %130 = arith.mulf %129, %119 : vector<16x256xf32>
    %131 = arith.addf %104, %130 : vector<16x256xf32>
    %cst_31 = arith.constant 0.00884026847 : f32
    %132 = vector.broadcast %cst_31 : f32 to vector<16x256xf32>
    %133 = arith.mulf %132, %119 : vector<16x256xf32>
    %134 = arith.addf %107, %133 : vector<16x256xf32>
    %cst_32 = arith.constant 0.0354824327 : f32
    %135 = vector.broadcast %cst_32 : f32 to vector<16x256xf32>
    %136 = arith.mulf %135, %119 : vector<16x256xf32>
    %137 = arith.addf %110, %136 : vector<16x256xf32>
    %cst_33 = arith.constant 0.0160453208 : f32
    %138 = vector.broadcast %cst_33 : f32 to vector<16x256xf32>
    %139 = arith.mulf %138, %119 : vector<16x256xf32>
    %140 = arith.addf %113, %139 : vector<16x256xf32>
    %cst_34 = arith.constant -0.013865931 : f32
    %141 = vector.broadcast %cst_34 : f32 to vector<16x256xf32>
    %142 = arith.mulf %141, %119 : vector<16x256xf32>
    %143 = arith.addf %116, %142 : vector<16x256xf32>
    %144 = vector.extract_strided_slice %43 {offsets = [0, 0], sizes = [16, 256], strides = [1, 1]} : vector<20x256xf32> to vector<16x256xf32>
    %145 = vector.extract_strided_slice %39 {offsets = [4, 0], sizes = [16, 256], strides = [1, 1]} : vector<20x256xf32> to vector<16x256xf32>
    %146 = arith.addf %144, %145 : vector<16x256xf32>
    %cst_35 = arith.constant -0.029102264 : f32
    %147 = vector.broadcast %cst_35 : f32 to vector<16x256xf32>
    %148 = arith.mulf %147, %146 : vector<16x256xf32>
    %149 = arith.addf %122, %148 : vector<16x256xf32>
    %cst_36 = arith.constant -0.0374850594 : f32
    %150 = vector.broadcast %cst_36 : f32 to vector<16x256xf32>
    %151 = arith.mulf %150, %146 : vector<16x256xf32>
    %152 = arith.addf %125, %151 : vector<16x256xf32>
    %cst_37 = arith.constant -0.0386819392 : f32
    %153 = vector.broadcast %cst_37 : f32 to vector<16x256xf32>
    %154 = arith.mulf %153, %146 : vector<16x256xf32>
    %155 = arith.addf %128, %154 : vector<16x256xf32>
    %cst_38 = arith.constant -0.0374850594 : f32
    %156 = vector.broadcast %cst_38 : f32 to vector<16x256xf32>
    %157 = arith.mulf %156, %146 : vector<16x256xf32>
    %158 = arith.addf %131, %157 : vector<16x256xf32>
    %cst_39 = arith.constant -0.029102264 : f32
    %159 = vector.broadcast %cst_39 : f32 to vector<16x256xf32>
    %160 = arith.mulf %159, %146 : vector<16x256xf32>
    %161 = arith.addf %134, %160 : vector<16x256xf32>
    %cst_40 = arith.constant 0.00254986342 : f32
    %162 = vector.broadcast %cst_40 : f32 to vector<16x256xf32>
    %163 = arith.mulf %162, %146 : vector<16x256xf32>
    %164 = arith.addf %137, %163 : vector<16x256xf32>
    %cst_41 = arith.constant 0.0319636166 : f32
    %165 = vector.broadcast %cst_41 : f32 to vector<16x256xf32>
    %166 = arith.mulf %165, %146 : vector<16x256xf32>
    %167 = arith.addf %140, %166 : vector<16x256xf32>
    %cst_42 = arith.constant 0.00254986342 : f32
    %168 = vector.broadcast %cst_42 : f32 to vector<16x256xf32>
    %169 = arith.mulf %168, %146 : vector<16x256xf32>
    %170 = arith.addf %143, %169 : vector<16x256xf32>
    %171 = vector.extract_strided_slice %39 {offsets = [1, 0], sizes = [16, 256], strides = [1, 1]} : vector<20x256xf32> to vector<16x256xf32>
    %172 = vector.extract_strided_slice %43 {offsets = [3, 0], sizes = [16, 256], strides = [1, 1]} : vector<20x256xf32> to vector<16x256xf32>
    %173 = arith.addf %171, %172 : vector<16x256xf32>
    %cst_43 = arith.constant 0.00884026847 : f32
    %174 = vector.broadcast %cst_43 : f32 to vector<16x256xf32>
    %175 = arith.mulf %174, %173 : vector<16x256xf32>
    %176 = arith.addf %149, %175 : vector<16x256xf32>
    %cst_44 = arith.constant 0.0354824327 : f32
    %177 = vector.broadcast %cst_44 : f32 to vector<16x256xf32>
    %178 = arith.mulf %177, %173 : vector<16x256xf32>
    %179 = arith.addf %152, %178 : vector<16x256xf32>
    %cst_45 = arith.constant 0.0160453208 : f32
    %180 = vector.broadcast %cst_45 : f32 to vector<16x256xf32>
    %181 = arith.mulf %180, %173 : vector<16x256xf32>
    %182 = arith.addf %155, %181 : vector<16x256xf32>
    %cst_46 = arith.constant -0.013865931 : f32
    %183 = vector.broadcast %cst_46 : f32 to vector<16x256xf32>
    %184 = arith.mulf %183, %173 : vector<16x256xf32>
    %185 = arith.addf %158, %184 : vector<16x256xf32>
    %cst_47 = arith.constant -0.029102264 : f32
    %186 = vector.broadcast %cst_47 : f32 to vector<16x256xf32>
    %187 = arith.mulf %186, %173 : vector<16x256xf32>
    %188 = arith.addf %161, %187 : vector<16x256xf32>
    %cst_48 = arith.constant -0.0336463712 : f32
    %189 = vector.broadcast %cst_48 : f32 to vector<16x256xf32>
    %190 = arith.mulf %189, %173 : vector<16x256xf32>
    %191 = arith.addf %164, %190 : vector<16x256xf32>
    %cst_49 = arith.constant -0.032415092 : f32
    %192 = vector.broadcast %cst_49 : f32 to vector<16x256xf32>
    %193 = arith.mulf %192, %173 : vector<16x256xf32>
    %194 = arith.addf %167, %193 : vector<16x256xf32>
    %cst_50 = arith.constant -0.0216489583 : f32
    %195 = vector.broadcast %cst_50 : f32 to vector<16x256xf32>
    %196 = arith.mulf %195, %173 : vector<16x256xf32>
    %197 = arith.addf %170, %196 : vector<16x256xf32>
    %198 = vector.extract_strided_slice %40 {offsets = [1, 0], sizes = [16, 256], strides = [1, 1]} : vector<20x256xf32> to vector<16x256xf32>
    %199 = vector.extract_strided_slice %42 {offsets = [3, 0], sizes = [16, 256], strides = [1, 1]} : vector<20x256xf32> to vector<16x256xf32>
    %200 = arith.addf %198, %199 : vector<16x256xf32>
    %cst_51 = arith.constant 0.00884026847 : f32
    %201 = vector.broadcast %cst_51 : f32 to vector<16x256xf32>
    %202 = arith.mulf %201, %200 : vector<16x256xf32>
    %203 = arith.addf %176, %202 : vector<16x256xf32>
    %cst_52 = arith.constant 0.0260238796 : f32
    %204 = vector.broadcast %cst_52 : f32 to vector<16x256xf32>
    %205 = arith.mulf %204, %200 : vector<16x256xf32>
    %206 = arith.addf %179, %205 : vector<16x256xf32>
    %cst_53 = arith.constant 0.0319636166 : f32
    %207 = vector.broadcast %cst_53 : f32 to vector<16x256xf32>
    %208 = arith.mulf %207, %200 : vector<16x256xf32>
    %209 = arith.addf %182, %208 : vector<16x256xf32>
    %cst_54 = arith.constant 0.0260238796 : f32
    %210 = vector.broadcast %cst_54 : f32 to vector<16x256xf32>
    %211 = arith.mulf %210, %200 : vector<16x256xf32>
    %212 = arith.addf %185, %211 : vector<16x256xf32>
    %cst_55 = arith.constant 0.00884026847 : f32
    %213 = vector.broadcast %cst_55 : f32 to vector<16x256xf32>
    %214 = arith.mulf %213, %200 : vector<16x256xf32>
    %215 = arith.addf %188, %214 : vector<16x256xf32>
    %cst_56 = arith.constant -0.00744569255 : f32
    %216 = vector.broadcast %cst_56 : f32 to vector<16x256xf32>
    %217 = arith.mulf %216, %200 : vector<16x256xf32>
    %218 = arith.addf %191, %217 : vector<16x256xf32>
    %cst_57 = arith.constant -0.0135260653 : f32
    %219 = vector.broadcast %cst_57 : f32 to vector<16x256xf32>
    %220 = arith.mulf %219, %200 : vector<16x256xf32>
    %221 = arith.addf %194, %220 : vector<16x256xf32>
    %cst_58 = arith.constant -0.00744569255 : f32
    %222 = vector.broadcast %cst_58 : f32 to vector<16x256xf32>
    %223 = arith.mulf %222, %200 : vector<16x256xf32>
    %224 = arith.addf %197, %223 : vector<16x256xf32>
    %225 = vector.extract_strided_slice %41 {offsets = [1, 0], sizes = [16, 256], strides = [1, 1]} : vector<20x256xf32> to vector<16x256xf32>
    %226 = vector.extract_strided_slice %41 {offsets = [3, 0], sizes = [16, 256], strides = [1, 1]} : vector<20x256xf32> to vector<16x256xf32>
    %227 = arith.addf %225, %226 : vector<16x256xf32>
    %cst_59 = arith.constant 0.00884026847 : f32
    %228 = vector.broadcast %cst_59 : f32 to vector<16x256xf32>
    %229 = arith.mulf %228, %227 : vector<16x256xf32>
    %230 = arith.addf %203, %229 : vector<16x256xf32>
    %cst_60 = arith.constant 0.00988330599 : f32
    %231 = vector.broadcast %cst_60 : f32 to vector<16x256xf32>
    %232 = arith.mulf %231, %227 : vector<16x256xf32>
    %233 = arith.addf %206, %232 : vector<16x256xf32>
    %cst_61 = arith.constant 0.0160453208 : f32
    %234 = vector.broadcast %cst_61 : f32 to vector<16x256xf32>
    %235 = arith.mulf %234, %227 : vector<16x256xf32>
    %236 = arith.addf %209, %235 : vector<16x256xf32>
    %cst_62 = arith.constant 0.0310397651 : f32
    %237 = vector.broadcast %cst_62 : f32 to vector<16x256xf32>
    %238 = arith.mulf %237, %227 : vector<16x256xf32>
    %239 = arith.addf %212, %238 : vector<16x256xf32>
    %cst_63 = arith.constant 0.040523991 : f32
    %240 = vector.broadcast %cst_63 : f32 to vector<16x256xf32>
    %241 = arith.mulf %240, %227 : vector<16x256xf32>
    %242 = arith.addf %215, %241 : vector<16x256xf32>
    %cst_64 = arith.constant 0.0310397651 : f32
    %243 = vector.broadcast %cst_64 : f32 to vector<16x256xf32>
    %244 = arith.mulf %243, %227 : vector<16x256xf32>
    %245 = arith.addf %218, %244 : vector<16x256xf32>
    %cst_65 = arith.constant 0.0160453208 : f32
    %246 = vector.broadcast %cst_65 : f32 to vector<16x256xf32>
    %247 = arith.mulf %246, %227 : vector<16x256xf32>
    %248 = arith.addf %221, %247 : vector<16x256xf32>
    %cst_66 = arith.constant 0.00988330599 : f32
    %249 = vector.broadcast %cst_66 : f32 to vector<16x256xf32>
    %250 = arith.mulf %249, %227 : vector<16x256xf32>
    %251 = arith.addf %224, %250 : vector<16x256xf32>
    %252 = vector.extract_strided_slice %42 {offsets = [1, 0], sizes = [16, 256], strides = [1, 1]} : vector<20x256xf32> to vector<16x256xf32>
    %253 = vector.extract_strided_slice %40 {offsets = [3, 0], sizes = [16, 256], strides = [1, 1]} : vector<20x256xf32> to vector<16x256xf32>
    %254 = arith.addf %252, %253 : vector<16x256xf32>
    %cst_67 = arith.constant 0.00884026847 : f32
    %255 = vector.broadcast %cst_67 : f32 to vector<16x256xf32>
    %256 = arith.mulf %255, %254 : vector<16x256xf32>
    %257 = arith.addf %230, %256 : vector<16x256xf32>
    %cst_68 = arith.constant -0.00744569255 : f32
    %258 = vector.broadcast %cst_68 : f32 to vector<16x256xf32>
    %259 = arith.mulf %258, %254 : vector<16x256xf32>
    %260 = arith.addf %233, %259 : vector<16x256xf32>
    %cst_69 = arith.constant -0.0135260653 : f32
    %261 = vector.broadcast %cst_69 : f32 to vector<16x256xf32>
    %262 = arith.mulf %261, %254 : vector<16x256xf32>
    %263 = arith.addf %236, %262 : vector<16x256xf32>
    %cst_70 = arith.constant -0.00744569255 : f32
    %264 = vector.broadcast %cst_70 : f32 to vector<16x256xf32>
    %265 = arith.mulf %264, %254 : vector<16x256xf32>
    %266 = arith.addf %239, %265 : vector<16x256xf32>
    %cst_71 = arith.constant 0.00884026847 : f32
    %267 = vector.broadcast %cst_71 : f32 to vector<16x256xf32>
    %268 = arith.mulf %267, %254 : vector<16x256xf32>
    %269 = arith.addf %242, %268 : vector<16x256xf32>
    %cst_72 = arith.constant 0.0260238796 : f32
    %270 = vector.broadcast %cst_72 : f32 to vector<16x256xf32>
    %271 = arith.mulf %270, %254 : vector<16x256xf32>
    %272 = arith.addf %245, %271 : vector<16x256xf32>
    %cst_73 = arith.constant 0.0319636166 : f32
    %273 = vector.broadcast %cst_73 : f32 to vector<16x256xf32>
    %274 = arith.mulf %273, %254 : vector<16x256xf32>
    %275 = arith.addf %248, %274 : vector<16x256xf32>
    %cst_74 = arith.constant 0.0260238796 : f32
    %276 = vector.broadcast %cst_74 : f32 to vector<16x256xf32>
    %277 = arith.mulf %276, %254 : vector<16x256xf32>
    %278 = arith.addf %251, %277 : vector<16x256xf32>
    %279 = vector.extract_strided_slice %43 {offsets = [1, 0], sizes = [16, 256], strides = [1, 1]} : vector<20x256xf32> to vector<16x256xf32>
    %280 = vector.extract_strided_slice %39 {offsets = [3, 0], sizes = [16, 256], strides = [1, 1]} : vector<20x256xf32> to vector<16x256xf32>
    %281 = arith.addf %279, %280 : vector<16x256xf32>
    %cst_75 = arith.constant 0.00884026847 : f32
    %282 = vector.broadcast %cst_75 : f32 to vector<16x256xf32>
    %283 = arith.mulf %282, %281 : vector<16x256xf32>
    %284 = arith.addf %257, %283 : vector<16x256xf32>
    %cst_76 = arith.constant -0.0216489583 : f32
    %285 = vector.broadcast %cst_76 : f32 to vector<16x256xf32>
    %286 = arith.mulf %285, %281 : vector<16x256xf32>
    %287 = arith.addf %260, %286 : vector<16x256xf32>
    %cst_77 = arith.constant -0.032415092 : f32
    %288 = vector.broadcast %cst_77 : f32 to vector<16x256xf32>
    %289 = arith.mulf %288, %281 : vector<16x256xf32>
    %290 = arith.addf %263, %289 : vector<16x256xf32>
    %cst_78 = arith.constant -0.0336463712 : f32
    %291 = vector.broadcast %cst_78 : f32 to vector<16x256xf32>
    %292 = arith.mulf %291, %281 : vector<16x256xf32>
    %293 = arith.addf %266, %292 : vector<16x256xf32>
    %cst_79 = arith.constant -0.029102264 : f32
    %294 = vector.broadcast %cst_79 : f32 to vector<16x256xf32>
    %295 = arith.mulf %294, %281 : vector<16x256xf32>
    %296 = arith.addf %269, %295 : vector<16x256xf32>
    %cst_80 = arith.constant -0.013865931 : f32
    %297 = vector.broadcast %cst_80 : f32 to vector<16x256xf32>
    %298 = arith.mulf %297, %281 : vector<16x256xf32>
    %299 = arith.addf %272, %298 : vector<16x256xf32>
    %cst_81 = arith.constant 0.0160453208 : f32
    %300 = vector.broadcast %cst_81 : f32 to vector<16x256xf32>
    %301 = arith.mulf %300, %281 : vector<16x256xf32>
    %302 = arith.addf %275, %301 : vector<16x256xf32>
    %cst_82 = arith.constant 0.0354824327 : f32
    %303 = vector.broadcast %cst_82 : f32 to vector<16x256xf32>
    %304 = arith.mulf %303, %281 : vector<16x256xf32>
    %305 = arith.addf %278, %304 : vector<16x256xf32>
    %306 = vector.extract_strided_slice %39 {offsets = [2, 0], sizes = [16, 256], strides = [1, 1]} : vector<20x256xf32> to vector<16x256xf32>
    %307 = vector.extract_strided_slice %43 {offsets = [2, 0], sizes = [16, 256], strides = [1, 1]} : vector<20x256xf32> to vector<16x256xf32>
    %308 = arith.addf %306, %307 : vector<16x256xf32>
    %cst_83 = arith.constant 0.040523991 : f32
    %309 = vector.broadcast %cst_83 : f32 to vector<16x256xf32>
    %310 = arith.mulf %309, %308 : vector<16x256xf32>
    %311 = arith.addf %284, %310 : vector<16x256xf32>
    %cst_84 = arith.constant 0.0170295686 : f32
    %312 = vector.broadcast %cst_84 : f32 to vector<16x256xf32>
    %313 = arith.mulf %312, %308 : vector<16x256xf32>
    %314 = arith.addf %287, %313 : vector<16x256xf32>
    %cst_85 = arith.constant -0.0135260653 : f32
    %315 = vector.broadcast %cst_85 : f32 to vector<16x256xf32>
    %316 = arith.mulf %315, %308 : vector<16x256xf32>
    %317 = arith.addf %290, %316 : vector<16x256xf32>
    %cst_86 = arith.constant -0.0261351578 : f32
    %318 = vector.broadcast %cst_86 : f32 to vector<16x256xf32>
    %319 = arith.mulf %318, %308 : vector<16x256xf32>
    %320 = arith.addf %293, %319 : vector<16x256xf32>
    %cst_87 = arith.constant -0.029102264 : f32
    %321 = vector.broadcast %cst_87 : f32 to vector<16x256xf32>
    %322 = arith.mulf %321, %308 : vector<16x256xf32>
    %323 = arith.addf %296, %322 : vector<16x256xf32>
    %cst_88 = arith.constant -0.0261351578 : f32
    %324 = vector.broadcast %cst_88 : f32 to vector<16x256xf32>
    %325 = arith.mulf %324, %308 : vector<16x256xf32>
    %326 = arith.addf %299, %325 : vector<16x256xf32>
    %cst_89 = arith.constant -0.0135260653 : f32
    %327 = vector.broadcast %cst_89 : f32 to vector<16x256xf32>
    %328 = arith.mulf %327, %308 : vector<16x256xf32>
    %329 = arith.addf %302, %328 : vector<16x256xf32>
    %cst_90 = arith.constant 0.0170295686 : f32
    %330 = vector.broadcast %cst_90 : f32 to vector<16x256xf32>
    %331 = arith.mulf %330, %308 : vector<16x256xf32>
    %332 = arith.addf %305, %331 : vector<16x256xf32>
    %333 = vector.extract_strided_slice %40 {offsets = [2, 0], sizes = [16, 256], strides = [1, 1]} : vector<20x256xf32> to vector<16x256xf32>
    %334 = vector.extract_strided_slice %42 {offsets = [2, 0], sizes = [16, 256], strides = [1, 1]} : vector<20x256xf32> to vector<16x256xf32>
    %335 = arith.addf %333, %334 : vector<16x256xf32>
    %cst_91 = arith.constant 0.040523991 : f32
    %336 = vector.broadcast %cst_91 : f32 to vector<16x256xf32>
    %337 = arith.mulf %336, %335 : vector<16x256xf32>
    %338 = arith.addf %311, %337 : vector<16x256xf32>
    %cst_92 = arith.constant 0.0310397651 : f32
    %339 = vector.broadcast %cst_92 : f32 to vector<16x256xf32>
    %340 = arith.mulf %339, %335 : vector<16x256xf32>
    %341 = arith.addf %314, %340 : vector<16x256xf32>
    %cst_93 = arith.constant 0.0160453208 : f32
    %342 = vector.broadcast %cst_93 : f32 to vector<16x256xf32>
    %343 = arith.mulf %342, %335 : vector<16x256xf32>
    %344 = arith.addf %317, %343 : vector<16x256xf32>
    %cst_94 = arith.constant 0.00988330599 : f32
    %345 = vector.broadcast %cst_94 : f32 to vector<16x256xf32>
    %346 = arith.mulf %345, %335 : vector<16x256xf32>
    %347 = arith.addf %320, %346 : vector<16x256xf32>
    %cst_95 = arith.constant 0.00884026847 : f32
    %348 = vector.broadcast %cst_95 : f32 to vector<16x256xf32>
    %349 = arith.mulf %348, %335 : vector<16x256xf32>
    %350 = arith.addf %323, %349 : vector<16x256xf32>
    %cst_96 = arith.constant 0.00988330599 : f32
    %351 = vector.broadcast %cst_96 : f32 to vector<16x256xf32>
    %352 = arith.mulf %351, %335 : vector<16x256xf32>
    %353 = arith.addf %326, %352 : vector<16x256xf32>
    %cst_97 = arith.constant 0.0160453208 : f32
    %354 = vector.broadcast %cst_97 : f32 to vector<16x256xf32>
    %355 = arith.mulf %354, %335 : vector<16x256xf32>
    %356 = arith.addf %329, %355 : vector<16x256xf32>
    %cst_98 = arith.constant 0.0310397651 : f32
    %357 = vector.broadcast %cst_98 : f32 to vector<16x256xf32>
    %358 = arith.mulf %357, %335 : vector<16x256xf32>
    %359 = arith.addf %332, %358 : vector<16x256xf32>
    %360 = vector.extract_strided_slice %41 {offsets = [2, 0], sizes = [16, 256], strides = [1, 1]} : vector<20x256xf32> to vector<16x256xf32>
    %cst_99 = arith.constant 0.040523991 : f32
    %361 = vector.broadcast %cst_99 : f32 to vector<16x256xf32>
    %362 = arith.mulf %361, %360 : vector<16x256xf32>
    %363 = arith.addf %338, %362 : vector<16x256xf32>
    %cst_100 = arith.constant 0.0364367105 : f32
    %364 = vector.broadcast %cst_100 : f32 to vector<16x256xf32>
    %365 = arith.mulf %364, %360 : vector<16x256xf32>
    %366 = arith.addf %341, %365 : vector<16x256xf32>
    %cst_101 = arith.constant 0.0319636166 : f32
    %367 = vector.broadcast %cst_101 : f32 to vector<16x256xf32>
    %368 = arith.mulf %367, %360 : vector<16x256xf32>
    %369 = arith.addf %344, %368 : vector<16x256xf32>
    %cst_102 = arith.constant 0.0364367105 : f32
    %370 = vector.broadcast %cst_102 : f32 to vector<16x256xf32>
    %371 = arith.mulf %370, %360 : vector<16x256xf32>
    %372 = arith.addf %347, %371 : vector<16x256xf32>
    %cst_103 = arith.constant 0.040523991 : f32
    %373 = vector.broadcast %cst_103 : f32 to vector<16x256xf32>
    %374 = arith.mulf %373, %360 : vector<16x256xf32>
    %375 = arith.addf %350, %374 : vector<16x256xf32>
    %cst_104 = arith.constant 0.0364367105 : f32
    %376 = vector.broadcast %cst_104 : f32 to vector<16x256xf32>
    %377 = arith.mulf %376, %360 : vector<16x256xf32>
    %378 = arith.addf %353, %377 : vector<16x256xf32>
    %cst_105 = arith.constant 0.0319636166 : f32
    %379 = vector.broadcast %cst_105 : f32 to vector<16x256xf32>
    %380 = arith.mulf %379, %360 : vector<16x256xf32>
    %381 = arith.addf %356, %380 : vector<16x256xf32>
    %cst_106 = arith.constant 0.0364367105 : f32
    %382 = vector.broadcast %cst_106 : f32 to vector<16x256xf32>
    %383 = arith.mulf %382, %360 : vector<16x256xf32>
    %384 = arith.addf %359, %383 : vector<16x256xf32>
    %cst_107 = arith.constant 0.000000e+00 : f32
    %385 = vector.broadcast %cst_107 : f32 to vector<16x256xf32>
    %386 = arith.cmpf ogt, %366, %363 : vector<16x256xf32>
    %cst_108 = arith.constant 1.000000e+00 : f32
    %387 = vector.broadcast %cst_108 : f32 to vector<16x256xf32>
    %388 = arith.select %386, %387, %385 : vector<16x256xi1>, vector<16x256xf32>
    %389 = arith.select %386, %366, %363 : vector<16x256xi1>, vector<16x256xf32>
    %390 = arith.cmpf ogt, %369, %389 : vector<16x256xf32>
    %cst_109 = arith.constant 2.000000e+00 : f32
    %391 = vector.broadcast %cst_109 : f32 to vector<16x256xf32>
    %392 = arith.select %390, %391, %388 : vector<16x256xi1>, vector<16x256xf32>
    %393 = arith.select %390, %369, %389 : vector<16x256xi1>, vector<16x256xf32>
    %394 = arith.cmpf ogt, %372, %393 : vector<16x256xf32>
    %cst_110 = arith.constant 3.000000e+00 : f32
    %395 = vector.broadcast %cst_110 : f32 to vector<16x256xf32>
    %396 = arith.select %394, %395, %392 : vector<16x256xi1>, vector<16x256xf32>
    %397 = arith.select %394, %372, %393 : vector<16x256xi1>, vector<16x256xf32>
    %398 = arith.cmpf ogt, %375, %397 : vector<16x256xf32>
    %cst_111 = arith.constant 4.000000e+00 : f32
    %399 = vector.broadcast %cst_111 : f32 to vector<16x256xf32>
    %400 = arith.select %398, %399, %396 : vector<16x256xi1>, vector<16x256xf32>
    %401 = arith.select %398, %375, %397 : vector<16x256xi1>, vector<16x256xf32>
    %402 = arith.cmpf ogt, %378, %401 : vector<16x256xf32>
    %cst_112 = arith.constant 5.000000e+00 : f32
    %403 = vector.broadcast %cst_112 : f32 to vector<16x256xf32>
    %404 = arith.select %402, %403, %400 : vector<16x256xi1>, vector<16x256xf32>
    %405 = arith.select %402, %378, %401 : vector<16x256xi1>, vector<16x256xf32>
    %406 = arith.cmpf ogt, %381, %405 : vector<16x256xf32>
    %cst_113 = arith.constant 6.000000e+00 : f32
    %407 = vector.broadcast %cst_113 : f32 to vector<16x256xf32>
    %408 = arith.select %406, %407, %404 : vector<16x256xi1>, vector<16x256xf32>
    %409 = arith.select %406, %381, %405 : vector<16x256xi1>, vector<16x256xf32>
    %410 = arith.cmpf ogt, %384, %409 : vector<16x256xf32>
    %cst_114 = arith.constant 7.000000e+00 : f32
    %411 = vector.broadcast %cst_114 : f32 to vector<16x256xf32>
    %412 = arith.select %410, %411, %408 : vector<16x256xi1>, vector<16x256xf32>
    %413 = arith.select %410, %384, %409 : vector<16x256xi1>, vector<16x256xf32>
    %c0_115 = arith.constant 0 : index
    %c0_116 = arith.constant 0 : index
    %414 = vector.load %arg2[%c0_115, %c0_116] : memref<16x256xf32, #tpu.memory_space<vmem>>, vector<16x256xf32>
    tpu.vector_store %arg2[%c0_115, %c0_116], %413 {strides = array<i32>} : memref<16x256xf32, #tpu.memory_space<vmem>>, vector<16x256xf32>,
    %cst_117 = arith.constant 1.250000e-01 : f32
    %415 = vector.broadcast %cst_117 : f32 to vector<16x256xf32>
    %416 = arith.mulf %412, %415 : vector<16x256xf32>
    %c0_118 = arith.constant 0 : index
    %c0_119 = arith.constant 0 : index
    %417 = vector.load %arg3[%c0_118, %c0_119] : memref<16x256xf32, #tpu.memory_space<vmem>>, vector<16x256xf32>
    tpu.vector_store %arg3[%c0_118, %c0_119], %416 {strides = array<i32>} : memref<16x256xf32, #tpu.memory_space<vmem>>, vector<16x256xf32>,
    return
  }
  func.func @transform_0(%arg0: i32) -> (i32, i32) {
    %c0_i32 = arith.constant 0 : i32
    %c0_i32_0 = arith.constant 0 : i32
    %c0_i32_1 = arith.constant 0 : i32
    return %c0_i32, %c0_i32_0 : i32, i32
  }
  func.func @transform_1(%arg0: i32) -> (i32, i32) {
    %c0_i32 = arith.constant 0 : i32
    %c0_i32_0 = arith.constant 0 : i32
    %c0_i32_1 = arith.constant 0 : i32
    return %c0_i32, %c0_i32_0 : i32, i32
  }
  func.func @transform_2(%arg0: i32) -> (i32, i32) {
    %c0_i32 = arith.constant 0 : i32
    %c0_i32_0 = arith.constant 0 : i32
    %c0_i32_1 = arith.constant 0 : i32
    return %c0_i32, %c0_i32_0 : i32, i32
  }
}

</mosaic_0001>

<bundles_post_ra>
// kernel: mfrat_forward.1
= control target key start
LH: loop header
LB: loop body
LE: loop exit
PB: predicated region body
PF: predicated region fallthrough
CT: control target
= control target key end

     0   :  { %s4180_s13 = smov 127   ;;  %s4181_s28 = smov 120   ;;  %vm313_vm0 = vcmask 1043456   ;;  %vm46_vm1 = vcmask 1039360   ;;  %vm98_vm2 = vcmask 1031168   ;;  %vm227_vm3 = vcmask 1046528   ;;  %s8435_s0 = inlined_call_operand.vmem [shape: f32[24,384], index: 0, kind: input, shape index: {}]   ;;  %s8436_s1 = inlined_call_operand.vmem [shape: f32[16,256], index: 1, kind: output, shape index: {0}]   ;;  %s8437_s2 = inlined_call_operand.vmem [shape: f32[16,256], index: 2, kind: output, shape index: {1}]  }
   0x1   :  { %v12_v0 = vld [vmem:[%s8435_s0 + $0x10] sm:$0xff]  ;;  %v4209_v1 = vld [vmem:[%s8435_s0] sm:$0xff]  ;;  %v4217_v2 = vld [vmem:[%s8435_s0 + $0x18] sm:$0xff]  ;;  %s4183_s29 = smov 126   ;;  %vm193_vm4 = vcmask 982016   ;;  %vm150_vm5 = vcmask 1014784  }
   0x2   :  { %32 = vrot.lane.b32.xlu1 %v12_v0, %s4180_s13  ;;  %28 = vrot.lane.b32.xlu0 %v4209_v1, %s4180_s13  ;;  %v11_v3 = vld [vmem:[%s8435_s0 + $0x8] sm:$0xff]  ;;  %v4231_v5 = vld [vmem:[%s8435_s0 + $0x20] sm:$0xff]  ;;  %v353_v11 = vrot.slane %v4209_v1, 4  ;;  %v354_v12 = vrot.slane %v4217_v2, 4  ;;  %v359_v16 = vrot.slane %v12_v0, 4  ;;  %vm270_vm6 = vcmask 1045504  }
   0x3   :  { %v15_v4 = vld [vmem:[%s8435_s0 + $0x28] sm:$0xff]  ;;  %v4239_v6 = vld [vmem:[%s8435_s0 + $0x38] sm:$0xff]  ;;  %v4244_v7 = vld [vmem:[%s8435_s0 + $0x30] sm:$0xff]  ;;  %v356_v9 = vrot.slane %v11_v3, 4  ;;  %v357_v10 = vrot.slane %v4231_v5, 4  ;;  %vm424_vm10 = vcmask 1041408  }
   0x4   :  { %v18_v8 = vld [vmem:[%s8435_s0 + $0x40] sm:$0xff]  ;;  %v362_v14 = vrot.slane %v4244_v7, 4  ;;  %v355_v15 = vsel %vm313_vm0, %v353_v11, %v354_v12  ;;  %v360_v17 = vrot.slane %v15_v4, 4  ;;  %s4182_s0 = smov 124   ;;  %v364_v21 = vrot.slane %v4239_v6, 4  ;;  %s4184_s30 = smov 2  }
   0x5   :  { %v358_v13 = vsel %vm313_vm0, %v356_v9, %v357_v10  ;;  %v366_v19 = vrot.slane %v18_v8, 4  ;;  %s4185_s3 = smov 4   ;;  %s4186_s4 = smov 125  }
   0x6   :  { %34 = vrot.lane.b32.xlu1 %v4217_v2, %s4180_s13  ;;  %30 = vrot.lane.b32.xlu0 %v11_v3, %s4180_s13  ;;  %v363_v18 = vsel %vm313_vm0, %v354_v12, %v362_v14  ;;  %v361_v20 = vsel %vm313_vm0, %v359_v16, %v360_v17  ;;  %v365_v23 = vsel %vm313_vm0, %v357_v10, %v364_v21 }
   0x7   :  { %v367_v22 = vsel %vm313_vm0, %v360_v17, %v366_v19 }
   0xa   :  { %38 = vrot.lane.b32.xlu1 %v15_v4, %s4180_s13  ;;  %36 = vrot.lane.b32.xlu0 %v4231_v5, %s4180_s13 }
   0xe   :  { %42 = vrot.lane.b32.xlu1 %v4239_v6, %s4180_s13  ;;  %40 = vrot.lane.b32.xlu0 %v4244_v7, %s4180_s13 }
  0x12   :  { %44 = vrot.lane.b32.xlu0 %v18_v8, %s4180_s13  ;;  %175 = vrot.lane.b32.xlu1 %v4209_v1, %s4181_s28 }
  0x16   :  { %179 = vrot.lane.b32.xlu1 %v12_v0, %s4181_s28  ;;  %177 = vrot.lane.b32.xlu0 %v11_v3, %s4181_s28 }
  0x1a   :  { %183 = vrot.lane.b32.xlu1 %v4231_v5, %s4181_s28  ;;  %181 = vrot.lane.b32.xlu0 %v4217_v2, %s4181_s28 }
  0x1e   :  { %187 = vrot.lane.b32.xlu1 %v4244_v7, %s4181_s28  ;;  %185 = vrot.lane.b32.xlu0 %v15_v4, %s4181_s28 }
  0x22   :  { %191 = vrot.lane.b32.xlu1 %v18_v8, %s4181_s28  ;;  %189 = vrot.lane.b32.xlu0 %v4239_v6, %s4181_s28 }
  0x26   :  { %370 = vrot.lane.b32.xlu1 %v358_v13, %s4182_s0  ;;  %368 = vrot.lane.b32.xlu0 %v355_v15, %s4182_s0 }
  0x2a   :  { %374 = vrot.lane.b32.xlu1 %v363_v18, %s4182_s0  ;;  %372 = vrot.lane.b32.xlu0 %v361_v20, %s4182_s0 }
  0x2e   :  { %378 = vrot.lane.b32.xlu1 %v367_v22, %s4182_s0  ;;  %376 = vrot.lane.b32.xlu0 %v365_v23, %s4182_s0 }
  0x74   :  { %v33_v24 = vpop.permute.xlu1 %32  ;;  %v29_v25 = vpop.permute.xlu0 %28 }
  0x75   :  { %v64_v26 = vadd.f32 %v33_v24, %v12_v0 }
  0x77   :  { %84 = vrot.lane.b32.xlu1 %v64_v26, %s4183_s29 }
  0x78   :  { %v35_v27 = vpop.permute.xlu1 %34  ;;  %v31_v28 = vpop.permute.xlu0 %30 }
  0x79   :  { %v48_v32 = vsel %vm46_vm1, %v31_v28, %v33_v24  ;;  %v47_v40 = vsel %vm46_vm1, %v29_v25, %v31_v28 }
  0x7a   :  { %v63_v34 = vadd.f32 %v48_v32, %v11_v3  ;;  %v62_v42 = vadd.f32 %v47_v40, %v4209_v1 }
  0x7c   :  { %v39_v29 = vpop.permute.xlu1 %38  ;;  %v37_v30 = vpop.permute.xlu0 %36 }
  0x7d   :  { %v67_v31 = vadd.f32 %v39_v29, %v15_v4  ;;  %v49_v35 = vsel %vm46_vm1, %v35_v27, %v37_v30  ;;  %v50_v44 = vsel %vm46_vm1, %v37_v30, %v39_v29 }
  0x7e   :  { %v65_v39 = vadd.f32 %v49_v35, %v4217_v2  ;;  %v66_v45 = vadd.f32 %v50_v44, %v4231_v5 }
  0x7f   :  { %90 = vrot.lane.b32.xlu0 %v67_v31, %s4183_s29 }
  0x80   :  { %v41_v33 = vpop.permute.xlu0 %40  ;;  %v43_v37 = vpop.permute.xlu1 %42 }
  0x81   :  { %v51_v46 = vsel %vm46_vm1, %v41_v33, %v43_v37 }
  0x82   :  { %v68_v47 = vadd.f32 %v51_v46, %v4244_v7 }
  0x83   :  { %82 = vrot.lane.b32.xlu0 %v63_v34, %s4183_s29 }
  0x84   :  { %v45_v36 = vpop.permute.xlu0 %44  ;;  %v4296_v48 = vpop.permute.xlu1 %175 }
  0x85   :  { %v70_v38 = vadd.f32 %v45_v36, %v18_v8  ;;  %v52_v41 = vsel %vm46_vm1, %v43_v37, %v45_v36  ;;  %v396_v36 = vlaneseq }
  0x86   :  { %v69_v43 = vadd.f32 %v52_v41, %v4239_v6 }
  0x87   :  { %96 = vrot.lane.b32.xlu1 %v70_v38, %s4183_s29  ;;  %86 = vrot.lane.b32.xlu0 %v65_v39, %s4183_s29 }
  0x88   :  { %v4298_v49 = vpop.permute.xlu1 %179  ;;  %v4302_v51 = vpop.permute.xlu0 %177 }
  0x8b   :  { %80 = vrot.lane.b32.xlu1 %v62_v42, %s4183_s29  ;;  %94 = vrot.lane.b32.xlu0 %v69_v43, %s4183_s29 }
  0x8c   :  { %v4300_v50 = vpop.permute.xlu1 %183  ;;  %v4306_v53 = vpop.permute.xlu0 %181 }
  0x8d   :  { %v196_v46 = vsel %vm193_vm4, %v4306_v53, %v4300_v50 }
  0x8f   :  { %88 = vrot.lane.b32.xlu1 %v66_v45, %s4183_s29 }
  0x90   :  { %v4304_v52 = vpop.permute.xlu1 %187  ;;  %v4310_v55 = vpop.permute.xlu0 %185 }
  0x93   :  { %92 = vrot.lane.b32.xlu1 %v68_v47, %s4183_s29 }
  0x94   :  { %v4308_v54 = vpop.permute.xlu1 %191  ;;  %v4314_v57 = vpop.permute.xlu0 %189 }
  0x98   :  { %v4312_v56 = vpop.permute.xlu1 %370  ;;  %v4318_v59 = vpop.permute.xlu0 %368 }
  0x9c   :  { %v4316_v58 = vpop.permute.xlu1 %374  ;;  %v4322_v61 = vpop.permute.xlu0 %372 }
  0xa0   :  { %v4320_v60 = vpop.permute.xlu1 %378  ;;  %v4324_v0 = vpop.permute.xlu0 %376 }
  0xe9   :  { %v85_v62 = vpop.permute.xlu1 %84 }
  0xea   :  { %v116_v63 = vadd.f32 %v85_v62, %v64_v26 }
  0xec   :  { %136 = vrot.lane.b32.xlu0 %v116_v63, %s4182_s0 }
  0xf1   :  { %v91_v1 = vpop.permute.xlu0 %90 }
  0xf2   :  { %v119_v2 = vadd.f32 %v91_v1, %v67_v31 }
  0xf4   :  { %142 = vrot.lane.b32.xlu1 %v119_v2, %s4182_s0 }
  0xf5   :  { %v83_v3 = vpop.permute.xlu0 %82 }
  0xf6   :  { %v100_v4 = vsel %vm98_vm2, %v83_v3, %v85_v62  ;;  %v4370_v62 = vand.u32 127, %v396_v36 }
  0xf7   :  { %v115_v5 = vadd.f32 %v100_v4, %v63_v34 }
  0xf9   :  { %v97_v6 = vpop.permute.xlu1 %96  ;;  %134 = vrot.lane.b32.xlu1 %v115_v5, %s4182_s0  ;;  %v87_v8 = vpop.permute.xlu0 %86 }
  0xfa   :  { %v122_v7 = vadd.f32 %v97_v6, %v70_v38 }
  0xfc   :  { %148 = vrot.lane.b32.xlu0 %v122_v7, %s4182_s0 }
  0xfd   :  { %v81_v9 = vpop.permute.xlu1 %80  ;;  %v95_v12 = vpop.permute.xlu0 %94 }
  0xfe   :  { %v99_v10 = vsel %vm98_vm2, %v81_v9, %v83_v3  ;;  %v104_v18 = vsel %vm98_vm2, %v95_v12, %v97_v6 }
  0xff   :  { %v114_v11 = vadd.f32 %v99_v10, %v62_v42  ;;  %v4341_v22 = vadd.f32 %v104_v18, %v69_v43  ;;  %v194_v42 = vsel %vm193_vm4, %v4296_v48, %v4302_v51  ;;  %v195_v43 = vsel %vm193_vm4, %v4302_v51, %v4298_v49 }
 0x100   :  { %v197_v48 = vsel %vm193_vm4, %v4300_v50, %v4310_v55  ;;  %v399_v50 = vadd.s32 256, %v4370_v62 }
 0x101   :  { %v89_v13 = vpop.permute.xlu1 %88  ;;  %132 = vrot.lane.b32.xlu0 %v114_v11, %s4182_s0 }
 0x102   :  { %v101_v14 = vsel %vm98_vm2, %v87_v8, %v89_v13  ;;  %v102_v15 = vsel %vm98_vm2, %v89_v13, %v91_v1 }
 0x103   :  { %v118_v16 = vadd.f32 %v102_v15, %v66_v45  ;;  %v117_v17 = vadd.f32 %v101_v14, %v65_v39 }
 0x105   :  { %v93_v19 = vpop.permute.xlu1 %92  ;;  %140 = vrot.lane.b32.xlu0 %v118_v16, %s4182_s0  ;;  %138 = vrot.lane.b32.xlu1 %v117_v17, %s4182_s0 }
 0x106   :  { %v103_v20 = vsel %vm98_vm2, %v93_v19, %v95_v12 }
 0x107   :  { %v4339_v21 = vadd.f32 %v103_v20, %v68_v47 }
 0x109   :  { %146 = vrot.lane.b32.xlu1 %v4341_v22, %s4182_s0  ;;  %144 = vrot.lane.b32.xlu0 %v4339_v21, %s4182_s0 }
 0x15e   :  { %v137_v23 = vpop.permute.xlu0 %136 }
 0x15f   :  { %v168_v25 = vadd.f32 %v137_v23, %v116_v63 }
 0x161   :  { %v211_v28 = vadd.f32 %v4298_v49, %v168_v25 }
 0x163   :  { %v234_v31 = vrot.slane %v211_v28, 1 }
 0x166   :  { %v143_v24 = vpop.permute.xlu1 %142 }
 0x167   :  { %v171_v26 = vadd.f32 %v143_v24, %v119_v2 }
 0x169   :  { %v4348_v27 = vadd.f32 %v4310_v55, %v171_v26 }
 0x16b   :  { %v235_v29 = vrot.slane %v4348_v27, 1  ;;  %v135_v33 = vpop.permute.xlu1 %134 }
 0x16c   :  { %v152_v37 = vsel %vm150_vm5, %v135_v33, %v137_v23 }
 0x16d   :  { %v236_v34 = vsel %vm227_vm3, %v234_v31, %v235_v29  ;;  %v167_v47 = vadd.f32 %v152_v37, %v115_v5  ;;  %v199_v5 = vsel %vm193_vm4, %v4314_v57, %v4308_v54  ;;  %v198_v37 = vsel %vm193_vm4, %v4304_v52, %v4314_v57 }
 0x16e   :  { %v149_v30 = vpop.permute.xlu0 %148  ;;  %v254_v40 = vadd.f32 %v236_v34, %v211_v28 }
 0x16f   :  { %v174_v32 = vadd.f32 %v149_v30, %v122_v7  ;;  %v210_v10 = vadd.f32 %v195_v43, %v167_v47 }
 0x170   :  { %v277_v3 = vrot.slane %v254_v40, 2 }
 0x171   :  { %v4354_v35 = vadd.f32 %v4308_v54, %v174_v32  ;;  %v231_v28 = vrot.slane %v210_v10, 1 }
 0x173   :  { %v241_v38 = vrot.slane %v4354_v35, 1  ;;  %v133_v39 = vpop.permute.xlu0 %132 }
 0x174   :  { %v151_v41 = vsel %vm150_vm5, %v133_v39, %v135_v33 }
 0x175   :  { %v242_v44 = vsel %vm227_vm3, %v235_v29, %v241_v38  ;;  %v260_v45 = vadd.f32 %v241_v38, %v4354_v35  ;;  %v166_v49 = vadd.f32 %v151_v41, %v114_v11  ;;  %v402_v29 = vand.u32 31, %v399_v50 }
 0x176   :  { %v257_v63 = vadd.f32 %v242_v44, %v4348_v27 }
 0x177   :  { %v284_v1 = vrot.slane %v260_v45, 2  ;;  %v139_v51 = vpop.permute.xlu1 %138  ;;  %v141_v2 = vpop.permute.xlu0 %140  ;;  %v209_v14 = vadd.f32 %v194_v42, %v166_v49  ;;  %vm4406_vm7 = vcmp.ge.s32.totalorder %v402_v29, 2  ;;  %vm4410_vm8 = vcmp.lt.s32.totalorder %v402_v29, 18 }
 0x178   :  { %v278_v4 = vrot.slane %v257_v63, 2  ;;  %v153_v6 = vsel %vm150_vm5, %v139_v51, %v141_v2  ;;  %v154_v53 = vsel %vm150_vm5, %v141_v2, %v143_v24  ;;  %vm411_vm9 = vmand %vm4406_vm7, %vm4410_vm8  ;;  %vm1360_vm7 = vcmask 31744  }
 0x179   :  { %v303_v7 = vadd.f32 %v284_v1, %v260_v45  ;;  %v169_v8 = vadd.f32 %v153_v6, %v117_v17  ;;  %v170_v9 = vadd.f32 %v154_v53, %v118_v16  ;;  %v228_v36 = vrot.slane %v209_v14, 1 }
 0x17a   :  { %v279_v55 = vsel %vm270_vm6, %v277_v3, %v278_v4  ;;  %v285_v11 = vsel %vm270_vm6, %v278_v4, %v284_v1  ;;  %v4417_v45 = vadd.s32 128, %v4370_v62  ;;  %vm1087_vm8 = vcmask 1022976  }
 0x17b   :  { %v297_v12 = vadd.f32 %v279_v55, %v254_v40  ;;  %v300_v13 = vadd.f32 %v285_v11, %v257_v63  ;;  %v4384_v15 = vadd.f32 %v196_v46, %v169_v8  ;;  %v147_v18 = vpop.permute.xlu1 %146  ;;  %v145_v19 = vpop.permute.xlu0 %144  ;;  %v327_v20 = vrot.slane %v303_v7, 4 }
 0x17c   :  { %v4386_v23 = vadd.f32 %v197_v48, %v170_v9  ;;  %v156_v54 = vsel %vm150_vm5, %v147_v18, %v149_v30  ;;  %v155_v16 = vsel %vm150_vm5, %v145_v19, %v147_v18  ;;  %v401_v19 = vand.u32 31, %v4417_v45 }
 0x17d   :  { %v320_v17 = vrot.slane %v297_v12, 4  ;;  %v321_v24 = vrot.slane %v300_v13, 4  ;;  %v229_v25 = vrot.slane %v4384_v15, 1  ;;  %v173_v26 = vadd.f32 %v156_v54, %v4341_v22 }
 0x17e   :  { %v232_v31 = vrot.slane %v4386_v23, 1  ;;  %v172_v32 = vadd.f32 %v155_v16, %v4339_v21  ;;  %vm4468_vm11 = vcmp.ge.s32.totalorder %v401_v19, 2  ;;  %vm4476_vm12 = vcmp.lt.s32.totalorder %v401_v19, 18 }
 0x17f   :  { %v322_v33 = vsel %vm313_vm0, %v320_v17, %v321_v24  ;;  %v328_v34 = vsel %vm313_vm0, %v321_v24, %v327_v20  ;;  %v4396_v30 = vadd.f32 %v199_v5, %v173_v26  ;;  %v230_v40 = vsel %vm227_vm3, %v228_v36, %v229_v25  ;;  %vm410_vm15 = vmand %vm4468_vm11, %vm4476_vm12 }
 0x180   :  { %v337_v38 = vadd.f32 %v322_v33, %v297_v12  ;;  %v340_v39 = vadd.f32 %v328_v34, %v300_v13  ;;  %v233_v22 = vsel %vm227_vm3, %v231_v28, %v232_v31  ;;  %v4404_v42 = vadd.f32 %v198_v37, %v172_v32 }
 0x181   :  { %v253_v41 = vadd.f32 %v233_v22, %v210_v10  ;;  %v239_v21 = vrot.slane %v4396_v30, 1  ;;  %v252_v49 = vadd.f32 %v230_v40, %v209_v14 }
 0x182   :  { %v343_v52 = vadd.f32 %v337_v38, %v4348_v27  ;;  %v346_v57 = vadd.f32 %v340_v39, %v4354_v35  ;;  %v237_v63 = vrot.slane %v4404_v42, 1 }
 0x183   :  { %v240_v46 = vsel %vm227_vm3, %v232_v31, %v239_v21  ;;  %v259_v47 = vadd.f32 %v239_v21, %v4396_v30  ;;  %v274_v27 = vrot.slane %v253_v41, 2  ;;  %v271_v18 = vrot.slane %v252_v49, 2 }
 0x184   :  { %v349_v48 = vmul.f32 0.012345679, %v343_v52  ;;  %v352_v1 = vmul.f32 0.012345679, %v346_v57  ;;  %v256_v51 = vadd.f32 %v240_v46, %v4386_v23  ;;  %v238_v2 = vsel %vm227_vm3, %v229_v25, %v237_v63 }
 0x185   :  { %v282_v35 = vrot.slane %v259_v47, 2  ;;  %v258_v3 = vadd.f32 %v237_v63, %v4404_v42  ;;  %v255_v5 = vadd.f32 %v238_v2, %v4384_v15  ;;  %v400_v57 = vand.u32 31, %v4370_v62 }
 0x186   :  { %v392_v4 = vsub.f32 %v349_v48, %v4322_v61  ;;  %v395_v6 = vsub.f32 %v352_v1, %v4320_v60  ;;  %v275_v53 = vrot.slane %v256_v51, 2 }
 0x187   :  { %v302_v7 = vadd.f32 %v282_v35, %v259_v47  ;;  %v280_v8 = vrot.slane %v258_v3, 2  ;;  %v272_v20 = vrot.slane %v255_v5, 2  ;;  %vm4483_vm13 = vcmp.ge.s32.totalorder %v400_v57, 2 }
 0x188   :  { %v414_v9 = vsel %vm411_vm9, %v392_v4, 0.0  ;;  %v417_v10 = vsel %vm411_vm9, %v395_v6, 0.0  ;;  %v276_v50 = vsel %vm270_vm6, %v274_v27, %v275_v53  ;;  %v283_v55 = vsel %vm270_vm6, %v275_v53, %v282_v35 }
 0x189   :  { %v427_v11 = vrot.slane %v414_v9, 6  ;;  %v432_v12 = vrot.slane %v417_v10, 6  ;;  %v296_v13 = vadd.f32 %v276_v50, %v253_v41  ;;  %v299_v14 = vadd.f32 %v283_v55, %v256_v51 }
 0x18a   :  { %v301_v54 = vadd.f32 %v280_v8, %v258_v3  ;;  %v325_v28 = vrot.slane %v302_v7, 4  ;;  %v273_v29 = vsel %vm270_vm6, %v271_v18, %v272_v20  ;;  %v281_v31 = vsel %vm270_vm6, %v272_v20, %v280_v8 }
 0x18b   :  { %v4436_v16 = vsel %vm424_vm10, %v427_v11, %v432_v12  ;;  %v4439_v17 = vsel %vm424_vm10, 0.0, %v427_v11  ;;  %v4442_v24 = vsel %vm424_vm10, %v432_v12, 0.0  ;;  %v317_v25 = vrot.slane %v296_v13, 4 }
 0x18c   :  { %8622 = vst [vmem:[#allocation2_spill] sm:$0xff] %v4436_v16  ;;  %8623 = vst [vmem:[#allocation3_spill] sm:$0xff] %v4439_v17  ;;  %v318_v26 = vrot.slane %v299_v14, 4  ;;  %v295_v32 = vadd.f32 %v273_v29, %v252_v49  ;;  %v298_v33 = vadd.f32 %v281_v31, %v255_v5  ;;  %v4447_v34 = vrot.slane %v4442_v24, 2 }
 0x18d   :  { %8624 = vst [vmem:[#allocation4_spill] sm:$0xff] %v4442_v24  ;;  %v462_v36 = vrot.slane %v4436_v16, 4  ;;  %v468_v39 = vrot.slane %v4442_v24, 4  ;;  %v461_v22 = vrot.slane %v4439_v17, 4  ;;  %v323_v43 = vrot.slane %v301_v54, 4 }
 0x18e   :  { %8625 = vst [vmem:[#allocation5_spill] sm:$0xff] %v4447_v34  ;;  %v319_v37 = vsel %vm313_vm0, %v317_v25, %v318_v26  ;;  %v326_v38 = vsel %vm313_vm0, %v318_v26, %v325_v28  ;;  %v314_v41 = vrot.slane %v295_v32, 4  ;;  %v315_v21 = vrot.slane %v298_v33, 4  ;;  %1874 = vrot.lane.b32.xlu1 %v4447_v34, %s4183_s29  ;;  %1598 = vrot.lane.b32.xlu0 %v4447_v34, %s4182_s0 }
 0x18f   :  { %v339_v40 = vadd.f32 %v326_v38, %v299_v14  ;;  %v336_v44 = vadd.f32 %v319_v37, %v296_v13  ;;  %v4463_v48 = vsel %vm313_vm0, %v462_v36, %v468_v39  ;;  %v4466_v1 = vsel %vm313_vm0, %v461_v22, %v462_v36 }
 0x190   :  { %v316_v45 = vsel %vm313_vm0, %v314_v41, %v315_v21  ;;  %v324_v46 = vsel %vm313_vm0, %v315_v21, %v323_v43  ;;  %vm4487_vm14 = vcmp.lt.s32.totalorder %v400_v57, 18  ;;  %v383_v4 = vsel %vm150_vm5, %v4324_v0, %v4320_v60 }
 0x191   :  { %v345_v52 = vadd.f32 %v339_v40, %v4396_v30  ;;  %v335_v47 = vadd.f32 %v316_v45, %v295_v32  ;;  %v338_v63 = vadd.f32 %v324_v46, %v298_v33  ;;  %v342_v30 = vadd.f32 %v336_v44, %v4386_v23  ;;  %vm409_vm4 = vmand %vm4483_vm13, %vm4487_vm14 }
 0x192   :  { %480 = vrot.lane.b32.xlu1 %v4463_v48, %s4182_s0  ;;  %474 = vrot.lane.b32.xlu0 %v4466_v1, %s4182_s0  ;;  %v382_v23 = vsel %vm150_vm5, %v4316_v58, %v4324_v0  ;;  %v1574_v0 = vrot.slane %v4436_v16, 2  ;;  %v1573_v53 = vrot.slane %v4439_v17, 2  ;;  %v380_v5 = vsel %vm150_vm5, %v4318_v59, %v4312_v56 }
 0x193   :  { %v351_v51 = vmul.f32 0.012345679, %v345_v52  ;;  %v341_v27 = vadd.f32 %v335_v47, %v4384_v15  ;;  %v344_v35 = vadd.f32 %v338_v63, %v4404_v42  ;;  %v348_v42 = vmul.f32 0.012345679, %v342_v30 }
 0x194   :  { %v381_v7 = vsel %vm150_vm5, %v4312_v56, %v4322_v61  ;;  %v4533_v50 = vsel %vm270_vm6, %v1574_v0, %v4447_v34  ;;  %v4536_v55 = vsel %vm270_vm6, %v1573_v53, %v1574_v0  ;;  %v841_v63 = vadd.f32 %v4463_v48, %v4436_v16 }
 0x195   :  { %v350_v6 = vmul.f32 0.012345679, %v344_v35  ;;  %v394_v15 = vsub.f32 %v351_v51, %v383_v4  ;;  %v347_v60 = vmul.f32 0.012345679, %v341_v27  ;;  %v391_v56 = vsub.f32 %v348_v42, %v381_v7 }
 0x196   :  { %524 = vrot.lane.b32.xlu1 %v4463_v48, %s4183_s29  ;;  %518 = vrot.lane.b32.xlu0 %v4466_v1, %s4183_s29  ;;  %v838_v49 = vadd.f32 %v4466_v1, %v4439_v17  ;;  %v847_v51 = vmul.f32 -0.029102264, %v841_v63  ;;  %v883_v30 = vmul.f32 -0.026135158, %v841_v63  ;;  %v955_v35 = vmul.f32 0.017029569, %v841_v63 }
 0x197   :  { %v393_v58 = vsub.f32 %v350_v6, %v382_v23  ;;  %v416_v8 = vsel %vm410_vm15, %v394_v15, 0.0  ;;  %v390_v59 = vsub.f32 %v347_v60, %v380_v5  ;;  %v413_v11 = vsel %vm410_vm15, %v391_v56, 0.0 }
 0x198   :  { %v430_v61 = vrot.slane %v416_v8, 6  ;;  %v426_v18 = vrot.slane %v413_v11, 6  ;;  %v844_v62 = vmul.f32 -0.029102264, %v838_v49  ;;  %v880_v27 = vmul.f32 -0.026135158, %v838_v49 }
 0x199   :  { %v415_v9 = vsel %vm409_vm4, %v393_v58, 0.0  ;;  %v412_v12 = vsel %vm409_vm4, %v390_v59, 0.0  ;;  %v952_v2 = vmul.f32 0.017029569, %v838_v49  ;;  %v991_v6 = vmul.f32 0.04052399, %v841_v63 }
 0x19a   :  { %1044 = vrot.lane.b32.xlu1 %v4463_v48, %s4184_s30  ;;  %1038 = vrot.lane.b32.xlu0 %v4466_v1, %s4184_s30  ;;  %v428_v10 = vrot.slane %v415_v9, 6  ;;  %v4553_v13 = vsel %vm424_vm10, %v430_v61, 0.0  ;;  %v425_v19 = vrot.slane %v412_v12, 6  ;;  %v4569_v25 = vsel %vm424_vm10, %v426_v18, %v430_v61 }
 0x19b   :  { %8634 = vst [vmem:[#allocation6_spill] sm:$0xff] %v4553_v13  ;;  %v4563_v20 = vrot.slane %v4553_v13, 2  ;;  %8637 = vst [vmem:[#allocation9_spill] sm:$0xff] %v4569_v25  ;;  %v4572_v26 = vsel %vm424_vm10, 0.0, %v426_v18  ;;  %v459_v32 = vrot.slane %v4569_v25, 4  ;;  %v466_v22 = vrot.slane %v4553_v13, 4 }
 0x19c   :  { %v4556_v14 = vsel %vm424_vm10, %v428_v10, 0.0  ;;  %8638 = vst [vmem:[#allocation10_spill] sm:$0xff] %v4572_v26  ;;  %v4575_v28 = vsel %vm424_vm10, %v425_v19, %v428_v10  ;;  %v4578_v29 = vsel %vm424_vm10, 0.0, %v425_v19  ;;  %v458_v31 = vrot.slane %v4572_v26, 4 }
 0x19d   :  { %8635 = vst [vmem:[#allocation7_spill] sm:$0xff] %v4556_v14  ;;  %8636 = vst [vmem:[#allocation8_spill] sm:$0xff] %v4563_v20  ;;  %v4566_v54 = vrot.slane %v4556_v14, 2  ;;  %v455_v33 = vrot.slane %v4578_v29, 4  ;;  %v456_v36 = vrot.slane %v4575_v28, 4  ;;  %v464_v39 = vrot.slane %v4556_v14, 4 }
 0x19e   :  { %1592 = vrot.lane.b32.xlu1 %v4533_v50, %s4182_s0  ;;  %1586 = vrot.lane.b32.xlu0 %v4536_v55, %s4182_s0  ;;  %8639 = vst [vmem:[#allocation11_spill] sm:$0xff] %v4575_v28  ;;  %8640 = vst [vmem:[#allocation12_spill] sm:$0xff] %v4578_v29  ;;  %v460_v37 = vsel %vm313_vm0, %v458_v31, %v459_v32  ;;  %v467_v41 = vsel %vm313_vm0, %v459_v32, %v466_v22  ;;  %v1570_v21 = vrot.slane %v4572_v26, 2 }
 0x19f   :  { %v457_v38 = vsel %vm313_vm0, %v455_v33, %v456_v36  ;;  %v465_v40 = vsel %vm313_vm0, %v456_v36, %v464_v39  ;;  %v1571_v43 = vrot.slane %v4569_v25, 2  ;;  %v1567_v44 = vrot.slane %v4578_v29, 2 }
 0x1a0   :  { %v1568_v52 = vrot.slane %v4575_v28, 2  ;;  %v919_v48 = vmul.f32 -0.013526065, %v841_v63  ;;  %v916_v1 = vmul.f32 -0.013526065, %v838_v49  ;;  %v837_v3 = vadd.f32 %v460_v37, %v4572_v26 }
 0x1a1   :  { %v4619_v57 = vsel %vm270_vm6, %v1570_v21, %v1571_v43  ;;  %v4634_v47 = vsel %vm270_vm6, %v1571_v43, %v4563_v20  ;;  %v836_v4 = vadd.f32 %v457_v38, %v4578_v29  ;;  %v988_v23 = vmul.f32 0.04052399, %v838_v49 }
 0x1a2   :  { %1862 = vrot.lane.b32.xlu1 %v4536_v55, %s4183_s29  ;;  %1868 = vrot.lane.b32.xlu0 %v4533_v50, %s4183_s29  ;;  %v4622_v45 = vsel %vm270_vm6, %v1567_v44, %v1568_v52  ;;  %v4630_v46 = vsel %vm270_vm6, %v1568_v52, %v4566_v54  ;;  %v839_v15 = vadd.f32 %v465_v40, %v4575_v28  ;;  %v843_v60 = vmul.f32 -0.029102264, %v837_v3 }
 0x1a3   :  { %v840_v42 = vadd.f32 %v467_v41, %v4569_v25  ;;  %v842_v58 = vmul.f32 -0.029102264, %v836_v4  ;;  %v879_v5 = vmul.f32 -0.026135158, %v837_v3  ;;  %v878_v7 = vmul.f32 -0.026135158, %v836_v4 }
 0x1a4   :  { %v845_v0 = vmul.f32 -0.029102264, %v839_v15  ;;  %v881_v8 = vmul.f32 -0.026135158, %v839_v15  ;;  %v915_v61 = vmul.f32 -0.013526065, %v837_v3 }
 0x1a5   :  { %v846_v53 = vmul.f32 -0.029102264, %v840_v42  ;;  %v882_v9 = vmul.f32 -0.026135158, %v840_v42  ;;  %v914_v10 = vmul.f32 -0.013526065, %v836_v4 }
 0x1a6   :  { %1596 = vrot.lane.b32.xlu1 %v4563_v20, %s4182_s0  ;;  %1594 = vrot.lane.b32.xlu0 %v4566_v54, %s4182_s0  ;;  %v917_v18 = vmul.f32 -0.013526065, %v839_v15  ;;  %v918_v19 = vmul.f32 -0.013526065, %v840_v42  ;;  %v951_v33 = vmul.f32 0.017029569, %v837_v3 }
 0x1a7   :  { %v950_v36 = vmul.f32 0.017029569, %v836_v4  ;;  %v953_v39 = vmul.f32 0.017029569, %v839_v15  ;;  %v954_v22 = vmul.f32 0.017029569, %v840_v42 }
 0x1a8   :  { %v987_v21 = vmul.f32 0.04052399, %v837_v3  ;;  %v986_v43 = vmul.f32 0.04052399, %v836_v4  ;;  %vm1046_vm0 = vcmask 15360  }
 0x1aa   :  { %1870 = vrot.lane.b32.xlu1 %v4566_v54, %s4183_s29  ;;  %1872 = vrot.lane.b32.xlu0 %v4563_v20, %s4183_s29 }
 0x1ae   :  { %472 = vrot.lane.b32.xlu1 %v460_v37, %s4182_s0  ;;  %470 = vrot.lane.b32.xlu0 %v457_v38, %s4182_s0 }
 0x1b2   :  { %476 = vrot.lane.b32.xlu1 %v465_v40, %s4182_s0  ;;  %478 = vrot.lane.b32.xlu0 %v467_v41, %s4182_s0 }
 0x1b6   :  { %516 = vrot.lane.b32.xlu1 %v460_v37, %s4183_s29  ;;  %514 = vrot.lane.b32.xlu0 %v457_v38, %s4183_s29 }
 0x1ba   :  { %520 = vrot.lane.b32.xlu1 %v465_v40, %s4183_s29  ;;  %522 = vrot.lane.b32.xlu0 %v467_v41, %s4183_s29 }
 0x1be   :  { %1036 = vrot.lane.b32.xlu1 %v460_v37, %s4184_s30  ;;  %1034 = vrot.lane.b32.xlu0 %v457_v38, %s4184_s30 }
 0x1c2   :  { %1040 = vrot.lane.b32.xlu1 %v465_v40, %s4184_s30  ;;  %1042 = vrot.lane.b32.xlu0 %v467_v41, %s4184_s30 }
 0x1c6   :  { %1354 = vrot.lane.b32.xlu1 %v460_v37, %s4185_s3  ;;  %1352 = vrot.lane.b32.xlu0 %v457_v38, %s4185_s3 }
 0x1ca   :  { %1358 = vrot.lane.b32.xlu1 %v467_v41, %s4185_s3  ;;  %1356 = vrot.lane.b32.xlu0 %v465_v40, %s4185_s3 }
 0x1ce   :  { %1584 = vrot.lane.b32.xlu1 %v4619_v57, %s4182_s0  ;;  %1582 = vrot.lane.b32.xlu0 %v4622_v45, %s4182_s0 }
 0x1d2   :  { %1588 = vrot.lane.b32.xlu1 %v4630_v46, %s4182_s0  ;;  %1590 = vrot.lane.b32.xlu0 %v4634_v47, %s4182_s0 }
 0x1d6   :  { %1858 = vrot.lane.b32.xlu1 %v4622_v45, %s4183_s29  ;;  %1860 = vrot.lane.b32.xlu0 %v4619_v57, %s4183_s29 }
 0x1da   :  { %1866 = vrot.lane.b32.xlu1 %v4634_v47, %s4183_s29  ;;  %1864 = vrot.lane.b32.xlu0 %v4630_v46, %s4183_s29 }
 0x1de   :  { %864 = vrot.lane.b32.xlu1 %v847_v51, %s4183_s29  ;;  %858 = vrot.lane.b32.xlu0 %v844_v62, %s4183_s29  ;;  %v989_v51 = vmul.f32 0.04052399, %v839_v15  ;;  %v990_v62 = vmul.f32 0.04052399, %v840_v42 }
 0x1e2   :  { %900 = vrot.lane.b32.xlu1 %v883_v30, %s4183_s29  ;;  %894 = vrot.lane.b32.xlu0 %v880_v27, %s4183_s29 }
 0x1e6   :  { %936 = vrot.lane.b32.xlu1 %v919_v48, %s4183_s29  ;;  %930 = vrot.lane.b32.xlu0 %v916_v1, %s4183_s29 }
 0x1ea   :  { %972 = vrot.lane.b32.xlu1 %v955_v35, %s4183_s29  ;;  %966 = vrot.lane.b32.xlu0 %v952_v2, %s4183_s29 }
 0x1ee   :  { %1008 = vrot.lane.b32.xlu1 %v991_v6, %s4183_s29  ;;  %1002 = vrot.lane.b32.xlu0 %v988_v23, %s4183_s29 }
 0x1f2   :  { %856 = vrot.lane.b32.xlu1 %v843_v60, %s4183_s29  ;;  %854 = vrot.lane.b32.xlu0 %v842_v58, %s4183_s29 }
 0x1f6   :  { %860 = vrot.lane.b32.xlu1 %v845_v0, %s4183_s29  ;;  %862 = vrot.lane.b32.xlu0 %v846_v53, %s4183_s29 }
 0x1fa   :  { %892 = vrot.lane.b32.xlu1 %v879_v5, %s4183_s29  ;;  %890 = vrot.lane.b32.xlu0 %v878_v7, %s4183_s29 }
 0x1fe   :  { %896 = vrot.lane.b32.xlu1 %v881_v8, %s4183_s29  ;;  %898 = vrot.lane.b32.xlu0 %v882_v9, %s4183_s29 }
 0x200   :  { %v4674_v56 = vpop.permute.xlu1 %1874  ;;  %v4676_v59 = vpop.permute.xlu0 %1598 }
 0x201   :  { %8641 = vst [vmem:[#allocation13_spill] sm:$0xff] %v4676_v59  ;;  %v4734_v3 = vadd.f32 %v4674_v56, %v4442_v24 }
 0x202   :  { %928 = vrot.lane.b32.xlu1 %v915_v61, %s4183_s29  ;;  %926 = vrot.lane.b32.xlu0 %v914_v10, %s4183_s29 }
 0x203   :  { %v2087_v53 = vmul.f32 -0.0074456926, %v4734_v3 }
 0x204   :  { %v4680_v11 = vpop.permute.xlu1 %480  ;;  %v4682_v12 = vpop.permute.xlu0 %474 }
 0x205   :  { %8642 = vst [vmem:[#allocation14_spill] sm:$0xff] %v4680_v11  ;;  %8643 = vst [vmem:[#allocation15_spill] sm:$0xff] %v4682_v12  ;;  %v2110_v10 = vrot.slane %v2087_v53, 1 }
 0x206   :  { %932 = vrot.lane.b32.xlu1 %v917_v18, %s4183_s29  ;;  %934 = vrot.lane.b32.xlu0 %v918_v19, %s4183_s29 }
 0x208   :  { %v4686_v31 = vpop.permute.xlu1 %524  ;;  %v4688_v32 = vpop.permute.xlu0 %518 }
 0x209   :  { %v4706_v44 = vadd.f32 %v4686_v31, %v4436_v16  ;;  %v4710_v52 = vadd.f32 %v4688_v32, %v4439_v17 }
 0x20a   :  { %964 = vrot.lane.b32.xlu1 %v951_v33, %s4183_s29  ;;  %962 = vrot.lane.b32.xlu0 %v950_v36, %s4183_s29 }
 0x20b   :  { %v547_v35 = vmul.f32 -0.029102264, %v4706_v44  ;;  %v544_v2 = vmul.f32 -0.029102264, %v4710_v52  ;;  %v583_v4 = vmul.f32 -0.013865931, %v4706_v44 }
 0x20c   :  { %v4692_v37 = vpop.permute.xlu1 %1044  ;;  %v4694_v38 = vpop.permute.xlu0 %1038  ;;  %v580_v15 = vmul.f32 -0.013865931, %v4710_v52  ;;  %v619_v8 = vmul.f32 0.01604532, %v4706_v44  ;;  %v616_v9 = vmul.f32 0.01604532, %v4710_v52 }
 0x20d   :  { %v655_v33 = vmul.f32 0.035482433, %v4706_v44  ;;  %v652_v36 = vmul.f32 0.035482433, %v4710_v52 }
 0x20e   :  { %968 = vrot.lane.b32.xlu1 %v953_v39, %s4183_s29  ;;  %970 = vrot.lane.b32.xlu0 %v954_v22, %s4183_s29 }
 0x210   :  { %v4698_v40 = vpop.permute.xlu1 %1592  ;;  %v4700_v41 = vpop.permute.xlu0 %1586 }
 0x211   :  { %8644 = vst [vmem:[#allocation16_spill] sm:$0xff] %v4698_v40  ;;  %8645 = vst [vmem:[#allocation17_spill] sm:$0xff] %v4700_v41 }
 0x212   :  { %1000 = vrot.lane.b32.xlu1 %v987_v21, %s4183_s29  ;;  %998 = vrot.lane.b32.xlu0 %v986_v43, %s4183_s29  ;;  %v691_v43 = vmul.f32 0.0088402685, %v4706_v44 }
 0x214   :  { %v4712_v63 = vpop.permute.xlu1 %1862  ;;  %v4714_v49 = vpop.permute.xlu0 %1868 }
 0x215   :  { %v4720_v30 = vadd.f32 %v4712_v63, %v4439_v17  ;;  %v4724_v27 = vadd.f32 %v4714_v49, %v4436_v16 }
 0x216   :  { %1004 = vrot.lane.b32.xlu1 %v989_v51, %s4183_s29  ;;  %1006 = vrot.lane.b32.xlu0 %v990_v62, %s4183_s29  ;;  %v688_v51 = vmul.f32 0.0088402685, %v4710_v52 }
 0x217   :  { %v2081_v42 = vmul.f32 -0.0074456926, %v4720_v30  ;;  %v2084_v60 = vmul.f32 -0.0074456926, %v4724_v27 }
 0x218   :  { %v4726_v48 = vpop.permute.xlu1 %1596  ;;  %v4728_v1 = vpop.permute.xlu0 %1594 }
 0x219   :  { %8646 = vst [vmem:[#allocation18_spill] sm:$0xff] %v4726_v48  ;;  %8647 = vst [vmem:[#allocation19_spill] sm:$0xff] %v4728_v1  ;;  %v2103_v58 = vrot.slane %v2081_v42, 1  ;;  %v2104_v0 = vrot.slane %v2084_v60, 1  ;;  %v763_v60 = vmul.f32 -0.032415092, %v4706_v44 }
 0x21a   :  { %564 = vrot.lane.b32.xlu1 %v547_v35, %s4180_s13  ;;  %558 = vrot.lane.b32.xlu0 %v544_v2, %s4180_s13  ;;  %v727_v2 = vmul.f32 -0.021648958, %v4706_v44 }
 0x21b   :  { %v4756_v61 = vsel %vm227_vm3, %v2103_v58, %v2104_v0  ;;  %v4767_v39 = vsel %vm227_vm3, %v2104_v0, %v2110_v10  ;;  %v760_v58 = vmul.f32 -0.032415092, %v4710_v52  ;;  %v796_v10 = vmul.f32 -0.03364637, %v4710_v52 }
 0x21c   :  { %v4739_v6 = vpop.permute.xlu1 %1870  ;;  %v4741_v23 = vpop.permute.xlu0 %1872 }
 0x21e   :  { %600 = vrot.lane.b32.xlu1 %v583_v4, %s4180_s13  ;;  %594 = vrot.lane.b32.xlu0 %v580_v15, %s4180_s13  ;;  %v724_v4 = vmul.f32 -0.021648958, %v4710_v52 }
 0x220   :  { %v4749_v5 = vpop.permute.xlu1 %472  ;;  %v4751_v7 = vpop.permute.xlu0 %470 }
 0x221   :  { %8648 = vst [vmem:[#allocation20_spill] sm:$0xff] %v4749_v5  ;;  %8649 = vst [vmem:[#allocation21_spill] sm:$0xff] %v4751_v7 }
 0x222   :  { %636 = vrot.lane.b32.xlu1 %v619_v8, %s4180_s13  ;;  %630 = vrot.lane.b32.xlu0 %v616_v9, %s4180_s13  ;;  %v799_v9 = vmul.f32 -0.03364637, %v4706_v44 }
 0x224   :  { %v4760_v18 = vpop.permute.xlu1 %476  ;;  %v4762_v19 = vpop.permute.xlu0 %478 }
 0x225   :  { %8650 = vst [vmem:[#allocation22_spill] sm:$0xff] %v4760_v18  ;;  %8651 = vst [vmem:[#allocation23_spill] sm:$0xff] %v4762_v19 }
 0x226   :  { %672 = vrot.lane.b32.xlu1 %v655_v33, %s4180_s13  ;;  %666 = vrot.lane.b32.xlu0 %v652_v36, %s4180_s13 }
 0x228   :  { %v4771_v22 = vpop.permute.xlu1 %516  ;;  %v4773_v21 = vpop.permute.xlu0 %514 }
 0x22a   :  { %708 = vrot.lane.b32.xlu1 %v691_v43, %s4180_s13  ;;  %702 = vrot.lane.b32.xlu0 %v688_v51, %s4180_s13 }
 0x22c   :  { %v4779_v62 = vpop.permute.xlu1 %520  ;;  %v4781_v35 = vpop.permute.xlu0 %522 }
 0x22e   :  { %744 = vrot.lane.b32.xlu1 %v727_v2, %s4180_s13  ;;  %738 = vrot.lane.b32.xlu0 %v724_v4, %s4180_s13 }
 0x230   :  { %v4787_v15 = vpop.permute.xlu1 %1036  ;;  %v4789_v42 = vpop.permute.xlu0 %1034 }
 0x231   :  { %v1057_v0 = vadd.f32 %v4789_v42, %v4578_v29 }
 0x232   :  { %780 = vrot.lane.b32.xlu1 %v763_v60, %s4180_s13  ;;  %774 = vrot.lane.b32.xlu0 %v760_v58, %s4180_s13 }
 0x233   :  { %v1063_v2 = vmul.f32 -0.029102264, %v1057_v0  ;;  %v1100_v60 = vmul.f32 -0.03364637, %v1057_v0  ;;  %v1136_v1 = vmul.f32 -0.032415092, %v1057_v0 }
 0x234   :  { %v4797_v53 = vpop.permute.xlu1 %1040  ;;  %v4799_v8 = vpop.permute.xlu0 %1042  ;;  %v1172_v11 = vmul.f32 -0.021648958, %v1057_v0  ;;  %v1244_v18 = vmul.f32 0.035482433, %v1057_v0 }
 0x235   :  { %v1060_v33 = vadd.f32 %v4797_v53, %v4575_v28 }
 0x236   :  { %816 = vrot.lane.b32.xlu1 %v799_v9, %s4180_s13  ;;  %810 = vrot.lane.b32.xlu0 %v796_v10, %s4180_s13 }
 0x237   :  { %v1066_v36 = vmul.f32 -0.029102264, %v1060_v33  ;;  %v1103_v4 = vmul.f32 -0.03364637, %v1060_v33  ;;  %v1139_v10 = vmul.f32 -0.032415092, %v1060_v33 }
 0x238   :  { %v4807_v43 = vpop.permute.xlu1 %1354  ;;  %v4809_v51 = vpop.permute.xlu0 %1352  ;;  %v1175_v41 = vmul.f32 -0.021648958, %v1060_v33  ;;  %v1283_v19 = vmul.f32 0.01604532, %v1060_v33 }
 0x23a   :  { %1081 = vrot.lane.b32.xlu1 %v1066_v36, %s4186_s4  ;;  %1075 = vrot.lane.b32.xlu0 %v1063_v2, %s4186_s4 }
 0x23c   :  { %v4813_v44 = vpop.permute.xlu1 %1358  ;;  %v4815_v52 = vpop.permute.xlu0 %1356 }
 0x23e   :  { %1118 = vrot.lane.b32.xlu1 %v1103_v4, %s4186_s4  ;;  %1112 = vrot.lane.b32.xlu0 %v1100_v60, %s4186_s4 }
 0x240   :  { %v4819_v58 = vpop.permute.xlu1 %1584  ;;  %v4821_v9 = vpop.permute.xlu0 %1582 }
 0x241   :  { %8652 = vst [vmem:[#allocation24_spill] sm:$0xff] %v4819_v58  ;;  %8653 = vst [vmem:[#allocation25_spill] sm:$0xff] %v4821_v9  ;;  %v1211_v9 = vmul.f32 0.0088402685, %v1060_v33  ;;  %v1208_v58 = vmul.f32 0.0088402685, %v1057_v0 }
 0x242   :  { %1154 = vrot.lane.b32.xlu1 %v1139_v10, %s4186_s4  ;;  %1148 = vrot.lane.b32.xlu0 %v1136_v1, %s4186_s4 }
 0x244   :  { %v4825_v36 = vpop.permute.xlu1 %1588  ;;  %v4827_v2 = vpop.permute.xlu0 %1590 }
 0x245   :  { %8654 = vst [vmem:[#allocation26_spill] sm:$0xff] %v4825_v36  ;;  %8655 = vst [vmem:[#allocation27_spill] sm:$0xff] %v4827_v2  ;;  %v1247_v36 = vmul.f32 0.035482433, %v1060_v33  ;;  %v1280_v2 = vmul.f32 0.01604532, %v1057_v0 }
 0x246   :  { %1190 = vrot.lane.b32.xlu1 %v1175_v41, %s4186_s4  ;;  %1184 = vrot.lane.b32.xlu0 %v1172_v11, %s4186_s4 }
 0x248   :  { %v4831_v4 = vpop.permute.xlu1 %1858  ;;  %v4833_v60 = vpop.permute.xlu0 %1860 }
 0x24a   :  { %1226 = vrot.lane.b32.xlu1 %v1211_v9, %s4186_s4  ;;  %1220 = vrot.lane.b32.xlu0 %v1208_v58, %s4186_s4  ;;  %v4851_v58 = vadd.f32 %v4809_v51, %v4578_v29  ;;  %v4855_v9 = vadd.f32 %v4815_v52, %v4575_v28 }
 0x24c   :  { %v4837_v1 = vpop.permute.xlu1 %1866  ;;  %v4839_v10 = vpop.permute.xlu0 %1864 }
 0x24e   :  { %1262 = vrot.lane.b32.xlu1 %v1247_v36, %s4186_s4  ;;  %1256 = vrot.lane.b32.xlu0 %v1244_v18, %s4186_s4 }
 0x250   :  { %v4843_v11 = vpop.permute.xlu1 %864  ;;  %v4845_v41 = vpop.permute.xlu0 %858 }
 0x251   :  { %8656 = vst [vmem:[#allocation28_spill] sm:$0xff] %v4843_v11  ;;  %8657 = vst [vmem:[#allocation29_spill] sm:$0xff] %v4845_v41  ;;  %v1319_v11 = vmul.f32 -0.013865931, %v1060_v33  ;;  %v1316_v41 = vmul.f32 -0.013865931, %v1057_v0 }
 0x252   :  { %1298 = vrot.lane.b32.xlu1 %v1283_v19, %s4186_s4  ;;  %1292 = vrot.lane.b32.xlu0 %v1280_v2, %s4186_s4  ;;  %v4865_v19 = vadd.f32 %v4807_v43, %v4439_v17  ;;  %v4869_v2 = vadd.f32 %v4813_v44, %v4436_v16  ;;  %v1378_v0 = vmul.f32 -0.029102264, %v4855_v9 }
 0x254   :  { %v4857_v36 = vpop.permute.xlu1 %900  ;;  %v4859_v18 = vpop.permute.xlu0 %894 }
 0x255   :  { %8658 = vst [vmem:[#allocation30_spill] sm:$0xff] %v4857_v36  ;;  %8659 = vst [vmem:[#allocation31_spill] sm:$0xff] %v4859_v18  ;;  %v1375_v36 = vmul.f32 -0.029102264, %v4851_v58  ;;  %v1380_v18 = vmul.f32 -0.029102264, %v4869_v2 }
 0x256   :  { %1334 = vrot.lane.b32.xlu1 %v1319_v11, %s4186_s4  ;;  %1328 = vrot.lane.b32.xlu0 %v1316_v41, %s4186_s4  ;;  %v1377_v41 = vmul.f32 -0.029102264, %v4865_v19 }
 0x258   :  { %v4871_v40 = vpop.permute.xlu1 %936  ;;  %v4873_v48 = vpop.permute.xlu0 %930 }
 0x259   :  { %8660 = vst [vmem:[#allocation32_spill] sm:$0xff] %v4871_v40  ;;  %8661 = vst [vmem:[#allocation33_spill] sm:$0xff] %v4873_v48  ;;  %v2138_v40 = vmul.f32 -0.013526065, %v4720_v30  ;;  %v2141_v48 = vmul.f32 -0.013526065, %v4724_v27 }
 0x25a   :  { %1387 = vrot.lane.b32.xlu0 %v1375_v36, %s4182_s0  ;;  %1393 = vrot.lane.b32.xlu1 %v1378_v0, %s4182_s0  ;;  %v1411_v0 = vmul.f32 -0.03748506, %v4851_v58 }
 0x25c   :  { %v4879_v33 = vpop.permute.xlu1 %972  ;;  %v4881_v11 = vpop.permute.xlu0 %966 }
 0x25d   :  { %8662 = vst [vmem:[#allocation34_spill] sm:$0xff] %v4879_v33  ;;  %8663 = vst [vmem:[#allocation35_spill] sm:$0xff] %v4881_v11  ;;  %v1414_v33 = vmul.f32 -0.03748506, %v4855_v9  ;;  %v2160_v11 = vrot.slane %v2138_v40, 1 }
 0x25e   :  { %1391 = vrot.lane.b32.xlu0 %v1377_v41, %s4182_s0  ;;  %1397 = vrot.lane.b32.xlu1 %v1380_v18, %s4182_s0  ;;  %v2144_v41 = vmul.f32 -0.013526065, %v4734_v3  ;;  %v2161_v18 = vrot.slane %v2141_v48, 1  ;;  %v1447_v48 = vmul.f32 -0.03868194, %v4851_v58 }
 0x260   :  { %v4889_v59 = vpop.permute.xlu1 %1008  ;;  %v4891_v36 = vpop.permute.xlu0 %1002  ;;  %v2167_v12 = vrot.slane %v2144_v41, 1  ;;  %v1452_v41 = vmul.f32 -0.03868194, %v4869_v2 }
 0x261   :  { %8664 = vst [vmem:[#allocation36_spill] sm:$0xff] %v4889_v59  ;;  %8665 = vst [vmem:[#allocation37_spill] sm:$0xff] %v4891_v36  ;;  %v1413_v59 = vmul.f32 -0.03748506, %v4865_v19  ;;  %v1416_v36 = vmul.f32 -0.03748506, %v4869_v2 }
 0x262   :  { %1423 = vrot.lane.b32.xlu0 %v1411_v0, %s4182_s0  ;;  %1429 = vrot.lane.b32.xlu1 %v1414_v33, %s4182_s0  ;;  %v4907_v0 = vsel %vm227_vm3, %v2160_v11, %v2161_v18  ;;  %v1449_v11 = vmul.f32 -0.03868194, %v4865_v19 }
 0x264   :  { %v4898_v7 = vpop.permute.xlu1 %856  ;;  %v4900_v5 = vpop.permute.xlu0 %854 }
 0x265   :  { %8666 = vst [vmem:[#allocation38_spill] sm:$0xff] %v4898_v7  ;;  %8667 = vst [vmem:[#allocation39_spill] sm:$0xff] %v4900_v5  ;;  %v1450_v5 = vmul.f32 -0.03868194, %v4855_v9  ;;  %v4916_v7 = vsel %vm227_vm3, %v2161_v18, %v2167_v12  ;;  %v1491_v18 = vmul.f32 0.0025498634, %v4851_v58 }
 0x266   :  { %1427 = vrot.lane.b32.xlu0 %v1413_v59, %s4182_s0  ;;  %1433 = vrot.lane.b32.xlu1 %v1416_v36, %s4182_s0  ;;  %8670 = vst [vmem:[#allocation42_spill] sm:$0xff] %v4916_v7  ;;  %v1962_v7 = vmul.f32 0.02602388, %v4724_v27 }
 0x268   :  { %v4909_v33 = vpop.permute.xlu1 %860  ;;  %v4911_v40 = vpop.permute.xlu0 %862  ;;  %v1982_v34 = vrot.slane %v1962_v7, 1  ;;  %v526_v7 = vsel %vm98_vm2, %v4773_v21, %v4771_v22 }
 0x269   :  { %8668 = vst [vmem:[#allocation40_spill] sm:$0xff] %v4909_v33  ;;  %8669 = vst [vmem:[#allocation41_spill] sm:$0xff] %v4911_v40 }
 0x26a   :  { %1459 = vrot.lane.b32.xlu0 %v1447_v48, %s4182_s0  ;;  %1465 = vrot.lane.b32.xlu1 %v1450_v5, %s4182_s0  ;;  %v1494_v5 = vmul.f32 0.0025498634, %v4855_v9 }
 0x26c   :  { %v4920_v59 = vpop.permute.xlu1 %892  ;;  %v4922_v36 = vpop.permute.xlu0 %890 }
 0x26d   :  { %8671 = vst [vmem:[#allocation43_spill] sm:$0xff] %v4920_v59  ;;  %8672 = vst [vmem:[#allocation44_spill] sm:$0xff] %v4922_v36  ;;  %v1959_v59 = vmul.f32 0.02602388, %v4720_v30 }
 0x26e   :  { %1463 = vrot.lane.b32.xlu0 %v1449_v11, %s4182_s0  ;;  %1469 = vrot.lane.b32.xlu1 %v1452_v41, %s4182_s0  ;;  %v1493_v11 = vmul.f32 0.0025498634, %v4865_v19  ;;  %v1496_v41 = vmul.f32 0.0025498634, %v4869_v2 }
 0x26f   :  { %v1981_v20 = vrot.slane %v1959_v59, 1 }
 0x270   :  { %v4928_v33 = vpop.permute.xlu1 %896  ;;  %v4930_v12 = vpop.permute.xlu0 %898 }
 0x271   :  { %8673 = vst [vmem:[#allocation45_spill] sm:$0xff] %v4928_v33  ;;  %8674 = vst [vmem:[#allocation46_spill] sm:$0xff] %v4930_v12  ;;  %v1983_v59 = vsel %vm227_vm3, %v1981_v20, %v1982_v34  ;;  %v528_v20 = vsel %vm98_vm2, %v4779_v62, %v4781_v35 }
 0x272   :  { %1503 = vrot.lane.b32.xlu0 %v1491_v18, %s4182_s0  ;;  %1509 = vrot.lane.b32.xlu1 %v1494_v5, %s4182_s0  ;;  %v1527_v18 = vmul.f32 0.031963617, %v4851_v58  ;;  %v1530_v5 = vmul.f32 0.031963617, %v4855_v9  ;;  %v1532_v58 = vmul.f32 0.031963617, %v4869_v2 }
 0x273   :  { %v2019_v2 = vmul.f32 0.031963617, %v4724_v27 }
 0x274   :  { %v4936_v48 = vpop.permute.xlu1 %928  ;;  %v4938_v40 = vpop.permute.xlu0 %926 }
 0x275   :  { %8675 = vst [vmem:[#allocation47_spill] sm:$0xff] %v4936_v48  ;;  %8676 = vst [vmem:[#allocation48_spill] sm:$0xff] %v4938_v40  ;;  %v1902_v48 = vmul.f32 0.0088402685, %v4720_v30  ;;  %v1905_v40 = vmul.f32 0.0088402685, %v4724_v27  ;;  %v527_v27 = vsel %vm98_vm2, %v4771_v22, %v4688_v32 }
 0x276   :  { %1507 = vrot.lane.b32.xlu0 %v1493_v11, %s4182_s0  ;;  %1513 = vrot.lane.b32.xlu1 %v1496_v41, %s4182_s0  ;;  %v1908_v11 = vmul.f32 0.0088402685, %v4734_v3 }
 0x277   :  { %v1925_v9 = vrot.slane %v1905_v40, 1 }
 0x278   :  { %v4944_v33 = vpop.permute.xlu1 %932  ;;  %v4946_v12 = vpop.permute.xlu0 %934 }
 0x279   :  { %8677 = vst [vmem:[#allocation49_spill] sm:$0xff] %v4944_v33  ;;  %8678 = vst [vmem:[#allocation50_spill] sm:$0xff] %v4946_v12  ;;  %v1529_v33 = vmul.f32 0.031963617, %v4865_v19  ;;  %v1924_v12 = vrot.slane %v1902_v48, 1 }
 0x27a   :  { %1539 = vrot.lane.b32.xlu0 %v1527_v18, %s4182_s0  ;;  %1545 = vrot.lane.b32.xlu1 %v1530_v5, %s4182_s0  ;;  %v1931_v18 = vrot.slane %v1908_v11, 1  ;;  %v1965_v5 = vmul.f32 0.02602388, %v4734_v3  ;;  %v2016_v19 = vmul.f32 0.031963617, %v4720_v30 }
 0x27b   :  { %v1926_v40 = vsel %vm227_vm3, %v1924_v12, %v1925_v9  ;;  %v2022_v11 = vmul.f32 0.031963617, %v4734_v3 }
 0x27c   :  { %v4955_v36 = vpop.permute.xlu1 %964  ;;  %v4957_v41 = vpop.permute.xlu0 %962  ;;  %v1932_v48 = vsel %vm227_vm3, %v1925_v9, %v1931_v18  ;;  %v2038_v30 = vrot.slane %v2016_v19, 1  ;;  %v4992_v9 = vadd.f32 %v527_v27, %v4572_v26  ;;  %v4995_v18 = vadd.f32 %v526_v7, %v4578_v29 }
 0x27d   :  { %8679 = vst [vmem:[#allocation51_spill] sm:$0xff] %v4955_v36  ;;  %8680 = vst [vmem:[#allocation52_spill] sm:$0xff] %v4957_v41  ;;  %v2045_v3 = vrot.slane %v2022_v11, 1  ;;  %v5012_v19 = vadd.f32 %v528_v20, %v4575_v28 }
 0x27e   :  { %1543 = vrot.lane.b32.xlu0 %v1529_v33, %s4182_s0  ;;  %1549 = vrot.lane.b32.xlu1 %v1532_v58, %s4182_s0  ;;  %v1988_v33 = vrot.slane %v1965_v5, 1  ;;  %v579_v7 = vmul.f32 -0.013865931, %v4992_v9 }
 0x27f   :  { %v581_v20 = vmul.f32 -0.013865931, %v5012_v19 }
 0x280   :  { %v4966_v36 = vpop.permute.xlu1 %968  ;;  %v4968_v41 = vpop.permute.xlu0 %970  ;;  %v1989_v12 = vsel %vm227_vm3, %v1982_v34, %v1988_v33  ;;  %v529_v34 = vsel %vm98_vm2, %v4781_v35, %v4686_v31  ;;  %v543_v31 = vmul.f32 -0.029102264, %v4992_v9  ;;  %v542_v35 = vmul.f32 -0.029102264, %v4995_v18 }
 0x281   :  { %8681 = vst [vmem:[#allocation53_spill] sm:$0xff] %v4966_v36  ;;  %8682 = vst [vmem:[#allocation54_spill] sm:$0xff] %v4968_v41  ;;  %v2039_v41 = vrot.slane %v2019_v2, 1  ;;  %v5015_v2 = vadd.f32 %v529_v34, %v4569_v25  ;;  %v545_v33 = vmul.f32 -0.029102264, %v5012_v19 }
 0x282   :  { %1937 = vrot.lane.b32.xlu0 %v1926_v40, %s4180_s13  ;;  %1943 = vrot.lane.b32.xlu1 %v1932_v48, %s4180_s13 }
 0x283   :  { %v2040_v22 = vsel %vm227_vm3, %v2038_v30, %v2039_v41  ;;  %v2046_v21 = vsel %vm227_vm3, %v2039_v41, %v2045_v3  ;;  %v546_v11 = vmul.f32 -0.029102264, %v5015_v2  ;;  %v582_v34 = vmul.f32 -0.013865931, %v5015_v2 }
 0x284   :  { %v4977_v58 = vpop.permute.xlu1 %1000  ;;  %v4979_v36 = vpop.permute.xlu0 %998 }
 0x286   :  { %1994 = vrot.lane.b32.xlu0 %v1983_v59, %s4180_s13  ;;  %2000 = vrot.lane.b32.xlu1 %v1989_v12, %s4180_s13  ;;  %v578_v59 = vmul.f32 -0.013865931, %v4995_v18 }
 0x288   :  { %v4997_v32 = vpop.permute.xlu1 %1004  ;;  %v4999_v5 = vpop.permute.xlu0 %1006 }
 0x28a   :  { %2051 = vrot.lane.b32.xlu0 %v2040_v22, %s4180_s13  ;;  %2057 = vrot.lane.b32.xlu1 %v2046_v21, %s4180_s13 }
 0x28c   :  { %v5017_v40 = vpop.permute.xlu1 %564  ;;  %v5019_v62 = vpop.permute.xlu0 %558 }
 0x28d   :  { %8683 = vst [vmem:[#allocation55_spill] sm:$0xff] %v5017_v40  ;;  %8684 = vst [vmem:[#allocation56_spill] sm:$0xff] %v5019_v62 }
 0x28e   :  { %556 = vrot.lane.b32.xlu1 %v543_v31, %s4180_s13  ;;  %554 = vrot.lane.b32.xlu0 %v542_v35, %s4180_s13  ;;  %v615_v31 = vmul.f32 0.01604532, %v4992_v9  ;;  %v614_v35 = vmul.f32 0.01604532, %v4995_v18 }
 0x290   :  { %v5025_v41 = vpop.permute.xlu1 %600  ;;  %v5027_v48 = vpop.permute.xlu0 %594 }
 0x291   :  { %8685 = vst [vmem:[#allocation57_spill] sm:$0xff] %v5025_v41  ;;  %8686 = vst [vmem:[#allocation58_spill] sm:$0xff] %v5027_v48 }
 0x292   :  { %560 = vrot.lane.b32.xlu1 %v545_v33, %s4180_s13  ;;  %562 = vrot.lane.b32.xlu0 %v546_v11, %s4180_s13 }
 0x294   :  { %v5033_v30 = vpop.permute.xlu1 %636  ;;  %v5035_v27 = vpop.permute.xlu0 %630 }
 0x295   :  { %8687 = vst [vmem:[#allocation59_spill] sm:$0xff] %v5035_v27 }
 0x296   :  { %592 = vrot.lane.b32.xlu1 %v579_v7, %s4180_s13  ;;  %590 = vrot.lane.b32.xlu0 %v578_v59, %s4180_s13  ;;  %v617_v7 = vmul.f32 0.01604532, %v5012_v19  ;;  %v618_v59 = vmul.f32 0.01604532, %v5015_v2 }
 0x298   :  { %v5041_v12 = vpop.permute.xlu1 %672  ;;  %v5043_v3 = vpop.permute.xlu0 %666 }
 0x299   :  { %8688 = vst [vmem:[#allocation60_spill] sm:$0xff] %v5041_v12 }
 0x29a   :  { %596 = vrot.lane.b32.xlu1 %v581_v20, %s4180_s13  ;;  %598 = vrot.lane.b32.xlu0 %v582_v34, %s4180_s13 }
 0x29c   :  { %v5049_v22 = vpop.permute.xlu1 %708  ;;  %v5051_v21 = vpop.permute.xlu0 %702 }
 0x29d   :  { %8689 = vst [vmem:[#allocation61_spill] sm:$0xff] %v5049_v22  ;;  %8690 = vst [vmem:[#allocation62_spill] sm:$0xff] %v5051_v21 }
 0x29e   :  { %628 = vrot.lane.b32.xlu1 %v615_v31, %s4180_s13  ;;  %626 = vrot.lane.b32.xlu0 %v614_v35, %s4180_s13  ;;  %v651_v31 = vmul.f32 0.035482433, %v4992_v9  ;;  %v650_v35 = vmul.f32 0.035482433, %v4995_v18 }
 0x2a0   :  { %v5057_v33 = vpop.permute.xlu1 %744  ;;  %v5059_v11 = vpop.permute.xlu0 %738 }
 0x2a1   :  { %8691 = vst [vmem:[#allocation63_spill] sm:$0xff] %v5057_v33  ;;  %8692 = vst [vmem:[#allocation64_spill] sm:$0xff] %v5059_v11 }
 0x2a2   :  { %632 = vrot.lane.b32.xlu1 %v617_v7, %s4180_s13  ;;  %634 = vrot.lane.b32.xlu0 %v618_v59, %s4180_s13  ;;  %v653_v7 = vmul.f32 0.035482433, %v5012_v19  ;;  %v654_v59 = vmul.f32 0.035482433, %v5015_v2 }
 0x2a4   :  { %v5065_v20 = vpop.permute.xlu1 %780  ;;  %v5067_v34 = vpop.permute.xlu0 %774 }
 0x2a5   :  { %8693 = vst [vmem:[#allocation65_spill] sm:$0xff] %v5065_v20  ;;  %8694 = vst [vmem:[#allocation66_spill] sm:$0xff] %v5067_v34 }
 0x2a6   :  { %664 = vrot.lane.b32.xlu1 %v651_v31, %s4180_s13  ;;  %662 = vrot.lane.b32.xlu0 %v650_v35, %s4180_s13  ;;  %v687_v31 = vmul.f32 0.0088402685, %v4992_v9  ;;  %v686_v35 = vmul.f32 0.0088402685, %v4995_v18 }
 0x2a8   :  { %v5073_v27 = vpop.permute.xlu1 %816  ;;  %v5075_v41 = vpop.permute.xlu0 %810 }
 0x2a9   :  { %8695 = vst [vmem:[#allocation67_spill] sm:$0xff] %v5073_v27  ;;  %8696 = vst [vmem:[#allocation68_spill] sm:$0xff] %v5075_v41 }
 0x2aa   :  { %668 = vrot.lane.b32.xlu1 %v653_v7, %s4180_s13  ;;  %670 = vrot.lane.b32.xlu0 %v654_v59, %s4180_s13  ;;  %v689_v7 = vmul.f32 0.0088402685, %v5012_v19  ;;  %v690_v59 = vmul.f32 0.0088402685, %v5015_v2 }
 0x2ac   :  { %v5081_v48 = vpop.permute.xlu1 %1081  ;;  %v5083_v40 = vpop.permute.xlu0 %1075 }
 0x2ad   :  { %8697 = vst [vmem:[#allocation69_spill] sm:$0xff] %v5081_v48  ;;  %8698 = vst [vmem:[#allocation70_spill] sm:$0xff] %v5083_v40 }
 0x2ae   :  { %700 = vrot.lane.b32.xlu1 %v687_v31, %s4180_s13  ;;  %698 = vrot.lane.b32.xlu0 %v686_v35, %s4180_s13  ;;  %v723_v31 = vmul.f32 -0.021648958, %v4992_v9  ;;  %v722_v35 = vmul.f32 -0.021648958, %v4995_v18 }
 0x2b0   :  { %v5089_v62 = vpop.permute.xlu1 %1118  ;;  %v5091_v27 = vpop.permute.xlu0 %1112 }
 0x2b1   :  { %8699 = vst [vmem:[#allocation71_spill] sm:$0xff] %v5089_v62  ;;  %8700 = vst [vmem:[#allocation72_spill] sm:$0xff] %v5091_v27 }
 0x2b2   :  { %704 = vrot.lane.b32.xlu1 %v689_v7, %s4180_s13  ;;  %706 = vrot.lane.b32.xlu0 %v690_v59, %s4180_s13  ;;  %v725_v7 = vmul.f32 -0.021648958, %v5012_v19  ;;  %v726_v59 = vmul.f32 -0.021648958, %v5015_v2 }
 0x2b4   :  { %v5097_v48 = vpop.permute.xlu1 %1154  ;;  %v5099_v40 = vpop.permute.xlu0 %1148 }
 0x2b5   :  { %8701 = vst [vmem:[#allocation73_spill] sm:$0xff] %v5097_v48  ;;  %8702 = vst [vmem:[#allocation74_spill] sm:$0xff] %v5099_v40 }
 0x2b6   :  { %736 = vrot.lane.b32.xlu1 %v723_v31, %s4180_s13  ;;  %734 = vrot.lane.b32.xlu0 %v722_v35, %s4180_s13  ;;  %v759_v31 = vmul.f32 -0.032415092, %v4992_v9  ;;  %v758_v35 = vmul.f32 -0.032415092, %v4995_v18 }
 0x2b8   :  { %v5105_v62 = vpop.permute.xlu1 %1190  ;;  %v5107_v27 = vpop.permute.xlu0 %1184 }
 0x2b9   :  { %8703 = vst [vmem:[#allocation75_spill] sm:$0xff] %v5105_v62  ;;  %8704 = vst [vmem:[#allocation76_spill] sm:$0xff] %v5107_v27 }
 0x2ba   :  { %740 = vrot.lane.b32.xlu1 %v725_v7, %s4180_s13  ;;  %742 = vrot.lane.b32.xlu0 %v726_v59, %s4180_s13  ;;  %v761_v7 = vmul.f32 -0.032415092, %v5012_v19  ;;  %v762_v59 = vmul.f32 -0.032415092, %v5015_v2 }
 0x2bc   :  { %v5113_v40 = vpop.permute.xlu1 %1226  ;;  %v5115_v48 = vpop.permute.xlu0 %1220 }
 0x2bd   :  { %8705 = vst [vmem:[#allocation77_spill] sm:$0xff] %v5113_v40  ;;  %8706 = vst [vmem:[#allocation78_spill] sm:$0xff] %v5115_v48 }
 0x2be   :  { %772 = vrot.lane.b32.xlu1 %v759_v31, %s4180_s13  ;;  %770 = vrot.lane.b32.xlu0 %v758_v35, %s4180_s13  ;;  %v795_v31 = vmul.f32 -0.03364637, %v4992_v9  ;;  %v794_v35 = vmul.f32 -0.03364637, %v4995_v18 }
 0x2c0   :  { %v5121_v62 = vpop.permute.xlu1 %1262  ;;  %v5123_v27 = vpop.permute.xlu0 %1256 }
 0x2c1   :  { %8707 = vst [vmem:[#allocation79_spill] sm:$0xff] %v5121_v62  ;;  %8708 = vst [vmem:[#allocation80_spill] sm:$0xff] %v5123_v27  ;;  %v1048_v62 = vsel %vm1046_vm0, %v4787_v15, %v4694_v38  ;;  %v1047_v27 = vsel %vm1046_vm0, %v4789_v42, %v4787_v15  ;;  %v797_v38 = vmul.f32 -0.03364637, %v5012_v19  ;;  %v1049_v15 = vsel %vm1046_vm0, %v4797_v53, %v4799_v8 }
 0x2c2   :  { %776 = vrot.lane.b32.xlu1 %v761_v7, %s4180_s13  ;;  %778 = vrot.lane.b32.xlu0 %v762_v59, %s4180_s13  ;;  %v5144_v7 = vadd.f32 %v1048_v62, %v4439_v17  ;;  %v5147_v59 = vadd.f32 %v1047_v27, %v4572_v26  ;;  %v1050_v42 = vsel %vm1046_vm0, %v4799_v8, %v4692_v37 }
 0x2c3   :  { %v5164_v62 = vadd.f32 %v1049_v15, %v4569_v25  ;;  %v5167_v27 = vadd.f32 %v1050_v42, %v4436_v16 }
 0x2c4   :  { %v5129_v40 = vpop.permute.xlu1 %1298  ;;  %v5131_v48 = vpop.permute.xlu0 %1292  ;;  %v1064_v53 = vmul.f32 -0.029102264, %v5147_v59  ;;  %v1101_v42 = vmul.f32 -0.03364637, %v5147_v59 }
 0x2c5   :  { %8709 = vst [vmem:[#allocation81_spill] sm:$0xff] %v5129_v40  ;;  %8710 = vst [vmem:[#allocation82_spill] sm:$0xff] %v5131_v48  ;;  %v798_v40 = vmul.f32 -0.03364637, %v5015_v2 }
 0x2c6   :  { %808 = vrot.lane.b32.xlu1 %v795_v31, %s4180_s13  ;;  %806 = vrot.lane.b32.xlu0 %v794_v35, %s4180_s13  ;;  %v1065_v31 = vmul.f32 -0.029102264, %v5144_v7  ;;  %v1067_v35 = vmul.f32 -0.029102264, %v5164_v62 }
 0x2c8   :  { %v5149_v9 = vpop.permute.xlu1 %1334  ;;  %v5151_v18 = vpop.permute.xlu0 %1328 }
 0x2c9   :  { %8711 = vst [vmem:[#allocation83_spill] sm:$0xff] %v5149_v9  ;;  %8712 = vst [vmem:[#allocation84_spill] sm:$0xff] %v5151_v18 }
 0x2ca   :  { %812 = vrot.lane.b32.xlu1 %v797_v38, %s4180_s13  ;;  %814 = vrot.lane.b32.xlu0 %v798_v40, %s4180_s13  ;;  %v1068_v40 = vmul.f32 -0.029102264, %v5167_v27 }
 0x2cc   :  { %v5169_v19 = vpop.permute.xlu1 %1393  ;;  %v5171_v2 = vpop.permute.xlu0 %1387 }
 0x2cd   :  { %8713 = vst [vmem:[#allocation85_spill] sm:$0xff] %v5169_v19  ;;  %8714 = vst [vmem:[#allocation86_spill] sm:$0xff] %v5171_v2 }
 0x2ce   :  { %1077 = vrot.lane.b32.xlu1 %v1064_v53, %s4186_s4  ;;  %1079 = vrot.lane.b32.xlu0 %v1065_v31, %s4186_s4  ;;  %v1102_v53 = vmul.f32 -0.03364637, %v5144_v7 }
 0x2d0   :  { %v5177_v37 = vpop.permute.xlu1 %1397  ;;  %v5179_v8 = vpop.permute.xlu0 %1391 }
 0x2d1   :  { %8715 = vst [vmem:[#allocation87_spill] sm:$0xff] %v5177_v37  ;;  %8716 = vst [vmem:[#allocation88_spill] sm:$0xff] %v5179_v8 }
 0x2d2   :  { %1085 = vrot.lane.b32.xlu1 %v1068_v40, %s4186_s4  ;;  %1083 = vrot.lane.b32.xlu0 %v1067_v35, %s4186_s4  ;;  %v1105_v40 = vmul.f32 -0.03364637, %v5167_v27  ;;  %v1104_v35 = vmul.f32 -0.03364637, %v5164_v62 }
 0x2d4   :  { %v5185_v38 = vpop.permute.xlu1 %1429  ;;  %v5187_v15 = vpop.permute.xlu0 %1423 }
 0x2d5   :  { %8717 = vst [vmem:[#allocation89_spill] sm:$0xff] %v5185_v38  ;;  %8718 = vst [vmem:[#allocation90_spill] sm:$0xff] %v5187_v15 }
 0x2d6   :  { %1114 = vrot.lane.b32.xlu1 %v1101_v42, %s4186_s4  ;;  %1116 = vrot.lane.b32.xlu0 %v1102_v53, %s4186_s4  ;;  %v1137_v42 = vmul.f32 -0.032415092, %v5147_v59  ;;  %v1138_v53 = vmul.f32 -0.032415092, %v5144_v7 }
 0x2d8   :  { %v5193_v31 = vpop.permute.xlu1 %1433  ;;  %v5195_v9 = vpop.permute.xlu0 %1427 }
 0x2d9   :  { %8719 = vst [vmem:[#allocation91_spill] sm:$0xff] %v5193_v31  ;;  %8720 = vst [vmem:[#allocation92_spill] sm:$0xff] %v5195_v9 }
 0x2da   :  { %1122 = vrot.lane.b32.xlu1 %v1105_v40, %s4186_s4  ;;  %1120 = vrot.lane.b32.xlu0 %v1104_v35, %s4186_s4  ;;  %v1141_v40 = vmul.f32 -0.032415092, %v5167_v27  ;;  %v1140_v35 = vmul.f32 -0.032415092, %v5164_v62 }
 0x2dc   :  { %v5201_v38 = vpop.permute.xlu1 %1465  ;;  %v5203_v15 = vpop.permute.xlu0 %1459 }
 0x2dd   :  { %8721 = vst [vmem:[#allocation93_spill] sm:$0xff] %v5201_v38  ;;  %8722 = vst [vmem:[#allocation94_spill] sm:$0xff] %v5203_v15 }
 0x2de   :  { %1150 = vrot.lane.b32.xlu1 %v1137_v42, %s4186_s4  ;;  %1152 = vrot.lane.b32.xlu0 %v1138_v53, %s4186_s4  ;;  %v1173_v42 = vmul.f32 -0.021648958, %v5147_v59  ;;  %v1174_v53 = vmul.f32 -0.021648958, %v5144_v7 }
 0x2e0   :  { %v5209_v31 = vpop.permute.xlu1 %1469  ;;  %v5211_v9 = vpop.permute.xlu0 %1463 }
 0x2e1   :  { %8723 = vst [vmem:[#allocation95_spill] sm:$0xff] %v5209_v31  ;;  %8724 = vst [vmem:[#allocation96_spill] sm:$0xff] %v5211_v9 }
 0x2e2   :  { %1158 = vrot.lane.b32.xlu1 %v1141_v40, %s4186_s4  ;;  %1156 = vrot.lane.b32.xlu0 %v1140_v35, %s4186_s4  ;;  %v1177_v40 = vmul.f32 -0.021648958, %v5167_v27  ;;  %v1176_v35 = vmul.f32 -0.021648958, %v5164_v62 }
 0x2e4   :  { %v5217_v15 = vpop.permute.xlu1 %1509  ;;  %v5219_v38 = vpop.permute.xlu0 %1503 }
 0x2e5   :  { %8725 = vst [vmem:[#allocation97_spill] sm:$0xff] %v5217_v15  ;;  %8726 = vst [vmem:[#allocation98_spill] sm:$0xff] %v5219_v38 }
 0x2e6   :  { %1186 = vrot.lane.b32.xlu1 %v1173_v42, %s4186_s4  ;;  %1188 = vrot.lane.b32.xlu0 %v1174_v53, %s4186_s4  ;;  %v1209_v42 = vmul.f32 0.0088402685, %v5147_v59  ;;  %v1210_v53 = vmul.f32 0.0088402685, %v5144_v7 }
 0x2e8   :  { %v5225_v9 = vpop.permute.xlu1 %1513  ;;  %v5227_v31 = vpop.permute.xlu0 %1507 }
 0x2e9   :  { %8727 = vst [vmem:[#allocation99_spill] sm:$0xff] %v5225_v9  ;;  %8728 = vst [vmem:[#allocation100_spill] sm:$0xff] %v5227_v31 }
 0x2ea   :  { %1194 = vrot.lane.b32.xlu1 %v1177_v40, %s4186_s4  ;;  %1192 = vrot.lane.b32.xlu0 %v1176_v35, %s4186_s4  ;;  %v1213_v40 = vmul.f32 0.0088402685, %v5167_v27  ;;  %v1212_v35 = vmul.f32 0.0088402685, %v5164_v62 }
 0x2ec   :  { %v5233_v15 = vpop.permute.xlu1 %1545  ;;  %v5235_v38 = vpop.permute.xlu0 %1539 }
 0x2ed   :  { %8729 = vst [vmem:[#allocation101_spill] sm:$0xff] %v5233_v15  ;;  %8730 = vst [vmem:[#allocation102_spill] sm:$0xff] %v5235_v38 }
 0x2ee   :  { %1222 = vrot.lane.b32.xlu1 %v1209_v42, %s4186_s4  ;;  %1224 = vrot.lane.b32.xlu0 %v1210_v53, %s4186_s4  ;;  %v1245_v42 = vmul.f32 0.035482433, %v5147_v59  ;;  %v1246_v53 = vmul.f32 0.035482433, %v5144_v7 }
 0x2f0   :  { %v5241_v9 = vpop.permute.xlu1 %1549  ;;  %v5243_v31 = vpop.permute.xlu0 %1543 }
 0x2f1   :  { %8731 = vst [vmem:[#allocation103_spill] sm:$0xff] %v5241_v9  ;;  %8732 = vst [vmem:[#allocation104_spill] sm:$0xff] %v5243_v31 }
 0x2f2   :  { %1230 = vrot.lane.b32.xlu1 %v1213_v40, %s4186_s4  ;;  %1228 = vrot.lane.b32.xlu0 %v1212_v35, %s4186_s4  ;;  %v1249_v40 = vmul.f32 0.035482433, %v5167_v27  ;;  %v1248_v35 = vmul.f32 0.035482433, %v5164_v62 }
 0x2f4   :  { %v5249_v15 = vpop.permute.xlu1 %1943  ;;  %v5251_v38 = vpop.permute.xlu0 %1937 }
 0x2f5   :  { %8733 = vst [vmem:[#allocation105_spill] sm:$0xff] %v5249_v15  ;;  %8734 = vst [vmem:[#allocation106_spill] sm:$0xff] %v5251_v38 }
 0x2f6   :  { %1258 = vrot.lane.b32.xlu1 %v1245_v42, %s4186_s4  ;;  %1260 = vrot.lane.b32.xlu0 %v1246_v53, %s4186_s4  ;;  %v1281_v42 = vmul.f32 0.01604532, %v5147_v59  ;;  %v1282_v53 = vmul.f32 0.01604532, %v5144_v7 }
 0x2f8   :  { %v5257_v9 = vpop.permute.xlu1 %2000  ;;  %v5259_v31 = vpop.permute.xlu0 %1994 }
 0x2f9   :  { %8735 = vst [vmem:[#allocation107_spill] sm:$0xff] %v5257_v9  ;;  %8736 = vst [vmem:[#allocation108_spill] sm:$0xff] %v5259_v31 }
 0x2fa   :  { %1266 = vrot.lane.b32.xlu1 %v1249_v40, %s4186_s4  ;;  %1264 = vrot.lane.b32.xlu0 %v1248_v35, %s4186_s4  ;;  %v1285_v40 = vmul.f32 0.01604532, %v5167_v27  ;;  %v1284_v35 = vmul.f32 0.01604532, %v5164_v62 }
 0x2fc   :  { %v5265_v15 = vpop.permute.xlu1 %2057  ;;  %v5267_v38 = vpop.permute.xlu0 %2051 }
 0x2fd   :  { %8737 = vst [vmem:[#allocation109_spill] sm:$0xff] %v5265_v15  ;;  %8738 = vst [vmem:[#allocation110_spill] sm:$0xff] %v5267_v38 }
 0x2fe   :  { %1294 = vrot.lane.b32.xlu1 %v1281_v42, %s4186_s4  ;;  %1296 = vrot.lane.b32.xlu0 %v1282_v53, %s4186_s4  ;;  %v1317_v42 = vmul.f32 -0.013865931, %v5147_v59  ;;  %v1318_v53 = vmul.f32 -0.013865931, %v5144_v7  ;;  %v1321_v7 = vmul.f32 -0.013865931, %v5167_v27 }
 0x300   :  { %v5273_v9 = vpop.permute.xlu1 %556  ;;  %v5275_v31 = vpop.permute.xlu0 %554 }
 0x301   :  { %8739 = vst [vmem:[#allocation111_spill] sm:$0xff] %v5273_v9  ;;  %8740 = vst [vmem:[#allocation112_spill] sm:$0xff] %v5275_v31  ;;  %v1361_v31 = vsel %vm1360_vm7, %v4809_v51, %v4807_v43  ;;  %v1362_v9 = vsel %vm1360_vm7, %v4815_v52, %v4813_v44  ;;  %v1320_v43 = vmul.f32 -0.013865931, %v5164_v62 }
 0x302   :  { %1302 = vrot.lane.b32.xlu1 %v1285_v40, %s4186_s4  ;;  %1300 = vrot.lane.b32.xlu0 %v1284_v35, %s4186_s4  ;;  %v1370_v40 = vadd.f32 %v1361_v31, %v4572_v26  ;;  %v1373_v35 = vadd.f32 %v1362_v9, %v4569_v25 }
 0x304   :  { %v5281_v38 = vpop.permute.xlu1 %560  ;;  %v5283_v15 = vpop.permute.xlu0 %562  ;;  %v1376_v52 = vmul.f32 -0.029102264, %v1370_v40  ;;  %v1379_v31 = vmul.f32 -0.029102264, %v1373_v35  ;;  %v1412_v27 = vmul.f32 -0.03748506, %v1370_v40 }
 0x305   :  { %8741 = vst [vmem:[#allocation113_spill] sm:$0xff] %v5281_v38  ;;  %8742 = vst [vmem:[#allocation114_spill] sm:$0xff] %v5283_v15  ;;  %v1415_v62 = vmul.f32 -0.03748506, %v1373_v35 }
 0x306   :  { %1330 = vrot.lane.b32.xlu1 %v1317_v42, %s4186_s4  ;;  %1332 = vrot.lane.b32.xlu0 %v1318_v53, %s4186_s4  ;;  %v1879_v53 = vsel %vm98_vm2, %v4837_v1, %v4714_v49  ;;  %v1448_v49 = vmul.f32 -0.03868194, %v1370_v40 }
 0x308   :  { %v5297_v38 = vpop.permute.xlu1 %592  ;;  %v5299_v59 = vpop.permute.xlu0 %590 }
 0x309   :  { %8743 = vst [vmem:[#allocation115_spill] sm:$0xff] %v5297_v38  ;;  %8744 = vst [vmem:[#allocation116_spill] sm:$0xff] %v5299_v59  ;;  %v1528_v59 = vmul.f32 0.031963617, %v1370_v40  ;;  %v1531_v38 = vmul.f32 0.031963617, %v1373_v35 }
 0x30a   :  { %1338 = vrot.lane.b32.xlu1 %v1321_v7, %s4186_s4  ;;  %1336 = vrot.lane.b32.xlu0 %v1320_v43, %s4186_s4  ;;  %v1878_v7 = vsel %vm98_vm2, %v4839_v10, %v4837_v1  ;;  %v1876_v43 = vsel %vm98_vm2, %v4831_v4, %v4833_v60  ;;  %v5334_v1 = vadd.f32 %v1879_v53, %v4569_v25 }
 0x30b   :  { %v5337_v10 = vadd.f32 %v1878_v7, %v4575_v28  ;;  %v5342_v4 = vadd.f32 %v1876_v43, %v4578_v29  ;;  %v1492_v7 = vmul.f32 0.0025498634, %v1370_v40 }
 0x30c   :  { %v5305_v51 = vpop.permute.xlu1 %596  ;;  %v5307_v44 = vpop.permute.xlu0 %598  ;;  %v1904_v43 = vmul.f32 0.0088402685, %v5334_v1 }
 0x30d   :  { %8745 = vst [vmem:[#allocation117_spill] sm:$0xff] %v5305_v51  ;;  %8746 = vst [vmem:[#allocation118_spill] sm:$0xff] %v5307_v44 }
 0x30e   :  { %1389 = vrot.lane.b32.xlu1 %v1376_v52, %s4182_s0  ;;  %1395 = vrot.lane.b32.xlu0 %v1379_v31, %s4182_s0  ;;  %v1877_v52 = vsel %vm98_vm2, %v4833_v60, %v4712_v63  ;;  %v1880_v60 = vsel %vm98_vm2, %v4739_v6, %v4741_v23  ;;  %v1922_v15 = vrot.slane %v1904_v43, 1 }
 0x30f   :  { %v5345_v63 = vadd.f32 %v1877_v52, %v4572_v26  ;;  %v5362_v6 = vadd.f32 %v1880_v60, %v4556_v14 }
 0x310   :  { %v5311_v9 = vpop.permute.xlu1 %628  ;;  %v5313_v42 = vpop.permute.xlu0 %626 }
 0x311   :  { %8747 = vst [vmem:[#allocation119_spill] sm:$0xff] %v5311_v9  ;;  %8748 = vst [vmem:[#allocation120_spill] sm:$0xff] %v5313_v42  ;;  %v1451_v9 = vmul.f32 -0.03868194, %v1373_v35 }
 0x312   :  { %1425 = vrot.lane.b32.xlu1 %v1412_v27, %s4182_s0  ;;  %1431 = vrot.lane.b32.xlu0 %v1415_v62, %s4182_s0  ;;  %v1881_v27 = vsel %vm98_vm2, %v4741_v23, %v4674_v56  ;;  %v1901_v56 = vmul.f32 0.0088402685, %v5345_v63  ;;  %v1900_v23 = vmul.f32 0.0088402685, %v5342_v4 }
 0x313   :  { %v5365_v52 = vadd.f32 %v1881_v27, %v4553_v13  ;;  %v1906_v27 = vmul.f32 0.0088402685, %v5362_v6 }
 0x314   :  { %v5329_v31 = vpop.permute.xlu1 %632  ;;  %v5331_v42 = vpop.permute.xlu0 %634  ;;  %v1921_v60 = vrot.slane %v1901_v56, 1  ;;  %v1957_v56 = vmul.f32 0.02602388, %v5342_v4 }
 0x315   :  { %v1907_v18 = vmul.f32 0.0088402685, %v5365_v52 }
 0x316   :  { %1461 = vrot.lane.b32.xlu1 %v1448_v49, %s4182_s0  ;;  %1467 = vrot.lane.b32.xlu0 %v1451_v9, %s4182_s0  ;;  %v1495_v9 = vmul.f32 0.0025498634, %v1373_v35  ;;  %v1903_v49 = vmul.f32 0.0088402685, %v5337_v10  ;;  %v1923_v2 = vsel %vm227_vm3, %v1921_v60, %v1922_v15  ;;  %v1961_v35 = vmul.f32 0.02602388, %v5334_v1 }
 0x317   :  { %v1929_v43 = vrot.slane %v1907_v18, 1  ;;  %v1975_v18 = vrot.slane %v1957_v56, 1  ;;  %v2014_v56 = vmul.f32 0.031963617, %v5342_v4 }
 0x318   :  { %v5353_v62 = vpop.permute.xlu1 %664  ;;  %v5355_v53 = vpop.permute.xlu0 %662  ;;  %v1979_v48 = vrot.slane %v1961_v35, 1  ;;  %v2018_v35 = vmul.f32 0.031963617, %v5334_v1 }
 0x31a   :  { %1505 = vrot.lane.b32.xlu1 %v1492_v7, %s4182_s0  ;;  %1511 = vrot.lane.b32.xlu0 %v1495_v9, %s4182_s0  ;;  %v1919_v7 = vrot.slane %v1903_v49, 1  ;;  %v1918_v9 = vrot.slane %v1900_v23, 1  ;;  %v1958_v49 = vmul.f32 0.02602388, %v5345_v63  ;;  %v2036_v33 = vrot.slane %v2018_v35, 1 }
 0x31b   :  { %v2083_v35 = vmul.f32 -0.0074456926, %v5334_v1 }
 0x31c   :  { %v5369_v51 = vpop.permute.xlu1 %668  ;;  %v5371_v44 = vpop.permute.xlu0 %670  ;;  %v1920_v40 = vsel %vm227_vm3, %v1918_v9, %v1919_v7  ;;  %v1930_v9 = vsel %vm227_vm3, %v1922_v15, %v1929_v43 }
 0x31e   :  { %1541 = vrot.lane.b32.xlu1 %v1528_v59, %s4182_s0  ;;  %1547 = vrot.lane.b32.xlu0 %v1531_v38, %s4182_s0  ;;  %v1960_v59 = vmul.f32 0.02602388, %v5337_v10  ;;  %v1927_v38 = vrot.slane %v1906_v27, 1  ;;  %v1963_v27 = vmul.f32 0.02602388, %v5362_v6 }
 0x320   :  { %v5377_v37 = vpop.permute.xlu1 %700  ;;  %v5379_v19 = vpop.permute.xlu0 %698  ;;  %v1928_v60 = vsel %vm227_vm3, %v1919_v7, %v1927_v38  ;;  %v1976_v41 = vrot.slane %v1960_v59, 1  ;;  %v2017_v59 = vmul.f32 0.031963617, %v5337_v10  ;;  %v1984_v38 = vrot.slane %v1963_v27, 1 }
 0x321   :  { %8749 = vst [vmem:[#allocation121_spill] sm:$0xff] %v5377_v37  ;;  %8750 = vst [vmem:[#allocation122_spill] sm:$0xff] %v5379_v19 }
 0x322   :  { %1935 = vrot.lane.b32.xlu1 %v1923_v2, %s4180_s13  ;;  %1933 = vrot.lane.b32.xlu0 %v1920_v40, %s4180_s13  ;;  %v1978_v2 = vrot.slane %v1958_v49, 1  ;;  %v1964_v40 = vmul.f32 0.02602388, %v5365_v52  ;;  %v1977_v15 = vsel %vm227_vm3, %v1975_v18, %v1976_v41  ;;  %v2015_v49 = vmul.f32 0.031963617, %v5345_v63 }
 0x324   :  { %v5389_v23 = vpop.permute.xlu1 %704  ;;  %v5391_v8 = vpop.permute.xlu0 %706  ;;  %v1980_v7 = vsel %vm227_vm3, %v1978_v2, %v1979_v48  ;;  %v1986_v43 = vrot.slane %v1964_v40, 1  ;;  %v1985_v2 = vsel %vm227_vm3, %v1976_v41, %v1984_v38  ;;  %v2035_v27 = vrot.slane %v2015_v49, 1 }
 0x325   :  { %8751 = vst [vmem:[#allocation123_spill] sm:$0xff] %v5389_v23  ;;  %8752 = vst [vmem:[#allocation124_spill] sm:$0xff] %v5391_v8  ;;  %v2032_v40 = vrot.slane %v2014_v56, 1  ;;  %v2080_v49 = vmul.f32 -0.0074456926, %v5345_v63 }
 0x326   :  { %1939 = vrot.lane.b32.xlu1 %v1928_v60, %s4180_s13  ;;  %1941 = vrot.lane.b32.xlu0 %v1930_v9, %s4180_s13  ;;  %v1987_v18 = vsel %vm227_vm3, %v1979_v48, %v1986_v43  ;;  %v2037_v41 = vsel %vm227_vm3, %v2035_v27, %v2036_v33  ;;  %v2079_v56 = vmul.f32 -0.0074456926, %v5342_v4 }
 0x328   :  { %v5399_v20 = vpop.permute.xlu1 %736  ;;  %v5401_v34 = vpop.permute.xlu0 %734 }
 0x329   :  { %8753 = vst [vmem:[#allocation125_spill] sm:$0xff] %v5399_v20  ;;  %8754 = vst [vmem:[#allocation126_spill] sm:$0xff] %v5401_v34  ;;  %v2033_v34 = vrot.slane %v2017_v59, 1  ;;  %v2082_v59 = vmul.f32 -0.0074456926, %v5337_v10 }
 0x32a   :  { %1992 = vrot.lane.b32.xlu1 %v1980_v7, %s4180_s13  ;;  %1990 = vrot.lane.b32.xlu0 %v1977_v15, %s4180_s13  ;;  %v2020_v7 = vmul.f32 0.031963617, %v5362_v6  ;;  %v2021_v15 = vmul.f32 0.031963617, %v5365_v52 }
 0x32b   :  { %v2034_v48 = vsel %vm227_vm3, %v2032_v40, %v2033_v34 }
 0x32c   :  { %v5411_v60 = vpop.permute.xlu1 %740  ;;  %v5413_v9 = vpop.permute.xlu0 %742  ;;  %v2041_v38 = vrot.slane %v2020_v7, 1  ;;  %v2043_v43 = vrot.slane %v2021_v15, 1  ;;  %v2100_v7 = vrot.slane %v2080_v49, 1  ;;  %v2097_v15 = vrot.slane %v2079_v56, 1 }
 0x32d   :  { %8755 = vst [vmem:[#allocation127_spill] sm:$0xff] %v5411_v60  ;;  %8756 = vst [vmem:[#allocation128_spill] sm:$0xff] %v5413_v9  ;;  %v2140_v49 = vmul.f32 -0.013526065, %v5334_v1  ;;  %v2139_v56 = vmul.f32 -0.013526065, %v5337_v10 }
 0x32e   :  { %1996 = vrot.lane.b32.xlu1 %v1985_v2, %s4180_s13  ;;  %1998 = vrot.lane.b32.xlu0 %v1987_v18, %s4180_s13  ;;  %v2042_v27 = vsel %vm227_vm3, %v2033_v34, %v2041_v38  ;;  %v2044_v40 = vsel %vm227_vm3, %v2036_v33, %v2043_v43 }
 0x32f   :  { %v2155_v1 = vrot.slane %v2139_v56, 1  ;;  %v2143_v56 = vmul.f32 -0.013526065, %v5365_v52 }
 0x330   :  { %v5421_v20 = vpop.permute.xlu1 %772  ;;  %v5423_v60 = vpop.permute.xlu0 %770 }
 0x331   :  { %8757 = vst [vmem:[#allocation129_spill] sm:$0xff] %v5421_v20  ;;  %8758 = vst [vmem:[#allocation130_spill] sm:$0xff] %v5423_v60  ;;  %v2101_v60 = vrot.slane %v2083_v35, 1  ;;  %v2098_v20 = vrot.slane %v2082_v59, 1  ;;  %v2086_v35 = vmul.f32 -0.0074456926, %v5365_v52 }
 0x332   :  { %2049 = vrot.lane.b32.xlu1 %v2037_v41, %s4180_s13  ;;  %2047 = vrot.lane.b32.xlu0 %v2034_v48, %s4180_s13  ;;  %v2085_v41 = vmul.f32 -0.0074456926, %v5362_v6 }
 0x333   :  { %v2099_v34 = vsel %vm227_vm3, %v2097_v15, %v2098_v20 }
 0x334   :  { %v5433_v2 = vpop.permute.xlu1 %776  ;;  %v5435_v18 = vpop.permute.xlu0 %778  ;;  %v2106_v33 = vrot.slane %v2085_v41, 1  ;;  %v2158_v41 = vrot.slane %v2140_v49, 1 }
 0x335   :  { %8759 = vst [vmem:[#allocation131_spill] sm:$0xff] %v5433_v2  ;;  %8760 = vst [vmem:[#allocation132_spill] sm:$0xff] %v5435_v18  ;;  %v2102_v2 = vsel %vm227_vm3, %v2100_v7, %v2101_v60  ;;  %v8775_v18 = vld [vmem:[#allocation42_spill] sm:$0xff] }
 0x336   :  { %2053 = vrot.lane.b32.xlu1 %v2042_v27, %s4180_s13  ;;  %2055 = vrot.lane.b32.xlu0 %v2044_v40, %s4180_s13  ;;  %v2107_v43 = vsel %vm227_vm3, %v2098_v20, %v2106_v33  ;;  %v2137_v27 = vmul.f32 -0.013526065, %v5345_v63  ;;  %v2136_v40 = vmul.f32 -0.013526065, %v5342_v4  ;;  %v5474_v4 = vadd.f32 %v4619_v57, %v4572_v26 }
 0x337   :  { %v5478_v63 = vadd.f32 %v4634_v47, %v4569_v25 }
 0x338   :  { %v5442_v48 = vpop.permute.xlu1 %808  ;;  %v5444_v9 = vpop.permute.xlu0 %806  ;;  %v2157_v10 = vrot.slane %v2137_v27, 1 }
 0x339   :  { %8761 = vst [vmem:[#allocation133_spill] sm:$0xff] %v5442_v48  ;;  %8762 = vst [vmem:[#allocation134_spill] sm:$0xff] %v5444_v9 }
 0x33a   :  { %2114 = vrot.lane.b32.xlu1 %v2102_v2, %s4180_s13  ;;  %2112 = vrot.lane.b32.xlu0 %v2099_v34, %s4180_s13  ;;  %v2108_v2 = vrot.slane %v2086_v35, 1  ;;  %v2142_v34 = vmul.f32 -0.013526065, %v5362_v6  ;;  %v5490_v35 = vadd.f32 %v4630_v46, %v4575_v28  ;;  %v2159_v6 = vsel %vm227_vm3, %v2157_v10, %v2158_v41 }
 0x33b   :  { %v2219_v10 = vmul.f32 0.0088402685, %v5478_v63 }
 0x33c   :  { %v5451_v59 = vpop.permute.xlu1 %812  ;;  %v5453_v38 = vpop.permute.xlu0 %814  ;;  %v2109_v20 = vsel %vm227_vm3, %v2101_v60, %v2108_v2  ;;  %v2163_v49 = vrot.slane %v2142_v34, 1  ;;  %v5499_v2 = vadd.f32 %v4536_v55, %v4439_v17  ;;  %v5513_v34 = vadd.f32 %v4533_v50, %v4436_v16 }
 0x33d   :  { %8763 = vst [vmem:[#allocation135_spill] sm:$0xff] %v5451_v59  ;;  %8764 = vst [vmem:[#allocation136_spill] sm:$0xff] %v5453_v38  ;;  %v2237_v59 = vrot.slane %v2219_v10, 1 }
 0x33e   :  { %2118 = vrot.lane.b32.xlu1 %v2107_v43, %s4180_s13  ;;  %2116 = vrot.lane.b32.xlu0 %v4756_v61, %s4180_s13  ;;  %v2154_v61 = vrot.slane %v2136_v40, 1  ;;  %v2164_v52 = vsel %vm227_vm3, %v2155_v1, %v2163_v49  ;;  %v2217_v38 = vmul.f32 0.0088402685, %v5499_v2  ;;  %v2220_v48 = vmul.f32 0.0088402685, %v5513_v34 }
 0x33f   :  { %v2274_v23 = vmul.f32 0.009883306, %v5499_v2 }
 0x340   :  { %v5463_v7 = vpop.permute.xlu1 %1077  ;;  %v5465_v15 = vpop.permute.xlu0 %1079  ;;  %v2156_v43 = vsel %vm227_vm3, %v2154_v61, %v2155_v1  ;;  %v5509_v61 = vadd.f32 %v4566_v54, %v4556_v14 }
 0x341   :  { %8765 = vst [vmem:[#allocation137_spill] sm:$0xff] %v5463_v7  ;;  %8766 = vst [vmem:[#allocation138_spill] sm:$0xff] %v5465_v15 }
 0x342   :  { %2122 = vrot.lane.b32.xlu1 %v4767_v39, %s4180_s13  ;;  %2120 = vrot.lane.b32.xlu0 %v2109_v20, %s4180_s13  ;;  %v5486_v39 = vadd.f32 %v4622_v45, %v4578_v29  ;;  %v2216_v20 = vmul.f32 0.0088402685, %v5474_v4 }
 0x344   :  { %v5480_v60 = vpop.permute.xlu1 %1085  ;;  %v5482_v33 = vpop.permute.xlu0 %1083  ;;  %v2236_v49 = vrot.slane %v2216_v20, 1 }
 0x345   :  { %8767 = vst [vmem:[#allocation139_spill] sm:$0xff] %v5480_v60  ;;  %8768 = vst [vmem:[#allocation140_spill] sm:$0xff] %v5482_v33  ;;  %v8772_v33 = vld [vmem:[#allocation8_spill] sm:$0xff] }
 0x346   :  { %2171 = vrot.lane.b32.xlu1 %v2159_v6, %s4180_s13  ;;  %2169 = vrot.lane.b32.xlu0 %v2156_v43, %s4180_s13  ;;  %v2215_v6 = vmul.f32 0.0088402685, %v5486_v39  ;;  %v2218_v43 = vmul.f32 0.0088402685, %v5490_v35  ;;  %v5527_v15 = vadd.f32 %v8772_v33, %v4553_v13 }
 0x348   :  { %v5501_v27 = vpop.permute.xlu1 %1114  ;;  %v5503_v40 = vpop.permute.xlu0 %1116  ;;  %v2234_v9 = vrot.slane %v2218_v43, 1  ;;  %v2222_v11 = vmul.f32 0.0088402685, %v5527_v15  ;;  %v2240_v43 = vrot.slane %v2220_v48, 1  ;;  %v2272_v48 = vmul.f32 0.009883306, %v5486_v39 }
 0x349   :  { %8769 = vst [vmem:[#allocation141_spill] sm:$0xff] %v5501_v27  ;;  %8770 = vst [vmem:[#allocation142_spill] sm:$0xff] %v5503_v40  ;;  %v2165_v40 = vrot.slane %v2143_v56, 1  ;;  %v8771_v27 = vld [vmem:[#allocation5_spill] sm:$0xff]  ;;  %v2233_v56 = vrot.slane %v2215_v6, 1  ;;  %v2239_v6 = vrot.slane %v2217_v38, 1 }
 0x34a   :  { %2175 = vrot.lane.b32.xlu1 %v2164_v52, %s4180_s13  ;;  %2173 = vrot.lane.b32.xlu0 %v4907_v0, %s4180_s13  ;;  %v5523_v60 = vadd.f32 %v8771_v27, %v4442_v24  ;;  %v2221_v52 = vmul.f32 0.0088402685, %v5509_v61  ;;  %v2275_v38 = vmul.f32 0.009883306, %v5490_v35 }
 0x34b   :  { %v2166_v0 = vsel %vm227_vm3, %v2158_v41, %v2165_v40  ;;  %v2238_v41 = vsel %vm227_vm3, %v2236_v49, %v2237_v59  ;;  %v2235_v40 = vsel %vm227_vm3, %v2233_v56, %v2234_v9  ;;  %v2241_v56 = vsel %vm227_vm3, %v2239_v6, %v2240_v43 }
 0x34c   :  { %v5529_v7 = vpop.permute.xlu1 %1122  ;;  %v5531_v1 = vpop.permute.xlu0 %1120  ;;  %v2242_v10 = vrot.slane %v2221_v52, 1  ;;  %v2273_v52 = vmul.f32 0.009883306, %v5474_v4  ;;  %v2290_v6 = vrot.slane %v2272_v48, 1  ;;  %v2296_v48 = vrot.slane %v2274_v23, 1 }
 0x34d   :  { %8773 = vst [vmem:[#allocation5_spill] sm:$0xff] %v5529_v7  ;;  %8774 = vst [vmem:[#allocation8_spill] sm:$0xff] %v5531_v1  ;;  %v2223_v7 = vmul.f32 0.0088402685, %v5523_v60  ;;  %v2329_v23 = vmul.f32 0.01604532, %v5486_v39 }
 0x34e   :  { %2179 = vrot.lane.b32.xlu1 %v8775_v18, %s4180_s13  ;;  %2177 = vrot.lane.b32.xlu0 %v2166_v0, %s4180_s13  ;;  %v2243_v49 = vsel %vm227_vm3, %v2234_v9, %v2242_v10  ;;  %v2278_v10 = vmul.f32 0.009883306, %v5509_v61 }
 0x34f   :  { %v2246_v18 = vrot.slane %v2223_v7, 1 }
 0x350   :  { %v5541_v1 = vpop.permute.xlu1 %1150  ;;  %v5543_v20 = vpop.permute.xlu0 %1152 }
 0x351   :  { %8776 = vst [vmem:[#allocation42_spill] sm:$0xff] %v5541_v1  ;;  %8777 = vst [vmem:[#allocation143_spill] sm:$0xff] %v5543_v20  ;;  %v2244_v1 = vrot.slane %v2222_v11, 1  ;;  %v2276_v20 = vmul.f32 0.009883306, %v5478_v63  ;;  %v2247_v7 = vsel %vm227_vm3, %v2240_v43, %v2246_v18 }
 0x352   :  { %2250 = vrot.lane.b32.xlu1 %v2238_v41, %s4183_s29  ;;  %2248 = vrot.lane.b32.xlu0 %v2235_v40, %s4183_s29 }
 0x353   :  { %v2245_v40 = vsel %vm227_vm3, %v2237_v59, %v2244_v1  ;;  %v2294_v9 = vrot.slane %v2276_v20, 1  ;;  %v2280_v59 = vmul.f32 0.009883306, %v5523_v60  ;;  %v2279_v1 = vmul.f32 0.009883306, %v5527_v15 }
 0x354   :  { %v5550_v0 = vpop.permute.xlu1 %1158  ;;  %v5552_v22 = vpop.permute.xlu0 %1156 }
 0x355   :  { %8778 = vst [vmem:[#allocation144_spill] sm:$0xff] %v5550_v0  ;;  %8779 = vst [vmem:[#allocation145_spill] sm:$0xff] %v5552_v22  ;;  %v2293_v0 = vrot.slane %v2273_v52, 1  ;;  %v2291_v22 = vrot.slane %v2275_v38, 1 }
 0x356   :  { %2254 = vrot.lane.b32.xlu1 %v2243_v49, %s4183_s29  ;;  %2252 = vrot.lane.b32.xlu0 %v2241_v56, %s4183_s29  ;;  %v2277_v49 = vmul.f32 0.009883306, %v5513_v34  ;;  %v2299_v56 = vrot.slane %v2278_v10, 1  ;;  %v2303_v10 = vrot.slane %v2280_v59, 1 }
 0x357   :  { %v2295_v20 = vsel %vm227_vm3, %v2293_v0, %v2294_v9  ;;  %v2292_v52 = vsel %vm227_vm3, %v2290_v6, %v2291_v22 }
 0x358   :  { %v5563_v41 = vpop.permute.xlu1 %1186  ;;  %v5565_v11 = vpop.permute.xlu0 %1188  ;;  %v2297_v38 = vrot.slane %v2277_v49, 1  ;;  %v2300_v0 = vsel %vm227_vm3, %v2291_v22, %v2299_v56  ;;  %v2332_v49 = vmul.f32 0.01604532, %v5490_v35  ;;  %v2335_v56 = vmul.f32 0.01604532, %v5509_v61 }
 0x359   :  { %8780 = vst [vmem:[#allocation146_spill] sm:$0xff] %v5563_v41  ;;  %8781 = vst [vmem:[#allocation147_spill] sm:$0xff] %v5565_v11  ;;  %v2333_v11 = vmul.f32 0.01604532, %v5478_v63  ;;  %v2331_v41 = vmul.f32 0.01604532, %v5499_v2 }
 0x35a   :  { %2258 = vrot.lane.b32.xlu1 %v2247_v7, %s4183_s29  ;;  %2256 = vrot.lane.b32.xlu0 %v2245_v40, %s4183_s29  ;;  %v2330_v7 = vmul.f32 0.01604532, %v5474_v4  ;;  %v2298_v6 = vsel %vm227_vm3, %v2296_v48, %v2297_v38  ;;  %v2304_v59 = vsel %vm227_vm3, %v2297_v38, %v2303_v10  ;;  %v2347_v48 = vrot.slane %v2329_v23, 1 }
 0x35b   :  { %v2351_v22 = vrot.slane %v2333_v11, 1  ;;  %v2356_v38 = vrot.slane %v2335_v56, 1  ;;  %v2336_v11 = vmul.f32 0.01604532, %v5527_v15  ;;  %v2353_v23 = vrot.slane %v2331_v41, 1 }
 0x35c   :  { %v5573_v43 = vpop.permute.xlu1 %1194  ;;  %v5575_v18 = vpop.permute.xlu0 %1192  ;;  %v2386_v41 = vmul.f32 0.031039765, %v5486_v39 }
 0x35d   :  { %8782 = vst [vmem:[#allocation148_spill] sm:$0xff] %v5573_v43  ;;  %8783 = vst [vmem:[#allocation149_spill] sm:$0xff] %v5575_v18  ;;  %v2301_v18 = vrot.slane %v2279_v1, 1  ;;  %v2358_v56 = vrot.slane %v2336_v11, 1 }
 0x35e   :  { %2307 = vrot.lane.b32.xlu1 %v2295_v20, %s4183_s29  ;;  %2305 = vrot.lane.b32.xlu0 %v2292_v52, %s4183_s29  ;;  %v2350_v20 = vrot.slane %v2330_v7, 1 }
 0x35f   :  { %v2302_v1 = vsel %vm227_vm3, %v2294_v9, %v2301_v18  ;;  %v2337_v9 = vmul.f32 0.01604532, %v5523_v60 }
 0x360   :  { %v5584_v40 = vpop.permute.xlu1 %1222  ;;  %v5586_v43 = vpop.permute.xlu0 %1224  ;;  %v2352_v18 = vsel %vm227_vm3, %v2350_v20, %v2351_v22 }
 0x361   :  { %8784 = vst [vmem:[#allocation150_spill] sm:$0xff] %v5584_v40  ;;  %8785 = vst [vmem:[#allocation151_spill] sm:$0xff] %v5586_v43  ;;  %v2348_v40 = vrot.slane %v2332_v49, 1 }
 0x362   :  { %2311 = vrot.lane.b32.xlu1 %v2300_v0, %s4183_s29  ;;  %2309 = vrot.lane.b32.xlu0 %v2298_v6, %s4183_s29  ;;  %v2334_v0 = vmul.f32 0.01604532, %v5513_v34 }
 0x363   :  { %v2349_v10 = vsel %vm227_vm3, %v2347_v48, %v2348_v40  ;;  %v2357_v20 = vsel %vm227_vm3, %v2348_v40, %v2356_v38  ;;  %v2359_v40 = vsel %vm227_vm3, %v2351_v22, %v2358_v56  ;;  %v2394_v22 = vmul.f32 0.031039765, %v5523_v60 }
 0x364   :  { %v5595_v52 = vpop.permute.xlu1 %1230  ;;  %v5597_v43 = vpop.permute.xlu0 %1228  ;;  %v2354_v49 = vrot.slane %v2334_v0, 1  ;;  %v2389_v0 = vmul.f32 0.031039765, %v5490_v35 }
 0x365   :  { %8786 = vst [vmem:[#allocation152_spill] sm:$0xff] %v5595_v52  ;;  %8787 = vst [vmem:[#allocation153_spill] sm:$0xff] %v5597_v43  ;;  %v2390_v52 = vmul.f32 0.031039765, %v5478_v63  ;;  %v2388_v43 = vmul.f32 0.031039765, %v5499_v2 }
 0x366   :  { %2315 = vrot.lane.b32.xlu1 %v2304_v59, %s4183_s29  ;;  %2313 = vrot.lane.b32.xlu0 %v2302_v1, %s4183_s29  ;;  %v2355_v48 = vsel %vm227_vm3, %v2353_v23, %v2354_v49 }
 0x367   :  { %v2408_v23 = vrot.slane %v2390_v52, 1 }
 0x368   :  { %v5606_v7 = vpop.permute.xlu1 %1258  ;;  %v5608_v6 = vpop.permute.xlu0 %1260 }
 0x369   :  { %8788 = vst [vmem:[#allocation154_spill] sm:$0xff] %v5606_v7  ;;  %8789 = vst [vmem:[#allocation155_spill] sm:$0xff] %v5608_v6  ;;  %v2360_v6 = vrot.slane %v2337_v9, 1  ;;  %v2387_v7 = vmul.f32 0.031039765, %v5474_v4 }
 0x36a   :  { %2364 = vrot.lane.b32.xlu1 %v2352_v18, %s4183_s29  ;;  %2362 = vrot.lane.b32.xlu0 %v2349_v10, %s4183_s29  ;;  %v2392_v18 = vmul.f32 0.031039765, %v5509_v61 }
 0x36b   :  { %v2361_v10 = vsel %vm227_vm3, %v2354_v49, %v2360_v6  ;;  %v2407_v38 = vrot.slane %v2387_v7, 1  ;;  %v2410_v7 = vrot.slane %v2388_v43, 1  ;;  %v2447_v43 = vmul.f32 0.04052399, %v5478_v63 }
 0x36c   :  { %v5616_v59 = vpop.permute.xlu1 %1266  ;;  %v5618_v1 = vpop.permute.xlu0 %1264  ;;  %v2413_v49 = vrot.slane %v2392_v18, 1  ;;  %v2444_v18 = vmul.f32 0.04052399, %v5474_v4  ;;  %v2449_v63 = vmul.f32 0.04052399, %v5509_v61 }
 0x36d   :  { %8790 = vst [vmem:[#allocation156_spill] sm:$0xff] %v5616_v59  ;;  %8791 = vst [vmem:[#allocation157_spill] sm:$0xff] %v5618_v1  ;;  %v2404_v59 = vrot.slane %v2386_v41, 1  ;;  %v2405_v1 = vrot.slane %v2389_v0, 1  ;;  %v2409_v6 = vsel %vm227_vm3, %v2407_v38, %v2408_v23  ;;  %v2393_v41 = vmul.f32 0.031039765, %v5527_v15 }
 0x36e   :  { %2368 = vrot.lane.b32.xlu1 %v2357_v20, %s4183_s29  ;;  %2366 = vrot.lane.b32.xlu0 %v2355_v48, %s4183_s29  ;;  %v2391_v20 = vmul.f32 0.031039765, %v5513_v34 }
 0x36f   :  { %v2406_v52 = vsel %vm227_vm3, %v2404_v59, %v2405_v1  ;;  %v2415_v59 = vrot.slane %v2393_v41, 1  ;;  %v2448_v41 = vmul.f32 0.04052399, %v5513_v34 }
 0x370   :  { %v5629_v9 = vpop.permute.xlu1 %1294  ;;  %v5631_v11 = vpop.permute.xlu0 %1296  ;;  %v2411_v56 = vrot.slane %v2391_v20, 1  ;;  %v2443_v20 = vmul.f32 0.04052399, %v5486_v39 }
 0x371   :  { %8792 = vst [vmem:[#allocation158_spill] sm:$0xff] %v5629_v9  ;;  %8793 = vst [vmem:[#allocation159_spill] sm:$0xff] %v5631_v11 }
 0x372   :  { %2372 = vrot.lane.b32.xlu1 %v2361_v10, %s4183_s29  ;;  %2370 = vrot.lane.b32.xlu0 %v2359_v40, %s4183_s29  ;;  %v2414_v40 = vsel %vm227_vm3, %v2405_v1, %v2413_v49  ;;  %v2412_v38 = vsel %vm227_vm3, %v2410_v7, %v2411_v56  ;;  %v2464_v1 = vrot.slane %v2444_v18, 1  ;;  %v2416_v49 = vsel %vm227_vm3, %v2408_v23, %v2415_v59 }
 0x373   :  { %v2461_v7 = vrot.slane %v2443_v20, 1  ;;  %v2470_v23 = vrot.slane %v2449_v63, 1  ;;  %v2468_v59 = vrot.slane %v2448_v41, 1 }
 0x374   :  { %v5639_v48 = vpop.permute.xlu1 %1302  ;;  %v5641_v9 = vpop.permute.xlu0 %1300 }
 0x375   :  { %8794 = vst [vmem:[#allocation160_spill] sm:$0xff] %v5639_v48  ;;  %8795 = vst [vmem:[#allocation161_spill] sm:$0xff] %v5641_v9  ;;  %v2417_v48 = vrot.slane %v2394_v22, 1  ;;  %v2465_v22 = vrot.slane %v2447_v43, 1  ;;  %v2450_v43 = vmul.f32 0.04052399, %v5527_v15 }
 0x376   :  { %2421 = vrot.lane.b32.xlu1 %v2409_v6, %s4183_s29  ;;  %2419 = vrot.lane.b32.xlu0 %v2406_v52, %s4183_s29  ;;  %v2446_v6 = vmul.f32 0.04052399, %v5490_v35  ;;  %v2445_v35 = vmul.f32 0.04052399, %v5499_v2 }
 0x377   :  { %v2418_v4 = vsel %vm227_vm3, %v2411_v56, %v2417_v48  ;;  %v2466_v48 = vsel %vm227_vm3, %v2464_v1, %v2465_v22  ;;  %v2451_v56 = vmul.f32 0.04052399, %v5523_v60  ;;  %v2472_v1 = vrot.slane %v2450_v43, 1 }
 0x378   :  { %v5649_v0 = vpop.permute.xlu1 %1330  ;;  %v5651_v10 = vpop.permute.xlu0 %1332  ;;  %v2462_v39 = vrot.slane %v2446_v6, 1 }
 0x379   :  { %8796 = vst [vmem:[#allocation162_spill] sm:$0xff] %v5649_v0  ;;  %8797 = vst [vmem:[#allocation163_spill] sm:$0xff] %v5651_v10  ;;  %v2474_v6 = vrot.slane %v2451_v56, 1  ;;  %v2473_v63 = vsel %vm227_vm3, %v2465_v22, %v2472_v1 }
 0x37a   :  { %2425 = vrot.lane.b32.xlu1 %v2414_v40, %s4183_s29  ;;  %2423 = vrot.lane.b32.xlu0 %v2412_v38, %s4183_s29  ;;  %v2463_v61 = vsel %vm227_vm3, %v2461_v7, %v2462_v39  ;;  %v2467_v38 = vrot.slane %v2445_v35, 1  ;;  %v2471_v20 = vsel %vm227_vm3, %v2462_v39, %v2470_v23 }
 0x37b   :  { %v2475_v15 = vsel %vm227_vm3, %v2468_v59, %v2474_v6 }
 0x37c   :  { %v5661_v52 = vpop.permute.xlu1 %1338  ;;  %v5663_v10 = vpop.permute.xlu0 %1336  ;;  %v2469_v60 = vsel %vm227_vm3, %v2467_v38, %v2468_v59 }
 0x37d   :  { %8798 = vst [vmem:[#allocation164_spill] sm:$0xff] %v5661_v52  ;;  %8799 = vst [vmem:[#allocation165_spill] sm:$0xff] %v5663_v10 }
 0x37e   :  { %2429 = vrot.lane.b32.xlu1 %v2418_v4, %s4183_s29  ;;  %2427 = vrot.lane.b32.xlu0 %v2416_v49, %s4183_s29 }
 0x380   :  { %v5672_v40 = vpop.permute.xlu1 %1389  ;;  %v5674_v18 = vpop.permute.xlu0 %1395 }
 0x381   :  { %8800 = vst [vmem:[#allocation166_spill] sm:$0xff] %v5672_v40  ;;  %8801 = vst [vmem:[#allocation167_spill] sm:$0xff] %v5674_v18 }
 0x382   :  { %2478 = vrot.lane.b32.xlu1 %v2466_v48, %s4183_s29  ;;  %2476 = vrot.lane.b32.xlu0 %v2463_v61, %s4183_s29 }
 0x384   :  { %v5682_v2 = vpop.permute.xlu1 %1425  ;;  %v5684_v34 = vpop.permute.xlu0 %1431 }
 0x385   :  { %8802 = vst [vmem:[#allocation168_spill] sm:$0xff] %v5682_v2  ;;  %8803 = vst [vmem:[#allocation169_spill] sm:$0xff] %v5684_v34 }
 0x386   :  { %2482 = vrot.lane.b32.xlu1 %v2471_v20, %s4183_s29  ;;  %2480 = vrot.lane.b32.xlu0 %v2469_v60, %s4183_s29 }
 0x388   :  { %v5690_v4 = vpop.permute.xlu1 %1461  ;;  %v5692_v49 = vpop.permute.xlu0 %1467 }
 0x389   :  { %8804 = vst [vmem:[#allocation170_spill] sm:$0xff] %v5690_v4  ;;  %8805 = vst [vmem:[#allocation171_spill] sm:$0xff] %v5692_v49 }
 0x38a   :  { %2486 = vrot.lane.b32.xlu1 %v2475_v15, %s4183_s29  ;;  %2484 = vrot.lane.b32.xlu0 %v2473_v63, %s4183_s29 }
 0x38c   :  { %v5698_v7 = vpop.permute.xlu1 %1505  ;;  %v5700_v39 = vpop.permute.xlu0 %1511 }
 0x38d   :  { %8806 = vst [vmem:[#allocation172_spill] sm:$0xff] %v5698_v7  ;;  %8807 = vst [vmem:[#allocation173_spill] sm:$0xff] %v5700_v39 }
 0x38e   :  { %2514 = vrot.lane.b32.xlu1 %v4619_v57, %s4184_s30  ;;  %2512 = vrot.lane.b32.xlu0 %v4622_v45, %s4184_s30 }
 0x390   :  { %v5706_v35 = vpop.permute.xlu1 %1541  ;;  %v5708_v41 = vpop.permute.xlu0 %1547 }
 0x391   :  { %8808 = vst [vmem:[#allocation174_spill] sm:$0xff] %v5706_v35  ;;  %8809 = vst [vmem:[#allocation175_spill] sm:$0xff] %v5708_v41 }
 0x392   :  { %2518 = vrot.lane.b32.xlu1 %v4630_v46, %s4184_s30  ;;  %2516 = vrot.lane.b32.xlu0 %v4536_v55, %s4184_s30 }
 0x394   :  { %v5714_v22 = vpop.permute.xlu1 %1935  ;;  %v5716_v48 = vpop.permute.xlu0 %1933 }
 0x395   :  { %8810 = vst [vmem:[#allocation176_spill] sm:$0xff] %v5714_v22  ;;  %8811 = vst [vmem:[#allocation177_spill] sm:$0xff] %v5716_v48 }
 0x396   :  { %2522 = vrot.lane.b32.xlu1 %v4533_v50, %s4184_s30  ;;  %2520 = vrot.lane.b32.xlu0 %v4634_v47, %s4184_s30 }
 0x398   :  { %v5722_v23 = vpop.permute.xlu1 %1939  ;;  %v5724_v56 = vpop.permute.xlu0 %1941 }
 0x399   :  { %8812 = vst [vmem:[#allocation178_spill] sm:$0xff] %v5722_v23  ;;  %8813 = vst [vmem:[#allocation179_spill] sm:$0xff] %v5724_v56 }
 0x39a   :  { %2526 = vrot.lane.b32.xlu1 %v8772_v33, %s4184_s30  ;;  %2524 = vrot.lane.b32.xlu0 %v4566_v54, %s4184_s30 }
 0x39c   :  { %v5730_v55 = vpop.permute.xlu1 %1992  ;;  %v5732_v61 = vpop.permute.xlu0 %1990 }
 0x39d   :  { %8814 = vst [vmem:[#allocation180_spill] sm:$0xff] %v5730_v55  ;;  %8815 = vst [vmem:[#allocation181_spill] sm:$0xff] %v5732_v61 }
 0x39e   :  { %2528 = vrot.lane.b32.xlu0 %v8771_v27, %s4184_s30 }
 0x3a0   :  { %v5736_v50 = vpop.permute.xlu1 %1996  ;;  %v5738_v38 = vpop.permute.xlu0 %1998 }
 0x3a1   :  { %8816 = vst [vmem:[#allocation182_spill] sm:$0xff] %v5736_v50  ;;  %8817 = vst [vmem:[#allocation183_spill] sm:$0xff] %v5738_v38 }
 0x3a4   :  { %v5740_v59 = vpop.permute.xlu1 %2049  ;;  %v5742_v43 = vpop.permute.xlu0 %2047 }
 0x3a5   :  { %8818 = vst [vmem:[#allocation184_spill] sm:$0xff] %v5740_v59  ;;  %8819 = vst [vmem:[#allocation185_spill] sm:$0xff] %v5742_v43 }
 0x3a8   :  { %v5744_v20 = vpop.permute.xlu1 %2053  ;;  %v5746_v6 = vpop.permute.xlu0 %2055 }
 0x3a9   :  { %8820 = vst [vmem:[#allocation186_spill] sm:$0xff] %v5744_v20  ;;  %8821 = vst [vmem:[#allocation187_spill] sm:$0xff] %v5746_v6 }
 0x3ac   :  { %v5748_v60 = vpop.permute.xlu1 %2114  ;;  %v5750_v1 = vpop.permute.xlu0 %2112 }
 0x3ad   :  { %8822 = vst [vmem:[#allocation188_spill] sm:$0xff] %v5748_v60  ;;  %8823 = vst [vmem:[#allocation189_spill] sm:$0xff] %v5750_v1 }
 0x3b0   :  { %v5752_v15 = vpop.permute.xlu1 %2118  ;;  %v5754_v63 = vpop.permute.xlu0 %2116 }
 0x3b1   :  { %8824 = vst [vmem:[#allocation190_spill] sm:$0xff] %v5752_v15  ;;  %8825 = vst [vmem:[#allocation191_spill] sm:$0xff] %v5754_v63 }
 0x3b4   :  { %v5756_v27 = vpop.permute.xlu1 %2122  ;;  %v5758_v4 = vpop.permute.xlu0 %2120 }
 0x3b5   :  { %8826 = vst [vmem:[#allocation192_spill] sm:$0xff] %v5756_v27  ;;  %8827 = vst [vmem:[#allocation193_spill] sm:$0xff] %v5758_v4 }
 0x3b8   :  { %v5760_v50 = vpop.permute.xlu1 %2171  ;;  %v5762_v59 = vpop.permute.xlu0 %2169 }
 0x3b9   :  { %8828 = vst [vmem:[#allocation194_spill] sm:$0xff] %v5760_v50  ;;  %8829 = vst [vmem:[#allocation195_spill] sm:$0xff] %v5762_v59 }
 0x3bc   :  { %v5764_v43 = vpop.permute.xlu1 %2175  ;;  %v5766_v20 = vpop.permute.xlu0 %2173 }
 0x3bd   :  { %8830 = vst [vmem:[#allocation196_spill] sm:$0xff] %v5764_v43  ;;  %8831 = vst [vmem:[#allocation197_spill] sm:$0xff] %v5766_v20 }
 0x3c0   :  { %v5768_v6 = vpop.permute.xlu1 %2179  ;;  %v5770_v60 = vpop.permute.xlu0 %2177 }
 0x3c1   :  { %8832 = vst [vmem:[#allocation198_spill] sm:$0xff] %v5768_v6  ;;  %8833 = vst [vmem:[#allocation199_spill] sm:$0xff] %v5770_v60 }
 0x3c4   :  { %v5772_v1 = vpop.permute.xlu1 %2250  ;;  %v5774_v15 = vpop.permute.xlu0 %2248 }
 0x3c5   :  { %8834 = vst [vmem:[#allocation200_spill] sm:$0xff] %v5772_v1  ;;  %8835 = vst [vmem:[#allocation201_spill] sm:$0xff] %v5774_v15 }
 0x3c8   :  { %v5776_v63 = vpop.permute.xlu1 %2254  ;;  %v5778_v27 = vpop.permute.xlu0 %2252 }
 0x3c9   :  { %8836 = vst [vmem:[#allocation202_spill] sm:$0xff] %v5776_v63  ;;  %8837 = vst [vmem:[#allocation203_spill] sm:$0xff] %v5778_v27 }
 0x3cc   :  { %v5780_v4 = vpop.permute.xlu1 %2258  ;;  %v5782_v50 = vpop.permute.xlu0 %2256 }
 0x3cd   :  { %8838 = vst [vmem:[#allocation204_spill] sm:$0xff] %v5780_v4  ;;  %8839 = vst [vmem:[#allocation205_spill] sm:$0xff] %v5782_v50 }
 0x3d0   :  { %v5784_v59 = vpop.permute.xlu1 %2307  ;;  %v5786_v43 = vpop.permute.xlu0 %2305 }
 0x3d1   :  { %8840 = vst [vmem:[#allocation206_spill] sm:$0xff] %v5784_v59  ;;  %8841 = vst [vmem:[#allocation207_spill] sm:$0xff] %v5786_v43 }
 0x3d4   :  { %v5788_v20 = vpop.permute.xlu1 %2311  ;;  %v5790_v6 = vpop.permute.xlu0 %2309 }
 0x3d5   :  { %8842 = vst [vmem:[#allocation208_spill] sm:$0xff] %v5788_v20  ;;  %8843 = vst [vmem:[#allocation209_spill] sm:$0xff] %v5790_v6 }
 0x3d8   :  { %v5792_v60 = vpop.permute.xlu1 %2315  ;;  %v5794_v1 = vpop.permute.xlu0 %2313 }
 0x3d9   :  { %8844 = vst [vmem:[#allocation210_spill] sm:$0xff] %v5792_v60  ;;  %8845 = vst [vmem:[#allocation211_spill] sm:$0xff] %v5794_v1 }
 0x3dc   :  { %v5796_v15 = vpop.permute.xlu1 %2364  ;;  %v5798_v63 = vpop.permute.xlu0 %2362 }
 0x3dd   :  { %8846 = vst [vmem:[#allocation212_spill] sm:$0xff] %v5796_v15  ;;  %8847 = vst [vmem:[#allocation213_spill] sm:$0xff] %v5798_v63 }
 0x3e0   :  { %v5800_v27 = vpop.permute.xlu1 %2368  ;;  %v5802_v4 = vpop.permute.xlu0 %2366 }
 0x3e1   :  { %8848 = vst [vmem:[#allocation214_spill] sm:$0xff] %v5800_v27  ;;  %8849 = vst [vmem:[#allocation215_spill] sm:$0xff] %v5802_v4 }
 0x3e4   :  { %v5804_v50 = vpop.permute.xlu1 %2372  ;;  %v5806_v59 = vpop.permute.xlu0 %2370 }
 0x3e5   :  { %8850 = vst [vmem:[#allocation216_spill] sm:$0xff] %v5804_v50  ;;  %8851 = vst [vmem:[#allocation217_spill] sm:$0xff] %v5806_v59 }
 0x3e8   :  { %v5808_v43 = vpop.permute.xlu1 %2421  ;;  %v5810_v20 = vpop.permute.xlu0 %2419 }
 0x3e9   :  { %8852 = vst [vmem:[#allocation218_spill] sm:$0xff] %v5808_v43  ;;  %8853 = vst [vmem:[#allocation219_spill] sm:$0xff] %v5810_v20 }
 0x3ec   :  { %v5812_v6 = vpop.permute.xlu1 %2425  ;;  %v5814_v60 = vpop.permute.xlu0 %2423 }
 0x3ed   :  { %8854 = vst [vmem:[#allocation220_spill] sm:$0xff] %v5812_v6  ;;  %8855 = vst [vmem:[#allocation221_spill] sm:$0xff] %v5814_v60 }
 0x3f0   :  { %v5816_v1 = vpop.permute.xlu1 %2429  ;;  %v5818_v15 = vpop.permute.xlu0 %2427 }
 0x3f1   :  { %8856 = vst [vmem:[#allocation222_spill] sm:$0xff] %v5816_v1  ;;  %8857 = vst [vmem:[#allocation223_spill] sm:$0xff] %v5818_v15 }
 0x3f4   :  { %v5820_v63 = vpop.permute.xlu1 %2478  ;;  %v5822_v27 = vpop.permute.xlu0 %2476 }
 0x3f5   :  { %8858 = vst [vmem:[#allocation224_spill] sm:$0xff] %v5820_v63  ;;  %8859 = vst [vmem:[#allocation225_spill] sm:$0xff] %v5822_v27 }
 0x3f8   :  { %v5824_v4 = vpop.permute.xlu1 %2482  ;;  %v5826_v50 = vpop.permute.xlu0 %2480 }
 0x3f9   :  { %8860 = vst [vmem:[#allocation226_spill] sm:$0xff] %v5824_v4  ;;  %8861 = vst [vmem:[#allocation227_spill] sm:$0xff] %v5826_v50 }
 0x3fc   :  { %v5828_v59 = vpop.permute.xlu1 %2486  ;;  %v5830_v43 = vpop.permute.xlu0 %2484 }
 0x3fd   :  { %8862 = vst [vmem:[#allocation228_spill] sm:$0xff] %v5828_v59  ;;  %8863 = vst [vmem:[#allocation229_spill] sm:$0xff] %v5830_v43 }
 0x400   :  { %v2515_v20 = vpop.permute.xlu1 %2514  ;;  %v2513_v6 = vpop.permute.xlu0 %2512 }
 0x401   :  { %v5833_v60 = vadd.f32 %v2513_v6, %v4578_v29  ;;  %v2530_v1 = vsel %vm1046_vm0, %v2513_v6, %v2515_v20 }
 0x402   :  { %v5841_v50 = vadd.f32 %v2530_v1, %v4572_v26 }
 0x403   :  { %v2554_v4 = vmul.f32 0.0088402685, %v5833_v60 }
 0x404   :  { %v2519_v15 = vpop.permute.xlu1 %2518  ;;  %v2517_v27 = vpop.permute.xlu0 %2516  ;;  %v2555_v22 = vmul.f32 0.0088402685, %v5841_v50 }
 0x405   :  { %v5837_v63 = vadd.f32 %v2519_v15, %v4575_v28  ;;  %v2531_v59 = vsel %vm1046_vm0, %v2515_v20, %v2517_v27  ;;  %v2572_v6 = vrot.slane %v2554_v4, 1 }
 0x406   :  { %v5845_v43 = vadd.f32 %v2531_v59, %v4439_v17 }
 0x407   :  { %v2557_v38 = vmul.f32 0.0088402685, %v5837_v63 }
 0x408   :  { %v2523_v61 = vpop.permute.xlu1 %2522  ;;  %v2521_v55 = vpop.permute.xlu0 %2520  ;;  %v2556_v27 = vmul.f32 0.0088402685, %v5845_v43 }
 0x409   :  { %v2573_v23 = vrot.slane %v2557_v38, 1  ;;  %v2532_v56 = vsel %vm1046_vm0, %v2519_v15, %v2521_v55  ;;  %v2533_v48 = vsel %vm1046_vm0, %v2521_v55, %v2523_v61  ;;  %v2575_v15 = vrot.slane %v2555_v22, 1 }
 0x40a   :  { %v5852_v1 = vadd.f32 %v2532_v56, %v4569_v25  ;;  %v5855_v20 = vadd.f32 %v2533_v48, %v4436_v16 }
 0x40b   :  { %v2574_v59 = vsel %vm227_vm3, %v2572_v6, %v2573_v23  ;;  %v2578_v6 = vrot.slane %v2556_v27, 1  ;;  %v2611_v27 = vmul.f32 -0.0074456926, %v5833_v60 }
 0x40c   :  { %v2527_v41 = vpop.permute.xlu1 %2526  ;;  %2587 = vrot.lane.b32.xlu1 %v2574_v59, %s4186_s4  ;;  %v2525_v4 = vpop.permute.xlu0 %2524  ;;  %v2559_v38 = vmul.f32 0.0088402685, %v5855_v20  ;;  %v2558_v55 = vmul.f32 0.0088402685, %v5852_v1  ;;  %v2614_v59 = vmul.f32 -0.0074456926, %v5837_v63 }
 0x40d   :  { %v2534_v61 = vsel %vm1046_vm0, %v2525_v4, %v2527_v41  ;;  %v5864_v56 = vadd.f32 %v2525_v4, %v4556_v14 }
 0x40e   :  { %v5867_v48 = vadd.f32 %v2534_v61, %v4553_v13  ;;  %v2579_v35 = vrot.slane %v2559_v38, 1  ;;  %v2576_v39 = vrot.slane %v2558_v55, 1 }
 0x40f   :  { %v2560_v7 = vmul.f32 0.0088402685, %v5864_v56 }
 0x410   :  { %v2529_v49 = vpop.permute.xlu0 %2528  ;;  %v2580_v34 = vsel %vm227_vm3, %v2578_v6, %v2579_v35  ;;  %v2577_v2 = vsel %vm227_vm3, %v2575_v15, %v2576_v39  ;;  %v2561_v52 = vmul.f32 0.0088402685, %v5867_v48  ;;  %v2630_v6 = vrot.slane %v2614_v59, 1 }
 0x411   :  { %v2535_v4 = vsel %vm1046_vm0, %v2527_v41, %v2529_v49  ;;  %2591 = vrot.lane.b32.xlu1 %v2580_v34, %s4186_s4  ;;  %2589 = vrot.lane.b32.xlu0 %v2577_v2, %s4186_s4  ;;  %v2581_v22 = vrot.slane %v2560_v7, 1  ;;  %v2616_v15 = vmul.f32 -0.0074456926, %v5855_v20  ;;  %v2615_v34 = vmul.f32 -0.0074456926, %v5852_v1 }
 0x412   :  { %v5879_v38 = vadd.f32 %v2535_v4, %v4442_v24  ;;  %v2583_v55 = vrot.slane %v2561_v52, 1  ;;  %v2629_v2 = vrot.slane %v2611_v27, 1  ;;  %v2613_v7 = vmul.f32 -0.0074456926, %v5845_v43 }
 0x413   :  { %v2582_v61 = vsel %vm227_vm3, %v2573_v23, %v2581_v22  ;;  %v2612_v52 = vmul.f32 -0.0074456926, %v5841_v50  ;;  %v2636_v59 = vrot.slane %v2616_v15, 1  ;;  %v2618_v22 = vmul.f32 -0.0074456926, %v5867_v48 }
 0x414   :  { %v2584_v10 = vsel %vm227_vm3, %v2576_v39, %v2583_v55  ;;  %v2562_v49 = vmul.f32 0.0088402685, %v5879_v38  ;;  %v2631_v23 = vsel %vm227_vm3, %v2629_v2, %v2630_v6  ;;  %v2633_v39 = vrot.slane %v2615_v34, 1 }
 0x415   :  { %2593 = vrot.lane.b32.xlu0 %v2582_v61, %s4186_s4  ;;  %2595 = vrot.lane.b32.xlu1 %v2584_v10, %s4186_s4  ;;  %v2617_v55 = vmul.f32 -0.0074456926, %v5864_v56  ;;  %v2635_v10 = vrot.slane %v2613_v7, 1  ;;  %v2632_v27 = vrot.slane %v2612_v52, 1  ;;  %v2640_v15 = vrot.slane %v2618_v22, 1 }
 0x416   :  { %v2585_v41 = vrot.slane %v2562_v49, 1  ;;  %v2671_v49 = vmul.f32 -0.013526065, %v5837_v63  ;;  %v2668_v34 = vmul.f32 -0.013526065, %v5833_v60 }
 0x417   :  { %v2637_v61 = vsel %vm227_vm3, %v2635_v10, %v2636_v59  ;;  %v2634_v2 = vsel %vm227_vm3, %v2632_v27, %v2633_v39  ;;  %v2638_v0 = vrot.slane %v2617_v55, 1  ;;  %v2673_v7 = vmul.f32 -0.013526065, %v5855_v20 }
 0x418   :  { %v2586_v4 = vsel %vm227_vm3, %v2579_v35, %v2585_v41  ;;  %v2619_v35 = vmul.f32 -0.0074456926, %v5879_v38  ;;  %v2687_v41 = vrot.slane %v2671_v49, 1  ;;  %v2641_v52 = vsel %vm227_vm3, %v2633_v39, %v2640_v15 }
 0x419   :  { %2644 = vrot.lane.b32.xlu1 %v2631_v23, %s4186_s4  ;;  %2597 = vrot.lane.b32.xlu0 %v2586_v4, %s4186_s4  ;;  %v2639_v23 = vsel %vm227_vm3, %v2630_v6, %v2638_v0  ;;  %v2672_v10 = vmul.f32 -0.013526065, %v5852_v1  ;;  %v2686_v22 = vrot.slane %v2668_v34, 1  ;;  %v2670_v55 = vmul.f32 -0.013526065, %v5845_v43 }
 0x41a   :  { %v2642_v4 = vrot.slane %v2619_v35, 1  ;;  %v2669_v27 = vmul.f32 -0.013526065, %v5841_v50  ;;  %v2675_v49 = vmul.f32 -0.013526065, %v5867_v48 }
 0x41b   :  { %v2690_v0 = vrot.slane %v2672_v10, 1  ;;  %v2674_v6 = vmul.f32 -0.013526065, %v5864_v56  ;;  %v2692_v15 = vrot.slane %v2670_v55, 1 }
 0x41c   :  { %v2643_v39 = vsel %vm227_vm3, %v2636_v59, %v2642_v4  ;;  %v2689_v35 = vrot.slane %v2669_v27, 1  ;;  %v2697_v34 = vrot.slane %v2675_v49, 1  ;;  %v2676_v59 = vmul.f32 -0.013526065, %v5879_v38 }
 0x41d   :  { %2648 = vrot.lane.b32.xlu1 %v2637_v61, %s4186_s4  ;;  %2646 = vrot.lane.b32.xlu0 %v2634_v2, %s4186_s4  ;;  %v2688_v61 = vsel %vm227_vm3, %v2686_v22, %v2687_v41  ;;  %v2693_v2 = vrot.slane %v2673_v7, 1  ;;  %v2695_v18 = vrot.slane %v2674_v6, 1  ;;  %v2733_v7 = vmul.f32 0.02602388, %v5833_v60 }
 0x41e   :  { %v2691_v22 = vsel %vm227_vm3, %v2689_v35, %v2690_v0  ;;  %v2698_v4 = vsel %vm227_vm3, %v2690_v0, %v2697_v34  ;;  %v2699_v27 = vrot.slane %v2676_v59, 1  ;;  %v2737_v49 = vmul.f32 0.02602388, %v5852_v1 }
 0x41f   :  { %v2696_v55 = vsel %vm227_vm3, %v2687_v41, %v2695_v18  ;;  %v2735_v6 = vmul.f32 0.02602388, %v5845_v43  ;;  %v2740_v0 = vmul.f32 0.02602388, %v5867_v48 }
 0x420   :  { %v2700_v18 = vsel %vm227_vm3, %v2693_v2, %v2699_v27  ;;  %v2755_v34 = vrot.slane %v2737_v49, 1  ;;  %v2790_v27 = vmul.f32 0.031963617, %v5833_v60 }
 0x421   :  { %2652 = vrot.lane.b32.xlu1 %v2641_v52, %s4186_s4  ;;  %2650 = vrot.lane.b32.xlu0 %v2639_v23, %s4186_s4  ;;  %v2736_v52 = vmul.f32 0.02602388, %v5837_v63  ;;  %v2694_v23 = vsel %vm227_vm3, %v2692_v15, %v2693_v2  ;;  %v2734_v15 = vmul.f32 0.02602388, %v5841_v50  ;;  %v2762_v59 = vrot.slane %v2740_v0, 1 }
 0x422   :  { %v2741_v2 = vmul.f32 0.02602388, %v5879_v38  ;;  %v2808_v0 = vrot.slane %v2790_v27, 1 }
 0x423   :  { %v2752_v10 = vrot.slane %v2736_v52, 1  ;;  %v2739_v52 = vmul.f32 0.02602388, %v5864_v56 }
 0x425   :  { %2701 = vrot.lane.b32.xlu1 %v2688_v61, %s4186_s4  ;;  %2654 = vrot.lane.b32.xlu0 %v2643_v39, %s4186_s4  ;;  %v2738_v61 = vmul.f32 0.02602388, %v5855_v20  ;;  %v2751_v39 = vrot.slane %v2733_v7, 1  ;;  %v2793_v7 = vmul.f32 0.031963617, %v5837_v63 }
 0x426   :  { %v2795_v63 = vmul.f32 0.031963617, %v5855_v20  ;;  %v2796_v20 = vmul.f32 0.031963617, %v5864_v56 }
 0x427   :  { %v2753_v35 = vsel %vm227_vm3, %v2751_v39, %v2752_v10  ;;  %v2758_v41 = vrot.slane %v2738_v61, 1  ;;  %v2760_v39 = vrot.slane %v2739_v52, 1  ;;  %v2763_v61 = vsel %vm227_vm3, %v2755_v34, %v2762_v59 }
 0x428   :  { %v2809_v49 = vrot.slane %v2793_v7, 1  ;;  %v2791_v52 = vmul.f32 0.031963617, %v5841_v50 }
 0x429   :  { %2705 = vrot.lane.b32.xlu1 %v2694_v23, %s4186_s4  ;;  %2703 = vrot.lane.b32.xlu0 %v2691_v22, %s4186_s4  ;;  %v2757_v23 = vrot.slane %v2735_v6, 1  ;;  %v2754_v22 = vrot.slane %v2734_v15, 1  ;;  %v2761_v6 = vsel %vm227_vm3, %v2752_v10, %v2760_v39  ;;  %v2764_v15 = vrot.slane %v2741_v2, 1 }
 0x42a   :  { %v2810_v60 = vsel %vm227_vm3, %v2808_v0, %v2809_v49  ;;  %v2811_v59 = vrot.slane %v2791_v52, 1 }
 0x42b   :  { %v2765_v10 = vsel %vm227_vm3, %v2758_v41, %v2764_v15 }
 0x42d   :  { %2709 = vrot.lane.b32.xlu1 %v2698_v4, %s4186_s4  ;;  %2707 = vrot.lane.b32.xlu0 %v2696_v55, %s4186_s4  ;;  %v2759_v4 = vsel %vm227_vm3, %v2757_v23, %v2758_v41  ;;  %v2756_v55 = vsel %vm227_vm3, %v2754_v22, %v2755_v34  ;;  %v2797_v34 = vmul.f32 0.031963617, %v5867_v48  ;;  %v2815_v23 = vrot.slane %v2795_v63, 1 }
 0x42e   :  { %v2817_v48 = vrot.slane %v2796_v20, 1 }
 0x430   :  { %v2818_v41 = vsel %vm227_vm3, %v2809_v49, %v2817_v48 }
 0x431   :  { %2766 = vrot.lane.b32.xlu1 %v2753_v35, %s4186_s4  ;;  %2711 = vrot.lane.b32.xlu0 %v2700_v18, %s4186_s4  ;;  %v2794_v35 = vmul.f32 0.031963617, %v5852_v1  ;;  %v2792_v18 = vmul.f32 0.031963617, %v5845_v43  ;;  %v2798_v43 = vmul.f32 0.031963617, %v5879_v38 }
 0x433   :  { %v2812_v22 = vrot.slane %v2794_v35, 1  ;;  %v2814_v1 = vrot.slane %v2792_v18, 1 }
 0x435   :  { %2770 = vrot.lane.b32.xlu1 %v2759_v4, %s4186_s4  ;;  %2768 = vrot.lane.b32.xlu0 %v2756_v55, %s4186_s4  ;;  %v2816_v50 = vsel %vm227_vm3, %v2814_v1, %v2815_v23  ;;  %v2813_v7 = vsel %vm227_vm3, %v2811_v59, %v2812_v22  ;;  %v2819_v4 = vrot.slane %v2797_v34, 1  ;;  %v2821_v55 = vrot.slane %v2798_v43, 1 }
 0x437   :  { %v2820_v56 = vsel %vm227_vm3, %v2812_v22, %v2819_v4  ;;  %v2822_v38 = vsel %vm227_vm3, %v2815_v23, %v2821_v55 }
 0x439   :  { %2774 = vrot.lane.b32.xlu1 %v2763_v61, %s4186_s4  ;;  %2772 = vrot.lane.b32.xlu0 %v2761_v6, %s4186_s4 }
 0x43d   :  { %2823 = vrot.lane.b32.xlu1 %v2810_v60, %s4186_s4  ;;  %2776 = vrot.lane.b32.xlu0 %v2765_v10, %s4186_s4 }
 0x441   :  { %2827 = vrot.lane.b32.xlu1 %v2816_v50, %s4186_s4  ;;  %2825 = vrot.lane.b32.xlu0 %v2813_v7, %s4186_s4 }
 0x445   :  { %2831 = vrot.lane.b32.xlu1 %v2820_v56, %s4186_s4  ;;  %2829 = vrot.lane.b32.xlu0 %v2818_v41, %s4186_s4 }
 0x449   :  { %2851 = vrot.lane.b32.xlu1 %v4622_v45, %s4185_s3  ;;  %2833 = vrot.lane.b32.xlu0 %v2822_v38, %s4186_s4 }
 0x44d   :  { %2855 = vrot.lane.b32.xlu1 %v4630_v46, %s4185_s3  ;;  %2853 = vrot.lane.b32.xlu0 %v4619_v57, %s4185_s3 }
 0x451   :  { %2859 = vrot.lane.b32.xlu1 %v4566_v54, %s4185_s3  ;;  %2857 = vrot.lane.b32.xlu0 %v4634_v47, %s4185_s3 }
 0x455   :  { %2861 = vrot.lane.b32.xlu0 %v8772_v33, %s4185_s3 }
 0x47e   :  { %v5982_v39 = vpop.permute.xlu1 %2587 }
 0x47f   :  { %8864 = vst [vmem:[#allocation230_spill] sm:$0xff] %v5982_v39 }
 0x483   :  { %v5984_v45 = vpop.permute.xlu1 %2591  ;;  %v5986_v2 = vpop.permute.xlu0 %2589 }
 0x484   :  { %8865 = vst [vmem:[#allocation231_spill] sm:$0xff] %v5984_v45  ;;  %8866 = vst [vmem:[#allocation232_spill] sm:$0xff] %v5986_v2 }
 0x487   :  { %v5988_v27 = vpop.permute.xlu1 %2595  ;;  %v5990_v46 = vpop.permute.xlu0 %2593 }
 0x488   :  { %8867 = vst [vmem:[#allocation233_spill] sm:$0xff] %v5988_v27  ;;  %8868 = vst [vmem:[#allocation234_spill] sm:$0xff] %v5990_v46 }
 0x48b   :  { %v5992_v57 = vpop.permute.xlu1 %2644  ;;  %v5994_v61 = vpop.permute.xlu0 %2597 }
 0x48c   :  { %8869 = vst [vmem:[#allocation235_spill] sm:$0xff] %v5992_v57  ;;  %8870 = vst [vmem:[#allocation236_spill] sm:$0xff] %v5994_v61 }
 0x48f   :  { %v5996_v54 = vpop.permute.xlu1 %2648  ;;  %v5998_v47 = vpop.permute.xlu0 %2646 }
 0x490   :  { %8871 = vst [vmem:[#allocation237_spill] sm:$0xff] %v5996_v54  ;;  %8872 = vst [vmem:[#allocation238_spill] sm:$0xff] %v5998_v47 }
 0x493   :  { %v6000_v49 = vpop.permute.xlu1 %2652  ;;  %v6002_v33 = vpop.permute.xlu0 %2650 }
 0x494   :  { %8873 = vst [vmem:[#allocation239_spill] sm:$0xff] %v6000_v49  ;;  %8874 = vst [vmem:[#allocation240_spill] sm:$0xff] %v6002_v33 }
 0x497   :  { %v6004_v6 = vpop.permute.xlu1 %2701  ;;  %v6006_v15 = vpop.permute.xlu0 %2654 }
 0x498   :  { %8875 = vst [vmem:[#allocation241_spill] sm:$0xff] %v6004_v6  ;;  %8876 = vst [vmem:[#allocation242_spill] sm:$0xff] %v6006_v15 }
 0x49b   :  { %v6008_v63 = vpop.permute.xlu1 %2705  ;;  %v6010_v35 = vpop.permute.xlu0 %2703 }
 0x49c   :  { %8877 = vst [vmem:[#allocation243_spill] sm:$0xff] %v6008_v63  ;;  %8878 = vst [vmem:[#allocation244_spill] sm:$0xff] %v6010_v35 }
 0x49f   :  { %v6012_v0 = vpop.permute.xlu1 %2709  ;;  %v6014_v18 = vpop.permute.xlu0 %2707 }
 0x4a0   :  { %8879 = vst [vmem:[#allocation245_spill] sm:$0xff] %v6012_v0  ;;  %8880 = vst [vmem:[#allocation246_spill] sm:$0xff] %v6014_v18 }
 0x4a3   :  { %v6016_v52 = vpop.permute.xlu1 %2766  ;;  %v6018_v60 = vpop.permute.xlu0 %2711 }
 0x4a4   :  { %8881 = vst [vmem:[#allocation247_spill] sm:$0xff] %v6016_v52  ;;  %8882 = vst [vmem:[#allocation248_spill] sm:$0xff] %v6018_v60 }
 0x4a7   :  { %v6020_v34 = vpop.permute.xlu1 %2770  ;;  %v6022_v10 = vpop.permute.xlu0 %2768 }
 0x4a8   :  { %8883 = vst [vmem:[#allocation249_spill] sm:$0xff] %v6020_v34  ;;  %8884 = vst [vmem:[#allocation250_spill] sm:$0xff] %v6022_v10 }
 0x4ab   :  { %v6024_v23 = vpop.permute.xlu1 %2774  ;;  %v6026_v22 = vpop.permute.xlu0 %2772 }
 0x4ac   :  { %8885 = vst [vmem:[#allocation251_spill] sm:$0xff] %v6024_v23  ;;  %8886 = vst [vmem:[#allocation252_spill] sm:$0xff] %v6026_v22 }
 0x4af   :  { %v6028_v20 = vpop.permute.xlu1 %2823  ;;  %v6030_v1 = vpop.permute.xlu0 %2776 }
 0x4b0   :  { %8887 = vst [vmem:[#allocation253_spill] sm:$0xff] %v6028_v20  ;;  %8888 = vst [vmem:[#allocation254_spill] sm:$0xff] %v6030_v1 }
 0x4b3   :  { %v6032_v59 = vpop.permute.xlu1 %2827  ;;  %v6034_v43 = vpop.permute.xlu0 %2825 }
 0x4b4   :  { %8889 = vst [vmem:[#allocation255_spill] sm:$0xff] %v6032_v59  ;;  %8890 = vst [vmem:[#allocation256_spill] sm:$0xff] %v6034_v43 }
 0x4b7   :  { %v6036_v50 = vpop.permute.xlu1 %2831  ;;  %v6038_v7 = vpop.permute.xlu0 %2829 }
 0x4b8   :  { %8891 = vst [vmem:[#allocation257_spill] sm:$0xff] %v6036_v50  ;;  %8892 = vst [vmem:[#allocation258_spill] sm:$0xff] %v6038_v7 }
 0x4bb   :  { %v2852_v4 = vpop.permute.xlu1 %2851  ;;  %v6040_v48 = vpop.permute.xlu0 %2833 }
 0x4bc   :  { %8893 = vst [vmem:[#allocation259_spill] sm:$0xff] %v6040_v48  ;;  %v6043_v56 = vadd.f32 %v2852_v4, %v4578_v29 }
 0x4be   :  { %v2884_v38 = vmul.f32 0.0088402685, %v6043_v56  ;;  %v3055_v61 = vmul.f32 -0.03364637, %v6043_v56  ;;  %v3112_v12 = vmul.f32 -0.029102264, %v6043_v56 }
 0x4bf   :  { %v2856_v41 = vpop.permute.xlu1 %2855  ;;  %v2854_v55 = vpop.permute.xlu0 %2853 }
 0x4c0   :  { %v6047_v63 = vadd.f32 %v2856_v41, %v4575_v28  ;;  %v2863_v6 = vsel %vm1360_vm7, %v2852_v4, %v2854_v55  ;;  %v6051_v35 = vadd.f32 %v2854_v55, %v4439_v17  ;;  %v2902_v20 = vrot.slane %v2884_v38, 1 }
 0x4c1   :  { %v6054_v7 = vadd.f32 %v2863_v6, %v4572_v26 }
 0x4c2   :  { %v2887_v48 = vmul.f32 0.0088402685, %v6047_v63  ;;  %v2886_v43 = vmul.f32 0.0088402685, %v6051_v35  ;;  %v2943_v54 = vmul.f32 -0.021648958, %v6051_v35 }
 0x4c3   :  { %v2860_v50 = vpop.permute.xlu1 %2859  ;;  %v2858_v59 = vpop.permute.xlu0 %2857  ;;  %v2885_v6 = vmul.f32 0.0088402685, %v6054_v7  ;;  %v3056_v27 = vmul.f32 -0.03364637, %v6054_v7  ;;  %v3284_v8 = vmul.f32 0.035482433, %v6054_v7 }
 0x4c4   :  { %v6059_v1 = vadd.f32 %v2860_v50, %v4556_v14  ;;  %v2864_v22 = vsel %vm1360_vm7, %v2856_v41, %v2858_v59  ;;  %v6063_v4 = vadd.f32 %v2858_v59, %v4436_v16  ;;  %v2903_v55 = vrot.slane %v2887_v48, 1 }
 0x4c5   :  { %v6066_v23 = vadd.f32 %v2864_v22, %v4569_v25  ;;  %v2908_v22 = vrot.slane %v2886_v43, 1  ;;  %v2941_v43 = vmul.f32 -0.021648958, %v6043_v56  ;;  %v3285_v19 = vmul.f32 0.035482433, %v6051_v35 }
 0x4c6   :  { %v2904_v34 = vsel %vm227_vm3, %v2902_v20, %v2903_v55  ;;  %v2889_v38 = vmul.f32 0.0088402685, %v6063_v4  ;;  %v2890_v41 = vmul.f32 0.0088402685, %v6059_v1  ;;  %v2905_v20 = vrot.slane %v2885_v6, 1 }
 0x4c7   :  { %2917 = vrot.lane.b32.xlu1 %v2904_v34, %s4182_s0  ;;  %v2862_v52 = vpop.permute.xlu0 %2861  ;;  %v2888_v10 = vmul.f32 0.0088402685, %v6066_v23  ;;  %v2944_v34 = vmul.f32 -0.021648958, %v6047_v63  ;;  %v3232_v2 = vmul.f32 0.01604532, %v6059_v1 }
 0x4c8   :  { %v2865_v59 = vsel %vm1360_vm7, %v2860_v50, %v2862_v52  ;;  %v6076_v48 = vadd.f32 %v2862_v52, %v4442_v24  ;;  %v2909_v60 = vrot.slane %v2889_v38, 1  ;;  %v2911_v49 = vrot.slane %v2890_v41, 1 }
 0x4c9   :  { %v6079_v18 = vadd.f32 %v2865_v59, %v4553_v13  ;;  %v2906_v0 = vrot.slane %v2888_v10, 1  ;;  %v2960_v6 = vrot.slane %v2944_v34, 1  ;;  %v2945_v10 = vmul.f32 -0.021648958, %v6066_v23 }
 0x4ca   :  { %v2910_v15 = vsel %vm227_vm3, %v2908_v22, %v2909_v60  ;;  %v2892_v52 = vmul.f32 0.0088402685, %v6076_v48  ;;  %v2912_v59 = vsel %vm227_vm3, %v2903_v55, %v2911_v49  ;;  %v2959_v41 = vrot.slane %v2941_v43, 1 }
 0x4cb   :  { %2921 = vrot.lane.b32.xlu1 %v2910_v15, %s4182_s0  ;;  %v2907_v33 = vsel %vm227_vm3, %v2905_v20, %v2906_v0  ;;  %v2891_v50 = vmul.f32 0.0088402685, %v6079_v18  ;;  %v2946_v20 = vmul.f32 -0.021648958, %v6063_v4  ;;  %v2948_v55 = vmul.f32 -0.021648958, %v6079_v18 }
 0x4cc   :  { %2919 = vrot.lane.b32.xlu0 %v2907_v33, %s4182_s0  ;;  %v2915_v15 = vrot.slane %v2892_v52, 1  ;;  %v2942_v33 = vmul.f32 -0.021648958, %v6054_v7  ;;  %v2961_v34 = vsel %vm227_vm3, %v2959_v41, %v2960_v6  ;;  %v2965_v43 = vrot.slane %v2943_v54, 1 }
 0x4cd   :  { %v2913_v38 = vrot.slane %v2891_v50, 1  ;;  %v2963_v50 = vrot.slane %v2945_v10, 1  ;;  %v2966_v49 = vrot.slane %v2946_v20, 1  ;;  %v2970_v41 = vrot.slane %v2948_v55, 1 }
 0x4ce   :  { %v2916_v57 = vsel %vm227_vm3, %v2909_v60, %v2915_v15  ;;  %v2962_v52 = vrot.slane %v2942_v33, 1  ;;  %v3001_v60 = vmul.f32 -0.032415092, %v6047_v63  ;;  %v3002_v20 = vmul.f32 -0.032415092, %v6066_v23 }
 0x4cf   :  { %v2914_v22 = vsel %vm227_vm3, %v2906_v0, %v2913_v38  ;;  %v2947_v0 = vmul.f32 -0.021648958, %v6059_v1  ;;  %v2949_v38 = vmul.f32 -0.021648958, %v6076_v48  ;;  %v3003_v54 = vmul.f32 -0.032415092, %v6063_v4 }
 0x4d0   :  { %2923 = vrot.lane.b32.xlu0 %v2912_v59, %s4182_s0  ;;  %2925 = vrot.lane.b32.xlu1 %v2914_v22, %s4182_s0  ;;  %v2964_v59 = vsel %vm227_vm3, %v2962_v52, %v2963_v50  ;;  %v2967_v22 = vsel %vm227_vm3, %v2965_v43, %v2966_v49  ;;  %v3004_v33 = vmul.f32 -0.032415092, %v6059_v1  ;;  %v2971_v55 = vsel %vm227_vm3, %v2963_v50, %v2970_v41 }
 0x4d1   :  { %v2968_v10 = vrot.slane %v2947_v0, 1  ;;  %v2972_v15 = vrot.slane %v2949_v38, 1  ;;  %v3017_v52 = vrot.slane %v3001_v60, 1  ;;  %v3006_v43 = vmul.f32 -0.032415092, %v6076_v48 }
 0x4d2   :  { %v2999_v38 = vmul.f32 -0.032415092, %v6054_v7  ;;  %v3020_v50 = vrot.slane %v3002_v20, 1  ;;  %v3025_v41 = vrot.slane %v3004_v33, 1  ;;  %v6135_v20 = vmul.f32 -0.03364637, %v6051_v35 }
 0x4d3   :  { %v2969_v0 = vsel %vm227_vm3, %v2960_v6, %v2968_v10  ;;  %v6126_v6 = vmul.f32 -0.03364637, %v6066_v23  ;;  %v3023_v10 = vrot.slane %v3003_v54, 1  ;;  %v3029_v46 = vrot.slane %v3006_v43, 1 }
 0x4d4   :  { %2927 = vrot.lane.b32.xlu0 %v2916_v57, %s4182_s0  ;;  %2974 = vrot.lane.b32.xlu1 %v2961_v34, %s4182_s0  ;;  %v2998_v57 = vmul.f32 -0.032415092, %v6043_v56  ;;  %v3005_v34 = vmul.f32 -0.032415092, %v6079_v18  ;;  %v3073_v54 = vrot.slane %v3055_v61, 1  ;;  %v3253_v40 = vrot.slane %v3232_v2, 1 }
 0x4d5   :  { %v8520_v33 = vrot.slane %v6126_v6, 1  ;;  %v3226_v61 = vmul.f32 0.01604532, %v6043_v56  ;;  %v3287_v21 = vmul.f32 0.035482433, %v6066_v23 }
 0x4d6   :  { %v3016_v47 = vrot.slane %v2998_v57, 1  ;;  %v3027_v60 = vrot.slane %v3005_v34, 1  ;;  %v3019_v57 = vrot.slane %v2999_v38, 1  ;;  %v3026_v34 = vsel %vm227_vm3, %v3017_v52, %v3025_v41 }
 0x4d7   :  { %v3030_v38 = vsel %vm227_vm3, %v3023_v10, %v3029_v46  ;;  %v3227_v46 = vmul.f32 0.01604532, %v6054_v7  ;;  %v6163_v41 = vmul.f32 -0.03364637, %v6079_v18 }
 0x4d8   :  { %2976 = vrot.lane.b32.xlu0 %v2964_v59, %s4182_s0  ;;  %2978 = vrot.lane.b32.xlu1 %v2967_v22, %s4182_s0  ;;  %v3000_v59 = vmul.f32 -0.032415092, %v6051_v35  ;;  %v6122_v22 = vmul.f32 -0.03364637, %v6047_v63  ;;  %v3028_v43 = vsel %vm227_vm3, %v3020_v50, %v3027_v60  ;;  %v3230_v60 = vmul.f32 0.01604532, %v6066_v23 }
 0x4da   :  { %v3022_v45 = vrot.slane %v3000_v59, 1  ;;  %v8519_v39 = vrot.slane %v6122_v22, 1  ;;  %v3076_v59 = vrot.slane %v3056_v27, 1 }
 0x4dc   :  { %2980 = vrot.lane.b32.xlu0 %v2969_v0, %s4182_s0  ;;  %2982 = vrot.lane.b32.xlu1 %v2971_v55, %s4182_s0  ;;  %v2973_v0 = vsel %vm227_vm3, %v2966_v49, %v2972_v15  ;;  %v3018_v55 = vsel %vm227_vm3, %v3016_v47, %v3017_v52  ;;  %v6139_v49 = vmul.f32 -0.03364637, %v6063_v4  ;;  %v3021_v47 = vsel %vm227_vm3, %v3019_v57, %v3020_v50 }
 0x4dd   :  { %v3024_v15 = vsel %vm227_vm3, %v3022_v45, %v3023_v10  ;;  %v3075_v45 = vsel %vm227_vm3, %v3073_v54, %v8519_v39  ;;  %v3079_v52 = vrot.slane %v6135_v20, 1  ;;  %v3229_v50 = vmul.f32 0.01604532, %v6047_v63 }
 0x4de   :  { %v3078_v27 = vsel %vm227_vm3, %v3076_v59, %v8520_v33  ;;  %v6170_v57 = vmul.f32 -0.029102264, %v6047_v63  ;;  %v3244_v20 = vrot.slane %v3226_v61, 1  ;;  %v3248_v39 = vrot.slane %v3230_v60, 1 }
 0x4df   :  { %v3245_v54 = vrot.slane %v3229_v50, 1  ;;  %v3228_v59 = vmul.f32 0.01604532, %v6051_v35  ;;  %v3231_v10 = vmul.f32 0.01604532, %v6063_v4 }
 0x4e0   :  { %2984 = vrot.lane.b32.xlu0 %v2973_v0, %s4182_s0  ;;  %3031 = vrot.lane.b32.xlu1 %v3018_v55, %s4182_s0  ;;  %v6147_v0 = vmul.f32 -0.03364637, %v6059_v1  ;;  %v6167_v55 = vmul.f32 -0.03364637, %v6076_v48  ;;  %v3233_v61 = vmul.f32 0.01604532, %v6079_v18 }
 0x4e1   :  { %v6177_v33 = vsel %vm227_vm3, %v3244_v20, %v3245_v54  ;;  %v3283_v60 = vmul.f32 0.035482433, %v6043_v56  ;;  %v3286_v20 = vmul.f32 0.035482433, %v6047_v63 }
 0x4e2   :  { %v3086_v37 = vrot.slane %v6167_v55, 1 }
 0x4e3   :  { %v3301_v11 = vrot.slane %v3283_v60, 1  ;;  %v3305_v60 = vrot.slane %v3287_v21, 1  ;;  %v3291_v21 = vmul.f32 0.035482433, %v6076_v48 }
 0x4e4   :  { %3033 = vrot.lane.b32.xlu0 %v3021_v47, %s4182_s0  ;;  %3035 = vrot.lane.b32.xlu1 %v3024_v15, %s4182_s0  ;;  %v3082_v47 = vrot.slane %v6147_v0, 1  ;;  %v3247_v15 = vrot.slane %v3227_v46, 1  ;;  %v3250_v0 = vrot.slane %v3228_v59, 1  ;;  %v3234_v46 = vmul.f32 0.01604532, %v6076_v48 }
 0x4e5   :  { %v6196_v59 = vsel %vm227_vm3, %v3245_v54, %v3253_v40  ;;  %v3290_v40 = vmul.f32 0.035482433, %v6079_v18 }
 0x4e6   :  { %v6183_v50 = vsel %vm227_vm3, %v3247_v15, %v3248_v39  ;;  %v3257_v9 = vrot.slane %v3234_v46, 1  ;;  %v3304_v46 = vrot.slane %v3284_v8, 1 }
 0x4e8   :  { %3037 = vrot.lane.b32.xlu0 %v3026_v34, %s4182_s0  ;;  %3039 = vrot.lane.b32.xlu1 %v3028_v43, %s4182_s0  ;;  %v3251_v34 = vrot.slane %v3231_v10, 1  ;;  %v3255_v43 = vrot.slane %v3233_v61, 1  ;;  %v3302_v10 = vrot.slane %v3286_v20, 1  ;;  %v6216_v8 = vsel %vm227_vm3, %v3304_v46, %v3305_v60 }
 0x4e9   :  { %v3312_v20 = vrot.slane %v3290_v40, 1  ;;  %v3131_v46 = vrot.slane %v6170_v57, 1 }
 0x4ea   :  { %v6193_v15 = vsel %vm227_vm3, %v3250_v0, %v3251_v34  ;;  %v6199_v2 = vsel %vm227_vm3, %v3248_v39, %v3255_v43  ;;  %v6202_v61 = vsel %vm227_vm3, %v3251_v34, %v3257_v9  ;;  %v3289_v0 = vmul.f32 0.035482433, %v6059_v1 }
 0x4eb   :  { %v8894_v39 = vrot.slane %v6139_v49, 1  ;;  %v3084_v9 = vrot.slane %v6163_v41, 1  ;;  %v3314_v41 = vrot.slane %v3291_v21, 1 }
 0x4ec   :  { %3041 = vrot.lane.b32.xlu0 %v3030_v38, %s4182_s0  ;;  %3088 = vrot.lane.b32.xlu1 %v3075_v45, %s4182_s0  ;;  %v6206_v38 = vsel %vm227_vm3, %v3301_v11, %v3302_v10  ;;  %v3288_v45 = vmul.f32 0.035482433, %v6063_v4  ;;  %v3307_v11 = vrot.slane %v3285_v19, 1  ;;  %v3310_v43 = vrot.slane %v3289_v0, 1 }
 0x4ed   :  { %v3081_v54 = vsel %vm227_vm3, %v3079_v52, %v8894_v39  ;;  %v3116_v52 = vmul.f32 -0.029102264, %v6066_v23  ;;  %v6232_v19 = vsel %vm227_vm3, %v3305_v60, %v3312_v20  ;;  %v8896_v0 = vrot.slane %v6126_v6, 1 }
 0x4ee   :  { %v3308_v34 = vrot.slane %v3288_v45, 1  ;;  %v8895_v45 = vrot.slane %v6122_v22, 1  ;;  %v3130_v60 = vrot.slane %v3112_v12, 1  ;;  %v3114_v22 = vmul.f32 -0.029102264, %v6051_v35 }
 0x4ef   :  { %v3085_v40 = vsel %vm227_vm3, %v8896_v0, %v3084_v9  ;;  %v3134_v21 = vrot.slane %v3116_v52, 1  ;;  %v3169_v0 = vmul.f32 -0.013865931, %v6043_v56 }
 0x4f0   :  { %3090 = vrot.lane.b32.xlu0 %v3078_v27, %s4182_s0  ;;  %3092 = vrot.lane.b32.xlu1 %v3081_v54, %s4182_s0  ;;  %v6226_v39 = vsel %vm227_vm3, %v3307_v11, %v3308_v34  ;;  %v6229_v27 = vsel %vm227_vm3, %v3302_v10, %v3310_v43  ;;  %v3083_v55 = vsel %vm227_vm3, %v8895_v45, %v3082_v47  ;;  %v3117_v54 = vmul.f32 -0.029102264, %v6063_v4 }
 0x4f1   :  { %v6242_v57 = vsel %vm227_vm3, %v3308_v34, %v3314_v41  ;;  %v3113_v10 = vmul.f32 -0.029102264, %v6054_v7  ;;  %v8897_v47 = vrot.slane %v6139_v49, 1  ;;  %v3132_v9 = vsel %vm227_vm3, %v3130_v60, %v3131_v46 }
 0x4f2   :  { %v3137_v11 = vrot.slane %v3117_v54, 1  ;;  %v3118_v34 = vmul.f32 -0.029102264, %v6059_v1  ;;  %v3119_v43 = vmul.f32 -0.029102264, %v6079_v18  ;;  %v3136_v12 = vrot.slane %v3114_v22, 1 }
 0x4f3   :  { %v3087_v6 = vsel %vm227_vm3, %v8897_v47, %v3086_v37  ;;  %v3133_v20 = vrot.slane %v3113_v10, 1  ;;  %v3120_v49 = vmul.f32 -0.029102264, %v6076_v48  ;;  %v3173_v54 = vmul.f32 -0.013865931, %v6066_v23 }
 0x4f4   :  { %3094 = vrot.lane.b32.xlu0 %v3083_v55, %s4182_s0  ;;  %3096 = vrot.lane.b32.xlu1 %v3085_v40, %s4182_s0  ;;  %v3138_v37 = vsel %vm227_vm3, %v3136_v12, %v3137_v11  ;;  %v3139_v52 = vrot.slane %v3118_v34, 1  ;;  %v3141_v45 = vrot.slane %v3119_v43, 1  ;;  %v3172_v55 = vmul.f32 -0.013865931, %v6047_v63 }
 0x4f5   :  { %v3135_v41 = vsel %vm227_vm3, %v3133_v20, %v3134_v21  ;;  %v3143_v40 = vrot.slane %v3120_v49, 1  ;;  %v3174_v47 = vmul.f32 -0.013865931, %v6063_v4  ;;  %v3170_v63 = vmul.f32 -0.013865931, %v6054_v7 }
 0x4f6   :  { %v3140_v10 = vsel %vm227_vm3, %v3131_v46, %v3139_v52  ;;  %v3142_v60 = vsel %vm227_vm3, %v3134_v21, %v3141_v45  ;;  %v3188_v22 = vrot.slane %v3172_v55, 1  ;;  %v3191_v34 = vrot.slane %v3173_v54, 1 }
 0x4f7   :  { %v3144_v56 = vsel %vm227_vm3, %v3137_v11, %v3143_v40  ;;  %v3194_v46 = vrot.slane %v3174_v47, 1  ;;  %v3175_v21 = vmul.f32 -0.013865931, %v6059_v1  ;;  %v3176_v43 = vmul.f32 -0.013865931, %v6079_v18 }
 0x4f8   :  { %3098 = vrot.lane.b32.xlu0 %v3087_v6, %s4182_s0  ;;  %3145 = vrot.lane.b32.xlu1 %v3132_v9, %s4182_s0  ;;  %v3187_v6 = vrot.slane %v3169_v0, 1  ;;  %v3171_v9 = vmul.f32 -0.013865931, %v6051_v35  ;;  %v3190_v4 = vrot.slane %v3170_v63, 1  ;;  %v3880_v52 = vmul.f32 0.04052399, %v4575_v28 }
 0x4f9   :  { %v3196_v12 = vrot.slane %v3175_v21, 1  ;;  %v3198_v11 = vrot.slane %v3176_v43, 1  ;;  %v3879_v45 = vmul.f32 0.04052399, %v4439_v17  ;;  %v3881_v55 = vmul.f32 0.04052399, %v4569_v25 }
 0x4fa   :  { %v3189_v23 = vsel %vm227_vm3, %v3187_v6, %v3188_v22  ;;  %v3193_v20 = vrot.slane %v3171_v9, 1  ;;  %v3192_v7 = vsel %vm227_vm3, %v3190_v4, %v3191_v34  ;;  %v6314_v0 = vmul.f32 0.03643671, %v4575_v28 }
 0x4fb   :  { %v3197_v18 = vsel %vm227_vm3, %v3188_v22, %v3196_v12  ;;  %v3199_v1 = vsel %vm227_vm3, %v3191_v34, %v3198_v11  ;;  %v3896_v54 = vrot.slane %v3880_v52, 2  ;;  %v3899_v47 = vrot.slane %v3881_v55, 2  ;;  %v8903_v12 = vld [vmem:[#allocation15_spill] sm:$0xff]  ;;  %v8904_v11 = vld [vmem:[#allocation20_spill] sm:$0xff]  ;;  %v8907_v55 = vld [vmem:[#allocation13_spill] sm:$0xff] }
 0x4fc   :  { %3147 = vrot.lane.b32.xlu0 %v3135_v41, %s4182_s0  ;;  %3149 = vrot.lane.b32.xlu1 %v3138_v37, %s4182_s0  ;;  %v3195_v35 = vsel %vm227_vm3, %v3193_v20, %v3194_v46  ;;  %v3177_v41 = vmul.f32 -0.013865931, %v6076_v48  ;;  %v3877_v48 = vmul.f32 0.04052399, %v4578_v29  ;;  %v8526_v9 = vrot.slane %v6314_v0, 2 }
 0x4fd   :  { %v6326_v34 = vmul.f32 0.03643671, %v4439_v17  ;;  %v6337_v21 = vmul.f32 0.03643671, %v4436_v16  ;;  %v6340_v43 = vmul.f32 0.03643671, %v4572_v26 }
 0x4fe   :  { %v3200_v49 = vrot.slane %v3177_v41, 1  ;;  %v3895_v40 = vrot.slane %v3877_v48, 2  ;;  %v483_v41 = vsel %vm150_vm5, %v8904_v11, %v8903_v12 }
 0x500   :  { %3151 = vrot.lane.b32.xlu0 %v3140_v10, %s4182_s0  ;;  %3153 = vrot.lane.b32.xlu1 %v3142_v60, %s4182_s0  ;;  %v3201_v37 = vsel %vm227_vm3, %v3194_v46, %v3200_v49  ;;  %v3901_v10 = vrot.slane %v3879_v45, 2  ;;  %v6365_v49 = vmul.f32 0.03643671, %v4553_v13  ;;  %v3958_v45 = vrot.slane %v6326_v34, 2  ;;  %v8915_v34 = vld [vmem:[#allocation14_spill] sm:$0xff] }
 0x504   :  { %3155 = vrot.lane.b32.xlu0 %v3144_v56, %s4182_s0  ;;  %3202 = vrot.lane.b32.xlu1 %v3189_v23, %s4182_s0  ;;  %v6323_v56 = vmul.f32 0.04052399, %v4442_v24  ;;  %v6329_v23 = vsel %vm270_vm6, %v3895_v40, %v3896_v54  ;;  %v8910_v40 = vld [vmem:[#allocation27_spill] sm:$0xff] }
 0x505   :  { %8898 = vst [vmem:[#allocation260_spill] sm:$0xff] %v6329_v23 }
 0x506   :  { %v3908_v52 = vrot.slane %v6323_v56, 2 }
 0x508   :  { %3204 = vrot.lane.b32.xlu0 %v3192_v7, %s4182_s0  ;;  %3206 = vrot.lane.b32.xlu1 %v3195_v35, %s4182_s0  ;;  %v6352_v35 = vmul.f32 0.03643671, %v4569_v25 }
 0x50c   :  { %3208 = vrot.lane.b32.xlu0 %v3197_v18, %s4182_s0  ;;  %3210 = vrot.lane.b32.xlu1 %v3199_v1, %s4182_s0  ;;  %v8905_v18 = vld [vmem:[#allocation21_spill] sm:$0xff] }
 0x50d   :  { %v482_v1 = vsel %vm150_vm5, %v8905_v18, %v8904_v11  ;;  %v8916_v11 = vld [vmem:[#allocation17_spill] sm:$0xff]  ;;  %v8917_v18 = vld [vmem:[#allocation24_spill] sm:$0xff] }
 0x510   :  { %3212 = vrot.lane.b32.xlu0 %v3201_v37, %s4182_s0  ;;  %3259 = vrot.lane.b32.xlu1 %v6177_v33, %s4182_s0  ;;  %v6302_v33 = vmul.f32 0.04052399, %v4436_v16  ;;  %v6368_v37 = vmul.f32 0.03643671, %v4556_v14 }
 0x512   :  { %v8527_v60 = vrot.slane %v6302_v33, 2 }
 0x514   :  { %3261 = vrot.lane.b32.xlu0 %v6183_v50, %s4182_s0  ;;  %3263 = vrot.lane.b32.xlu1 %v6193_v15, %s4182_s0  ;;  %v3878_v50 = vmul.f32 0.04052399, %v4572_v26  ;;  %v3884_v15 = vmul.f32 0.04052399, %v4553_v13  ;;  %v6334_v46 = vsel %vm270_vm6, %v3901_v10, %v8527_v60 }
 0x515   :  { %8899 = vst [vmem:[#allocation261_spill] sm:$0xff] %v6334_v46 }
 0x516   :  { %v3898_v22 = vrot.slane %v3878_v50, 2  ;;  %v3906_v63 = vrot.slane %v3884_v15, 2  ;;  %v6378_v50 = vmul.f32 0.03643671, %v4442_v24  ;;  %v8908_v15 = vld [vmem:[#allocation18_spill] sm:$0xff] }
 0x518   :  { %3265 = vrot.lane.b32.xlu0 %v6196_v59, %s4182_s0  ;;  %3267 = vrot.lane.b32.xlu1 %v6199_v2, %s4182_s0  ;;  %v3883_v59 = vmul.f32 0.04052399, %v4556_v14  ;;  %v3934_v2 = vmul.f32 0.03643671, %v4578_v29  ;;  %v6343_v4 = vsel %vm270_vm6, %v3898_v22, %v3899_v47  ;;  %v6346_v20 = vsel %vm270_vm6, %v3899_v47, %v3906_v63 }
 0x519   :  { %8900 = vst [vmem:[#allocation262_spill] sm:$0xff] %v6343_v4  ;;  %8901 = vst [vmem:[#allocation263_spill] sm:$0xff] %v6346_v20  ;;  %v3955_v22 = vrot.slane %v6340_v43, 2  ;;  %v6389_v47 = vadd.f32 %v483_v41, %v4572_v26  ;;  %v6392_v63 = vadd.f32 %v482_v1, %v4578_v29  ;;  %v3956_v43 = vrot.slane %v6352_v35, 2 }
 0x51a   :  { %v3904_v6 = vrot.slane %v3883_v59, 2  ;;  %v1605_v59 = vsel %vm150_vm5, %v8908_v15, %v8907_v55  ;;  %v1601_v55 = vsel %vm150_vm5, %v8917_v18, %v8916_v11  ;;  %v3963_v41 = vrot.slane %v6365_v49, 2 }
 0x51b   :  { %8911 = vst [vmem:[#allocation20_spill] sm:$0xff] %v6389_v47  ;;  %8912 = vst [vmem:[#allocation21_spill] sm:$0xff] %v6392_v63  ;;  %v3961_v1 = vrot.slane %v6368_v37, 2  ;;  %v6421_v10 = vadd.f32 %v1605_v59, %v4553_v13  ;;  %v8922_v37 = vld [vmem:[#allocation25_spill] sm:$0xff] }
 0x51c   :  { %3269 = vrot.lane.b32.xlu0 %v6202_v61, %s4182_s0  ;;  %3538 = vrot.lane.b32.xlu1 %v4578_v29, %s4183_s29  ;;  %v3952_v61 = vrot.slane %v3934_v2, 2  ;;  %v6349_v7 = vsel %vm270_vm6, %v3896_v54, %v3904_v6  ;;  %v8909_v2 = vld [vmem:[#allocation16_spill] sm:$0xff]  ;;  %v8913_v6 = vld [vmem:[#allocation23_spill] sm:$0xff] }
 0x51d   :  { %8902 = vst [vmem:[#allocation264_spill] sm:$0xff] %v6349_v7  ;;  %v1603_v54 = vsel %vm150_vm5, %v8910_v40, %v8909_v2  ;;  %v485_v12 = vsel %vm150_vm5, %v8913_v6, %v8915_v34  ;;  %v8918_v2 = vld [vmem:[#allocation19_spill] sm:$0xff]  ;;  %8921 = vst [vmem:[#allocation18_spill] sm:$0xff] %v6421_v10 }
 0x51e   :  { %v6373_v48 = vsel %vm270_vm6, %v3952_v61, %v8526_v9  ;;  %v8914_v61 = vld [vmem:[#allocation22_spill] sm:$0xff]  ;;  %v6417_v11 = vadd.f32 %v1603_v54, %v4569_v25  ;;  %v3965_v9 = vrot.slane %v6378_v50, 2  ;;  %v493_v49 = vadd.f32 %v485_v12, %v4569_v25 }
 0x51f   :  { %8906 = vst [vmem:[#allocation15_spill] sm:$0xff] %v6373_v48  ;;  %v484_v56 = vsel %vm150_vm5, %v8914_v61, %v8913_v6  ;;  %v1604_v6 = vsel %vm150_vm5, %v8918_v2, %v8908_v15  ;;  %v8919_v61 = vld [vmem:[#allocation26_spill] sm:$0xff]  ;;  %v1600_v15 = vsel %vm150_vm5, %v8922_v37, %v8917_v18  ;;  %v6429_v2 = vadd.f32 %v1601_v55, %v4572_v26 }
 0x520   :  { %3540 = vrot.lane.b32.xlu0 %v4572_v26, %s4183_s29  ;;  %3542 = vrot.lane.b32.xlu1 %v4439_v17, %s4183_s29  ;;  %v1602_v34 = vsel %vm150_vm5, %v8919_v61, %v8910_v40  ;;  %8920 = vst [vmem:[#allocation13_spill] sm:$0xff] %v6417_v11  ;;  %v492_v35 = vadd.f32 %v484_v56, %v4575_v28  ;;  %v6432_v40 = vmul.f32 -0.029102264, %v6389_v47  ;;  %v6435_v54 = vmul.f32 -0.029102264, %v6392_v63 }
 0x521   :  { %8923 = vst [vmem:[#allocation16_spill] sm:$0xff] %v6429_v2  ;;  %v6438_v50 = vmul.f32 0.0025498634, %v6389_v47  ;;  %v6441_v59 = vadd.f32 %v1602_v34, %v4575_v28  ;;  %v6444_v56 = vmul.f32 0.0025498634, %v6392_v63  ;;  %v6457_v55 = vadd.f32 %v1600_v15, %v4578_v29 }
 0x522   :  { %8924 = vst [vmem:[#allocation27_spill] sm:$0xff] %v6432_v40  ;;  %8925 = vst [vmem:[#allocation23_spill] sm:$0xff] %v6435_v54  ;;  %v6447_v12 = vmul.f32 -0.03748506, %v6389_v47  ;;  %v6450_v18 = vmul.f32 -0.03748506, %v6392_v63  ;;  %v6467_v60 = vadd.f32 %v1604_v6, %v4556_v14 }
 0x523   :  { %8926 = vst [vmem:[#allocation22_spill] sm:$0xff] %v6438_v50  ;;  %8927 = vst [vmem:[#allocation14_spill] sm:$0xff] %v6441_v59  ;;  %v6460_v61 = vmul.f32 -0.03868194, %v6389_v47  ;;  %v6463_v34 = vmul.f32 -0.03868194, %v6392_v63 }
 0x524   :  { %3544 = vrot.lane.b32.xlu0 %v4575_v28, %s4183_s29  ;;  %3546 = vrot.lane.b32.xlu1 %v4569_v25, %s4183_s29  ;;  %8928 = vst [vmem:[#allocation17_spill] sm:$0xff] %v6444_v56  ;;  %8929 = vst [vmem:[#allocation24_spill] sm:$0xff] %v6447_v12  ;;  %v1741_v37 = vmul.f32 -0.029102264, %v6417_v11  ;;  %v6469_v48 = vmul.f32 -0.029102264, %v492_v35 }
 0x525   :  { %8930 = vst [vmem:[#allocation19_spill] sm:$0xff] %v6450_v18  ;;  %8931 = vst [vmem:[#allocation26_spill] sm:$0xff] %v6457_v55  ;;  %v6471_v7 = vmul.f32 -0.029102264, %v493_v49  ;;  %v6473_v20 = vmul.f32 0.0025498634, %v492_v35 }
 0x526   :  { %8932 = vst [vmem:[#allocation25_spill] sm:$0xff] %v6460_v61  ;;  %8933 = vst [vmem:[#allocation265_spill] sm:$0xff] %v6463_v34  ;;  %v6475_v4 = vmul.f32 0.0025498634, %v493_v49  ;;  %v6477_v15 = vmul.f32 0.031963617, %v492_v35 }
 0x527   :  { %8934 = vst [vmem:[#allocation266_spill] sm:$0xff] %v6467_v60  ;;  %8935 = vst [vmem:[#allocation267_spill] sm:$0xff] %v6469_v48  ;;  %v1739_v47 = vmul.f32 -0.029102264, %v6429_v2  ;;  %v8939_v63 = vrot.slane %v6302_v33, 2  ;;  %v8942_v61 = vrot.slane %v6337_v21, 2 }
 0x528   :  { %3548 = vrot.lane.b32.xlu0 %v4436_v16, %s4183_s29  ;;  %3550 = vrot.lane.b32.xlu1 %v4556_v14, %s4183_s29  ;;  %8936 = vst [vmem:[#allocation268_spill] sm:$0xff] %v6471_v7  ;;  %8937 = vst [vmem:[#allocation269_spill] sm:$0xff] %v6473_v20  ;;  %v6485_v23 = vmul.f32 0.031963617, %v493_v49  ;;  %v6487_v6 = vmul.f32 -0.03748506, %v492_v35 }
 0x529   :  { %8938 = vst [vmem:[#allocation270_spill] sm:$0xff] %v6475_v4  ;;  %v6483_v46 = vsel %vm270_vm6, %v8939_v63, %v3908_v52  ;;  %v1740_v34 = vmul.f32 -0.029102264, %v6441_v59  ;;  %v6497_v18 = vsel %vm270_vm6, %v3958_v45, %v8942_v61  ;;  %v6499_v33 = vmul.f32 -0.03748506, %v493_v49 }
 0x52a   :  { %8940 = vst [vmem:[#allocation271_spill] sm:$0xff] %v6483_v46  ;;  %8941 = vst [vmem:[#allocation272_spill] sm:$0xff] %v6487_v6  ;;  %v1754_v52 = vrot.slane %v1741_v37, 1  ;;  %v1738_v63 = vmul.f32 -0.029102264, %v6457_v55  ;;  %v6503_v46 = vsel %vm270_vm6, %v3955_v22, %v3956_v43  ;;  %v1753_v45 = vrot.slane %v1739_v47, 1 }
 0x52b   :  { %8943 = vst [vmem:[#allocation273_spill] sm:$0xff] %v6497_v18  ;;  %8944 = vst [vmem:[#allocation274_spill] sm:$0xff] %v6499_v33  ;;  %v1742_v6 = vmul.f32 -0.029102264, %v6467_v60  ;;  %v1711_v12 = vmul.f32 -0.013865931, %v6417_v11 }
 0x52c   :  { %3552 = vrot.lane.b32.xlu0 %v4553_v13, %s4183_s29  ;;  %3554 = vrot.lane.b32.xlu1 %v4442_v24, %s4183_s29  ;;  %8945 = vst [vmem:[#allocation275_spill] sm:$0xff] %v6503_v46  ;;  %v6511_v7 = vmul.f32 -0.03868194, %v492_v35  ;;  %v1710_v61 = vmul.f32 -0.013865931, %v6441_v59  ;;  %v8947_v37 = vrot.slane %v6314_v0, 2 }
 0x52d   :  { %v6519_v22 = vmul.f32 -0.03868194, %v493_v49  ;;  %v1751_v46 = vrot.slane %v1740_v34, 1  ;;  %v1709_v33 = vmul.f32 -0.013865931, %v6429_v2  ;;  %v8949_v47 = vrot.slane %v6337_v21, 2 }
 0x52e   :  { %v6517_v18 = vsel %vm270_vm6, %v8947_v37, %v3961_v1  ;;  %v8951_v0 = vld [vmem:[#allocation31_spill] sm:$0xff]  ;;  %v8954_v35 = vld [vmem:[#allocation44_spill] sm:$0xff]  ;;  %v1750_v34 = vrot.slane %v1738_v63, 1  ;;  %v1756_v21 = vrot.slane %v1742_v6, 1 }
 0x52f   :  { %8948 = vst [vmem:[#allocation277_spill] sm:$0xff] %v6517_v18  ;;  %v1723_v63 = vrot.slane %v1709_v33, 1 }
 0x530   :  { %3316 = vrot.lane.b32.xlu0 %v6206_v38, %s4182_s0  ;;  %3318 = vrot.lane.b32.xlu1 %v6216_v8, %s4182_s0  ;;  %v1743_v38 = vmul.f32 -0.029102264, %v6421_v10  ;;  %v6509_v8 = vsel %vm270_vm6, %v3956_v43, %v3963_v41  ;;  %v6529_v43 = vsel %vm270_vm6, %v8949_v47, %v3965_v9  ;;  %v8952_v41 = vld [vmem:[#allocation43_spill] sm:$0xff]  ;;  %v1724_v9 = vrot.slane %v1711_v12, 1  ;;  %v8957_v47 = vld [vmem:[#allocation46_spill] sm:$0xff] }
 0x531   :  { %8946 = vst [vmem:[#allocation276_spill] sm:$0xff] %v6509_v8  ;;  %8950 = vst [vmem:[#allocation278_spill] sm:$0xff] %v6529_v43  ;;  %v6534_v1 = vsel %vm98_vm2, %v8952_v41, %v8951_v0  ;;  %v6539_v49 = vsel %vm98_vm2, %v8954_v35, %v8952_v41  ;;  %v8958_v43 = vld [vmem:[#allocation45_spill] sm:$0xff]  ;;  %v8960_v0 = vld [vmem:[#allocation30_spill] sm:$0xff]  ;;  %v1721_v41 = vrot.slane %v1710_v61, 1  ;;  %v6557_v35 = vsel %vm227_vm3, %v1750_v34, %v1751_v46 }
 0x532   :  { %8953 = vst [vmem:[#allocation31_spill] sm:$0xff] %v6534_v1  ;;  %8955 = vst [vmem:[#allocation43_spill] sm:$0xff] %v6539_v49  ;;  %v1758_v37 = vrot.slane %v1743_v38, 1  ;;  %v6548_v18 = vsel %vm98_vm2, %v8958_v43, %v8957_v47  ;;  %v6553_v8 = vsel %vm98_vm2, %v8957_v47, %v8960_v0  ;;  %v6560_v6 = vsel %vm227_vm3, %v1751_v46, %v1756_v21  ;;  %v8965_v38 = vld [vmem:[#allocation33_spill] sm:$0xff]  ;;  %v8966_v61 = vld [vmem:[#allocation47_spill] sm:$0xff] }
 0x533   :  { %8959 = vst [vmem:[#allocation46_spill] sm:$0xff] %v6548_v18  ;;  %8961 = vst [vmem:[#allocation45_spill] sm:$0xff] %v6553_v8  ;;  %v6572_v43 = vsel %vm98_vm2, %v8966_v61, %v8965_v38  ;;  %v8968_v34 = vld [vmem:[#allocation48_spill] sm:$0xff]  ;;  %v6591_v0 = vmul.f32 0.01604532, %v6417_v11 }
 0x534   :  { %3320 = vrot.lane.b32.xlu0 %v6226_v39, %s4182_s0  ;;  %3322 = vrot.lane.b32.xlu1 %v6229_v27, %s4182_s0  ;;  %v6542_v39 = vsel %vm227_vm3, %v1753_v45, %v1754_v52  ;;  %v1708_v27 = vmul.f32 -0.013865931, %v6457_v55  ;;  %v1712_v45 = vmul.f32 -0.013865931, %v6467_v60  ;;  %8962 = vst [vmem:[#allocation30_spill] sm:$0xff] %v6557_v35  ;;  %8963 = vst [vmem:[#allocation279_spill] sm:$0xff] %v6560_v6 }
 0x535   :  { %8956 = vst [vmem:[#allocation44_spill] sm:$0xff] %v6542_v39  ;;  %v6563_v12 = vsel %vm227_vm3, %v1754_v52, %v1758_v37  ;;  %8967 = vst [vmem:[#allocation33_spill] sm:$0xff] %v6572_v43  ;;  %v6577_v46 = vsel %vm98_vm2, %v8968_v34, %v8966_v61  ;;  %v1713_v52 = vmul.f32 -0.013865931, %v6421_v10  ;;  %v8971_v37 = vld [vmem:[#allocation50_spill] sm:$0xff]  ;;  %v8976_v61 = vld [vmem:[#allocation32_spill] sm:$0xff] }
 0x536   :  { %8964 = vst [vmem:[#allocation280_spill] sm:$0xff] %v6563_v12  ;;  %8969 = vst [vmem:[#allocation47_spill] sm:$0xff] %v6577_v46  ;;  %v1720_v21 = vrot.slane %v1708_v27, 1  ;;  %v6594_v38 = vmul.f32 0.01604532, %v6441_v59  ;;  %v6599_v27 = vsel %vm98_vm2, %v8971_v37, %v8976_v61  ;;  %v8978_v12 = vld [vmem:[#allocation35_spill] sm:$0xff] }
 0x537   :  { %v1682_v6 = vmul.f32 0.01604532, %v6467_v60  ;;  %v1683_v35 = vmul.f32 0.01604532, %v6421_v10  ;;  %v6613_v39 = vmul.f32 -0.021648958, %v6441_v59 }
 0x538   :  { %3324 = vrot.lane.b32.xlu0 %v6232_v19, %s4182_s0  ;;  %3326 = vrot.lane.b32.xlu1 %v6242_v57, %s4182_s0  ;;  %v8972_v19 = vld [vmem:[#allocation49_spill] sm:$0xff]  ;;  %v6588_v57 = vsel %vm227_vm3, %v1723_v63, %v1724_v9  ;;  %8975 = vst [vmem:[#allocation281_spill] sm:$0xff] %v6594_v38  ;;  %v6602_v34 = vsel %vm227_vm3, %v1720_v21, %v1721_v41  ;;  %v8979_v63 = vld [vmem:[#allocation51_spill] sm:$0xff]  ;;  %v6626_v61 = vmul.f32 -0.03364637, %v6417_v11 }
 0x539   :  { %v6580_v33 = vpop.permute.xlu1 %2917  ;;  %v6585_v47 = vsel %vm98_vm2, %v8972_v19, %v8971_v37  ;;  %8973 = vst [vmem:[#allocation50_spill] sm:$0xff] %v6588_v57  ;;  %8974 = vst [vmem:[#allocation49_spill] sm:$0xff] %v6591_v0  ;;  %v1770_v19 = vmul.f32 -0.03364637, %v6441_v59  ;;  %v6608_v57 = vsel %vm98_vm2, %v8979_v63, %v8978_v12  ;;  %v1728_v12 = vrot.slane %v1713_v52, 1 }
 0x53a   :  { %8970 = vst [vmem:[#allocation48_spill] sm:$0xff] %v6580_v33  ;;  %8977 = vst [vmem:[#allocation32_spill] sm:$0xff] %v6602_v34  ;;  %v1726_v33 = vrot.slane %v1712_v45, 1  ;;  %v8980_v45 = vld [vmem:[#allocation52_spill] sm:$0xff]  ;;  %v1768_v37 = vmul.f32 -0.03364637, %v6457_v55 }
 0x53b   :  { %v6622_v21 = vsel %vm98_vm2, %v8980_v45, %v8979_v63  ;;  %v1828_v18 = vmul.f32 -0.021648958, %v6457_v55  ;;  %v6639_v52 = vsel %vm227_vm3, %v1724_v9, %v1728_v12  ;;  %v1781_v63 = vrot.slane %v1770_v19, 1 }
 0x53c   :  { %3340 = vrot.lane.b32.xlu0 %v4578_v29, %s4182_s0  ;;  %3342 = vrot.lane.b32.xlu1 %v4572_v26, %s4182_s0  ;;  %v6631_v8 = vsel %vm227_vm3, %v1721_v41, %v1726_v33  ;;  %8984 = vst [vmem:[#allocation282_spill] sm:$0xff] %v6639_v52  ;;  %v1769_v45 = vmul.f32 -0.03364637, %v6429_v2  ;;  %v6643_v49 = vmul.f32 -0.021648958, %v6417_v11  ;;  %v8986_v41 = vld [vmem:[#allocation53_spill] sm:$0xff] }
 0x53d   :  { %v6628_v34 = vpop.permute.xlu1 %2921  ;;  %8982 = vst [vmem:[#allocation51_spill] sm:$0xff] %v6631_v8  ;;  %v1696_v29 = vrot.slane %v1682_v6, 1  ;;  %v1698_v26 = vrot.slane %v1683_v35, 1  ;;  %v1780_v9 = vrot.slane %v1768_v37, 1  ;;  %v1784_v19 = vrot.slane %v6626_v61, 1  ;;  %v8987_v52 = vld [vmem:[#allocation34_spill] sm:$0xff] }
 0x53e   :  { %8981 = vst [vmem:[#allocation35_spill] sm:$0xff] %v6628_v34  ;;  %v6636_v1 = vpop.permute.xlu0 %2919  ;;  %v8985_v34 = vld [vmem:[#allocation54_spill] sm:$0xff]  ;;  %v1829_v12 = vmul.f32 -0.021648958, %v6429_v2  ;;  %v8988_v35 = vrot.slane %v6594_v38, 1  ;;  %v8989_v8 = vrot.slane %v6591_v0, 1 }
 0x53f   :  { %8983 = vst [vmem:[#allocation52_spill] sm:$0xff] %v6636_v1  ;;  %v6648_v33 = vsel %vm98_vm2, %v8986_v41, %v8985_v34  ;;  %v1772_v1 = vmul.f32 -0.03364637, %v6467_v60  ;;  %v6661_v6 = vsel %vm98_vm2, %v8985_v34, %v8987_v52  ;;  %v1840_v61 = vrot.slane %v1828_v18, 1 }
 0x540   :  { %3344 = vrot.lane.b32.xlu0 %v4439_v17, %s4182_s0  ;;  %3346 = vrot.lane.b32.xlu1 %v4575_v28, %s4182_s0  ;;  %v6666_v41 = vsel %vm227_vm3, %v8988_v35, %v1696_v29  ;;  %v6671_v37 = vsel %vm227_vm3, %v8989_v8, %v1698_v26  ;;  %v6678_v43 = vsel %vm227_vm3, %v1780_v9, %v1781_v63  ;;  %v1783_v34 = vrot.slane %v1769_v45, 1  ;;  %v8992_v29 = vld [vmem:[#allocation37_spill] sm:$0xff] }
 0x541   :  { %v1844_v52 = vrot.slane %v6643_v49, 1  ;;  %v1773_v38 = vmul.f32 -0.03364637, %v6421_v10  ;;  %v6685_v35 = vsel %vm98_vm2, %v4977_v58, %v8992_v29  ;;  %v6690_v26 = vsel %vm98_vm2, %v4979_v36, %v4977_v58 }
 0x542   :  { %v6673_v28 = vpop.permute.xlu1 %2925  ;;  %v6675_v17 = vpop.permute.xlu0 %2923  ;;  %v8993_v18 = vrot.slane %v6613_v39, 1  ;;  %v1832_v45 = vmul.f32 -0.021648958, %v6467_v60  ;;  %v6703_v49 = vsel %vm227_vm3, %v1783_v34, %v1784_v19  ;;  %v1843_v9 = vrot.slane %v1829_v12, 1 }
 0x543   :  { %8990 = vst [vmem:[#allocation54_spill] sm:$0xff] %v6673_v28  ;;  %8991 = vst [vmem:[#allocation53_spill] sm:$0xff] %v6675_v17  ;;  %v1786_v29 = vrot.slane %v1772_v1, 1  ;;  %v1833_v36 = vmul.f32 -0.021648958, %v6421_v10  ;;  %v6709_v58 = vsel %vm98_vm2, %v4997_v32, %v4999_v5  ;;  %v1788_v32 = vrot.slane %v1773_v38, 1 }
 0x544   :  { %v6695_v8 = vsel %vm227_vm3, %v1840_v61, %v8993_v18  ;;  %3348 = vrot.lane.b32.xlu0 %v4569_v25, %s4182_s0  ;;  %3350 = vrot.lane.b32.xlu1 %v4436_v16, %s4182_s0  ;;  %v8994_v61 = vld [vmem:[#allocation36_spill] sm:$0xff]  ;;  %v1798_v0 = vmul.f32 -0.032415092, %v6457_v55  ;;  %v1800_v17 = vmul.f32 -0.032415092, %v6441_v59  ;;  %v6723_v1 = vsel %vm227_vm3, %v1843_v9, %v1844_v52 }
 0x545   :  { %v6714_v18 = vsel %vm98_vm2, %v4999_v5, %v8994_v61  ;;  %v6726_v28 = vsel %vm227_vm3, %v1781_v63, %v1786_v29  ;;  %v1801_v25 = vmul.f32 -0.032415092, %v6417_v11  ;;  %v640_v5 = vsel %vm46_vm1, %v5329_v31, %v5331_v42  ;;  %v9026_v11 = vld [vmem:[#allocation65_spill] sm:$0xff] }
 0x546   :  { %v6718_v34 = vpop.permute.xlu1 %2974  ;;  %v6720_v12 = vpop.permute.xlu0 %2927  ;;  %v1846_v61 = vrot.slane %v1832_v45, 1  ;;  %v1799_v55 = vmul.f32 -0.032415092, %v6429_v2  ;;  %v641_v38 = vsel %vm46_vm1, %v5331_v42, %v5033_v30  ;;  %v674_v63 = vsel %vm46_vm1, %v5355_v53, %v5353_v62 }
 0x547   :  { %8995 = vst [vmem:[#allocation34_spill] sm:$0xff] %v6718_v34  ;;  %8996 = vst [vmem:[#allocation37_spill] sm:$0xff] %v6720_v12  ;;  %v1802_v34 = vmul.f32 -0.032415092, %v6467_v60  ;;  %v1848_v31 = vrot.slane %v1833_v36, 1  ;;  %v675_v9 = vsel %vm46_vm1, %v5353_v62, %v5043_v3  ;;  %v676_v29 = vsel %vm46_vm1, %v5369_v51, %v5371_v44  ;;  %v8999_v36 = vld [vmem:[#allocation60_spill] sm:$0xff] }
 0x548   :  { %3352 = vrot.lane.b32.xlu0 %v4556_v14, %s4182_s0  ;;  %3354 = vrot.lane.b32.xlu1 %v4553_v13, %s4182_s0  ;;  %v1803_v45 = vmul.f32 -0.032415092, %v6421_v10  ;;  %v6752_v12 = vsel %vm227_vm3, %v1784_v19, %v1788_v32  ;;  %v1811_v60 = vrot.slane %v1800_v17, 1  ;;  %v648_v53 = vadd.f32 %v640_v5, %v6477_v15  ;;  %v9000_v15 = vld [vmem:[#allocation121_spill] sm:$0xff]  ;;  %v9001_v5 = vld [vmem:[#allocation122_spill] sm:$0xff] }
 0x549   :  { %v677_v10 = vsel %vm46_vm1, %v5371_v44, %v8999_v36  ;;  %v1810_v2 = vrot.slane %v1798_v0, 1  ;;  %v1814_v3 = vrot.slane %v1801_v25, 1  ;;  %v649_v62 = vadd.f32 %v641_v38, %v6485_v23  ;;  %v9008_v36 = vld [vmem:[#allocation61_spill] sm:$0xff]  ;;  %v9031_v13 = vld [vmem:[#allocation134_spill] sm:$0xff] }
 0x54a   :  { %v6754_v30 = vpop.permute.xlu1 %2978  ;;  %v6756_v42 = vpop.permute.xlu0 %2976  ;;  %v682_v51 = vadd.f32 %v674_v63, %v6444_v56  ;;  %v1813_v59 = vrot.slane %v1799_v55, 1  ;;  %v1816_v19 = vrot.slane %v1802_v34, 1  ;;  %v683_v17 = vadd.f32 %v675_v9, %v6438_v50  ;;  %v9023_v50 = vld [vmem:[#allocation24_spill] sm:$0xff] }
 0x54b   :  { %8997 = vst [vmem:[#allocation36_spill] sm:$0xff] %v6754_v30  ;;  %8998 = vst [vmem:[#allocation283_spill] sm:$0xff] %v6756_v42  ;;  %v684_v32 = vadd.f32 %v676_v29, %v6473_v20  ;;  %v710_v30 = vsel %vm46_vm1, %v9001_v5, %v9000_v15  ;;  %v1818_v44 = vrot.slane %v1803_v45, 1  ;;  %v685_v25 = vadd.f32 %v677_v10, %v6475_v4  ;;  %v9010_v5 = vld [vmem:[#allocation125_spill] sm:$0xff]  ;;  %v9020_v4 = vld [vmem:[#allocation268_spill] sm:$0xff] }
 0x54c   :  { %3356 = vrot.lane.b32.xlu0 %v4442_v24, %s4182_s0  ;;  %v9002_v23 = vrot.slane %v6613_v39, 1  ;;  %v6778_v55 = vsel %vm227_vm3, %v1844_v52, %v1848_v31  ;;  %v6781_v34 = vsel %vm227_vm3, %v1810_v2, %v1811_v60  ;;  %v6788_v9 = vadd.f32 %v6585_v47, %v648_v53  ;;  %v9005_v2 = vld [vmem:[#allocation62_spill] sm:$0xff]  ;;  %v9007_v53 = vld [vmem:[#allocation123_spill] sm:$0xff]  ;;  %v9018_v42 = vld [vmem:[#allocation129_spill] sm:$0xff] }
 0x54d   :  { %v6791_v10 = vsel %vm227_vm3, %v1813_v59, %v1814_v3  ;;  %v6794_v39 = vsel %vm227_vm3, %v1811_v60, %v1816_v19  ;;  %v6800_v52 = vadd.f32 %v6622_v21, %v682_v51  ;;  %v711_v31 = vsel %vm46_vm1, %v9000_v15, %v9005_v2  ;;  %v9006_v59 = vld [vmem:[#allocation124_spill] sm:$0xff]  ;;  %v9013_v2 = vld [vmem:[#allocation127_spill] sm:$0xff] }
 0x54e   :  { %v6775_v0 = vsel %vm227_vm3, %v9002_v23, %v1846_v61  ;;  %v6783_v38 = vpop.permute.xlu1 %2982  ;;  %v6785_v63 = vpop.permute.xlu0 %2980  ;;  %v6797_v61 = vsel %vm227_vm3, %v1814_v3, %v1818_v44  ;;  %v718_v45 = vadd.f32 %v710_v30, %v6435_v54  ;;  %v6807_v29 = vadd.f32 %v6599_v27, %v649_v62  ;;  %v9009_v15 = vld [vmem:[#allocation64_spill] sm:$0xff]  ;;  %v9011_v62 = vld [vmem:[#allocation126_spill] sm:$0xff] }
 0x54f   :  { %9003 = vst [vmem:[#allocation60_spill] sm:$0xff] %v6783_v38  ;;  %9004 = vst [vmem:[#allocation121_spill] sm:$0xff] %v6785_v63  ;;  %v712_v60 = vsel %vm46_vm1, %v9007_v53, %v9006_v59  ;;  %v713_v3 = vsel %vm46_vm1, %v9006_v59, %v9008_v36  ;;  %v6816_v51 = vadd.f32 %v6608_v57, %v683_v17  ;;  %v9012_v23 = vld [vmem:[#allocation128_spill] sm:$0xff]  ;;  %v9016_v63 = vld [vmem:[#allocation63_spill] sm:$0xff] }
 0x550   :  { %v6819_v19 = vadd.f32 %v6648_v33, %v684_v32  ;;  %v747_v30 = vsel %vm46_vm1, %v9010_v5, %v9009_v15  ;;  %v746_v44 = vsel %vm46_vm1, %v9011_v62, %v9010_v5  ;;  %v748_v53 = vsel %vm46_vm1, %v9013_v2, %v9012_v23  ;;  %v9017_v38 = vld [vmem:[#allocation66_spill] sm:$0xff]  ;;  %v9021_v20 = vld [vmem:[#allocation132_spill] sm:$0xff] }
 0x551   :  { %v985_v59 = vadd.f32 %v6661_v6, %v685_v25  ;;  %v719_v32 = vadd.f32 %v711_v31, %v6432_v40  ;;  %v749_v15 = vsel %vm46_vm1, %v9012_v23, %v9016_v63  ;;  %v783_v5 = vsel %vm46_vm1, %v9018_v42, %v9017_v38  ;;  %v9019_v62 = vld [vmem:[#allocation130_spill] sm:$0xff]  ;;  %v9022_v31 = vld [vmem:[#allocation131_spill] sm:$0xff]  ;;  %v9025_v40 = vld [vmem:[#allocation272_spill] sm:$0xff] }
 0x552   :  { %v6831_v17 = vpop.permute.xlu1 %3031  ;;  %v6833_v36 = vpop.permute.xlu0 %2984  ;;  %v782_v2 = vsel %vm46_vm1, %v9019_v62, %v9018_v42  ;;  %v1018_v25 = vadd.f32 %v6690_v26, %v718_v45  ;;  %v784_v56 = vsel %vm46_vm1, %v9022_v31, %v9021_v20  ;;  %v755_v63 = vadd.f32 %v747_v30, %v9023_v50  ;;  %v9024_v23 = vld [vmem:[#allocation19_spill] sm:$0xff]  ;;  %v9027_v62 = vld [vmem:[#allocation274_spill] sm:$0xff]  ;;  %v9028_v45 = vld [vmem:[#allocation25_spill] sm:$0xff] }
 0x553   :  { %9014 = vst [vmem:[#allocation122_spill] sm:$0xff] %v6831_v17  ;;  %9015 = vst [vmem:[#allocation62_spill] sm:$0xff] %v6833_v36  ;;  %v720_v17 = vadd.f32 %v712_v60, %v6469_v48  ;;  %v721_v36 = vadd.f32 %v713_v3, %v9020_v4  ;;  %v754_v54 = vadd.f32 %v746_v44, %v9024_v23  ;;  %v9029_v48 = vld [vmem:[#allocation265_spill] sm:$0xff] }
 0x554   :  { %v756_v38 = vadd.f32 %v748_v53, %v9025_v40  ;;  %v785_v42 = vsel %vm46_vm1, %v9021_v20, %v9026_v11  ;;  %v757_v26 = vadd.f32 %v749_v15, %v9027_v62  ;;  %v791_v60 = vadd.f32 %v783_v5, %v9028_v45  ;;  %v9030_v4 = vld [vmem:[#allocation133_spill] sm:$0xff]  ;;  %v9034_v53 = vld [vmem:[#allocation68_spill] sm:$0xff]  ;;  %v9036_v15 = vld [vmem:[#allocation135_spill] sm:$0xff] }
 0x555   :  { %v790_v3 = vadd.f32 %v782_v2, %v9029_v48  ;;  %v818_v31 = vsel %vm46_vm1, %v9031_v13, %v9030_v4  ;;  %v792_v44 = vadd.f32 %v784_v56, %v6511_v7  ;;  %v819_v20 = vsel %vm46_vm1, %v9030_v4, %v9034_v53  ;;  %v9035_v11 = vld [vmem:[#allocation136_spill] sm:$0xff]  ;;  %v9037_v45 = vld [vmem:[#allocation67_spill] sm:$0xff] }
 0x556   :  { %v6863_v14 = vpop.permute.xlu1 %3035  ;;  %v6865_v30 = vpop.permute.xlu0 %3033  ;;  %v820_v5 = vsel %vm46_vm1, %v9036_v15, %v9035_v11  ;;  %v821_v48 = vsel %vm46_vm1, %v9035_v11, %v9037_v45  ;;  %v793_v13 = vadd.f32 %v785_v42, %v6519_v22  ;;  %v1019_v2 = vadd.f32 %v6685_v35, %v719_v32  ;;  %v9051_v45 = vld [vmem:[#allocation78_spill] sm:$0xff] }
 0x557   :  { %9032 = vst [vmem:[#allocation124_spill] sm:$0xff] %v6863_v14  ;;  %9033 = vst [vmem:[#allocation123_spill] sm:$0xff] %v6865_v30  ;;  %v1020_v14 = vadd.f32 %v6709_v58, %v720_v17  ;;  %v1021_v7 = vadd.f32 %v6714_v18, %v721_v36  ;;  %v1022_v56 = vadd.f32 %v6622_v21, %v754_v54  ;;  %v9039_v21 = vld [vmem:[#allocation145_spill] sm:$0xff]  ;;  %v9042_v36 = vld [vmem:[#allocation144_spill] sm:$0xff] }
 0x558   :  { %v826_v4 = vadd.f32 %v818_v31, %v9024_v23  ;;  %v1023_v53 = vadd.f32 %v6608_v57, %v755_v63  ;;  %v1024_v15 = vadd.f32 %v6648_v33, %v756_v38  ;;  %v827_v30 = vadd.f32 %v819_v20, %v9023_v50  ;;  %v9040_v18 = vld [vmem:[#allocation73_spill] sm:$0xff]  ;;  %v9043_v63 = vld [vmem:[#allocation146_spill] sm:$0xff]  ;;  %v9045_v38 = vld [vmem:[#allocation147_spill] sm:$0xff] }
 0x559   :  { %v828_v11 = vadd.f32 %v820_v5, %v9025_v40  ;;  %v829_v22 = vadd.f32 %v821_v48, %v9027_v62  ;;  %v1025_v35 = vadd.f32 %v6661_v6, %v757_v26  ;;  %v1026_v54 = vadd.f32 %v6577_v46, %v790_v3  ;;  %v9041_v17 = vld [vmem:[#allocation33_spill] sm:$0xff]  ;;  %v9044_v6 = vld [vmem:[#allocation76_spill] sm:$0xff]  ;;  %v9046_v26 = vld [vmem:[#allocation43_spill] sm:$0xff] }
 0x55a   :  { %v6889_v32 = vpop.permute.xlu1 %3039  ;;  %v6891_v58 = vpop.permute.xlu0 %3037  ;;  %v1162_v57 = vsel %vm1087_vm8, %v9040_v18, %v9039_v21  ;;  %v1027_v33 = vadd.f32 %v9041_v17, %v791_v60  ;;  %v1028_v50 = vadd.f32 %v6585_v47, %v792_v44  ;;  %v1163_v40 = vsel %vm1087_vm8, %v9039_v21, %v9042_v36  ;;  %v9047_v60 = vld [vmem:[#allocation149_spill] sm:$0xff]  ;;  %v9048_v31 = vld [vmem:[#allocation75_spill] sm:$0xff]  ;;  %v9049_v44 = vld [vmem:[#allocation148_spill] sm:$0xff] }
 0x55b   :  { %9038 = vst [vmem:[#allocation61_spill] sm:$0xff] %v6891_v58  ;;  %v1196_v23 = vsel %vm1087_vm8, %v9044_v6, %v9043_v63  ;;  %v1197_v42 = vsel %vm1087_vm8, %v9043_v63, %v9045_v38  ;;  %v1029_v62 = vadd.f32 %v6599_v27, %v793_v13  ;;  %v6910_v3 = vadd.f32 %v9046_v26, %v826_v4  ;;  %v9050_v5 = vld [vmem:[#allocation150_spill] sm:$0xff]  ;;  %v9052_v18 = vld [vmem:[#allocation31_spill] sm:$0xff]  ;;  %v9054_v36 = vld [vmem:[#allocation45_spill] sm:$0xff] }
 0x55c   :  { %v1198_v47 = vsel %vm1087_vm8, %v9048_v31, %v9047_v60  ;;  %v1199_v20 = vsel %vm1087_vm8, %v9047_v60, %v9049_v44  ;;  %v1232_v48 = vsel %vm1087_vm8, %v9051_v45, %v9050_v5  ;;  %v6922_v21 = vadd.f32 %v1162_v57, %v6788_v9  ;;  %v9053_v13 = vld [vmem:[#allocation46_spill] sm:$0xff]  ;;  %v9056_v45 = vld [vmem:[#allocation151_spill] sm:$0xff]  ;;  %v9057_v17 = vld [vmem:[#allocation153_spill] sm:$0xff] }
 0x55d   :  { %v1031_v27 = vadd.f32 %v9052_v18, %v827_v30  ;;  %v1032_v4 = vadd.f32 %v9053_v13, %v828_v11  ;;  %v6927_v63 = vadd.f32 %v9054_v36, %v829_v22  ;;  %v6930_v31 = vadd.f32 %v1163_v40, %v6807_v29  ;;  %v9058_v46 = vld [vmem:[#allocation77_spill] sm:$0xff]  ;;  %v9059_v40 = vld [vmem:[#allocation152_spill] sm:$0xff] }
 0x55e   :  { %v3089_v6 = vpop.permute.xlu1 %3088  ;;  %v3042_v38 = vpop.permute.xlu0 %3041  ;;  %v1204_v60 = vadd.f32 %v1196_v23, %v6800_v52  ;;  %v1205_v44 = vadd.f32 %v1197_v42, %v6816_v51  ;;  %v1206_v30 = vadd.f32 %v1198_v47, %v6819_v19  ;;  %v1207_v57 = vadd.f32 %v1199_v20, %v985_v59  ;;  %v9060_v51 = vld [vmem:[#allocation154_spill] sm:$0xff]  ;;  %v9061_v23 = vld [vmem:[#allocation80_spill] sm:$0xff]  ;;  %v9063_v59 = vld [vmem:[#allocation157_spill] sm:$0xff] }
 0x55f   :  { %v6936_v9 = vsel %vm150_vm5, %v6889_v32, %v3042_v38  ;;  %v1240_v11 = vadd.f32 %v1232_v48, %v1018_v25  ;;  %v1233_v22 = vsel %vm1087_vm8, %v9050_v5, %v9056_v45  ;;  %v1234_v29 = vsel %vm1087_vm8, %v9058_v46, %v9057_v17  ;;  %v9062_v38 = vld [vmem:[#allocation155_spill] sm:$0xff]  ;;  %v9065_v20 = vld [vmem:[#allocation156_spill] sm:$0xff]  ;;  %v9066_v5 = vld [vmem:[#allocation158_spill] sm:$0xff] }
 0x560   :  { %9055 = vst [vmem:[#allocation64_spill] sm:$0xff] %v6936_v9  ;;  %v1235_v52 = vsel %vm1087_vm8, %v9057_v17, %v9059_v40  ;;  %v1268_v42 = vsel %vm1087_vm8, %v9061_v23, %v9060_v51  ;;  %v1269_v19 = vsel %vm1087_vm8, %v9060_v51, %v9062_v38  ;;  %v9064_v25 = vld [vmem:[#allocation79_spill] sm:$0xff]  ;;  %v1271_v46 = vsel %vm1087_vm8, %v9063_v59, %v9065_v20  ;;  %v9067_v48 = vld [vmem:[#allocation82_spill] sm:$0xff]  ;;  %v9069_v13 = vld [vmem:[#allocation161_spill] sm:$0xff] }
 0x561   :  { %v1270_v47 = vsel %vm1087_vm8, %v9064_v25, %v9063_v59  ;;  %v1304_v17 = vsel %vm1087_vm8, %v9067_v48, %v9066_v5  ;;  %v9068_v45 = vld [vmem:[#allocation159_spill] sm:$0xff]  ;;  %v9070_v51 = vld [vmem:[#allocation81_spill] sm:$0xff]  ;;  %v9071_v18 = vld [vmem:[#allocation160_spill] sm:$0xff]  ;;  %v1241_v48 = vadd.f32 %v1233_v22, %v1019_v2  ;;  %v1242_v26 = vadd.f32 %v1234_v29, %v1020_v14 }
 0x562   :  { %v1305_v40 = vsel %vm1087_vm8, %v9066_v5, %v9068_v45  ;;  %v3093_v23 = vpop.permute.xlu1 %3092  ;;  %v3091_v36 = vpop.permute.xlu0 %3090  ;;  %v1306_v38 = vsel %vm1087_vm8, %v9070_v51, %v9069_v13  ;;  %v1307_v25 = vsel %vm1087_vm8, %v9069_v13, %v9071_v18  ;;  %v1243_v24 = vadd.f32 %v1235_v52, %v1021_v7  ;;  %v9082_v22 = vld [vmem:[#allocation162_spill] sm:$0xff]  ;;  %v9083_v29 = vld [vmem:[#allocation84_spill] sm:$0xff] }
 0x563   :  { %v6973_v59 = vsel %vm150_vm5, %v3089_v6, %v3091_v36  ;;  %v6976_v20 = vsel %vm150_vm5, %v3091_v36, %v3093_v23  ;;  %v1276_v5 = vadd.f32 %v1268_v42, %v1022_v56  ;;  %v1277_v45 = vadd.f32 %v1269_v19, %v1023_v53  ;;  %v9072_v6 = vld [vmem:[#allocation88_spill] sm:$0xff]  ;;  %v9073_v36 = vld [vmem:[#allocation166_spill] sm:$0xff]  ;;  %v9084_v42 = vld [vmem:[#allocation163_spill] sm:$0xff] }
 0x564   :  { %v6978_v9 = vadd.f32 %v1270_v47, %v1024_v15  ;;  %v6980_v16 = vadd.f32 %v1271_v46, %v1025_v35  ;;  %v6982_v51 = vadd.f32 %v1304_v17, %v1026_v54  ;;  %v6984_v58 = vadd.f32 %v1305_v40, %v1027_v33  ;;  %v9075_v56 = vld [vmem:[#allocation86_spill] sm:$0xff]  ;;  %v9077_v15 = vld [vmem:[#allocation167_spill] sm:$0xff]  ;;  %v9078_v35 = vld [vmem:[#allocation85_spill] sm:$0xff] }
 0x565   :  { %v6986_v18 = vadd.f32 %v1306_v38, %v1028_v50  ;;  %v6988_v13 = vadd.f32 %v1307_v25, %v1029_v62  ;;  %v6993_v2 = vsel %vm150_vm5, %v9073_v36, %v9072_v6  ;;  %v6998_v53 = vsel %vm150_vm5, %v9075_v56, %v9073_v36  ;;  %v9080_v33 = vld [vmem:[#allocation87_spill] sm:$0xff]  ;;  %v9085_v47 = vld [vmem:[#allocation165_spill] sm:$0xff]  ;;  %v9087_v40 = vld [vmem:[#allocation164_spill] sm:$0xff] }
 0x566   :  { %9074 = vst [vmem:[#allocation125_spill] sm:$0xff] %v6993_v2  ;;  %v3097_v14 = vpop.permute.xlu1 %3096  ;;  %v3095_v7 = vpop.permute.xlu0 %3094  ;;  %9076 = vst [vmem:[#allocation126_spill] sm:$0xff] %v6998_v53  ;;  %v7003_v54 = vsel %vm150_vm5, %v9078_v35, %v9077_v15  ;;  %v7008_v50 = vsel %vm150_vm5, %v9077_v15, %v9080_v33  ;;  %v1340_v52 = vsel %vm1087_vm8, %v9083_v29, %v9082_v22  ;;  %v9086_v46 = vld [vmem:[#allocation83_spill] sm:$0xff]  ;;  %v9088_v25 = vld [vmem:[#allocation168_spill] sm:$0xff] }
 0x567   :  { %9079 = vst [vmem:[#allocation128_spill] sm:$0xff] %v7003_v54  ;;  %9081 = vst [vmem:[#allocation127_spill] sm:$0xff] %v7008_v50  ;;  %v7011_v62 = vsel %vm150_vm5, %v3095_v7, %v3097_v14  ;;  %v1341_v19 = vsel %vm1087_vm8, %v9082_v22, %v9084_v42  ;;  %v1342_v17 = vsel %vm1087_vm8, %v9086_v46, %v9085_v47  ;;  %v9089_v6 = vld [vmem:[#allocation90_spill] sm:$0xff]  ;;  %v9091_v7 = vld [vmem:[#allocation92_spill] sm:$0xff] }
 0x568   :  { %v1343_v23 = vsel %vm1087_vm8, %v9085_v47, %v9087_v40  ;;  %v1488_v38 = vadd.f32 %v6993_v2, %v1241_v48  ;;  %v7029_v36 = vsel %vm150_vm5, %v9089_v6, %v9088_v25  ;;  %v7034_v56 = vsel %vm150_vm5, %v9088_v25, %v9091_v7  ;;  %v9093_v15 = vld [vmem:[#allocation169_spill] sm:$0xff]  ;;  %v9096_v42 = vld [vmem:[#allocation91_spill] sm:$0xff] }
 0x569   :  { %9090 = vst [vmem:[#allocation63_spill] sm:$0xff] %v7029_v36  ;;  %9092 = vst [vmem:[#allocation66_spill] sm:$0xff] %v7034_v56  ;;  %v9094_v35 = vld [vmem:[#allocation89_spill] sm:$0xff]  ;;  %v1487_v22 = vadd.f32 %v6998_v53, %v1240_v11  ;;  %v1489_v29 = vadd.f32 %v7003_v54, %v1242_v26  ;;  %v1490_v48 = vadd.f32 %v7008_v50, %v1243_v24  ;;  %v9098_v50 = vld [vmem:[#allocation171_spill] sm:$0xff] }
 0x56a   :  { %v7039_v33 = vsel %vm150_vm5, %v9094_v35, %v9093_v15  ;;  %v7047_v47 = vsel %vm150_vm5, %v9093_v15, %v9096_v42  ;;  %v3146_v46 = vpop.permute.xlu1 %3145  ;;  %v3099_v40 = vpop.permute.xlu0 %3098  ;;  %v1348_v25 = vadd.f32 %v1340_v52, %v6910_v3  ;;  %v1349_v6 = vadd.f32 %v1341_v19, %v1031_v27  ;;  %v9099_v54 = vld [vmem:[#allocation93_spill] sm:$0xff]  ;;  %v9100_v3 = vld [vmem:[#allocation95_spill] sm:$0xff]  ;;  %v9102_v52 = vld [vmem:[#allocation172_spill] sm:$0xff] }
 0x56b   :  { %9095 = vst [vmem:[#allocation129_spill] sm:$0xff] %v7039_v33  ;;  %9097 = vst [vmem:[#allocation130_spill] sm:$0xff] %v7047_v47  ;;  %v1350_v7 = vadd.f32 %v1342_v17, %v1032_v4  ;;  %v7051_v35 = vsel %vm150_vm5, %v3097_v14, %v3099_v40  ;;  %v1483_v11 = vadd.f32 %v7029_v36, %v1204_v60  ;;  %v9101_v4 = vld [vmem:[#allocation44_spill] sm:$0xff]  ;;  %v9103_v60 = vld [vmem:[#allocation98_spill] sm:$0xff] }
 0x56c   :  { %v1484_v26 = vadd.f32 %v7034_v56, %v1205_v44  ;;  %v1485_v24 = vadd.f32 %v7039_v33, %v1206_v30  ;;  %v1473_v15 = vsel %vm150_vm5, %v9099_v54, %v9098_v50  ;;  %v1351_v42 = vadd.f32 %v1343_v23, %v6927_v63  ;;  %v9104_v19 = vld [vmem:[#allocation30_spill] sm:$0xff]  ;;  %v9105_v17 = vld [vmem:[#allocation279_spill] sm:$0xff]  ;;  %v9106_v54 = vld [vmem:[#allocation280_spill] sm:$0xff] }
 0x56d   :  { %v1486_v2 = vadd.f32 %v7047_v47, %v1207_v57  ;;  %v1474_v27 = vsel %vm150_vm5, %v9098_v50, %v9100_v3  ;;  %v1765_v14 = vadd.f32 %v9101_v4, %v1488_v38  ;;  %v1515_v44 = vsel %vm150_vm5, %v9103_v60, %v9102_v52  ;;  %v9107_v47 = vld [vmem:[#allocation100_spill] sm:$0xff] }
 0x56e   :  { %v1764_v30 = vadd.f32 %v9104_v19, %v1487_v22  ;;  %v7070_v40 = vadd.f32 %v9105_v17, %v1489_v29  ;;  %v7073_v33 = vadd.f32 %v9106_v54, %v1490_v48  ;;  %v3150_v63 = vpop.permute.xlu1 %3149  ;;  %v3148_v57 = vpop.permute.xlu0 %3147  ;;  %v1481_v23 = vadd.f32 %v1473_v15, %v6922_v21  ;;  %v9108_v29 = vld [vmem:[#allocation50_spill] sm:$0xff]  ;;  %v9109_v48 = vld [vmem:[#allocation32_spill] sm:$0xff]  ;;  %v9110_v19 = vld [vmem:[#allocation51_spill] sm:$0xff] }
 0x56f   :  { %v1516_v50 = vsel %vm150_vm5, %v9102_v52, %v9107_v47  ;;  %v7080_v38 = vsel %vm150_vm5, %v3146_v46, %v3148_v57  ;;  %v7083_v3 = vsel %vm150_vm5, %v3148_v57, %v3150_v63  ;;  %v1482_v22 = vadd.f32 %v1474_v27, %v6930_v31  ;;  %v9111_v21 = vld [vmem:[#allocation173_spill] sm:$0xff]  ;;  %v9113_v47 = vld [vmem:[#allocation99_spill] sm:$0xff]  ;;  %v9114_v52 = vld [vmem:[#allocation282_spill] sm:$0xff] }
 0x570   :  { %v1735_v4 = vadd.f32 %v9108_v29, %v1484_v26  ;;  %v1734_v60 = vadd.f32 %v9109_v48, %v1483_v11  ;;  %v1736_v17 = vadd.f32 %v9110_v19, %v1485_v24  ;;  %v1523_v54 = vadd.f32 %v1515_v44, %v1276_v5  ;;  %v9112_v15 = vld [vmem:[#allocation97_spill] sm:$0xff]  ;;  %v9115_v31 = vld [vmem:[#allocation174_spill] sm:$0xff]  ;;  %v9117_v11 = vld [vmem:[#allocation104_spill] sm:$0xff] }
 0x571   :  { %v1517_v36 = vsel %vm150_vm5, %v9112_v15, %v9111_v21  ;;  %v1518_v46 = vsel %vm150_vm5, %v9111_v21, %v9113_v47  ;;  %v1737_v63 = vadd.f32 %v9114_v52, %v1486_v2  ;;  %v1524_v57 = vadd.f32 %v1516_v50, %v1277_v45  ;;  %v9116_v27 = vld [vmem:[#allocation102_spill] sm:$0xff]  ;;  %v9118_v19 = vld [vmem:[#allocation175_spill] sm:$0xff]  ;;  %v9119_v15 = vld [vmem:[#allocation101_spill] sm:$0xff] }
 0x572   :  { %v1563_v56 = vadd.f32 %v1515_v44, %v1348_v25  ;;  %v1551_v26 = vsel %vm150_vm5, %v9116_v27, %v9115_v31  ;;  %v1552_v5 = vsel %vm150_vm5, %v9115_v31, %v9117_v11  ;;  %v3154_v24 = vpop.permute.xlu1 %3153  ;;  %v3152_v29 = vpop.permute.xlu0 %3151  ;;  %v1564_v48 = vadd.f32 %v1516_v50, %v1349_v6  ;;  %v9120_v21 = vld [vmem:[#allocation103_spill] sm:$0xff] }
 0x573   :  { %v1553_v53 = vsel %vm150_vm5, %v9119_v15, %v9118_v19  ;;  %v1554_v45 = vsel %vm150_vm5, %v9118_v19, %v9120_v21  ;;  %v7109_v2 = vsel %vm150_vm5, %v3152_v29, %v3154_v24  ;;  %v1525_v25 = vadd.f32 %v1517_v36, %v6978_v9 }
 0x574   :  { %v1526_v44 = vadd.f32 %v1518_v46, %v6980_v16  ;;  %v1565_v47 = vadd.f32 %v1517_v36, %v1350_v7  ;;  %v1566_v52 = vadd.f32 %v1518_v46, %v1351_v42  ;;  %v1559_v31 = vadd.f32 %v1551_v26, %v6982_v51  ;;  %v9121_v36 = vld [vmem:[#allocation106_spill] sm:$0xff]  ;;  %v9122_v7 = vld [vmem:[#allocation176_spill] sm:$0xff] }
 0x575   :  { %v1560_v6 = vadd.f32 %v1552_v5, %v6984_v58  ;;  %v1706_v50 = vadd.f32 %v6666_v41, %v1481_v23  ;;  %v1707_v27 = vadd.f32 %v6671_v37, %v1482_v22  ;;  %v1561_v11 = vadd.f32 %v1553_v53, %v6986_v18  ;;  %v9124_v58 = vld [vmem:[#allocation177_spill] sm:$0xff]  ;;  %v9128_v42 = vld [vmem:[#allocation178_spill] sm:$0xff]  ;;  %v9137_v5 = vld [vmem:[#allocation183_spill] sm:$0xff] }
 0x576   :  { %v1562_v19 = vadd.f32 %v1554_v45, %v6988_v13  ;;  %v1794_v29 = vadd.f32 %v6678_v43, %v1523_v54  ;;  %v1854_v9 = vadd.f32 %v6695_v8, %v1563_v56  ;;  %v3203_v15 = vpop.permute.xlu1 %3202  ;;  %v3156_v16 = vpop.permute.xlu0 %3155  ;;  %v7124_v51 = vsel %vm46_vm1, %v9122_v7, %v9121_v36  ;;  %v9127_v56 = vld [vmem:[#allocation179_spill] sm:$0xff]  ;;  %v9144_v36 = vld [vmem:[#allocation109_spill] sm:$0xff] }
 0x577   :  { %9123 = vst [vmem:[#allocation132_spill] sm:$0xff] %v7124_v51  ;;  %v7129_v41 = vsel %vm46_vm1, %v9124_v58, %v9122_v7  ;;  %v1795_v37 = vadd.f32 %v6703_v49, %v1524_v57  ;;  %v7133_v18 = vsel %vm150_vm5, %v3154_v24, %v3156_v16  ;;  %v1855_v43 = vadd.f32 %v6723_v1, %v1564_v48  ;;  %v9133_v57 = vld [vmem:[#allocation180_spill] sm:$0xff]  ;;  %v9146_v58 = vld [vmem:[#allocation189_spill] sm:$0xff] }
 0x578   :  { %9125 = vst [vmem:[#allocation131_spill] sm:$0xff] %v7129_v41  ;;  %9126 = vst [vmem:[#allocation24_spill] sm:$0xff] %v7133_v18  ;;  %v1796_v8 = vadd.f32 %v6726_v28, %v1525_v25  ;;  %v1797_v13 = vadd.f32 %v6752_v12, %v1526_v44  ;;  %v1856_v53 = vadd.f32 %v6775_v0, %v1565_v47  ;;  %v9130_v12 = vld [vmem:[#allocation105_spill] sm:$0xff]  ;;  %v9132_v0 = vld [vmem:[#allocation108_spill] sm:$0xff] }
 0x579   :  { %v7142_v23 = vsel %vm46_vm1, %v9128_v42, %v9127_v56  ;;  %v1857_v22 = vadd.f32 %v6778_v55, %v1566_v52  ;;  %v1824_v49 = vadd.f32 %v6781_v34, %v1559_v31  ;;  %v1825_v54 = vadd.f32 %v6791_v10, %v1560_v6  ;;  %v9135_v10 = vld [vmem:[#allocation181_spill] sm:$0xff]  ;;  %v9140_v25 = vld [vmem:[#allocation107_spill] sm:$0xff]  ;;  %v9145_v7 = vld [vmem:[#allocation188_spill] sm:$0xff] }
 0x57a   :  { %9129 = vst [vmem:[#allocation19_spill] sm:$0xff] %v7142_v23  ;;  %v7148_v46 = vadd.f32 %v7124_v51, %v1765_v14  ;;  %v7151_v28 = vadd.f32 %v7129_v41, %v1764_v30  ;;  %v7156_v1 = vsel %vm46_vm1, %v9127_v56, %v9130_v12  ;;  %v7161_v26 = vsel %vm46_vm1, %v9133_v57, %v9132_v0  ;;  %v3207_v55 = vpop.permute.xlu1 %3206  ;;  %v3205_v34 = vpop.permute.xlu0 %3204  ;;  %v9138_v30 = vld [vmem:[#allocation182_spill] sm:$0xff]  ;;  %v9142_v6 = vld [vmem:[#allocation187_spill] sm:$0xff] }
 0x57b   :  { %9131 = vst [vmem:[#allocation272_spill] sm:$0xff] %v7156_v1  ;;  %9134 = vst [vmem:[#allocation65_spill] sm:$0xff] %v7161_v26  ;;  %v7166_v14 = vsel %vm46_vm1, %v9135_v10, %v9133_v57  ;;  %v7171_v24 = vsel %vm46_vm1, %v9138_v30, %v9137_v5  ;;  %v7174_v48 = vsel %vm150_vm5, %v3203_v15, %v3205_v34  ;;  %v9143_v15 = vld [vmem:[#allocation186_spill] sm:$0xff]  ;;  %v9148_v57 = vld [vmem:[#allocation193_spill] sm:$0xff] }
 0x57c   :  { %9136 = vst [vmem:[#allocation274_spill] sm:$0xff] %v7166_v14  ;;  %9139 = vst [vmem:[#allocation25_spill] sm:$0xff] %v7171_v24  ;;  %v7177_v21 = vsel %vm150_vm5, %v3205_v34, %v3207_v55  ;;  %v7181_v45 = vadd.f32 %v7142_v23, %v7070_v40  ;;  %v7186_v44 = vsel %vm46_vm1, %v9137_v5, %v9140_v25  ;;  %v9149_v55 = vld [vmem:[#allocation190_spill] sm:$0xff]  ;;  %v9150_v10 = vld [vmem:[#allocation192_spill] sm:$0xff] }
 0x57d   :  { %9141 = vst [vmem:[#allocation265_spill] sm:$0xff] %v7186_v44  ;;  %v1826_v47 = vadd.f32 %v6794_v39, %v1561_v11  ;;  %v1827_v52 = vadd.f32 %v6797_v61, %v1562_v19  ;;  %v7192_v31 = vadd.f32 %v7156_v1, %v7073_v33  ;;  %v2061_v16 = vsel %vm46_vm1, %v9143_v15, %v9142_v6  ;;  %v9147_v33 = vld [vmem:[#allocation191_spill] sm:$0xff]  ;;  %v9151_v15 = vld [vmem:[#allocation194_spill] sm:$0xff]  ;;  %v9217_v1 = vld [vmem:[#allocation252_spill] sm:$0xff] }
 0x57e   :  { %v2062_v40 = vsel %vm46_vm1, %v9142_v6, %v9144_v36  ;;  %v2124_v56 = vsel %vm46_vm1, %v9146_v58, %v9145_v7  ;;  %v2072_v39 = vadd.f32 %v7161_v26, %v1735_v4  ;;  %v2071_v61 = vadd.f32 %v7166_v14, %v1734_v60  ;;  %v3211_v42 = vpop.permute.xlu1 %3210  ;;  %v3209_v12 = vpop.permute.xlu0 %3208  ;;  %v9152_v36 = vld [vmem:[#allocation195_spill] sm:$0xff]  ;;  %v9228_v23 = vld [vmem:[#allocation258_spill] sm:$0xff] }
 0x57f   :  { %v7206_v11 = vadd.f32 %v7171_v24, %v1736_v17  ;;  %v2125_v19 = vsel %vm46_vm1, %v9145_v7, %v9147_v33  ;;  %v7212_v0 = vadd.f32 %v7186_v44, %v1737_v63  ;;  %v2126_v34 = vsel %vm46_vm1, %v9149_v55, %v9148_v57  ;;  %v9153_v7 = vld [vmem:[#allocation197_spill] sm:$0xff]  ;;  %v9154_v33 = vld [vmem:[#allocation199_spill] sm:$0xff]  ;;  %v9155_v55 = vld [vmem:[#allocation196_spill] sm:$0xff] }
 0x580   :  { %v2127_v4 = vsel %vm46_vm1, %v9148_v57, %v9150_v10  ;;  %v7221_v60 = vsel %vm150_vm5, %v3209_v12, %v3211_v42  ;;  %v2069_v17 = vadd.f32 %v2061_v16, %v1706_v50  ;;  %v2070_v5 = vadd.f32 %v2062_v40, %v1707_v27  ;;  %v9156_v50 = vld [vmem:[#allocation198_spill] sm:$0xff]  ;;  %v9214_v14 = vld [vmem:[#allocation247_spill] sm:$0xff] }
 0x581   :  { %v2132_v30 = vadd.f32 %v2124_v56, %v1794_v29  ;;  %v2193_v25 = vadd.f32 %v2124_v56, %v1854_v9  ;;  %v2133_v6 = vadd.f32 %v2125_v19, %v1795_v37  ;;  %v2181_v63 = vsel %vm46_vm1, %v9152_v36, %v9151_v15  ;;  %v9157_v40 = vld [vmem:[#allocation206_spill] sm:$0xff]  ;;  %v9158_v56 = vld [vmem:[#allocation207_spill] sm:$0xff] }
 0x582   :  { %v2182_v58 = vsel %vm46_vm1, %v9151_v15, %v9153_v7  ;;  %v2183_v57 = vsel %vm46_vm1, %v9155_v55, %v9154_v33  ;;  %v2194_v10 = vadd.f32 %v2125_v19, %v1855_v43  ;;  %v2134_v12 = vadd.f32 %v2126_v34, %v1796_v8  ;;  %v3260_v29 = vpop.permute.xlu1 %3259  ;;  %v3213_v9 = vpop.permute.xlu0 %3212  ;;  %v9163_v55 = vld [vmem:[#allocation211_spill] sm:$0xff] }
 0x583   :  { %v2135_v44 = vadd.f32 %v2127_v4, %v1797_v13  ;;  %v2184_v27 = vsel %vm46_vm1, %v9154_v33, %v9156_v50  ;;  %v2195_v37 = vadd.f32 %v2126_v34, %v1856_v53  ;;  %v2196_v16 = vadd.f32 %v2127_v4, %v1857_v22  ;;  %v9161_v13 = vld [vmem:[#allocation209_spill] sm:$0xff]  ;;  %v9164_v53 = vld [vmem:[#allocation208_spill] sm:$0xff]  ;;  %v9166_v34 = vld [vmem:[#allocation210_spill] sm:$0xff] }
 0x584   :  { %v7238_v36 = vsel %vm98_vm2, %v9158_v56, %v9157_v40  ;;  %v7241_v15 = vsel %vm150_vm5, %v3211_v42, %v3213_v9  ;;  %v2189_v7 = vadd.f32 %v2181_v63, %v1824_v49  ;;  %v2190_v43 = vadd.f32 %v2182_v58, %v1825_v54  ;;  %v9168_v42 = vld [vmem:[#allocation212_spill] sm:$0xff]  ;;  %v9169_v49 = vld [vmem:[#allocation213_spill] sm:$0xff]  ;;  %v9171_v63 = vld [vmem:[#allocation215_spill] sm:$0xff] }
 0x585   :  { %9159 = vst [vmem:[#allocation133_spill] sm:$0xff] %v7238_v36  ;;  %9160 = vst [vmem:[#allocation134_spill] sm:$0xff] %v7241_v15  ;;  %v2191_v8 = vadd.f32 %v2183_v57, %v1826_v47  ;;  %v7246_v19 = vsel %vm98_vm2, %v9157_v40, %v9161_v13  ;;  %v2192_v33 = vadd.f32 %v2184_v27, %v1827_v52  ;;  %v9173_v58 = vld [vmem:[#allocation217_spill] sm:$0xff]  ;;  %v9174_v57 = vld [vmem:[#allocation214_spill] sm:$0xff] }
 0x586   :  { %9162 = vst [vmem:[#allocation68_spill] sm:$0xff] %v7246_v19  ;;  %v7251_v22 = vsel %vm98_vm2, %v9164_v53, %v9163_v55  ;;  %v7256_v4 = vsel %vm98_vm2, %v9163_v55, %v9166_v34  ;;  %v7261_v54 = vsel %vm98_vm2, %v9169_v49, %v9168_v42  ;;  %v7264_v47 = vadd.f32 %v7238_v36, %v2193_v25  ;;  %v9175_v27 = vld [vmem:[#allocation216_spill] sm:$0xff]  ;;  %v3264_v40 = vpop.permute.xlu1 %3263  ;;  %v3262_v56 = vpop.permute.xlu0 %3261  ;;  %v9176_v25 = vld [vmem:[#allocation218_spill] sm:$0xff]  ;;  %v9177_v55 = vld [vmem:[#allocation219_spill] sm:$0xff] }
 0x587   :  { %9165 = vst [vmem:[#allocation136_spill] sm:$0xff] %v7251_v22  ;;  %9167 = vst [vmem:[#allocation135_spill] sm:$0xff] %v7256_v4  ;;  %v7269_v52 = vsel %vm98_vm2, %v9168_v42, %v9171_v63  ;;  %v2376_v50 = vsel %vm98_vm2, %v9174_v57, %v9173_v58  ;;  %v2377_v9 = vsel %vm98_vm2, %v9173_v58, %v9175_v27  ;;  %v9196_v36 = vld [vmem:[#allocation236_spill] sm:$0xff] }
 0x588   :  { %9170 = vst [vmem:[#allocation67_spill] sm:$0xff] %v7261_v54  ;;  %9172 = vst [vmem:[#allocation145_spill] sm:$0xff] %v7269_v52  ;;  %v7278_v13 = vadd.f32 %v7246_v19, %v2194_v10  ;;  %v2431_v53 = vsel %vm98_vm2, %v9177_v55, %v9176_v25  ;;  %v7284_v34 = vsel %vm150_vm5, %v3260_v29, %v3262_v56  ;;  %v9178_v10 = vld [vmem:[#allocation221_spill] sm:$0xff] }
 0x589   :  { %v7287_v42 = vsel %vm150_vm5, %v3262_v56, %v3264_v40  ;;  %v7290_v49 = vadd.f32 %v7251_v22, %v2195_v37  ;;  %v7293_v63 = vadd.f32 %v7256_v4, %v2196_v16  ;;  %v7296_v58 = vadd.f32 %v7261_v54, %v2189_v7  ;;  %v9179_v40 = vld [vmem:[#allocation223_spill] sm:$0xff]  ;;  %v9180_v56 = vld [vmem:[#allocation220_spill] sm:$0xff]  ;;  %v9181_v7 = vld [vmem:[#allocation222_spill] sm:$0xff] }
 0x58a   :  { %v2432_v57 = vsel %vm98_vm2, %v9176_v25, %v9178_v10  ;;  %v7302_v27 = vadd.f32 %v7269_v52, %v2190_v43  ;;  %v2384_v29 = vadd.f32 %v2376_v50, %v2069_v17  ;;  %v2385_v55 = vadd.f32 %v2377_v9, %v2070_v5  ;;  %v3268_v24 = vpop.permute.xlu1 %3267  ;;  %v3266_v25 = vpop.permute.xlu0 %3265  ;;  %v9182_v52 = vld [vmem:[#allocation224_spill] sm:$0xff]  ;;  %v9183_v17 = vld [vmem:[#allocation225_spill] sm:$0xff] }
 0x58b   :  { %v2433_v37 = vsel %vm98_vm2, %v9180_v56, %v9179_v40  ;;  %v7307_v22 = vadd.f32 %v2376_v50, %v2191_v8  ;;  %v7309_v16 = vadd.f32 %v2377_v9, %v2192_v33  ;;  %v2439_v4 = vadd.f32 %v2431_v53, %v2071_v61  ;;  %v9184_v50 = vld [vmem:[#allocation227_spill] sm:$0xff]  ;;  %v9185_v9 = vld [vmem:[#allocation229_spill] sm:$0xff] }
 0x58c   :  { %v2434_v54 = vsel %vm98_vm2, %v9179_v40, %v9181_v7  ;;  %v2500_v10 = vadd.f32 %v2431_v53, %v2132_v30  ;;  %v2440_v43 = vadd.f32 %v2432_v57, %v2072_v39  ;;  %v2488_v5 = vsel %vm98_vm2, %v9183_v17, %v9182_v52  ;;  %v9186_v40 = vld [vmem:[#allocation226_spill] sm:$0xff]  ;;  %v9187_v53 = vld [vmem:[#allocation228_spill] sm:$0xff] }
 0x58d   :  { %v7318_v19 = vsel %vm150_vm5, %v3266_v25, %v3268_v24  ;;  %v2501_v8 = vadd.f32 %v2432_v57, %v2133_v6  ;;  %v2441_v33 = vadd.f32 %v2433_v37, %v7206_v11  ;;  %v2489_v61 = vsel %vm98_vm2, %v9182_v52, %v9184_v50  ;;  %v9188_v25 = vld [vmem:[#allocation232_spill] sm:$0xff]  ;;  %v9189_v17 = vld [vmem:[#allocation230_spill] sm:$0xff]  ;;  %v9191_v52 = vld [vmem:[#allocation231_spill] sm:$0xff] }
 0x58e   :  { %v2490_v56 = vsel %vm98_vm2, %v9186_v40, %v9185_v9  ;;  %v2442_v39 = vadd.f32 %v2434_v54, %v7212_v0  ;;  %v2502_v30 = vadd.f32 %v2433_v37, %v2134_v12  ;;  %v2491_v7 = vsel %vm98_vm2, %v9185_v9, %v9187_v53  ;;  %v9193_v40 = vld [vmem:[#allocation233_spill] sm:$0xff]  ;;  %v9194_v0 = vld [vmem:[#allocation234_spill] sm:$0xff]  ;;  %v3539_v37 = vpop.permute.xlu1 %3538  ;;  %v3270_v9 = vpop.permute.xlu0 %3269 }
 0x58f   :  { %v7334_v6 = vsel %vm1087_vm8, %v9189_v17, %v9188_v25  ;;  %v2503_v11 = vadd.f32 %v2434_v54, %v2135_v44  ;;  %v2496_v57 = vadd.f32 %v2488_v5, %v7151_v28  ;;  %v7340_v50 = vsel %vm1087_vm8, %v9188_v25, %v9191_v52  ;;  %v9199_v25 = vld [vmem:[#allocation238_spill] sm:$0xff]  ;;  %v9200_v52 = vld [vmem:[#allocation235_spill] sm:$0xff] }
 0x590   :  { %9190 = vst [vmem:[#allocation73_spill] sm:$0xff] %v7334_v6  ;;  %9192 = vst [vmem:[#allocation144_spill] sm:$0xff] %v7340_v50  ;;  %v7345_v12 = vsel %vm1087_vm8, %v9194_v0, %v9193_v40  ;;  %v2497_v53 = vadd.f32 %v2489_v61, %v7148_v46  ;;  %v2498_v17 = vadd.f32 %v2490_v56, %v7181_v45  ;;  %v9202_v46 = vld [vmem:[#allocation237_spill] sm:$0xff]  ;;  %v9205_v61 = vld [vmem:[#allocation240_spill] sm:$0xff] }
 0x591   :  { %9195 = vst [vmem:[#allocation146_spill] sm:$0xff] %v7345_v12  ;;  %v7352_v28 = vsel %vm1087_vm8, %v9193_v40, %v9196_v36  ;;  %v7355_v44 = vsel %vm150_vm5, %v3268_v24, %v3270_v9  ;;  %v2499_v54 = vadd.f32 %v2491_v7, %v7192_v31  ;;  %v7359_v5 = vadd.f32 %v7334_v6, %v2496_v57  ;;  %v9204_v31 = vld [vmem:[#allocation239_spill] sm:$0xff]  ;;  %v9207_v7 = vld [vmem:[#allocation242_spill] sm:$0xff]  ;;  %v9210_v9 = vld [vmem:[#allocation245_spill] sm:$0xff] }
 0x592   :  { %9197 = vst [vmem:[#allocation76_spill] sm:$0xff] %v7352_v28  ;;  %9198 = vst [vmem:[#allocation147_spill] sm:$0xff] %v7355_v44  ;;  %v7364_v0 = vsel %vm1087_vm8, %v9200_v52, %v9199_v25  ;;  %v7369_v45 = vsel %vm1087_vm8, %v9199_v25, %v9202_v46  ;;  %v7372_v36 = vadd.f32 %v7340_v50, %v2497_v53  ;;  %v9211_v25 = vld [vmem:[#allocation246_spill] sm:$0xff]  ;;  %v9212_v52 = vld [vmem:[#allocation248_spill] sm:$0xff]  ;;  %v3543_v26 = vpop.permute.xlu1 %3542 }
 0x593   :  { %9201 = vst [vmem:[#allocation149_spill] sm:$0xff] %v7364_v0  ;;  %9203 = vst [vmem:[#allocation75_spill] sm:$0xff] %v7369_v45  ;;  %v7375_v24 = vadd.f32 %v7345_v12, %v2498_v17  ;;  %v7380_v56 = vsel %vm1087_vm8, %v9205_v61, %v9204_v31  ;;  %v7385_v57 = vsel %vm1087_vm8, %v9204_v31, %v9207_v7  ;;  %v9213_v46 = vld [vmem:[#allocation250_spill] sm:$0xff]  ;;  %v3541_v12 = vpop.permute.xlu0 %3540  ;;  %v9215_v7 = vld [vmem:[#allocation249_spill] sm:$0xff] }
 0x594   :  { %9206 = vst [vmem:[#allocation148_spill] sm:$0xff] %v7380_v56  ;;  %9208 = vst [vmem:[#allocation150_spill] sm:$0xff] %v7385_v57  ;;  %v7388_v40 = vadd.f32 %v7352_v28, %v2499_v54  ;;  %v2715_v53 = vsel %vm1087_vm8, %v9211_v25, %v9210_v9  ;;  %v2716_v17 = vsel %vm1087_vm8, %v9210_v9, %v9212_v52 }
 0x595   :  { %v2778_v61 = vsel %vm1087_vm8, %v9214_v14, %v9213_v46  ;;  %v7400_v31 = vadd.f32 %v7364_v0, %v2439_v4  ;;  %v7403_v54 = vadd.f32 %v7369_v45, %v2440_v43  ;;  %v2779_v25 = vsel %vm1087_vm8, %v9213_v46, %v9215_v7  ;;  %v9216_v14 = vld [vmem:[#allocation251_spill] sm:$0xff]  ;;  %v9218_v0 = vld [vmem:[#allocation12_spill] sm:$0xff] }
 0x596   :  { %9209 = vst [vmem:[#allocation78_spill] sm:$0xff] %v7388_v40  ;;  %v3556_v28 = vsel %vm98_vm2, %v3539_v37, %v3541_v12  ;;  %v7410_v9 = vadd.f32 %v7380_v56, %v2441_v33  ;;  %v7413_v52 = vadd.f32 %v7385_v57, %v2442_v39  ;;  %v2780_v4 = vsel %vm1087_vm8, %v9217_v1, %v9216_v14  ;;  %v9219_v39 = vld [vmem:[#allocation254_spill] sm:$0xff]  ;;  %v9220_v57 = vld [vmem:[#allocation3_spill] sm:$0xff] }
 0x597   :  { %v7419_v50 = vadd.f32 %v3556_v28, %v9218_v0  ;;  %v2723_v43 = vadd.f32 %v2715_v53, %v2384_v29  ;;  %v2724_v45 = vadd.f32 %v2716_v17, %v2385_v55  ;;  %v7421_v6 = vadd.f32 %v2778_v61, %v2500_v10  ;;  %v3547_v28 = vpop.permute.xlu1 %3546  ;;  %v3545_v56 = vpop.permute.xlu0 %3544  ;;  %v9221_v10 = vld [vmem:[#allocation256_spill] sm:$0xff]  ;;  %v9223_v53 = vld [vmem:[#allocation255_spill] sm:$0xff] }
 0x598   :  { %v3557_v46 = vsel %vm98_vm2, %v3541_v12, %v3543_v26  ;;  %v7424_v37 = vadd.f32 %v2779_v25, %v2501_v8  ;;  %v7427_v33 = vadd.f32 %v2778_v61, %v7264_v47  ;;  %v2781_v7 = vsel %vm1087_vm8, %v9216_v14, %v9219_v39  ;;  %v9222_v8 = vld [vmem:[#allocation253_spill] sm:$0xff]  ;;  %v9224_v61 = vld [vmem:[#allocation10_spill] sm:$0xff]  ;;  %v9225_v14 = vld [vmem:[#allocation11_spill] sm:$0xff] }
 0x599   :  { %v7433_v1 = vadd.f32 %v3543_v26, %v9220_v57  ;;  %v7436_v29 = vadd.f32 %v2779_v25, %v7278_v13  ;;  %v7438_v55 = vadd.f32 %v2780_v4, %v2502_v30  ;;  %v2835_v12 = vsel %vm1087_vm8, %v9222_v8, %v9221_v10  ;;  %v9231_v57 = vld [vmem:[#allocation2_spill] sm:$0xff] }
 0x59a   :  { %v3558_v47 = vsel %vm98_vm2, %v3545_v56, %v3547_v28  ;;  %v2836_v17 = vsel %vm1087_vm8, %v9221_v10, %v9223_v53  ;;  %v7448_v26 = vadd.f32 %v3557_v46, %v9224_v61  ;;  %v3580_v13 = vmul.f32 0.04052399, %v7419_v50  ;;  %v9227_v56 = vld [vmem:[#allocation257_spill] sm:$0xff]  ;;  %v9229_v53 = vld [vmem:[#allocation259_spill] sm:$0xff] }
 0x59b   :  { %v7451_v39 = vadd.f32 %v3558_v47, %v9225_v14  ;;  %v7455_v30 = vadd.f32 %v2780_v4, %v7290_v49  ;;  %v7457_v25 = vadd.f32 %v2781_v7, %v2503_v11  ;;  %v7460_v8 = vadd.f32 %v2781_v7, %v7293_v63  ;;  %v9230_v47 = vld [vmem:[#allocation61_spill] sm:$0xff]  ;;  %v3551_v51 = vpop.permute.xlu1 %3550  ;;  %v3549_v49 = vpop.permute.xlu0 %3548 }
 0x59c   :  { %v2837_v10 = vsel %vm1087_vm8, %v9228_v23, %v9227_v56  ;;  %v2838_v46 = vsel %vm1087_vm8, %v9227_v56, %v9229_v53  ;;  %v3045_v41 = vsel %vm150_vm5, %v9230_v47, %v6889_v32  ;;  %v3582_v4 = vmul.f32 0.04052399, %v7433_v1  ;;  %v9232_v53 = vld [vmem:[#allocation9_spill] sm:$0xff] }
 0x59d   :  { %9226 = vst [vmem:[#allocation151_spill] sm:$0xff] %v7457_v25  ;;  %v3583_v11 = vmul.f32 0.04052399, %v7451_v39  ;;  %v7474_v63 = vadd.f32 %v2835_v12, %v7296_v58  ;;  %v7477_v7 = vadd.f32 %v2836_v17, %v7302_v27  ;;  %v3559_v23 = vsel %vm98_vm2, %v3547_v28, %v3549_v49  ;;  %v9235_v12 = vld [vmem:[#allocation64_spill] sm:$0xff] }
 0x59e   :  { %v7481_v56 = vadd.f32 %v3549_v49, %v9231_v57  ;;  %v7484_v18 = vadd.f32 %v3559_v23, %v9232_v53  ;;  %v3598_v32 = vrot.slane %v3580_v13, 2  ;;  %v3581_v40 = vmul.f32 0.04052399, %v7448_v26 }
 0x59f   :  { %v3599_v47 = vrot.slane %v3583_v11, 2  ;;  %v7488_v15 = vadd.f32 %v2837_v10, %v7307_v22  ;;  %v7491_v58 = vadd.f32 %v2838_v46, %v7309_v16  ;;  %v7493_v27 = vadd.f32 %v3045_v41, %v2723_v43  ;;  %v3555_v49 = vpop.permute.xlu1 %3554  ;;  %v3553_v23 = vpop.permute.xlu0 %3552  ;;  %v9237_v22 = vld [vmem:[#allocation4_spill] sm:$0xff] }
 0x5a0   :  { %v7496_v28 = vmul.f32 0.04052399, %v7481_v56  ;;  %v7499_v17 = vadd.f32 %v9235_v12, %v2724_v45  ;;  %v3604_v11 = vrot.slane %v3582_v4, 2  ;;  %v3584_v57 = vmul.f32 0.04052399, %v7484_v18  ;;  %v9238_v45 = vld [vmem:[#allocation7_spill] sm:$0xff] }
 0x5a1   :  { %9233 = vst [vmem:[#allocation153_spill] sm:$0xff] %v7491_v58  ;;  %9234 = vst [vmem:[#allocation77_spill] sm:$0xff] %v7493_v27  ;;  %v3600_v13 = vsel %vm270_vm6, %v3598_v32, %v3599_v47  ;;  %v7504_v10 = vadd.f32 %v3555_v49, %v9237_v22  ;;  %v3560_v16 = vsel %vm98_vm2, %v3551_v51, %v3553_v23  ;;  %v9239_v12 = vld [vmem:[#allocation6_spill] sm:$0xff]  ;;  %v3601_v4 = vrot.slane %v3581_v40, 2 }
 0x5a2   :  { %9236 = vst [vmem:[#allocation152_spill] sm:$0xff] %v7499_v17  ;;  %v3561_v41 = vsel %vm98_vm2, %v3553_v23, %v3555_v49  ;;  %3613 = vrot.lane.b32.xlu1 %v3600_v13, %s4180_s13  ;;  %v3605_v43 = vrot.slane %v7496_v28, 2  ;;  %v7511_v46 = vadd.f32 %v3560_v16, %v9238_v45  ;;  %v3602_v32 = vrot.slane %v3584_v57, 2 }
 0x5a3   :  { %v7514_v25 = vadd.f32 %v3561_v41, %v9239_v12  ;;  %v7518_v22 = vadd.f32 %v6973_v59, %v7400_v31  ;;  %v7522_v51 = vadd.f32 %v6976_v20, %v7403_v54  ;;  %v7526_v28 = vmul.f32 0.031039765, %v7451_v39  ;;  %v3319_v23 = vpop.permute.xlu1 %3318  ;;  %v3317_v13 = vpop.permute.xlu0 %3316 }
 0x5a4   :  { %v3606_v49 = vsel %vm270_vm6, %v3604_v11, %v3605_v43  ;;  %v3603_v16 = vsel %vm270_vm6, %v3601_v4, %v3602_v32  ;;  %v3586_v57 = vmul.f32 0.04052399, %v7511_v46  ;;  %v3588_v59 = vmul.f32 0.04052399, %v7504_v10 }
 0x5a5   :  { %9240 = vst [vmem:[#allocation154_spill] sm:$0xff] %v7518_v22  ;;  %9241 = vst [vmem:[#allocation80_spill] sm:$0xff] %v7522_v51  ;;  %v3587_v40 = vmul.f32 0.04052399, %v7514_v25  ;;  %v7534_v31 = vadd.f32 %v7011_v62, %v7410_v9  ;;  %v7537_v20 = vsel %vm150_vm5, %v3317_v13, %v3319_v23  ;;  %3615 = vrot.lane.b32.xlu0 %v3603_v16, %s4180_s13  ;;  %v3637_v54 = vmul.f32 0.031039765, %v7419_v50 }
 0x5a6   :  { %3617 = vrot.lane.b32.xlu1 %v3606_v49, %s4180_s13  ;;  %v3639_v11 = vmul.f32 0.031039765, %v7433_v1  ;;  %v7545_v41 = vadd.f32 %v7051_v35, %v7413_v52  ;;  %v7549_v4 = vadd.f32 %v7080_v38, %v7359_v5  ;;  %v3607_v9 = vrot.slane %v3586_v57, 2 }
 0x5a7   :  { %9242 = vst [vmem:[#allocation155_spill] sm:$0xff] %v7534_v31  ;;  %v3609_v62 = vrot.slane %v3587_v40, 2  ;;  %v7553_v13 = vadd.f32 %v7083_v3, %v7372_v36  ;;  %v3656_v49 = vrot.slane %v7526_v28, 2  ;;  %v7557_v16 = vmul.f32 0.031039765, %v7481_v56  ;;  %v3323_v51 = vpop.permute.xlu1 %3322  ;;  %v3321_v35 = vpop.permute.xlu0 %3320 }
 0x5a8   :  { %9243 = vst [vmem:[#allocation157_spill] sm:$0xff] %v7545_v41  ;;  %9244 = vst [vmem:[#allocation79_spill] sm:$0xff] %v7549_v4  ;;  %v3696_v31 = vmul.f32 0.01604532, %v7433_v1  ;;  %v3608_v38 = vsel %vm270_vm6, %v3599_v47, %v3607_v9  ;;  %v3611_v5 = vrot.slane %v3588_v59, 2  ;;  %v7564_v57 = vsel %vm150_vm5, %v3319_v23, %v3321_v35 }
 0x5a9   :  { %9245 = vst [vmem:[#allocation156_spill] sm:$0xff] %v7553_v13  ;;  %v3610_v52 = vsel %vm270_vm6, %v3602_v32, %v3609_v62  ;;  %v3641_v40 = vmul.f32 0.031039765, %v7484_v18  ;;  %3619 = vrot.lane.b32.xlu0 %v3608_v38, %s4180_s13  ;;  %v3655_v3 = vrot.slane %v3637_v54, 2  ;;  %v3661_v36 = vrot.slane %v3639_v11, 2 }
 0x5aa   :  { %3621 = vrot.lane.b32.xlu1 %v3610_v52, %s4180_s13  ;;  %v3638_v28 = vmul.f32 0.031039765, %v7448_v26  ;;  %v7571_v13 = vadd.f32 %v7109_v2, %v7375_v24  ;;  %v3694_v47 = vmul.f32 0.01604532, %v7419_v50  ;;  %v3697_v32 = vmul.f32 0.01604532, %v7451_v39 }
 0x5ab   :  { %v7576_v59 = vmul.f32 0.01604532, %v7481_v56  ;;  %v3657_v23 = vsel %vm270_vm6, %v3655_v3, %v3656_v49  ;;  %v3662_v62 = vrot.slane %v7557_v16, 2  ;;  %v3644_v54 = vmul.f32 0.031039765, %v7514_v25  ;;  %v3327_v9 = vpop.permute.xlu1 %3326  ;;  %v3325_v35 = vpop.permute.xlu0 %3324 }
 0x5ac   :  { %9246 = vst [vmem:[#allocation158_spill] sm:$0xff] %v7571_v13  ;;  %v3643_v11 = vmul.f32 0.031039765, %v7511_v46  ;;  %v3612_v2 = vsel %vm270_vm6, %v3605_v43, %v3611_v5  ;;  %v3659_v24 = vrot.slane %v3641_v40, 2  ;;  %v3645_v52 = vmul.f32 0.031039765, %v7504_v10 }
 0x5ad   :  { %v3698_v38 = vmul.f32 0.01604532, %v7484_v18  ;;  %v7586_v13 = vsel %vm150_vm5, %v3323_v51, %v3325_v35  ;;  %v7589_v3 = vsel %vm150_vm5, %v3325_v35, %v3327_v9  ;;  %3623 = vrot.lane.b32.xlu0 %v3612_v2, %s4180_s13  ;;  %v3701_v16 = vmul.f32 0.01604532, %v7514_v25 }
 0x5ae   :  { %9247 = vst [vmem:[#allocation82_spill] sm:$0xff] %v7589_v3  ;;  %3670 = vrot.lane.b32.xlu1 %v3657_v23, %s4180_s13  ;;  %v3700_v4 = vmul.f32 0.01604532, %v7511_v46  ;;  %v3658_v43 = vrot.slane %v3638_v28, 2  ;;  %v3713_v5 = vrot.slane %v3697_v32, 2  ;;  %v3718_v40 = vrot.slane %v3696_v31, 2 }
 0x5af   :  { %v3695_v41 = vmul.f32 0.01604532, %v7448_v26  ;;  %v3666_v22 = vrot.slane %v3644_v54, 2  ;;  %v3664_v17 = vrot.slane %v3643_v11, 2  ;;  %v3712_v51 = vrot.slane %v3694_v47, 2  ;;  %v3343_v9 = vpop.permute.xlu1 %3342  ;;  %v3341_v35 = vpop.permute.xlu0 %3340 }
 0x5b0   :  { %v8615_v27 = vrot.slane %v7576_v59, 2  ;;  %v3663_v23 = vsel %vm270_vm6, %v3661_v36, %v3662_v62  ;;  %v3660_v2 = vsel %vm270_vm6, %v3658_v43, %v3659_v24  ;;  %v3668_v44 = vrot.slane %v3645_v52, 2 }
 0x5b1   :  { %v3716_v58 = vrot.slane %v3698_v38, 2  ;;  %v3358_v3 = vsel %vm150_vm5, %v3341_v35, %v3343_v9  ;;  %3672 = vrot.lane.b32.xlu0 %v3660_v2, %s4180_s13  ;;  %v3723_v31 = vrot.slane %v3701_v16, 2  ;;  %v3721_v28 = vrot.slane %v3700_v4, 2 }
 0x5b2   :  { %3674 = vrot.lane.b32.xlu1 %v3663_v23, %s4180_s13  ;;  %v7603_v47 = vmul.f32 0.01604532, %v7504_v10  ;;  %v7607_v32 = vadd.f32 %v7174_v48, %v7421_v6  ;;  %v7611_v36 = vadd.f32 %v7177_v21, %v7424_v37  ;;  %v3714_v54 = vsel %vm270_vm6, %v3712_v51, %v3713_v5 }
 0x5b3   :  { %v3715_v11 = vrot.slane %v3695_v41, 2  ;;  %v3667_v52 = vsel %vm270_vm6, %v3659_v24, %v3666_v22  ;;  %v3665_v38 = vsel %vm270_vm6, %v3656_v49, %v3664_v17  ;;  %v3720_v4 = vsel %vm270_vm6, %v3718_v40, %v8615_v27  ;;  %v3347_v43 = vpop.permute.xlu1 %3346  ;;  %v3345_v48 = vpop.permute.xlu0 %3344 }
 0x5b4   :  { %v3808_v16 = vmul.f32 0.0088402685, %v7419_v50  ;;  %v3669_v6 = vsel %vm270_vm6, %v3662_v62, %v3668_v44  ;;  %v3811_v37 = vmul.f32 0.0088402685, %v7451_v39  ;;  %v3810_v41 = vmul.f32 0.0088402685, %v7433_v1 }
 0x5b5   :  { %v3717_v21 = vsel %vm270_vm6, %v3715_v11, %v3716_v58  ;;  %v3359_v22 = vsel %vm150_vm5, %v3343_v9, %v3345_v48  ;;  %3676 = vrot.lane.b32.xlu0 %v3665_v38, %s4180_s13  ;;  %v3724_v17 = vsel %vm270_vm6, %v3716_v58, %v3723_v31  ;;  %v3722_v49 = vsel %vm270_vm6, %v3713_v5, %v3721_v28 }
 0x5b6   :  { %3678 = vrot.lane.b32.xlu1 %v3667_v52, %s4180_s13  ;;  %v7631_v44 = vadd.f32 %v3358_v3, %v9218_v0  ;;  %v3826_v62 = vrot.slane %v3808_v16, 2  ;;  %v3827_v40 = vrot.slane %v3811_v37, 2  ;;  %v3813_v51 = vmul.f32 0.0088402685, %v7481_v56 }
 0x5b7   :  { %v7635_v35 = vadd.f32 %v3359_v22, %v9224_v61  ;;  %v3832_v9 = vrot.slane %v3810_v41, 2  ;;  %v3809_v23 = vmul.f32 0.0088402685, %v7448_v26  ;;  %v3812_v2 = vmul.f32 0.0088402685, %v7484_v18  ;;  %v3351_v58 = vpop.permute.xlu1 %3350  ;;  %v3349_v31 = vpop.permute.xlu0 %3348 }
 0x5b8   :  { %v7640_v5 = vsel %vm270_vm6, %v3826_v62, %v3827_v40  ;;  %v3833_v28 = vrot.slane %v3813_v51, 2  ;;  %v3815_v3 = vmul.f32 0.0088402685, %v7514_v25  ;;  %v3814_v11 = vmul.f32 0.0088402685, %v7511_v46 }
 0x5b9   :  { %v3360_v52 = vsel %vm150_vm5, %v3347_v43, %v3349_v31  ;;  %v3361_v38 = vsel %vm150_vm5, %v3349_v31, %v3351_v58  ;;  %3680 = vrot.lane.b32.xlu0 %v3669_v6, %s4180_s13  ;;  %v3829_v16 = vrot.slane %v3809_v23, 2  ;;  %v3830_v48 = vrot.slane %v3812_v2, 2 }
 0x5ba   :  { %3727 = vrot.lane.b32.xlu1 %v3714_v54, %s4180_s13  ;;  %v7649_v37 = vadd.f32 %v3360_v52, %v9225_v14  ;;  %v7652_v41 = vadd.f32 %v3361_v38, %v9232_v53  ;;  %v7655_v22 = vsel %vm270_vm6, %v3832_v9, %v3833_v28  ;;  %v3837_v62 = vrot.slane %v3815_v3, 2 }
 0x5bb   :  { %v7658_v43 = vsel %vm270_vm6, %v3829_v16, %v3830_v48  ;;  %v3835_v51 = vrot.slane %v3814_v11, 2  ;;  %v3816_v54 = vmul.f32 0.0088402685, %v7504_v10  ;;  %v3376_v6 = vmul.f32 0.04052399, %v7631_v44  ;;  %v3355_v23 = vpop.permute.xlu1 %3354  ;;  %v3353_v2 = vpop.permute.xlu0 %3352 }
 0x5bc   :  { %v7663_v58 = vsel %vm270_vm6, %v3830_v48, %v3837_v62  ;;  %v3377_v31 = vmul.f32 0.04052399, %v7635_v35  ;;  %v3378_v52 = vmul.f32 0.04052399, %v7649_v37  ;;  %v7668_v9 = vmul.f32 0.04052399, %v7652_v41 }
 0x5bd   :  { %9248 = vst [vmem:[#allocation159_spill] sm:$0xff] %v7663_v58  ;;  %v3362_v3 = vsel %vm150_vm5, %v3353_v2, %v3355_v23  ;;  %3729 = vrot.lane.b32.xlu0 %v3717_v21, %s4180_s13  ;;  %v7674_v11 = vsel %vm270_vm6, %v3827_v40, %v3835_v51  ;;  %v3839_v38 = vrot.slane %v3816_v54, 2  ;;  %v3388_v16 = vrot.slane %v3376_v6, 2 }
 0x5be   :  { %9249 = vst [vmem:[#allocation161_spill] sm:$0xff] %v7668_v9  ;;  %3731 = vrot.lane.b32.xlu1 %v3720_v4, %s4180_s13  ;;  %v7677_v48 = vadd.f32 %v3362_v3, %v9238_v45  ;;  %v3389_v62 = vrot.slane %v3378_v52, 2  ;;  %v3391_v27 = vrot.slane %v3377_v31, 2  ;;  %v8616_v24 = vrot.slane %v7668_v9, 2 }
 0x5bf   :  { %v7681_v58 = vsel %vm270_vm6, %v3833_v28, %v3839_v38  ;;  %v3406_v2 = vmul.f32 0.017029569, %v7631_v44  ;;  %v3407_v4 = vmul.f32 0.017029569, %v7635_v35  ;;  %v3408_v21 = vmul.f32 0.017029569, %v7649_v37  ;;  %v3357_v40 = vpop.permute.xlu0 %3356 }
 0x5c0   :  { %v7687_v51 = vsel %vm270_vm6, %v3388_v16, %v3389_v62  ;;  %v7692_v54 = vsel %vm270_vm6, %v3391_v27, %v8616_v24  ;;  %v3380_v6 = vmul.f32 0.04052399, %v7677_v48  ;;  %v3409_v28 = vmul.f32 0.017029569, %v7652_v41 }
 0x5c1   :  { %9250 = vst [vmem:[#allocation81_spill] sm:$0xff] %v7692_v54  ;;  %v7698_v31 = vadd.f32 %v7221_v60, %v7438_v55  ;;  %v3336_v52 = vadd.f32 %v7537_v20, %v7427_v33  ;;  %v3363_v3 = vsel %vm150_vm5, %v3355_v23, %v3357_v40  ;;  %3733 = vrot.lane.b32.xlu0 %v3722_v49, %s4180_s13  ;;  %v3418_v16 = vrot.slane %v3406_v2, 2 }
 0x5c2   :  { %3735 = vrot.lane.b32.xlu1 %v3724_v17, %s4180_s13  ;;  %v7706_v27 = vadd.f32 %v3363_v3, %v9239_v12  ;;  %v3394_v38 = vrot.slane %v3380_v6, 2  ;;  %v3419_v24 = vrot.slane %v3408_v21, 2  ;;  %v3337_v9 = vadd.f32 %v7564_v57, %v7436_v29  ;;  %v9253_v57 = vld [vmem:[#allocation260_spill] sm:$0xff] }
 0x5c3   :  { %v3421_v60 = vrot.slane %v3407_v4, 2  ;;  %v3422_v55 = vrot.slane %v3409_v28, 2  ;;  %v3410_v54 = vmul.f32 0.017029569, %v7677_v48  ;;  %v9251_v33 = vrot.slane %v7603_v47, 2 }
 0x5c4   :  { %v9252_v20 = vrot.slane %v7576_v59, 2  ;;  %v7717_v49 = vsel %vm270_vm6, %v3389_v62, %v3394_v38  ;;  %v7720_v23 = vsel %vm270_vm6, %v3418_v16, %v3419_v24  ;;  %v3411_v2 = vmul.f32 0.017029569, %v7706_v27  ;;  %v9258_v16 = vld [vmem:[#allocation147_spill] sm:$0xff] }
 0x5c5   :  { %v3279_v29 = vadd.f32 %v7284_v34, %v7474_v63  ;;  %v7729_v59 = vsel %vm270_vm6, %v3421_v60, %v3422_v55  ;;  %v3424_v47 = vrot.slane %v3410_v54, 2  ;;  %v3436_v62 = vmul.f32 -0.013526065, %v7631_v44 }
 0x5c6   :  { %v3726_v17 = vsel %vm270_vm6, %v9252_v20, %v9251_v33  ;;  %3910 = vrot.lane.b32.xlu1 %v9253_v57, %s4183_s29  ;;  %v3280_v4 = vadd.f32 %v7287_v42, %v7477_v7  ;;  %v3338_v21 = vadd.f32 %v7586_v13, %v7455_v30  ;;  %v7737_v40 = vadd.f32 %v7720_v23, %v3336_v52  ;;  %v9254_v7 = vld [vmem:[#allocation82_spill] sm:$0xff]  ;;  %v9255_v52 = vld [vmem:[#allocation261_spill] sm:$0xff] }
 0x5c7   :  { %3737 = vrot.lane.b32.xlu0 %v3726_v17, %s4180_s13  ;;  %v7740_v34 = vadd.f32 %v7729_v59, %v3337_v9  ;;  %v7743_v63 = vsel %vm270_vm6, %v3419_v24, %v3424_v47  ;;  %v3426_v6 = vrot.slane %v3411_v2, 2  ;;  %v3437_v54 = vmul.f32 -0.013526065, %v7635_v35  ;;  %v9256_v24 = vld [vmem:[#allocation262_spill] sm:$0xff] }
 0x5c8   :  { %v3438_v28 = vmul.f32 -0.013526065, %v7649_v37  ;;  %v3281_v42 = vadd.f32 %v7318_v19, %v7488_v15  ;;  %v3339_v30 = vadd.f32 %v9254_v7, %v7460_v8  ;;  %v7752_v13 = vadd.f32 %v7743_v63, %v3338_v21  ;;  %v9257_v8 = vld [vmem:[#allocation153_spill] sm:$0xff] }
 0x5c9   :  { %v3439_v9 = vmul.f32 -0.013526065, %v7652_v41  ;;  %v7760_v3 = vmul.f32 0.009883306, %v7451_v39  ;;  %v7763_v38 = vsel %vm270_vm6, %v3422_v55, %v3426_v6  ;;  %v3448_v15 = vrot.slane %v3436_v62, 2 }
 0x5ca   :  { %3914 = vrot.lane.b32.xlu1 %v9255_v52, %s4183_s29  ;;  %v3449_v19 = vrot.slane %v3438_v28, 2  ;;  %v3282_v60 = vadd.f32 %v9258_v16, %v9257_v8  ;;  %v7768_v33 = vadd.f32 %v7763_v38, %v3339_v30  ;;  %v3451_v20 = vrot.slane %v3437_v54, 2  ;;  %v9260_v54 = vld [vmem:[#allocation263_spill] sm:$0xff]  ;;  %v9261_v28 = vld [vmem:[#allocation264_spill] sm:$0xff] }
 0x5cb   :  { %3912 = vrot.lane.b32.xlu0 %v9256_v24, %s4183_s29  ;;  %v3452_v17 = vrot.slane %v3439_v9, 2  ;;  %v3440_v57 = vmul.f32 -0.013526065, %v7677_v48  ;;  %v3441_v39 = vmul.f32 -0.013526065, %v7706_v27 }
 0x5cc   :  { %v7771_v2 = vsel %vm270_vm6, %v3448_v15, %v3449_v19  ;;  %v3466_v55 = vmul.f32 -0.026135158, %v7631_v44  ;;  %v7777_v47 = vmul.f32 0.009883306, %v7419_v50  ;;  %v3467_v6 = vmul.f32 -0.026135158, %v7635_v35 }
 0x5cd   :  { %v7780_v62 = vsel %vm270_vm6, %v3451_v20, %v3452_v17  ;;  %v7783_v21 = vadd.f32 %v7771_v2, %v3279_v29  ;;  %v3454_v50 = vrot.slane %v3440_v57, 2  ;;  %v3456_v9 = vrot.slane %v3441_v39, 2  ;;  %v9266_v57 = vld [vmem:[#allocation152_spill] sm:$0xff] }
 0x5ce   :  { %3918 = vrot.lane.b32.xlu1 %v9260_v54, %s4183_s29  ;;  %v7792_v30 = vadd.f32 %v7780_v62, %v3280_v4  ;;  %v3468_v52 = vmul.f32 -0.026135158, %v7649_v37  ;;  %v3469_v29 = vmul.f32 -0.026135158, %v7652_v41  ;;  %v3478_v24 = vrot.slane %v3466_v55, 2  ;;  %v9267_v55 = vld [vmem:[#allocation15_spill] sm:$0xff] }
 0x5cf   :  { %9259 = vst [vmem:[#allocation160_spill] sm:$0xff] %v7783_v21  ;;  %3916 = vrot.lane.b32.xlu0 %v9261_v28, %s4183_s29  ;;  %v3481_v15 = vrot.slane %v3467_v6, 2  ;;  %v3455_v8 = vsel %vm270_vm6, %v3449_v19, %v3454_v50  ;;  %v3457_v16 = vsel %vm270_vm6, %v3452_v17, %v3456_v9  ;;  %v3470_v20 = vmul.f32 -0.026135158, %v7677_v48  ;;  %v9263_v28 = vld [vmem:[#allocation77_spill] sm:$0xff]  ;;  %v9268_v19 = vld [vmem:[#allocation271_spill] sm:$0xff] }
 0x5d0   :  { %9262 = vst [vmem:[#allocation88_spill] sm:$0xff] %v7792_v30  ;;  %v3471_v54 = vmul.f32 -0.026135158, %v7706_v27  ;;  %v7801_v7 = vadd.f32 %v3455_v8, %v9263_v28  ;;  %v7803_v4 = vadd.f32 %v3455_v8, %v3281_v42  ;;  %v7806_v39 = vadd.f32 %v3457_v16, %v9266_v57  ;;  %v9269_v21 = vld [vmem:[#allocation151_spill] sm:$0xff]  ;;  %v9270_v28 = vld [vmem:[#allocation134_spill] sm:$0xff] }
 0x5d1   :  { %v7808_v30 = vadd.f32 %v3457_v16, %v3282_v60  ;;  %v3479_v17 = vrot.slane %v3468_v52, 2  ;;  %v3482_v6 = vrot.slane %v3469_v29, 2  ;;  %v3484_v50 = vrot.slane %v3470_v20, 2  ;;  %v9271_v29 = vld [vmem:[#allocation154_spill] sm:$0xff] }
 0x5d2   :  { %9264 = vst [vmem:[#allocation166_spill] sm:$0xff] %v7801_v7  ;;  %9265 = vst [vmem:[#allocation86_spill] sm:$0xff] %v7803_v4  ;;  %3967 = vrot.lane.b32.xlu1 %v9267_v55, %s4183_s29  ;;  %v3486_v9 = vrot.slane %v3471_v54, 2  ;;  %v3225_v7 = vadd.f32 %v9270_v28, %v9269_v21  ;;  %v3496_v42 = vmul.f32 -0.029102264, %v7631_v44  ;;  %v9272_v54 = vld [vmem:[#allocation80_spill] sm:$0xff] }
 0x5d3   :  { %3920 = vrot.lane.b32.xlu0 %v9268_v19, %s4183_s29  ;;  %v3497_v8 = vmul.f32 -0.029102264, %v7635_v35  ;;  %v3498_v60 = vmul.f32 -0.029102264, %v7649_v37  ;;  %v3480_v16 = vsel %vm270_vm6, %v3478_v24, %v3479_v17  ;;  %v3483_v57 = vsel %vm270_vm6, %v3481_v15, %v3482_v6  ;;  %v9273_v37 = vld [vmem:[#allocation273_spill] sm:$0xff]  ;;  %v9274_v21 = vld [vmem:[#allocation275_spill] sm:$0xff] }
 0x5d4   :  { %v3485_v55 = vsel %vm270_vm6, %v3479_v17, %v3484_v50  ;;  %v3487_v52 = vsel %vm270_vm6, %v3482_v6, %v3486_v9  ;;  %v7824_v20 = vadd.f32 %v3480_v16, %v9271_v29  ;;  %v7827_v19 = vadd.f32 %v3483_v57, %v9272_v54  ;;  %v9275_v24 = vld [vmem:[#allocation155_spill] sm:$0xff]  ;;  %v9277_v6 = vld [vmem:[#allocation157_spill] sm:$0xff] }
 0x5d5   :  { %v7830_v44 = vadd.f32 %v3480_v16, %v7607_v32  ;;  %v7833_v35 = vadd.f32 %v3483_v57, %v7611_v36  ;;  %v7840_v15 = vadd.f32 %v3485_v55, %v9275_v24  ;;  %v7843_v17 = vadd.f32 %v3485_v55, %v7698_v31  ;;  %v9284_v24 = vld [vmem:[#allocation24_spill] sm:$0xff] }
 0x5d6   :  { %3971 = vrot.lane.b32.xlu1 %v9273_v37, %s4183_s29  ;;  %v7846_v50 = vadd.f32 %v3487_v52, %v9277_v6  ;;  %v3499_v32 = vmul.f32 -0.029102264, %v7652_v41  ;;  %v3756_v36 = vmul.f32 0.009883306, %v7481_v56  ;;  %v7850_v9 = vadd.f32 %v3487_v52, %v3225_v7  ;;  %v9279_v56 = vld [vmem:[#allocation276_spill] sm:$0xff]  ;;  %v9280_v7 = vld [vmem:[#allocation277_spill] sm:$0xff] }
 0x5d7   :  { %3969 = vrot.lane.b32.xlu0 %v9274_v21, %s4183_s29  ;;  %9276 = vst [vmem:[#allocation167_spill] sm:$0xff] %v7843_v17  ;;  %v3508_v28 = vrot.slane %v3496_v42, 2  ;;  %v3509_v16 = vrot.slane %v3498_v60, 2  ;;  %v3511_v57 = vrot.slane %v3497_v8, 2  ;;  %v3500_v54 = vmul.f32 -0.029102264, %v7677_v48 }
 0x5d8   :  { %9278 = vst [vmem:[#allocation85_spill] sm:$0xff] %v7850_v9  ;;  %v3512_v29 = vrot.slane %v3499_v32, 2  ;;  %v3501_v37 = vmul.f32 -0.029102264, %v7706_v27  ;;  %v3769_v31 = vrot.slane %v7777_v47, 2  ;;  %v9281_v8 = vld [vmem:[#allocation79_spill] sm:$0xff] }
 0x5d9   :  { %v3753_v55 = vmul.f32 0.009883306, %v7433_v1  ;;  %v3755_v21 = vmul.f32 0.009883306, %v7484_v18  ;;  %v3510_v41 = vsel %vm270_vm6, %v3508_v28, %v3509_v16  ;;  %v3514_v60 = vrot.slane %v3500_v54, 2  ;;  %v9283_v47 = vld [vmem:[#allocation78_spill] sm:$0xff] }
 0x5da   :  { %3975 = vrot.lane.b32.xlu1 %v9279_v56, %s4183_s29  ;;  %v3513_v42 = vsel %vm270_vm6, %v3511_v57, %v3512_v29  ;;  %v7864_v48 = vadd.f32 %v3510_v41, %v9281_v8  ;;  %v3516_v52 = vrot.slane %v3501_v37, 2  ;;  %v3168_v1 = vadd.f32 %v9284_v24, %v9283_v47  ;;  %v9286_v28 = vld [vmem:[#allocation156_spill] sm:$0xff]  ;;  %v9288_v47 = vld [vmem:[#allocation158_spill] sm:$0xff] }
 0x5db   :  { %3973 = vrot.lane.b32.xlu0 %v9280_v7, %s4183_s29  ;;  %v9285_v18 = vrot.slane %v7760_v3, 2  ;;  %v3752_v32 = vmul.f32 0.009883306, %v7448_v26  ;;  %v7873_v56 = vadd.f32 %v3513_v42, %v9286_v28  ;;  %v3776_v7 = vrot.slane %v3756_v36, 2  ;;  %v9291_v26 = vld [vmem:[#allocation278_spill] sm:$0xff] }
 0x5dc   :  { %9282 = vst [vmem:[#allocation87_spill] sm:$0xff] %v7864_v48  ;;  %v3758_v57 = vmul.f32 0.009883306, %v7514_v25  ;;  %v3515_v41 = vsel %vm270_vm6, %v3509_v16, %v3514_v60  ;;  %v3517_v54 = vsel %vm270_vm6, %v3512_v29, %v3516_v52  ;;  %v3773_v37 = vrot.slane %v3755_v21, 2  ;;  %v9292_v52 = vld [vmem:[#allocation3_spill] sm:$0xff] }
 0x5dd   :  { %v3771_v6 = vsel %vm270_vm6, %v3769_v31, %v9285_v18  ;;  %9287 = vst [vmem:[#allocation162_spill] sm:$0xff] %v7873_v56  ;;  %v3757_v8 = vmul.f32 0.009883306, %v7511_v46  ;;  %v7880_v24 = vadd.f32 %v3515_v41, %v9288_v47  ;;  %v7882_v9 = vadd.f32 %v3517_v54, %v3168_v1  ;;  %v9330_v56 = vld [vmem:[#allocation125_spill] sm:$0xff] }
 0x5de   :  { %3784 = vrot.lane.b32.xlu1 %v3771_v6, %s4180_s13  ;;  %v3775_v36 = vrot.slane %v3753_v55, 2  ;;  %v3772_v31 = vrot.slane %v3752_v32, 2  ;;  %v3991_v16 = vmul.f32 0.031963617, %v9218_v0  ;;  %v3994_v29 = vmul.f32 0.031963617, %v9225_v14 }
 0x5df   :  { %9289 = vst [vmem:[#allocation84_spill] sm:$0xff] %v7880_v24  ;;  %9290 = vst [vmem:[#allocation163_spill] sm:$0xff] %v7882_v9  ;;  %3977 = vrot.lane.b32.xlu0 %v9291_v26, %s4183_s29  ;;  %v3780_v21 = vrot.slane %v3758_v57, 2  ;;  %v3778_v42 = vrot.slane %v3757_v8, 2  ;;  %v3759_v60 = vmul.f32 0.009883306, %v7504_v10 }
 0x5e0   :  { %v3777_v25 = vsel %vm270_vm6, %v3775_v36, %v3776_v7  ;;  %v3774_v46 = vsel %vm270_vm6, %v3772_v31, %v3773_v37  ;;  %v3993_v1 = vmul.f32 0.031963617, %v9292_v52  ;;  %v4009_v55 = vrot.slane %v3991_v16, 2  ;;  %v9293_v6 = vld [vmem:[#allocation2_spill] sm:$0xff] }
 0x5e1   :  { %v4010_v18 = vrot.slane %v3994_v29, 2  ;;  %v3996_v32 = vmul.f32 0.031963617, %v9293_v6  ;;  %v3992_v0 = vmul.f32 0.031963617, %v9224_v61  ;;  %v3781_v14 = vsel %vm270_vm6, %v3773_v37, %v3780_v21  ;;  %v9297_v52 = vld [vmem:[#allocation14_spill] sm:$0xff] }
 0x5e2   :  { %3788 = vrot.lane.b32.xlu1 %v3777_v25, %s4180_s13  ;;  %v9294_v28 = vrot.slane %v7760_v3, 2  ;;  %v3782_v41 = vrot.slane %v3759_v60, 2  ;;  %v3995_v10 = vmul.f32 0.031963617, %v9232_v53  ;;  %v4015_v8 = vrot.slane %v3993_v1, 2  ;;  %v9295_v53 = vld [vmem:[#allocation4_spill] sm:$0xff] }
 0x5e3   :  { %3786 = vrot.lane.b32.xlu0 %v3774_v46, %s4180_s13  ;;  %v4011_v54 = vsel %vm270_vm6, %v4009_v55, %v4010_v18  ;;  %v4016_v47 = vrot.slane %v3996_v32, 2  ;;  %v3998_v26 = vmul.f32 0.031963617, %v9239_v12  ;;  %v4012_v37 = vrot.slane %v3992_v0, 2  ;;  %v9298_v55 = vld [vmem:[#allocation16_spill] sm:$0xff]  ;;  %v9299_v6 = vld [vmem:[#allocation26_spill] sm:$0xff] }
 0x5e4   :  { %v3779_v57 = vsel %vm270_vm6, %v9294_v28, %v3778_v42  ;;  %v3783_v61 = vsel %vm270_vm6, %v3776_v7, %v3782_v41  ;;  %v4013_v36 = vrot.slane %v3995_v10, 2  ;;  %v3997_v3 = vmul.f32 0.031963617, %v9238_v45  ;;  %v9296_v42 = vld [vmem:[#allocation13_spill] sm:$0xff]  ;;  %v9300_v0 = vld [vmem:[#allocation266_spill] sm:$0xff]  ;;  %v9303_v28 = vld [vmem:[#allocation111_spill] sm:$0xff] }
 0x5e5   :  { %v3999_v31 = vmul.f32 0.031963617, %v9295_v53  ;;  %v4017_v25 = vsel %vm270_vm6, %v4015_v8, %v4016_v47  ;;  %v4020_v29 = vrot.slane %v3998_v26, 2  ;;  %v1621_v60 = vmul.f32 0.0088402685, %v9296_v42  ;;  %v9305_v10 = vld [vmem:[#allocation29_spill] sm:$0xff] }
 0x5e6   :  { %3792 = vrot.lane.b32.xlu1 %v3781_v14, %s4180_s13  ;;  %v4014_v16 = vsel %vm270_vm6, %v4012_v37, %v4013_v36  ;;  %v4018_v46 = vrot.slane %v3997_v3, 2  ;;  %v1620_v1 = vmul.f32 0.0088402685, %v9297_v52  ;;  %v1618_v32 = vmul.f32 0.0088402685, %v9299_v6 }
 0x5e7   :  { %3790 = vrot.lane.b32.xlu0 %v3779_v57, %s4180_s13  ;;  %v4021_v12 = vsel %vm270_vm6, %v4013_v36, %v4020_v29  ;;  %v4022_v7 = vrot.slane %v3999_v31, 2  ;;  %v1622_v14 = vmul.f32 0.0088402685, %v9300_v0  ;;  %v9304_v57 = vld [vmem:[#allocation112_spill] sm:$0xff]  ;;  %v9308_v36 = vld [vmem:[#allocation41_spill] sm:$0xff]  ;;  %v9311_v29 = vld [vmem:[#allocation23_spill] sm:$0xff] }
 0x5e8   :  { %v4019_v45 = vsel %vm270_vm6, %v4010_v18, %v4018_v46  ;;  %v1619_v18 = vmul.f32 0.0088402685, %v9298_v55  ;;  %v566_v41 = vsel %vm46_vm1, %v9304_v57, %v9303_v28  ;;  %v1631_v26 = vrot.slane %v1620_v1, 1  ;;  %v9314_v1 = vld [vmem:[#allocation114_spill] sm:$0xff] }
 0x5e9   :  { %v4023_v21 = vsel %vm270_vm6, %v4016_v47, %v4022_v7  ;;  %v1634_v47 = vrot.slane %v1621_v60, 1  ;;  %v1630_v31 = vrot.slane %v1618_v32, 1  ;;  %v574_v46 = vadd.f32 %v566_v41, %v9311_v29  ;;  %v9317_v41 = vld [vmem:[#allocation137_spill] sm:$0xff] }
 0x5ea   :  { %4024 = vrot.lane.b32.xlu1 %v4011_v54, %s4183_s29  ;;  %v9306_v54 = vld [vmem:[#allocation38_spill] sm:$0xff]  ;;  %v1633_v53 = vrot.slane %v1619_v18, 1  ;;  %v1636_v7 = vrot.slane %v1622_v14, 1  ;;  %v7963_v18 = vmul.f32 0.035482433, %v9296_v42 }
 0x5eb   :  { %3794 = vrot.lane.b32.xlu0 %v3783_v61, %s4180_s13  ;;  %v867_v8 = vsel %vm98_vm2, %v9306_v54, %v9305_v10  ;;  %v9307_v61 = vld [vmem:[#allocation39_spill] sm:$0xff]  ;;  %v7966_v32 = vmul.f32 0.035482433, %v9297_v52  ;;  %v9318_v10 = vld [vmem:[#allocation70_spill] sm:$0xff]  ;;  %v1649_v52 = vmul.f32 0.035482433, %v9298_v55 }
 0x5ec   :  { %v866_v37 = vsel %vm98_vm2, %v9307_v61, %v9306_v54  ;;  %v1637_v57 = vsel %vm227_vm3, %v1631_v26, %v1636_v7  ;;  %v1088_v54 = vsel %vm1087_vm8, %v9318_v10, %v9317_v41  ;;  %v9319_v61 = vld [vmem:[#allocation138_spill] sm:$0xff]  ;;  %v9328_v7 = vld [vmem:[#allocation117_spill] sm:$0xff] }
 0x5ed   :  { %v1089_v42 = vsel %vm1087_vm8, %v9317_v41, %v9319_v61  ;;  %v9323_v41 = vld [vmem:[#allocation115_spill] sm:$0xff]  ;;  %v9324_v61 = vld [vmem:[#allocation116_spill] sm:$0xff] }
 0x5ee   :  { %4028 = vrot.lane.b32.xlu1 %v4017_v25, %s4183_s29  ;;  %v9310_v25 = vld [vmem:[#allocation27_spill] sm:$0xff] }
 0x5ef   :  { %4026 = vrot.lane.b32.xlu0 %v4014_v16, %s4183_s29 }
 0x5f2   :  { %4032 = vrot.lane.b32.xlu1 %v4021_v12, %s4183_s29  ;;  %v9312_v12 = vld [vmem:[#allocation18_spill] sm:$0xff] }
 0x5f3   :  { %4030 = vrot.lane.b32.xlu0 %v4019_v45, %s4183_s29  ;;  %v1623_v45 = vmul.f32 0.0088402685, %v9312_v12 }
 0x5f6   :  { %3841 = vrot.lane.b32.xlu1 %v7640_v5, %s4180_s13  ;;  %v9301_v5 = vld [vmem:[#allocation159_spill] sm:$0xff] }
 0x5f7   :  { %4034 = vrot.lane.b32.xlu0 %v4023_v21, %s4183_s29  ;;  %v9313_v21 = vld [vmem:[#allocation28_spill] sm:$0xff] }
 0x5f8   :  { %v869_v60 = vsel %vm98_vm2, %v9308_v36, %v9313_v21  ;;  %v1638_v21 = vrot.slane %v1623_v45, 1  ;;  %v9326_v45 = vld [vmem:[#allocation69_spill] sm:$0xff] }
 0x5fa   :  { %3845 = vrot.lane.b32.xlu1 %v7655_v22, %s4180_s13  ;;  %v9302_v22 = vld [vmem:[#allocation56_spill] sm:$0xff] }
 0x5fb   :  { %3843 = vrot.lane.b32.xlu0 %v7658_v43, %s4180_s13  ;;  %v567_v43 = vsel %vm46_vm1, %v9303_v28, %v9302_v22  ;;  %v9316_v28 = vld [vmem:[#allocation55_spill] sm:$0xff] }
 0x5fc   :  { %v575_v16 = vadd.f32 %v567_v43, %v9310_v25  ;;  %v569_v14 = vsel %vm46_vm1, %v9314_v1, %v9316_v28  ;;  %v1632_v43 = vsel %vm227_vm3, %v1630_v31, %v1631_v26  ;;  %v9320_v25 = vld [vmem:[#allocation267_spill] sm:$0xff]  ;;  %v9321_v31 = vld [vmem:[#allocation268_spill] sm:$0xff]  ;;  %v9322_v28 = vld [vmem:[#allocation58_spill] sm:$0xff] }
 0x5fd   :  { %v603_v10 = vsel %vm46_vm1, %v9323_v41, %v9322_v28  ;;  %v9329_v28 = vld [vmem:[#allocation126_spill] sm:$0xff] }
 0x5fe   :  { %3849 = vrot.lane.b32.xlu1 %v9301_v5, %s4180_s13  ;;  %v9315_v5 = vld [vmem:[#allocation113_spill] sm:$0xff] }
 0x5ff   :  { %3847 = vrot.lane.b32.xlu0 %v7674_v11, %s4180_s13  ;;  %v9309_v11 = vld [vmem:[#allocation40_spill] sm:$0xff]  ;;  %v568_v22 = vsel %vm46_vm1, %v9315_v5, %v9314_v1  ;;  %v577_v1 = vadd.f32 %v569_v14, %v9321_v31  ;;  %v7987_v5 = vmul.f32 0.035482433, %v9300_v0  ;;  %v1639_v14 = vsel %vm227_vm3, %v1634_v47, %v1638_v21  ;;  %v9327_v0 = vld [vmem:[#allocation118_spill] sm:$0xff] }
 0x600   :  { %v868_v3 = vsel %vm98_vm2, %v9309_v11, %v9308_v36  ;;  %v1648_v36 = vmul.f32 0.035482433, %v9299_v6  ;;  %v874_v11 = vadd.f32 %v866_v37, %v574_v46  ;;  %v576_v29 = vadd.f32 %v568_v22, %v9320_v25 }
 0x601   :  { %v602_v37 = vsel %vm46_vm1, %v9324_v61, %v9323_v41  ;;  %v1663_v25 = vrot.slane %v1649_v52, 1  ;;  %v604_v26 = vsel %vm46_vm1, %v9328_v7, %v9327_v0  ;;  %v9331_v41 = vld [vmem:[#allocation22_spill] sm:$0xff]  ;;  %v877_v52 = vadd.f32 %v869_v60, %v577_v1 }
 0x602   :  { %v1096_v46 = vadd.f32 %v1088_v54, %v874_v11  ;;  %v1660_v31 = vrot.slane %v1648_v36, 1  ;;  %v876_v9 = vadd.f32 %v868_v3, %v576_v29  ;;  %v611_v54 = vadd.f32 %v603_v10, %v9331_v41  ;;  %v9336_v10 = vld [vmem:[#allocation269_spill] sm:$0xff]  ;;  %v9340_v60 = vld [vmem:[#allocation142_spill] sm:$0xff]  ;;  %v9343_v41 = vld [vmem:[#allocation31_spill] sm:$0xff] }
 0x603   :  { %3851 = vrot.lane.b32.xlu0 %v7681_v58, %s4180_s13  ;;  %v1635_v58 = vsel %vm227_vm3, %v1633_v53, %v1634_v47  ;;  %v875_v53 = vadd.f32 %v867_v8, %v575_v16  ;;  %v9325_v16 = vld [vmem:[#allocation140_spill] sm:$0xff]  ;;  %v8010_v47 = vmul.f32 0.035482433, %v9312_v12  ;;  %v9334_v21 = vrot.slane %v7966_v32, 1  ;;  %v9338_v12 = vld [vmem:[#allocation141_spill] sm:$0xff] }
 0x604   :  { %v1090_v22 = vsel %vm1087_vm8, %v9326_v45, %v9325_v16  ;;  %v1407_v24 = vadd.f32 %v9329_v28, %v1096_v46  ;;  %v1666_v29 = vrot.slane %v7987_v5, 1  ;;  %v9337_v46 = vld [vmem:[#allocation139_spill] sm:$0xff]  ;;  %v9339_v45 = vld [vmem:[#allocation72_spill] sm:$0xff]  ;;  %v1125_v1 = vsel %vm1087_vm8, %v9338_v12, %v9340_v60 }
 0x605   :  { %v1097_v8 = vadd.f32 %v1089_v42, %v875_v53  ;;  %v9332_v42 = vld [vmem:[#allocation17_spill] sm:$0xff]  ;;  %v9333_v53 = vrot.slane %v7963_v18, 1  ;;  %v1098_v36 = vadd.f32 %v1090_v22, %v876_v9  ;;  %v1662_v3 = vsel %vm227_vm3, %v1660_v31, %v9334_v21  ;;  %v9341_v22 = vld [vmem:[#allocation128_spill] sm:$0xff]  ;;  %v9342_v28 = vld [vmem:[#allocation43_spill] sm:$0xff] }
 0x606   :  { %v610_v11 = vadd.f32 %v602_v37, %v9332_v42  ;;  %v612_v37 = vadd.f32 %v604_v26, %v9336_v10  ;;  %v1124_v9 = vsel %vm1087_vm8, %v9339_v45, %v9338_v12  ;;  %v1644_v31 = vadd.f32 %v1632_v43, %v1407_v24  ;;  %v9344_v42 = vld [vmem:[#allocation200_spill] sm:$0xff]  ;;  %v9346_v21 = vld [vmem:[#allocation203_spill] sm:$0xff]  ;;  %v9347_v10 = vld [vmem:[#allocation270_spill] sm:$0xff] }
 0x607   :  { %v1408_v48 = vadd.f32 %v9330_v56, %v1097_v8  ;;  %v1665_v61 = vsel %vm227_vm3, %v1663_v25, %v9333_v53  ;;  %v9335_v56 = vld [vmem:[#allocation57_spill] sm:$0xff]  ;;  %v1091_v8 = vsel %vm1087_vm8, %v9325_v16, %v9337_v46  ;;  %v1409_v5 = vadd.f32 %v9341_v22, %v1098_v36  ;;  %v9348_v12 = vld [vmem:[#allocation132_spill] sm:$0xff]  ;;  %v9349_v36 = vld [vmem:[#allocation131_spill] sm:$0xff] }
 0x608   :  { %v605_v7 = vsel %vm46_vm1, %v9327_v0, %v9335_v56  ;;  %v910_v0 = vadd.f32 %v9342_v28, %v610_v11  ;;  %v911_v26 = vadd.f32 %v9343_v41, %v611_v54  ;;  %v9345_v53 = vld [vmem:[#allocation201_spill] sm:$0xff]  ;;  %v2261_v56 = vsel %vm98_vm2, %v9344_v42, %v9346_v21  ;;  %v9350_v43 = vld [vmem:[#allocation46_spill] sm:$0xff]  ;;  %v9351_v54 = vld [vmem:[#allocation8_spill] sm:$0xff] }
 0x609   :  { %v1645_v25 = vadd.f32 %v1635_v58, %v1408_v48  ;;  %v2260_v16 = vsel %vm98_vm2, %v9345_v53, %v9344_v42  ;;  %v613_v46 = vadd.f32 %v605_v7, %v9347_v10  ;;  %v1099_v45 = vadd.f32 %v1091_v8, %v877_v52  ;;  %v9352_v22 = vld [vmem:[#allocation71_spill] sm:$0xff]  ;;  %v9354_v21 = vld [vmem:[#allocation66_spill] sm:$0xff]  ;;  %v9355_v52 = vld [vmem:[#allocation205_spill] sm:$0xff] }
 0x60a   :  { %v1953_v48 = vadd.f32 %v9349_v36, %v1644_v31  ;;  %v1132_v24 = vadd.f32 %v1124_v9, %v910_v0  ;;  %v1133_v58 = vadd.f32 %v1125_v1, %v911_v26  ;;  %v912_v11 = vadd.f32 %v9350_v43, %v612_v37  ;;  %v9353_v41 = vld [vmem:[#allocation127_spill] sm:$0xff]  ;;  %v9356_v8 = vld [vmem:[#allocation202_spill] sm:$0xff]  ;;  %v9357_v31 = vld [vmem:[#allocation52_spill] sm:$0xff] }
 0x60b   :  { %v1954_v60 = vadd.f32 %v9348_v12, %v1645_v25  ;;  %v1126_v28 = vsel %vm1087_vm8, %v9352_v22, %v9351_v54  ;;  %v1410_v53 = vadd.f32 %v9353_v41, %v1099_v45  ;;  %v1646_v4 = vadd.f32 %v1637_v57, %v1409_v5  ;;  %v9358_v9 = vld [vmem:[#allocation48_spill] sm:$0xff]  ;;  %v9359_v37 = vld [vmem:[#allocation35_spill] sm:$0xff]  ;;  %v9360_v26 = vld [vmem:[#allocation45_spill] sm:$0xff] }
 0x60c   :  { %v2268_v17 = vadd.f32 %v2260_v16, %v1953_v48  ;;  %v1444_v7 = vadd.f32 %v9354_v21, %v1133_v58  ;;  %v2262_v25 = vsel %vm98_vm2, %v9356_v8, %v9355_v52  ;;  %v2929_v1 = vsel %vm150_vm5, %v9358_v9, %v9357_v31  ;;  %v9361_v45 = vld [vmem:[#allocation19_spill] sm:$0xff]  ;;  %v9362_v5 = vld [vmem:[#allocation73_spill] sm:$0xff] }
 0x60d   :  { %v2269_v42 = vadd.f32 %v2261_v56, %v1954_v60  ;;  %v2930_v0 = vsel %vm150_vm5, %v9357_v31, %v9359_v37  ;;  %v913_v10 = vadd.f32 %v9360_v26, %v613_v46  ;;  %v1955_v57 = vadd.f32 %v9361_v45, %v1646_v4  ;;  %v9363_v56 = vld [vmem:[#allocation144_spill] sm:$0xff]  ;;  %v9364_v36 = vld [vmem:[#allocation5_spill] sm:$0xff]  ;;  %v9365_v43 = vld [vmem:[#allocation63_spill] sm:$0xff] }
 0x60e   :  { %v2607_v16 = vadd.f32 %v9362_v5, %v2268_v17  ;;  %v1127_v48 = vsel %vm1087_vm8, %v9351_v54, %v9364_v36  ;;  %v1134_v58 = vadd.f32 %v1126_v28, %v912_v11  ;;  %v1443_v22 = vadd.f32 %v9365_v43, %v1132_v24  ;;  %v9366_v9 = vld [vmem:[#allocation129_spill] sm:$0xff]  ;;  %v9367_v17 = vld [vmem:[#allocation204_spill] sm:$0xff]  ;;  %v9368_v26 = vld [vmem:[#allocation54_spill] sm:$0xff] }
 0x60f   :  { %v2608_v12 = vadd.f32 %v9363_v56, %v2269_v42  ;;  %v3381_v41 = vmul.f32 0.04052399, %v7706_v27  ;;  %v1647_v21 = vadd.f32 %v1639_v14, %v1410_v53  ;;  %v2270_v8 = vadd.f32 %v2262_v25, %v1955_v57  ;;  %v9369_v45 = vld [vmem:[#allocation53_spill] sm:$0xff]  ;;  %v9370_v11 = vld [vmem:[#allocation272_spill] sm:$0xff]  ;;  %v9371_v24 = vld [vmem:[#allocation146_spill] sm:$0xff] }
 0x610   :  { %v2937_v31 = vadd.f32 %v2929_v1, %v2607_v16  ;;  %v1445_v4 = vadd.f32 %v9366_v9, %v1134_v58  ;;  %v1675_v37 = vadd.f32 %v1665_v61, %v1444_v7  ;;  %v2263_v42 = vsel %vm98_vm2, %v9355_v52, %v9367_v17  ;;  %v9372_v53 = vld [vmem:[#allocation81_spill] sm:$0xff] }
 0x611   :  { %v2938_v46 = vadd.f32 %v2930_v0, %v2608_v12  ;;  %v2931_v54 = vsel %vm150_vm5, %v9369_v45, %v9368_v26  ;;  %v1956_v28 = vadd.f32 %v9370_v11, %v1647_v21  ;;  %v2609_v5 = vadd.f32 %v9371_v24, %v2270_v8  ;;  %v9374_v21 = vld [vmem:[#allocation37_spill] sm:$0xff] }
 0x612   :  { %v3402_v14 = vadd.f32 %v7687_v51, %v2937_v31  ;;  %v1674_v0 = vadd.f32 %v1662_v3, %v1443_v22  ;;  %v3396_v52 = vrot.slane %v3381_v41, 2  ;;  %v1135_v36 = vadd.f32 %v1127_v48, %v913_v10  ;;  %v9376_v41 = vld [vmem:[#allocation274_spill] sm:$0xff]  ;;  %v9377_v31 = vld [vmem:[#allocation76_spill] sm:$0xff] }
 0x613   :  { %v3403_v25 = vadd.f32 %v9372_v53, %v2938_v46  ;;  %v2271_v57 = vadd.f32 %v2263_v42, %v1956_v28  ;;  %v2939_v16 = vadd.f32 %v2931_v54, %v2609_v5  ;;  %v9373_v58 = vrot.slane %v7966_v32, 1  ;;  %v9378_v48 = vld [vmem:[#allocation130_spill] sm:$0xff] }
 0x614   :  { %v3614_v60 = vpop.permute.xlu1 %3613  ;;  %v1668_v43 = vrot.slane %v8010_v47, 1  ;;  %v2932_v3 = vsel %vm150_vm5, %v9368_v26, %v9374_v21  ;;  %v2010_v8 = vadd.f32 %v9376_v41, %v1674_v0  ;;  %v1446_v32 = vadd.f32 %v9378_v48, %v1135_v36  ;;  %v9379_v47 = vld [vmem:[#allocation161_spill] sm:$0xff]  ;;  %v9385_v53 = vld [vmem:[#allocation34_spill] sm:$0xff]  ;;  %v9394_v48 = vld [vmem:[#allocation148_spill] sm:$0xff] }
 0x615   :  { %v1667_v51 = vsel %vm227_vm3, %v9373_v58, %v1666_v29  ;;  %v2610_v46 = vadd.f32 %v9377_v31, %v2271_v57  ;;  %v3404_v17 = vadd.f32 %v7717_v49, %v2939_v16  ;;  %v9380_v45 = vrot.slane %v9379_v47, 2  ;;  %v9381_v26 = vld [vmem:[#allocation133_spill] sm:$0xff]  ;;  %v9384_v49 = vld [vmem:[#allocation283_spill] sm:$0xff]  ;;  %v9391_v31 = vld [vmem:[#allocation60_spill] sm:$0xff] }
 0x616   :  { %v1676_v42 = vadd.f32 %v1667_v51, %v1445_v4  ;;  %v2325_v11 = vadd.f32 %v9381_v26, %v2010_v8  ;;  %v9386_v4 = vld [vmem:[#allocation36_spill] sm:$0xff]  ;;  %v9387_v0 = vrot.slane %v7963_v18, 1  ;;  %v9389_v57 = vld [vmem:[#allocation75_spill] sm:$0xff] }
 0x617   :  { %v3616_v1 = vpop.permute.xlu0 %3615  ;;  %v3397_v54 = vsel %vm270_vm6, %v9380_v45, %v3396_v52  ;;  %v2940_v24 = vadd.f32 %v2932_v3, %v2610_v46  ;;  %v9390_v3 = vld [vmem:[#allocation136_spill] sm:$0xff]  ;;  %v9392_v46 = vld [vmem:[#allocation121_spill] sm:$0xff] }
 0x618   :  { %v3618_v27 = vpop.permute.xlu1 %3617  ;;  %v3625_v61 = vsel %vm46_vm1, %v3614_v60, %v3616_v1  ;;  %v9375_v60 = vld [vmem:[#allocation65_spill] sm:$0xff]  ;;  %v2988_v18 = vsel %vm150_vm5, %v9392_v46, %v9391_v31 }
 0x619   :  { %v3626_v7 = vsel %vm46_vm1, %v3616_v1, %v3618_v27  ;;  %v8078_v56 = vadd.f32 %v3625_v61, %v3402_v14  ;;  %v2011_v22 = vadd.f32 %v9375_v60, %v1675_v37  ;;  %v9382_v37 = vld [vmem:[#allocation68_spill] sm:$0xff]  ;;  %v9383_v27 = vld [vmem:[#allocation25_spill] sm:$0xff]  ;;  %v2987_v1 = vsel %vm150_vm5, %v9384_v49, %v9386_v4 }
 0x61a   :  { %v8080_v12 = vadd.f32 %v3626_v7, %v3403_v25  ;;  %v2012_v14 = vadd.f32 %v9383_v27, %v1676_v42  ;;  %v2986_v25 = vsel %vm150_vm5, %v9385_v53, %v9384_v49  ;;  %v1669_v61 = vsel %vm227_vm3, %v9387_v0, %v1668_v43  ;;  %v9388_v7 = vld [vmem:[#allocation149_spill] sm:$0xff]  ;;  %v9396_v49 = vld [vmem:[#allocation62_spill] sm:$0xff] }
 0x61b   :  { %v3620_v10 = vpop.permute.xlu0 %3619  ;;  %v2326_v28 = vadd.f32 %v9382_v37, %v2011_v22  ;;  %v2664_v52 = vadd.f32 %v9388_v7, %v2325_v11  ;;  %v3405_v58 = vadd.f32 %v3397_v54, %v2940_v24  ;;  %v1677_v21 = vadd.f32 %v1669_v61, %v1446_v32  ;;  %v9393_v43 = vld [vmem:[#allocation265_spill] sm:$0xff]  ;;  %v9395_v54 = vld [vmem:[#allocation135_spill] sm:$0xff] }
 0x61c   :  { %v3622_v9 = vpop.permute.xlu1 %3621  ;;  %v2327_v60 = vadd.f32 %v9390_v3, %v2012_v14 }
 0x61d   :  { %v3627_v29 = vsel %vm46_vm1, %v3620_v10, %v3622_v9  ;;  %v2665_v16 = vadd.f32 %v9389_v57, %v2326_v28  ;;  %v2994_v41 = vadd.f32 %v2986_v25, %v2664_v52  ;;  %v2013_v10 = vadd.f32 %v9393_v43, %v1677_v21  ;;  %v9399_v43 = vld [vmem:[#allocation120_spill] sm:$0xff] }
 0x61e   :  { %v8100_v5 = vadd.f32 %v3627_v29, %v3404_v17  ;;  %v2666_v42 = vadd.f32 %v9394_v48, %v2327_v60  ;;  %v9400_v48 = vld [vmem:[#allocation21_spill] sm:$0xff] }
 0x61f   :  { %v3624_v51 = vpop.permute.xlu0 %3623  ;;  %v2995_v8 = vadd.f32 %v2987_v1, %v2665_v16  ;;  %v3432_v47 = vadd.f32 %v7720_v23, %v2994_v41  ;;  %v2989_v23 = vsel %vm150_vm5, %v9391_v31, %v9396_v49 }
 0x620   :  { %v3671_v36 = vpop.permute.xlu1 %3670  ;;  %v3628_v22 = vsel %vm46_vm1, %v3622_v9, %v3624_v51  ;;  %v2328_v9 = vadd.f32 %v9395_v54, %v2013_v10  ;;  %v2996_v26 = vadd.f32 %v2988_v18, %v2666_v42  ;;  %v9398_v18 = vld [vmem:[#allocation119_spill] sm:$0xff]  ;;  %v502_v42 = vmul.f32 0.031963617, %v9400_v48  ;;  %v9402_v54 = vld [vmem:[#allocation20_spill] sm:$0xff] }
 0x621   :  { %v8119_v17 = vadd.f32 %v3628_v22, %v3405_v58  ;;  %v3433_v32 = vadd.f32 %v7729_v59, %v2995_v8  ;;  %v9397_v59 = vld [vmem:[#allocation150_spill] sm:$0xff]  ;;  %v638_v10 = vsel %vm46_vm1, %v9399_v43, %v9398_v18  ;;  %v9410_v48 = vld [vmem:[#allocation96_spill] sm:$0xff] }
 0x622   :  { %v2667_v53 = vadd.f32 %v9397_v59, %v2328_v9  ;;  %v3434_v4 = vadd.f32 %v7743_v63, %v2996_v26 }
 0x623   :  { %v3673_v45 = vpop.permute.xlu0 %3672 }
 0x624   :  { %v3675_v29 = vpop.permute.xlu1 %3674  ;;  %v3682_v11 = vsel %vm46_vm1, %v3671_v36, %v3673_v45  ;;  %v2997_v61 = vadd.f32 %v2989_v23, %v2667_v53  ;;  %v9403_v23 = vld [vmem:[#allocation47_spill] sm:$0xff]  ;;  %v9404_v53 = vld [vmem:[#allocation42_spill] sm:$0xff] }
 0x625   :  { %v3683_v37 = vsel %vm46_vm1, %v3673_v45, %v3675_v29  ;;  %v3690_v28 = vadd.f32 %v3682_v11, %v3432_v47  ;;  %v8129_v27 = vadd.f32 %v3682_v11, %v7737_v40  ;;  %v646_v45 = vadd.f32 %v638_v10, %v502_v42  ;;  %v9409_v10 = vld [vmem:[#allocation94_spill] sm:$0xff] }
 0x626   :  { %v3691_v24 = vadd.f32 %v3683_v37, %v3433_v32  ;;  %v8132_v14 = vadd.f32 %v3683_v37, %v7740_v34  ;;  %v3435_v34 = vadd.f32 %v7763_v38, %v2997_v61  ;;  %v9401_v32 = vld [vmem:[#allocation59_spill] sm:$0xff] }
 0x627   :  { %v3677_v1 = vpop.permute.xlu0 %3676  ;;  %v946_v59 = vadd.f32 %v9403_v23, %v646_v45 }
 0x628   :  { %v3679_v25 = vpop.permute.xlu1 %3678 }
 0x629   :  { %v3684_v0 = vsel %vm46_vm1, %v3677_v1, %v3679_v25 }
 0x62a   :  { %v3692_v7 = vadd.f32 %v3684_v0, %v3434_v4  ;;  %v8141_v40 = vadd.f32 %v3684_v0, %v7752_v13 }
 0x62b   :  { %v3681_v57 = vpop.permute.xlu0 %3680 }
 0x62c   :  { %v8143_v52 = vpop.permute.xlu1 %3727  ;;  %v3685_v16 = vsel %vm46_vm1, %v3679_v25, %v3681_v57  ;;  %v9405_v25 = vld [vmem:[#allocation74_spill] sm:$0xff] }
 0x62d   :  { %v8147_v36 = vadd.f32 %v3685_v16, %v3435_v34  ;;  %v8150_v58 = vadd.f32 %v3685_v16, %v7768_v33  ;;  %v1160_v4 = vsel %vm1087_vm8, %v9405_v25, %v9404_v53 }
 0x62f   :  { %v8154_v51 = vpop.permute.xlu0 %3729 }
 0x630   :  { %v8152_v63 = vpop.permute.xlu1 %3731 }
 0x633   :  { %v8158_v13 = vpop.permute.xlu0 %3733 }
 0x634   :  { %v8156_v21 = vpop.permute.xlu1 %3735 }
 0x638   :  { %v3911_v3 = vpop.permute.xlu1 %3910 }
 0x639   :  { %v3738_v60 = vpop.permute.xlu0 %3737 }
 0x63a   :  { %v3742_v38 = vsel %vm46_vm1, %v8156_v21, %v3738_v60 }
 0x63b   :  { %v8163_v22 = vadd.f32 %v3742_v38, %v7806_v39  ;;  %v8166_v41 = vadd.f32 %v3742_v38, %v7808_v30  ;;  %v639_v39 = vsel %vm46_vm1, %v9398_v18, %v9401_v32  ;;  %v503_v30 = vmul.f32 0.031963617, %v9402_v54 }
 0x63c   :  { %v3915_v33 = vpop.permute.xlu1 %3914  ;;  %v1679_v38 = vmul.f32 0.01604532, %v9298_v55 }
 0x63d   :  { %v3913_v8 = vpop.permute.xlu0 %3912  ;;  %v647_v11 = vadd.f32 %v639_v39, %v503_v30 }
 0x63e   :  { %v8177_v9 = vsel %vm98_vm2, %v3911_v3, %v3913_v8  ;;  %v8180_v26 = vsel %vm98_vm2, %v3913_v8, %v3915_v33  ;;  %v9406_v3 = vld [vmem:[#allocation143_spill] sm:$0xff]  ;;  %v1678_v33 = vmul.f32 0.01604532, %v9299_v6  ;;  %v1168_v8 = vadd.f32 %v1160_v4, %v946_v59 }
 0x63f   :  { %v8194_v61 = vadd.f32 %v8177_v9, %v8078_v56  ;;  %v8198_v34 = vadd.f32 %v8180_v26, %v8080_v12  ;;  %v1161_v60 = vsel %vm1087_vm8, %v9404_v53, %v9406_v3  ;;  %v9407_v12 = vld [vmem:[#allocation33_spill] sm:$0xff]  ;;  %v9413_v3 = vld [vmem:[#allocation110_spill] sm:$0xff] }
 0x640   :  { %v3919_v31 = vpop.permute.xlu1 %3918  ;;  %v947_v18 = vadd.f32 %v9407_v12, %v647_v11  ;;  %v9411_v53 = vld [vmem:[#allocation49_spill] sm:$0xff] }
 0x641   :  { %v3917_v46 = vpop.permute.xlu0 %3916  ;;  %v9412_v25 = vrot.slane %v9411_v53, 1  ;;  %v9422_v53 = vld [vmem:[#allocation145_spill] sm:$0xff] }
 0x642   :  { %v8212_v56 = vsel %vm98_vm2, %v3917_v46, %v3919_v31 }
 0x643   :  { %v8237_v32 = vadd.f32 %v8212_v56, %v8100_v5  ;;  %v1693_v5 = vrot.slane %v1679_v38, 1 }
 0x644   :  { %v3968_v29 = vpop.permute.xlu1 %3967 }
 0x645   :  { %v3921_v47 = vpop.permute.xlu0 %3920  ;;  %v1695_v4 = vsel %vm227_vm3, %v1693_v5, %v9412_v25  ;;  %v9421_v5 = vld [vmem:[#allocation67_spill] sm:$0xff] }
 0x646   :  { %v8250_v54 = vsel %vm98_vm2, %v3919_v31, %v3921_v47 }
 0x647   :  { %v8266_v31 = vadd.f32 %v8250_v54, %v8119_v17 }
 0x648   :  { %v3972_v37 = vpop.permute.xlu1 %3971 }
 0x649   :  { %v3970_v49 = vpop.permute.xlu0 %3969 }
 0x64a   :  { %v8187_v1 = vsel %vm98_vm2, %v3968_v29, %v3970_v49  ;;  %v8190_v0 = vsel %vm98_vm2, %v3970_v49, %v3972_v37  ;;  %v1169_v29 = vadd.f32 %v1161_v60, %v947_v18  ;;  %v9414_v60 = vld [vmem:[#allocation184_spill] sm:$0xff]  ;;  %v9417_v18 = vld [vmem:[#allocation185_spill] sm:$0xff] }
 0x64b   :  { %v8201_v57 = vadd.f32 %v8187_v1, %v3690_v28  ;;  %v8204_v16 = vadd.f32 %v8190_v0, %v3691_v24  ;;  %v9408_v24 = vld [vmem:[#allocation170_spill] sm:$0xff]  ;;  %v2060_v38 = vsel %vm46_vm1, %v9414_v60, %v9413_v3  ;;  %v2059_v17 = vsel %vm46_vm1, %v9417_v18, %v9414_v60  ;;  %v9423_v60 = vld [vmem:[#allocation123_spill] sm:$0xff] }
 0x64c   :  { %v3976_v43 = vpop.permute.xlu1 %3975  ;;  %v1471_v55 = vsel %vm150_vm5, %v9409_v10, %v9408_v24  ;;  %v1472_v6 = vsel %vm150_vm5, %v9408_v24, %v9410_v48 }
 0x64d   :  { %v3974_v28 = vpop.permute.xlu0 %3973  ;;  %vm4068_vm6 = vcmp.gt.f32.partialorder %v8201_v57, %v8194_v61  ;;  %vm4069_vm9 = vcmp.gt.f32.partialorder %v8204_v16, %v8198_v34  ;;  %v1479_v30 = vadd.f32 %v1471_v55, %v1168_v8  ;;  %v1480_v11 = vadd.f32 %v1472_v6, %v1169_v29  ;;  %v9418_v6 = vld [vmem:[#allocation244_spill] sm:$0xff]  ;;  %v9419_v29 = vld [vmem:[#allocation241_spill] sm:$0xff] }
 0x64e   :  { %v8226_v46 = vsel %vm98_vm2, %v3974_v28, %v3976_v43  ;;  %v8233_v42 = vsel %vm4068_vm6, %v8201_v57, %v8194_v61  ;;  %v8247_v45 = vsel %vm4069_vm9, %v8204_v16, %v8198_v34  ;;  %v9427_v57 = vld [vmem:[#allocation160_spill] sm:$0xff] }
 0x64f   :  { %v8240_v39 = vadd.f32 %v8226_v46, %v3692_v7  ;;  %v1690_v7 = vrot.slane %v1678_v33, 1  ;;  %v9415_v33 = vld [vmem:[#allocation281_spill] sm:$0xff] }
 0x650   :  { %v3785_v37 = vpop.permute.xlu1 %3784  ;;  %v9416_v8 = vrot.slane %v9415_v33, 1  ;;  %v9424_v33 = vld [vmem:[#allocation122_spill] sm:$0xff] }
 0x651   :  { %v3978_v49 = vpop.permute.xlu0 %3977  ;;  %vm4070_vm10 = vcmp.gt.f32.partialorder %v8240_v39, %v8237_v32 }
 0x652   :  { %v8255_v23 = vsel %vm98_vm2, %v3976_v43, %v3978_v49  ;;  %v8262_v59 = vsel %vm4070_vm10, %v8240_v39, %v8237_v32  ;;  %v1692_v12 = vsel %vm227_vm3, %v1690_v7, %v9416_v8  ;;  %v1705_v43 = vadd.f32 %v1695_v4, %v1480_v11  ;;  %v9420_v11 = vld [vmem:[#allocation243_spill] sm:$0xff] }
 0x653   :  { %v8270_v47 = vadd.f32 %v8255_v23, %v8147_v36  ;;  %v1704_v28 = vadd.f32 %v1692_v12, %v1479_v30  ;;  %v2713_v49 = vsel %vm1087_vm8, %v9419_v29, %v9418_v6  ;;  %v2714_v30 = vsel %vm1087_vm8, %v9418_v6, %v9420_v11  ;;  %v9429_v39 = vld [vmem:[#allocation167_spill] sm:$0xff] }
 0x654   :  { %v3789_v36 = vpop.permute.xlu1 %3788  ;;  %v2068_v55 = vadd.f32 %v2060_v38, %v1705_v43  ;;  %v3043_v8 = vsel %vm150_vm5, %v9424_v33, %v9423_v60  ;;  %v9425_v38 = vld [vmem:[#allocation124_spill] sm:$0xff]  ;;  %v3739_v11 = vsel %vm46_vm1, %v8143_v52, %v8154_v51  ;;  %v4187_v33 = vmov 0.0  }
 0x655   :  { %v3787_v24 = vpop.permute.xlu0 %3786  ;;  %vm4071_vm11 = vcmp.gt.f32.partialorder %v8270_v47, %v8266_v31  ;;  %v2067_v48 = vadd.f32 %v2059_v17, %v1704_v28  ;;  %v3044_v12 = vsel %vm150_vm5, %v9423_v60, %v9425_v38 }
 0x656   :  { %v8291_v10 = vsel %vm4071_vm11, %v8270_v47, %v8266_v31  ;;  %v2383_v25 = vadd.f32 %v9422_v53, %v2068_v55  ;;  %v3796_v6 = vsel %vm46_vm1, %v3785_v37, %v3787_v24  ;;  %v8320_v37 = vsel %vm46_vm1, %v8158_v13, %v8156_v21 }
 0x657   :  { %v2382_v7 = vadd.f32 %v9421_v5, %v2067_v48  ;;  %v3797_v48 = vsel %vm46_vm1, %v3787_v24, %v3789_v36  ;;  %v3740_v5 = vsel %vm46_vm1, %v8154_v51, %v8152_v63  ;;  %v3804_v36 = vadd.f32 %v3796_v6, %v7824_v20 }
 0x658   :  { %v3793_v4 = vpop.permute.xlu1 %3792  ;;  %v2722_v17 = vadd.f32 %v2714_v30, %v2383_v25  ;;  %v3805_v24 = vadd.f32 %v3797_v48, %v7827_v19  ;;  %v3866_v32 = vadd.f32 %v3797_v48, %v7833_v35  ;;  %v9431_v48 = vld [vmem:[#allocation87_spill] sm:$0xff] }
 0x659   :  { %v3791_v3 = vpop.permute.xlu0 %3790  ;;  %v2721_v18 = vadd.f32 %v2713_v49, %v2382_v7  ;;  %v4048_v19 = vadd.f32 %v8187_v1, %v3804_v36 }
 0x65a   :  { %v3052_v28 = vadd.f32 %v3044_v12, %v2722_v17  ;;  %v3798_v60 = vsel %vm46_vm1, %v3791_v3, %v3793_v4  ;;  %v4049_v13 = vadd.f32 %v8190_v0, %v3805_v24  ;;  %v4072_v3 = vsel %vm4068_vm6, 1.0, %v4187_v33 }
 0x65b   :  { %v3051_v43 = vadd.f32 %v3043_v8, %v2721_v18  ;;  %v4073_v8 = vsel %vm4069_vm9, 1.0, %v4187_v33  ;;  %v3806_v38 = vadd.f32 %v3798_v60, %v7840_v15  ;;  %v3869_v15 = vadd.f32 %v3739_v11, %v9427_v57 }
 0x65c   :  { %v4025_v29 = vpop.permute.xlu1 %4024  ;;  %v3463_v49 = vadd.f32 %v7780_v62, %v3052_v28  ;;  %v9426_v62 = vld [vmem:[#allocation166_spill] sm:$0xff] }
 0x65d   :  { %v3795_v55 = vpop.permute.xlu0 %3794  ;;  %v3462_v53 = vadd.f32 %v7771_v2, %v3051_v43  ;;  %v3749_v51 = vadd.f32 %v8320_v37, %v9426_v62 }
 0x65e   :  { %v3748_v7 = vadd.f32 %v3740_v5, %v3463_v49  ;;  %v3799_v12 = vsel %vm46_vm1, %v3793_v4, %v3795_v55 }
 0x65f   :  { %v3747_v30 = vadd.f32 %v3739_v11, %v3462_v53  ;;  %v9428_v53 = vld [vmem:[#allocation88_spill] sm:$0xff]  ;;  %v3807_v36 = vadd.f32 %v3799_v12, %v7846_v50  ;;  %v4075_v50 = vsel %vm4071_vm11, 1.0, %v4187_v33 }
 0x660   :  { %v4029_v52 = vpop.permute.xlu1 %4028  ;;  %v3870_v49 = vadd.f32 %v3740_v5, %v9428_v53 }
 0x661   :  { %v4027_v25 = vpop.permute.xlu0 %4026 }
 0x662   :  { %v8326_v63 = vsel %vm98_vm2, %v4025_v29, %v4027_v25  ;;  %v8329_v2 = vsel %vm98_vm2, %v4027_v25, %v4029_v52 }
 0x663   :  { %v4044_v21 = vadd.f32 %v8326_v63, %v3747_v30  ;;  %v4045_v20 = vadd.f32 %v8329_v2, %v3748_v7 }
 0x664   :  { %v4033_v18 = vpop.permute.xlu1 %4032 }
 0x665   :  { %vm4080_vm3 = vcmp.gt.f32.partialorder %v4044_v21, %v8233_v42  ;;  %vm4081_vm5 = vcmp.gt.f32.partialorder %v4045_v20, %v8247_v45  ;;  %v4031_v17 = vpop.permute.xlu0 %4030 }
 0x666   :  { %v4084_v43 = vsel %vm4080_vm3, 2.0, %v4072_v3  ;;  %v4085_v28 = vsel %vm4081_vm5, 2.0, %v4073_v8  ;;  %v4088_v29 = vsel %vm4080_vm3, %v4044_v21, %v8233_v42  ;;  %v4089_v61 = vsel %vm4081_vm5, %v4045_v20, %v8247_v45 }
 0x667   :  { %vm4092_vm12 = vcmp.gt.f32.partialorder %v4048_v19, %v4088_v29  ;;  %vm4093_vm13 = vcmp.gt.f32.partialorder %v4049_v13, %v4089_v61  ;;  %v4038_v34 = vsel %vm98_vm2, %v4031_v17, %v4033_v18  ;;  %v4050_v42 = vadd.f32 %v8226_v46, %v3806_v38 }
 0x668   :  { %v4096_v16 = vsel %vm4092_vm12, 3.0, %v4084_v43  ;;  %v4097_v4 = vsel %vm4093_vm13, 3.0, %v4085_v28  ;;  %v4046_v55 = vadd.f32 %v4038_v34, %v3749_v51  ;;  %v3842_v24 = vpop.permute.xlu1 %3841  ;;  %v4100_v7 = vsel %vm4092_vm12, %v4048_v19, %v4088_v29 }
 0x669   :  { %v4035_v30 = vpop.permute.xlu0 %4034  ;;  %v4101_v52 = vsel %vm4093_vm13, %v4049_v13, %v4089_v61  ;;  %v4074_v45 = vsel %vm4070_vm10, 1.0, %v4187_v33  ;;  %v3865_v51 = vadd.f32 %v3796_v6, %v7830_v44  ;;  %v3867_v21 = vadd.f32 %v3798_v60, %v9429_v39  ;;  %v9430_v6 = vld [vmem:[#allocation86_spill] sm:$0xff] }
 0x66a   :  { %vm4082_vm14 = vcmp.gt.f32.partialorder %v4046_v55, %v8262_v59  ;;  %v8359_v11 = vsel %vm98_vm2, %v4033_v18, %v4035_v30  ;;  %v4051_v20 = vadd.f32 %v8255_v23, %v3807_v36  ;;  %v3871_v35 = vadd.f32 %v8320_v37, %v9430_v6  ;;  %v9432_v33 = vld [vmem:[#allocation162_spill] sm:$0xff] }
 0x66b   :  { %v4086_v25 = vsel %vm4082_vm14, 2.0, %v4074_v45  ;;  %v4090_v5 = vsel %vm4082_vm14, %v4046_v55, %v8262_v59  ;;  %v4047_v62 = vadd.f32 %v8359_v11, %v8163_v22  ;;  %v4064_v38 = vadd.f32 %v8187_v1, %v8129_v27  ;;  %v9433_v27 = vld [vmem:[#allocation85_spill] sm:$0xff] }
 0x66c   :  { %vm4094_vm15 = vcmp.gt.f32.partialorder %v4050_v42, %v4090_v5  ;;  %v3846_v59 = vpop.permute.xlu1 %3845  ;;  %v4065_v18 = vadd.f32 %v8190_v0, %v8132_v14  ;;  %v4056_v43 = vadd.f32 %v8187_v1, %v3865_v51  ;;  %v4057_v28 = vadd.f32 %v8190_v0, %v3866_v32  ;;  %v9434_v1 = vld [vmem:[#allocation84_spill] sm:$0xff] }
 0x66d   :  { %v4098_v19 = vsel %vm4094_vm15, 3.0, %v4086_v25  ;;  %vm4083_vm2 = vcmp.gt.f32.partialorder %v4047_v62, %v8291_v10  ;;  %v3844_v13 = vpop.permute.xlu0 %3843  ;;  %v4102_v3 = vsel %vm4094_vm15, %v4050_v42, %v4090_v5  ;;  %v4058_v55 = vadd.f32 %v8226_v46, %v3867_v21 }
 0x66e   :  { %v4087_v31 = vsel %vm4083_vm2, 2.0, %v4075_v50  ;;  %v4091_v47 = vsel %vm4083_vm2, %v4047_v62, %v8291_v10  ;;  %v3853_v22 = vsel %vm46_vm1, %v3842_v24, %v3844_v13  ;;  %v3854_v44 = vsel %vm46_vm1, %v3844_v13, %v3846_v59 }
 0x66f   :  { %vm4095_vm4 = vcmp.gt.f32.partialorder %v4051_v20, %v4091_v47  ;;  %v3861_v60 = vadd.f32 %v3853_v22, %v9431_v48  ;;  %v3862_v8 = vadd.f32 %v3854_v44, %v9432_v33  ;;  %v3868_v53 = vadd.f32 %v3799_v12, %v9433_v27 }
 0x670   :  { %v8383_v17 = vsel %vm4095_vm4, 3.0, %v4087_v31  ;;  %v8385_v10 = vsel %vm4095_vm4, %v4051_v20, %v4091_v47  ;;  %v3850_v61 = vpop.permute.xlu1 %3849  ;;  %v4060_v14 = vadd.f32 %v8326_v63, %v3869_v15  ;;  %v4061_v24 = vadd.f32 %v8329_v2, %v3870_v49  ;;  %v9435_v20 = vld [vmem:[#allocation163_spill] sm:$0xff] }
 0x671   :  { %v4052_v37 = vadd.f32 %v8177_v9, %v3861_v60  ;;  %v4053_v29 = vadd.f32 %v8180_v26, %v3862_v8  ;;  %v3848_v57 = vpop.permute.xlu0 %3847  ;;  %v4062_v45 = vadd.f32 %v4038_v34, %v3871_v35  ;;  %v4059_v44 = vadd.f32 %v8255_v23, %v3868_v53 }
 0x672   :  { %v3855_v36 = vsel %vm46_vm1, %v3848_v57, %v3850_v61  ;;  %v4063_v48 = vadd.f32 %v8359_v11, %v8166_v41  ;;  %v4067_v8 = vadd.f32 %v8255_v23, %v8150_v58 }
 0x673   :  { %vm4104_vm0 = vcmp.gt.f32.partialorder %v4052_v37, %v4100_v7  ;;  %vm4105_vm7 = vcmp.gt.f32.partialorder %v4053_v29, %v4101_v52  ;;  %v3863_v0 = vadd.f32 %v3855_v36, %v9434_v1 }
 0x674   :  { %v4108_v30 = vsel %vm4104_vm0, 4.0, %v4096_v16  ;;  %v4109_v9 = vsel %vm4105_vm7, 4.0, %v4097_v4  ;;  %v4112_v42 = vsel %vm4104_vm0, %v4052_v37, %v4100_v7  ;;  %v4113_v26 = vsel %vm4105_vm7, %v4053_v29, %v4101_v52 }
 0x675   :  { %vm4116_vm8 = vcmp.gt.f32.partialorder %v4056_v43, %v4112_v42  ;;  %vm4117_vm6 = vcmp.gt.f32.partialorder %v4057_v28, %v4113_v26  ;;  %v4054_v25 = vadd.f32 %v8212_v56, %v3863_v0  ;;  %v3852_v12 = vpop.permute.xlu0 %3851 }
 0x676   :  { %v4120_v5 = vsel %vm4116_vm8, 5.0, %v4108_v30  ;;  %v4121_v63 = vsel %vm4117_vm6, 5.0, %v4109_v9  ;;  %v4124_v15 = vsel %vm4116_vm8, %v4056_v43, %v4112_v42  ;;  %v4125_v50 = vsel %vm4117_vm6, %v4057_v28, %v4113_v26 }
 0x677   :  { %vm4128_vm9 = vcmp.gt.f32.partialorder %v4060_v14, %v4124_v15  ;;  %vm4129_vm10 = vcmp.gt.f32.partialorder %v4061_v24, %v4125_v50  ;;  %vm4106_vm11 = vcmp.gt.f32.partialorder %v4054_v25, %v4102_v3  ;;  %v3856_v2 = vsel %vm46_vm1, %v3850_v61, %v3852_v12 }
 0x678   :  { %v4132_v49 = vsel %vm4128_vm9, 6.0, %v4120_v5  ;;  %v4133_v16 = vsel %vm4129_vm10, 6.0, %v4121_v63  ;;  %v4136_v4 = vsel %vm4128_vm9, %v4060_v14, %v4124_v15  ;;  %v4137_v7 = vsel %vm4129_vm10, %v4061_v24, %v4125_v50 }
 0x679   :  { %vm4140_vm3 = vcmp.gt.f32.partialorder %v4064_v38, %v4136_v4  ;;  %vm4141_vm5 = vcmp.gt.f32.partialorder %v4065_v18, %v4137_v7  ;;  %v4110_v34 = vsel %vm4106_vm11, 4.0, %v4098_v19  ;;  %v4114_v52 = vsel %vm4106_vm11, %v4054_v25, %v4102_v3 }
 0x67a   :  { %v4144_v62 = vsel %vm4140_vm3, 7.0, %v4132_v49  ;;  %v4145_v56 = vsel %vm4141_vm5, 7.0, %v4133_v16  ;;  %v4148_v51 = vsel %vm4140_vm3, %v4064_v38, %v4136_v4  ;;  %v4149_v32 = vsel %vm4141_vm5, %v4065_v18, %v4137_v7 }
 0x67b   :  { %4152 = vst [vmem:[%s8436_s1] sm:$0xff] %v4148_v51  ;;  %4153 = vst [vmem:[%s8436_s1 + $0x8] sm:$0xff] %v4149_v32  ;;  %v4156_v39 = vmul.f32 0.125, %v4144_v62  ;;  %v4157_v21 = vmul.f32 0.125, %v4145_v56  ;;  %vm4118_vm1 = vcmp.gt.f32.partialorder %v4058_v55, %v4114_v52  ;;  %v3864_v59 = vadd.f32 %v3856_v2, %v9435_v20 }
 0x67c   :  { %v4122_v13 = vsel %vm4118_vm1, 5.0, %v4110_v34  ;;  %v4126_v19 = vsel %vm4118_vm1, %v4058_v55, %v4114_v52  ;;  %v4066_v3 = vadd.f32 %v8226_v46, %v8141_v40 }
 0x67d   :  { %4160 = vst [vmem:[%s8437_s2] sm:$0xff] %v4156_v39  ;;  %4161 = vst [vmem:[%s8437_s2 + $0x8] sm:$0xff] %v4157_v21  ;;  %vm4130_vm12 = vcmp.gt.f32.partialorder %v4062_v45, %v4126_v19  ;;  %v4055_v31 = vadd.f32 %v8250_v54, %v3864_v59 }
 0x67e   :  { %v4134_v47 = vsel %vm4130_vm12, 6.0, %v4122_v13  ;;  %v4138_v22 = vsel %vm4130_vm12, %v4062_v45, %v4126_v19 }
 0x67f   :  { %vm4142_vm13 = vcmp.gt.f32.partialorder %v4066_v3, %v4138_v22  ;;  %vm4107_vm14 = vcmp.gt.f32.partialorder %v4055_v31, %v8385_v10 }
 0x680   :  { %v4146_v6 = vsel %vm4142_vm13, 7.0, %v4134_v47  ;;  %v4150_v40 = vsel %vm4142_vm13, %v4066_v3, %v4138_v22  ;;  %v4111_v46 = vsel %vm4107_vm14, 4.0, %v8383_v17  ;;  %v4115_v35 = vsel %vm4107_vm14, %v4055_v31, %v8385_v10 }
 0x681   :  { %4154 = vst [vmem:[%s8436_s1 + $0x10] sm:$0xff] %v4150_v40  ;;  %v4158_v54 = vmul.f32 0.125, %v4146_v6  ;;  %vm4119_vm15 = vcmp.gt.f32.partialorder %v4059_v44, %v4115_v35 }
 0x682   :  { %v4123_v60 = vsel %vm4119_vm15, 5.0, %v4111_v46  ;;  %v4127_v33 = vsel %vm4119_vm15, %v4059_v44, %v4115_v35 }
 0x683   :  { %4162 = vst [vmem:[%s8437_s2 + $0x10] sm:$0xff] %v4158_v54  ;;  %vm4131_vm2 = vcmp.gt.f32.partialorder %v4063_v48, %v4127_v33 }
 0x684   :  { %v4135_v38 = vsel %vm4131_vm2, 6.0, %v4123_v60  ;;  %v4139_v18 = vsel %vm4131_vm2, %v4063_v48, %v4127_v33 }
 0x685   :  { %vm4143_vm4 = vcmp.gt.f32.partialorder %v4067_v8, %v4139_v18 }
 0x686   :  { %v4147_v41 = vsel %vm4143_vm4, 7.0, %v4135_v38  ;;  %v4151_v11 = vsel %vm4143_vm4, %v4067_v8, %v4139_v18 }
 0x687   :  { %4155 = vst [vmem:[%s8436_s1 + $0x18] sm:$0xff] %v4151_v11  ;;  %v4159_v17 = vmul.f32 0.125, %v4147_v41 }
 0x689   :  { %4163 = vst [vmem:[%s8437_s2 + $0x18] sm:$0xff] %v4159_v17 }

</bundles_post_ra>
